<compile_context>
chip_gen: v5e
topology: v5e:2x2
jax: 0.10.0
libtpu: 0.0.40
codegen_flags: <defaults>
</compile_context>

<pallas_src>
import functools

import jax
import jax.numpy as jnp
from jax.experimental import pallas as pl
from jax.experimental.pallas import tpu as pltpu


# Weights + activations for the default shapes are ~4 MB; 32 MiB is safe on
# v5e/v6e (128 MiB physical) and v7x (64 MiB physical).
_VMEM_LIMIT = 32 * 1024 * 1024


# ----------------------------------------------------------------------------
# Single fused whole-model kernel (one grid step == one batch element)
# ----------------------------------------------------------------------------
def _transformer_kernel(
    x_ref, pe_ref, enc_w_ref, enc_b_ref,
    w_qkv_ref, b_qkv_ref, w_out_ref, b_out_ref, ln1_g_ref, ln1_b_ref,
    w_ff1_ref, b_ff1_ref, w_ff2_ref, b_ff2_ref, ln2_g_ref, ln2_b_ref,
    dec_w_ref, dec_b_ref, o_ref,
    *, n_layers, n_heads, d_model, head_pad, seq_len,
):
    S, D, H, P = seq_len, d_model, n_heads, head_pad

    def layer_norm(y, g, b):
        mean = jnp.mean(y, axis=-1, keepdims=True)
        c = y - mean
        var = jnp.mean(c * c, axis=-1, keepdims=True)
        return c * jax.lax.rsqrt(var + 1e-5) * g + b

    # Input encoder + positional encoding.  pe_ref holds the PE row selected by
    # the *batch* index (reproducing the PyTorch batch_first quirk), broadcast
    # over the sequence.
    x = x_ref[0].astype(jnp.bfloat16)                                  # [S, In]
    h = (jnp.dot(x, enc_w_ref[...], preferred_element_type=jnp.float32)
         + enc_b_ref[...] + pe_ref[0])                                 # [S, D] f32

    for l in range(n_layers):
        # ---- multi-head self-attention (head-padded, q pre-scaled) ----
        hb = h.astype(jnp.bfloat16)
        qkv = (jnp.dot(hb, w_qkv_ref[l], preferred_element_type=jnp.float32)
               + b_qkv_ref[l]).astype(jnp.bfloat16)                    # [S, 3*H*P]
        proj = jnp.zeros((S, D), jnp.float32)
        for hd in range(H):
            q = qkv[:, hd * P:(hd + 1) * P]                 # 128-lane aligned
            k = qkv[:, (H + hd) * P:(H + hd + 1) * P]
            v = qkv[:, (2 * H + hd) * P:(2 * H + hd + 1) * P]
            s = jax.lax.dot_general(
                q, k, (((1,), (1,)), ((), ())),
                preferred_element_type=jnp.float32)                    # [S, S]
            m = jnp.max(s, axis=-1, keepdims=True)
            p = jnp.exp(s - m)
            p = p * pl.reciprocal(jnp.sum(p, axis=-1, keepdims=True), approx=True)
            o_h = jnp.dot(p.astype(jnp.bfloat16), v,
                          preferred_element_type=jnp.float32)          # [S, P]
            # Head-merge is folded into the zero-row-padded out-projection:
            # no concat / unaligned lane slices.
            proj = proj + jnp.dot(o_h.astype(jnp.bfloat16),
                                  w_out_ref[l, hd * P:(hd + 1) * P, :],
                                  preferred_element_type=jnp.float32)
        h = layer_norm(h + proj + b_out_ref[l], ln1_g_ref[l], ln1_b_ref[l])

        # ---- feed-forward (ReLU), residual + LayerNorm ----
        hb = h.astype(jnp.bfloat16)
        ff = (jnp.dot(hb, w_ff1_ref[l], preferred_element_type=jnp.float32)
              + b_ff1_ref[l])
        ff = jnp.maximum(ff, 0.0).astype(jnp.bfloat16)                 # [S, F]
        z = (h + jnp.dot(ff, w_ff2_ref[l], preferred_element_type=jnp.float32)
             + b_ff2_ref[l])
        h = layer_norm(z, ln2_g_ref[l], ln2_b_ref[l])

    # Decoder on the last sequence position; lane-dense padded store.
    last = h[S - 1:S, :].astype(jnp.bfloat16)                          # [1, D]
    out = (jnp.dot(last, dec_w_ref[...], preferred_element_type=jnp.float32)
           + dec_b_ref[...])
    o_ref[0] = out.astype(o_ref.dtype)


def transformer_forward(x, packed, *, n_heads, out_size):
    """x: [B, S, input_size] f32 -> [B, out_size] f32."""
    B, S, In = x.shape
    D = packed["enc_w"].shape[1]
    L = packed["w_qkv"].shape[0]
    H = n_heads
    P = packed["w_qkv"].shape[2] // (3 * H)
    F = packed["w_ff1"].shape[2]
    OutP = packed["dec_w"].shape[1]

    # PE row per batch element (PyTorch quirk), broadcast over seq in-kernel.
    pe_b = packed["pe"][:B].reshape(B, 1, D).astype(jnp.float32)

    operands = [
        x.astype(jnp.float32), pe_b,
        packed["enc_w"], packed["enc_b"],
        packed["w_qkv"], packed["b_qkv"], packed["w_out"], packed["b_out"],
        packed["ln1_g"], packed["ln1_b"],
        packed["w_ff1"], packed["b_ff1"], packed["w_ff2"], packed["b_ff2"],
        packed["ln2_g"], packed["ln2_b"],
        packed["dec_w"], packed["dec_b"],
    ]

    def _full(a):
        shape = a.shape
        return pl.BlockSpec(shape, lambda *_: (0,) * len(shape))

    in_specs = [
        pl.BlockSpec((1, S, In), lambda b: (b, 0, 0)),   # x (per batch)
        pl.BlockSpec((1, 1, D), lambda b: (b, 0, 0)),    # pe (per batch)
    ] + [_full(a) for a in operands[2:]]                 # weights: resident in VMEM

    flops = (2 * B * S * In * D + 2 * B * D * OutP
             + B * L * (2 * S * D * 3 * H * P + 4 * H * S * S * P
                        + 2 * S * H * P * D + 4 * S * D * F))
    transcendentals = B * L * (H * S * S + 4 * S)
    bytes_accessed = (sum(int(a.size) * a.dtype.itemsize for a in operands)
                      + B * OutP * 4)
    cost = pl.CostEstimate(flops=flops, transcendentals=transcendentals,
                           bytes_accessed=bytes_accessed)

    out = pl.pallas_call(
        functools.partial(_transformer_kernel, n_layers=L, n_heads=H,
                          d_model=D, head_pad=P, seq_len=S),
        out_shape=jax.ShapeDtypeStruct((B, 1, OutP), jnp.float32),
        grid=(B,),
        in_specs=in_specs,
        out_specs=pl.BlockSpec((1, 1, OutP), lambda b: (b, 0, 0)),
        compiler_params=pltpu.CompilerParams(
            dimension_semantics=("parallel",),   # batch split across v7x TCs
            vmem_limit_bytes=_VMEM_LIMIT,
        ),
        cost_estimate=cost,
    )(*operands)
    return out.reshape(B, OutP)[:, :out_size]


# ----------------------------------------------------------------------------
# One-time parameter packing (plain JAX, runs once)
# ----------------------------------------------------------------------------
def make_pos_encoding(max_len, d_model):
    position = jnp.arange(max_len, dtype=jnp.float32)[:, None]
    div_term = jnp.exp(
        jnp.arange(0, d_model, 2, dtype=jnp.float32) * (-jnp.log(10000.0) / d_model)
    )
    pe = jnp.zeros((max_len, d_model), dtype=jnp.float32)
    pe = pe.at[:, 0::2].set(jnp.sin(position * div_term))
    pe = pe.at[:, 1::2].set(jnp.cos(position * div_term))
    return pe  # [max_len, d_model]


def pack_params(params, n_heads):
    """bf16 cast, 128-lane head-padded qkv/out-proj layouts (1/sqrt(Dh) folded
    into q), per-layer stacking, decoder output padded to a 128-lane store."""
    D = params["enc_w"].shape[1]
    H = n_heads
    Dh = D // H
    P = ((Dh + 127) // 128) * 128
    scale = 1.0 / float(Dh) ** 0.5
    out_size = params["dec_w"].shape[1]
    OutP = ((out_size + 127) // 128) * 128
    layers = params["layers"]
    L = len(layers)

    wq_l, bq_l, wo_l = [], [], []
    for p in layers:
        w_in, b_in = p["w_in"], p["b_in"]
        wq, wk, wv = w_in[:, :D], w_in[:, D:2 * D], w_in[:, 2 * D:]
        bq, bk, bv = b_in[:D], b_in[D:2 * D], b_in[2 * D:]
        w_pad = jnp.zeros((D, 3 * H * P), jnp.float32)
        b_pad = jnp.zeros((3 * H * P,), jnp.float32)
        wo_pad = jnp.zeros((H * P, D), jnp.float32)
        for h in range(H):
            sl = slice(h * Dh, (h + 1) * Dh)
            w_pad = w_pad.at[:, h * P:h * P + Dh].set(wq[:, sl] * scale)
            w_pad = w_pad.at[:, (H + h) * P:(H + h) * P + Dh].set(wk[:, sl])
            w_pad = w_pad.at[:, (2 * H + h) * P:(2 * H + h) * P + Dh].set(wv[:, sl])
            b_pad = b_pad.at[h * P:h * P + Dh].set(bq[sl] * scale)
            b_pad = b_pad.at[(H + h) * P:(H + h) * P + Dh].set(bk[sl])
            b_pad = b_pad.at[(2 * H + h) * P:(2 * H + h) * P + Dh].set(bv[sl])
            wo_pad = wo_pad.at[h * P:h * P + Dh, :].set(p["w_out"][sl, :])
        wq_l.append(w_pad); bq_l.append(b_pad); wo_l.append(wo_pad)

    dec_w, dec_b = params["dec_w"], params["dec_b"]
    if OutP != out_size:
        dec_w = jnp.pad(dec_w, ((0, 0), (0, OutP - out_size)))
        dec_b = jnp.pad(dec_b, ((0, OutP - out_size),))

    f32 = jnp.float32
    return {
        "enc_w": params["enc_w"].astype(jnp.bfloat16),
        "enc_b": params["enc_b"].reshape(1, D).astype(f32),
        "pe": params["pe"].astype(f32),
        "w_qkv": jnp.stack(wq_l).astype(jnp.bfloat16),
        "b_qkv": jnp.stack(bq_l).reshape(L, 1, 3 * H * P).astype(f32),
        "w_out": jnp.stack(wo_l).astype(jnp.bfloat16),
        "b_out": jnp.stack([p["b_out"] for p in layers]).reshape(L, 1, D).astype(f32),
        "ln1_g": jnp.stack([p["ln1_g"] for p in layers]).reshape(L, 1, D).astype(f32),
        "ln1_b": jnp.stack([p["ln1_b"] for p in layers]).reshape(L, 1, D).astype(f32),
        "w_ff1": jnp.stack([p["w_ff1"] for p in layers]).astype(jnp.bfloat16),
        "b_ff1": jnp.stack([p["b_ff1"] for p in layers]).reshape(L, 1, -1).astype(f32),
        "w_ff2": jnp.stack([p["w_ff2"] for p in layers]).astype(jnp.bfloat16),
        "b_ff2": jnp.stack([p["b_ff2"] for p in layers]).reshape(L, 1, D).astype(f32),
        "ln2_g": jnp.stack([p["ln2_g"] for p in layers]).reshape(L, 1, D).astype(f32),
        "ln2_b": jnp.stack([p["ln2_b"] for p in layers]).reshape(L, 1, D).astype(f32),
        "dec_w": dec_w.astype(jnp.bfloat16),
        "dec_b": dec_b.reshape(1, OutP).astype(f32),
    }


def init_params(key, input_size, output_size, d_model, n_heads, num_layers, dim_ff):
    def nrm(k, shape, scale=0.02):
        return scale * jax.random.normal(k, shape, dtype=jnp.float32)

    keys = jax.random.split(key, 2 + num_layers)
    params = {
        "enc_w": nrm(keys[0], (input_size, d_model)),
        "enc_b": jnp.zeros((d_model,), jnp.float32),
        "dec_w": nrm(keys[1], (d_model, output_size)),
        "dec_b": jnp.zeros((output_size,), jnp.float32),
        "pe": make_pos_encoding(5000, d_model),
        "layers": [],
    }
    for li in range(num_layers):
        lk = jax.random.split(keys[2 + li], 4)
        params["layers"].append({
            "w_in": nrm(lk[0], (d_model, 3 * d_model)),
            "b_in": jnp.zeros((3 * d_model,), jnp.float32),
            "w_out": nrm(lk[1], (d_model, d_model)),
            "b_out": jnp.zeros((d_model,), jnp.float32),
            "ln1_g": jnp.ones((d_model,), jnp.float32),
            "ln1_b": jnp.zeros((d_model,), jnp.float32),
            "w_ff1": nrm(lk[2], (d_model, dim_ff)),
            "b_ff1": jnp.zeros((dim_ff,), jnp.float32),
            "w_ff2": nrm(lk[3], (dim_ff, d_model)),
            "b_ff2": jnp.zeros((d_model,), jnp.float32),
            "ln2_g": jnp.ones((d_model,), jnp.float32),
            "ln2_b": jnp.zeros((d_model,), jnp.float32),
        })
    return params


# ----------------------------------------------------------------------------
# Pure-JAX f32 reference (weights quantized to bf16, like the kernel)
# ----------------------------------------------------------------------------
def _ln_ref(y, g, b, eps=1e-5):
    mean = jnp.mean(y, axis=-1, keepdims=True)
    var = jnp.mean((y - mean) ** 2, axis=-1, keepdims=True)
    return (y - mean) * jax.lax.rsqrt(var + eps) * g + b


def reference_forward(x, params, n_heads):
    w = lambda a: a.astype(jnp.bfloat16).astype(jnp.float32)
    B, S, _ = x.shape
    D = params["enc_w"].shape[1]
    H = n_heads
    Dh = D // H
    h = x @ w(params["enc_w"]) + params["enc_b"]
    h = h + params["pe"][:B][:, None, :]
    for p in params["layers"]:
        qkv = h @ w(p["w_in"]) + p["b_in"]
        q, k, v = qkv[..., :D], qkv[..., D:2 * D], qkv[..., 2 * D:]
        q = q.reshape(B, S, H, Dh).transpose(0, 2, 1, 3)
        k = k.reshape(B, S, H, Dh).transpose(0, 2, 1, 3)
        v = v.reshape(B, S, H, Dh).transpose(0, 2, 1, 3)
        s = jnp.einsum("bhqd,bhkd->bhqk", q, k) / (float(Dh) ** 0.5)
        a = jax.nn.softmax(s, axis=-1)
        o = jnp.einsum("bhqk,bhkd->bhqd", a, v).transpose(0, 2, 1, 3).reshape(B, S, D)
        h = _ln_ref(h + o @ w(p["w_out"]) + p["b_out"], p["ln1_g"], p["ln1_b"])
        ff = jax.nn.relu(h @ w(p["w_ff1"]) + p["b_ff1"])
        h = _ln_ref(h + ff @ w(p["w_ff2"]) + p["b_ff2"], p["ln2_g"], p["ln2_b"])
    return h[:, -1, :] @ w(params["dec_w"]) + params["dec_b"]


if __name__ == "__main__":
    # Small shapes consistent with the module defaults.
    B, S = 2, 8
    INPUT_SIZE, OUTPUT_SIZE = 16, 8
    D_MODEL, N_HEADS, NUM_LAYERS = 128, 4, 2
    DIM_FF = 2048  # nn.TransformerEncoderLayer default dim_feedforward

    key = jax.random.PRNGKey(0)
    kx, kp = jax.random.split(key)
    x = jax.random.normal(kx, (B, S, INPUT_SIZE), dtype=jnp.float32)
    params = init_params(kp, INPUT_SIZE, OUTPUT_SIZE, D_MODEL, N_HEADS,
                         NUM_LAYERS, DIM_FF)
    packed = pack_params(params, N_HEADS)

    fwd = jax.jit(functools.partial(transformer_forward, n_heads=N_HEADS,
                                    out_size=OUTPUT_SIZE))
    out = fwd(x, packed)
    jax.block_until_ready(out)

    assert out.shape == (B, OUTPUT_SIZE)
    assert bool(jnp.all(jnp.isfinite(out)))
    ref = reference_forward(x, params, N_HEADS)
    max_err = float(jnp.max(jnp.abs(out - ref)))
    assert max_err < 5e-2, max_err
    print("KERNEL_OK")
</pallas_src>

<mosaic_0001>
module attributes {stable_mosaic.version = 11 : i64} {
  func.func @_transformer_kernel(%arg0: i32, %arg1: memref<1x8x16xf32, #tpu.memory_space<vmem>>, %arg2: memref<1x1x128xf32, #tpu.memory_space<vmem>>, %arg3: memref<16x128xbf16, #tpu.memory_space<vmem>>, %arg4: memref<1x128xf32, #tpu.memory_space<vmem>>, %arg5: memref<2x128x1536xbf16, #tpu.memory_space<vmem>>, %arg6: memref<2x1x1536xf32, #tpu.memory_space<vmem>>, %arg7: memref<2x512x128xbf16, #tpu.memory_space<vmem>>, %arg8: memref<2x1x128xf32, #tpu.memory_space<vmem>>, %arg9: memref<2x1x128xf32, #tpu.memory_space<vmem>>, %arg10: memref<2x1x128xf32, #tpu.memory_space<vmem>>, %arg11: memref<2x128x2048xbf16, #tpu.memory_space<vmem>>, %arg12: memref<2x1x2048xf32, #tpu.memory_space<vmem>>, %arg13: memref<2x2048x128xbf16, #tpu.memory_space<vmem>>, %arg14: memref<2x1x128xf32, #tpu.memory_space<vmem>>, %arg15: memref<2x1x128xf32, #tpu.memory_space<vmem>>, %arg16: memref<2x1x128xf32, #tpu.memory_space<vmem>>, %arg17: memref<128x128xbf16, #tpu.memory_space<vmem>>, %arg18: memref<1x128xf32, #tpu.memory_space<vmem>>, %arg19: memref<1x1x128xf32, #tpu.memory_space<vmem>>) attributes {dimension_semantics = [#tpu.dimension_semantics<parallel>], iteration_bounds = array<i64: 2>, scalar_prefetch = 0 : i64, scratch_operands = 0 : i64, tpu.core_type = #tpu.core_type<tc>, window_params = [{transform_indices = @transform_0, window_bounds = array<i64: 1, 8, 16>}, {transform_indices = @transform_1, window_bounds = array<i64: 1, 1, 128>}, {pipeline_mode = #tpu.pipeline_mode<synchronous>, transform_indices = @transform_2, window_bounds = array<i64: 16, 128>}, {pipeline_mode = #tpu.pipeline_mode<synchronous>, transform_indices = @transform_3, window_bounds = array<i64: 1, 128>}, {pipeline_mode = #tpu.pipeline_mode<synchronous>, transform_indices = @transform_4, window_bounds = array<i64: 2, 128, 1536>}, {pipeline_mode = #tpu.pipeline_mode<synchronous>, transform_indices = @transform_5, window_bounds = array<i64: 2, 1, 1536>}, {pipeline_mode = #tpu.pipeline_mode<synchronous>, transform_indices = @transform_6, window_bounds = array<i64: 2, 512, 128>}, {pipeline_mode = #tpu.pipeline_mode<synchronous>, transform_indices = @transform_7, window_bounds = array<i64: 2, 1, 128>}, {pipeline_mode = #tpu.pipeline_mode<synchronous>, transform_indices = @transform_8, window_bounds = array<i64: 2, 1, 128>}, {pipeline_mode = #tpu.pipeline_mode<synchronous>, transform_indices = @transform_9, window_bounds = array<i64: 2, 1, 128>}, {pipeline_mode = #tpu.pipeline_mode<synchronous>, transform_indices = @transform_10, window_bounds = array<i64: 2, 128, 2048>}, {pipeline_mode = #tpu.pipeline_mode<synchronous>, transform_indices = @transform_11, window_bounds = array<i64: 2, 1, 2048>}, {pipeline_mode = #tpu.pipeline_mode<synchronous>, transform_indices = @transform_12, window_bounds = array<i64: 2, 2048, 128>}, {pipeline_mode = #tpu.pipeline_mode<synchronous>, transform_indices = @transform_13, window_bounds = array<i64: 2, 1, 128>}, {pipeline_mode = #tpu.pipeline_mode<synchronous>, transform_indices = @transform_14, window_bounds = array<i64: 2, 1, 128>}, {pipeline_mode = #tpu.pipeline_mode<synchronous>, transform_indices = @transform_15, window_bounds = array<i64: 2, 1, 128>}, {pipeline_mode = #tpu.pipeline_mode<synchronous>, transform_indices = @transform_16, window_bounds = array<i64: 128, 128>}, {pipeline_mode = #tpu.pipeline_mode<synchronous>, transform_indices = @transform_17, window_bounds = array<i64: 1, 128>}, {transform_indices = @transform_18, window_bounds = array<i64: 1, 1, 128>}]} {
    %c0 = arith.constant 0 : index
    %c0_0 = arith.constant 0 : index
    %c0_1 = arith.constant 0 : index
    %0 = vector.load %arg1[%c0, %c0_0, %c0_1] : memref<1x8x16xf32, #tpu.memory_space<vmem>>, vector<1x8x16xf32>
    %1 = vector.shape_cast %0 : vector<1x8x16xf32> to vector<8x16xf32>
    %2 = arith.truncf %1 : vector<8x16xf32> to vector<8x16xbf16>
    %c0_2 = arith.constant 0 : index
    %c0_3 = arith.constant 0 : index
    %3 = vector.load %arg3[%c0_2, %c0_3] : memref<16x128xbf16, #tpu.memory_space<vmem>>, vector<16x128xbf16>
    %cst = arith.constant dense<0.000000e+00> : vector<8x128xf32>
    %4 = tpu.matmul %2, %3, %cst {dimension_numbers = #tpu.dot_dimension_numbers<[1], [0], [0], [1], [0, 0, 1, 1], [], []>} : vector<8x16xbf16>, vector<16x128xbf16>, vector<8x128xf32> -> vector<8x128xf32>
    %c0_4 = arith.constant 0 : index
    %c0_5 = arith.constant 0 : index
    %5 = vector.load %arg4[%c0_4, %c0_5] : memref<1x128xf32, #tpu.memory_space<vmem>>, vector<1x128xf32>
    %6 = vector.broadcast %5 : vector<1x128xf32> to vector<8x128xf32>
    %7 = arith.addf %4, %6 : vector<8x128xf32>
    %c0_6 = arith.constant 0 : index
    %c0_7 = arith.constant 0 : index
    %c0_8 = arith.constant 0 : index
    %8 = vector.load %arg2[%c0_6, %c0_7, %c0_8] : memref<1x1x128xf32, #tpu.memory_space<vmem>>, vector<1x1x128xf32>
    %9 = vector.shape_cast %8 : vector<1x1x128xf32> to vector<1x128xf32>
    %10 = vector.broadcast %9 : vector<1x128xf32> to vector<8x128xf32>
    %11 = arith.addf %7, %10 : vector<8x128xf32>
    %12 = arith.truncf %11 : vector<8x128xf32> to vector<8x128xbf16>
    %c0_9 = arith.constant 0 : index
    %c0_10 = arith.constant 0 : index
    %c0_11 = arith.constant 0 : index
    %13 = vector.load %arg5[%c0_9, %c0_10, %c0_11] : memref<2x128x1536xbf16, #tpu.memory_space<vmem>>, vector<1x128x1536xbf16>
    %14 = vector.shape_cast %13 : vector<1x128x1536xbf16> to vector<128x1536xbf16>
    %cst_12 = arith.constant dense<0.000000e+00> : vector<8x1536xf32>
    %15 = tpu.matmul %12, %14, %cst_12 {dimension_numbers = #tpu.dot_dimension_numbers<[1], [0], [0], [1], [0, 0, 1, 1], [], []>} : vector<8x128xbf16>, vector<128x1536xbf16>, vector<8x1536xf32> -> vector<8x1536xf32>
    %c0_13 = arith.constant 0 : index
    %c0_14 = arith.constant 0 : index
    %c0_15 = arith.constant 0 : index
    %16 = vector.load %arg6[%c0_13, %c0_14, %c0_15] : memref<2x1x1536xf32, #tpu.memory_space<vmem>>, vector<1x1x1536xf32>
    %17 = vector.shape_cast %16 : vector<1x1x1536xf32> to vector<1x1536xf32>
    %18 = vector.broadcast %17 : vector<1x1536xf32> to vector<8x1536xf32>
    %19 = arith.addf %15, %18 : vector<8x1536xf32>
    %20 = arith.truncf %19 : vector<8x1536xf32> to vector<8x1536xbf16>
    %cst_16 = arith.constant 0.000000e+00 : f32
    %21 = vector.broadcast %cst_16 : f32 to vector<8x128xf32>
    %22 = vector.extract_strided_slice %20 {offsets = [0, 0], sizes = [8, 128], strides = [1, 1]} : vector<8x1536xbf16> to vector<8x128xbf16>
    %23 = vector.extract_strided_slice %20 {offsets = [0, 512], sizes = [8, 128], strides = [1, 1]} : vector<8x1536xbf16> to vector<8x128xbf16>
    %24 = vector.extract_strided_slice %20 {offsets = [0, 1024], sizes = [8, 128], strides = [1, 1]} : vector<8x1536xbf16> to vector<8x128xbf16>
    %cst_17 = arith.constant dense<0.000000e+00> : vector<8x8xf32>
    %25 = tpu.matmul %22, %23, %cst_17 {dimension_numbers = #tpu.dot_dimension_numbers<[1], [1], [0], [0], [0, 0, 1, 0], [], []>} : vector<8x128xbf16>, vector<8x128xbf16>, vector<8x8xf32> -> vector<8x8xf32>
    %cst_18 = arith.constant dense<0xFF800000> : vector<8xf32>
    %26 = vector.multi_reduction <maximumf>, %25, %cst_18 [1] : vector<8x8xf32> to vector<8xf32>
    %27 = vector.shape_cast %26 : vector<8xf32> to vector<8x1xf32>
    %28 = vector.broadcast %27 : vector<8x1xf32> to vector<8x8xf32>
    %29 = arith.subf %25, %28 : vector<8x8xf32>
    %30 = math.exp %29 : vector<8x8xf32>
    %cst_19 = arith.constant dense<0.000000e+00> : vector<8xf32>
    %31 = vector.multi_reduction <add>, %30, %cst_19 [1] : vector<8x8xf32> to vector<8xf32>
    %32 = vector.shape_cast %31 : vector<8xf32> to vector<8x1xf32>
    %33 = tpu.reciprocal %32 {approx = true} : vector<8x1xf32> -> vector<8x1xf32>
    %34 = vector.broadcast %33 : vector<8x1xf32> to vector<8x8xf32>
    %35 = arith.mulf %30, %34 : vector<8x8xf32>
    %36 = arith.truncf %35 : vector<8x8xf32> to vector<8x8xbf16>
    %cst_20 = arith.constant dense<0.000000e+00> : vector<8x128xf32>
    %37 = tpu.matmul %36, %24, %cst_20 {dimension_numbers = #tpu.dot_dimension_numbers<[1], [0], [0], [1], [0, 0, 1, 1], [], []>} : vector<8x8xbf16>, vector<8x128xbf16>, vector<8x128xf32> -> vector<8x128xf32>
    %38 = arith.truncf %37 : vector<8x128xf32> to vector<8x128xbf16>
    %c0_21 = arith.constant 0 : index
    %c0_22 = arith.constant 0 : index
    %c0_23 = arith.constant 0 : index
    %39 = vector.load %arg7[%c0_21, %c0_22, %c0_23] : memref<2x512x128xbf16, #tpu.memory_space<vmem>>, vector<1x128x128xbf16>
    %40 = vector.shape_cast %39 : vector<1x128x128xbf16> to vector<128x128xbf16>
    %cst_24 = arith.constant dense<0.000000e+00> : vector<8x128xf32>
    %41 = tpu.matmul %38, %40, %cst_24 {dimension_numbers = #tpu.dot_dimension_numbers<[1], [0], [0], [1], [0, 0, 1, 1], [], []>} : vector<8x128xbf16>, vector<128x128xbf16>, vector<8x128xf32> -> vector<8x128xf32>
    %42 = arith.addf %21, %41 : vector<8x128xf32>
    %43 = vector.extract_strided_slice %20 {offsets = [0, 128], sizes = [8, 128], strides = [1, 1]} : vector<8x1536xbf16> to vector<8x128xbf16>
    %44 = vector.extract_strided_slice %20 {offsets = [0, 640], sizes = [8, 128], strides = [1, 1]} : vector<8x1536xbf16> to vector<8x128xbf16>
    %45 = vector.extract_strided_slice %20 {offsets = [0, 1152], sizes = [8, 128], strides = [1, 1]} : vector<8x1536xbf16> to vector<8x128xbf16>
    %cst_25 = arith.constant dense<0.000000e+00> : vector<8x8xf32>
    %46 = tpu.matmul %43, %44, %cst_25 {dimension_numbers = #tpu.dot_dimension_numbers<[1], [1], [0], [0], [0, 0, 1, 0], [], []>} : vector<8x128xbf16>, vector<8x128xbf16>, vector<8x8xf32> -> vector<8x8xf32>
    %cst_26 = arith.constant dense<0xFF800000> : vector<8xf32>
    %47 = vector.multi_reduction <maximumf>, %46, %cst_26 [1] : vector<8x8xf32> to vector<8xf32>
    %48 = vector.shape_cast %47 : vector<8xf32> to vector<8x1xf32>
    %49 = vector.broadcast %48 : vector<8x1xf32> to vector<8x8xf32>
    %50 = arith.subf %46, %49 : vector<8x8xf32>
    %51 = math.exp %50 : vector<8x8xf32>
    %cst_27 = arith.constant dense<0.000000e+00> : vector<8xf32>
    %52 = vector.multi_reduction <add>, %51, %cst_27 [1] : vector<8x8xf32> to vector<8xf32>
    %53 = vector.shape_cast %52 : vector<8xf32> to vector<8x1xf32>
    %54 = tpu.reciprocal %53 {approx = true} : vector<8x1xf32> -> vector<8x1xf32>
    %55 = vector.broadcast %54 : vector<8x1xf32> to vector<8x8xf32>
    %56 = arith.mulf %51, %55 : vector<8x8xf32>
    %57 = arith.truncf %56 : vector<8x8xf32> to vector<8x8xbf16>
    %cst_28 = arith.constant dense<0.000000e+00> : vector<8x128xf32>
    %58 = tpu.matmul %57, %45, %cst_28 {dimension_numbers = #tpu.dot_dimension_numbers<[1], [0], [0], [1], [0, 0, 1, 1], [], []>} : vector<8x8xbf16>, vector<8x128xbf16>, vector<8x128xf32> -> vector<8x128xf32>
    %59 = arith.truncf %58 : vector<8x128xf32> to vector<8x128xbf16>
    %c0_29 = arith.constant 0 : index
    %c128 = arith.constant 128 : index
    %c0_30 = arith.constant 0 : index
    %60 = vector.load %arg7[%c0_29, %c128, %c0_30] : memref<2x512x128xbf16, #tpu.memory_space<vmem>>, vector<1x128x128xbf16>
    %61 = vector.shape_cast %60 : vector<1x128x128xbf16> to vector<128x128xbf16>
    %cst_31 = arith.constant dense<0.000000e+00> : vector<8x128xf32>
    %62 = tpu.matmul %59, %61, %cst_31 {dimension_numbers = #tpu.dot_dimension_numbers<[1], [0], [0], [1], [0, 0, 1, 1], [], []>} : vector<8x128xbf16>, vector<128x128xbf16>, vector<8x128xf32> -> vector<8x128xf32>
    %63 = arith.addf %42, %62 : vector<8x128xf32>
    %64 = vector.extract_strided_slice %20 {offsets = [0, 256], sizes = [8, 128], strides = [1, 1]} : vector<8x1536xbf16> to vector<8x128xbf16>
    %65 = vector.extract_strided_slice %20 {offsets = [0, 768], sizes = [8, 128], strides = [1, 1]} : vector<8x1536xbf16> to vector<8x128xbf16>
    %66 = vector.extract_strided_slice %20 {offsets = [0, 1280], sizes = [8, 128], strides = [1, 1]} : vector<8x1536xbf16> to vector<8x128xbf16>
    %cst_32 = arith.constant dense<0.000000e+00> : vector<8x8xf32>
    %67 = tpu.matmul %64, %65, %cst_32 {dimension_numbers = #tpu.dot_dimension_numbers<[1], [1], [0], [0], [0, 0, 1, 0], [], []>} : vector<8x128xbf16>, vector<8x128xbf16>, vector<8x8xf32> -> vector<8x8xf32>
    %cst_33 = arith.constant dense<0xFF800000> : vector<8xf32>
    %68 = vector.multi_reduction <maximumf>, %67, %cst_33 [1] : vector<8x8xf32> to vector<8xf32>
    %69 = vector.shape_cast %68 : vector<8xf32> to vector<8x1xf32>
    %70 = vector.broadcast %69 : vector<8x1xf32> to vector<8x8xf32>
    %71 = arith.subf %67, %70 : vector<8x8xf32>
    %72 = math.exp %71 : vector<8x8xf32>
    %cst_34 = arith.constant dense<0.000000e+00> : vector<8xf32>
    %73 = vector.multi_reduction <add>, %72, %cst_34 [1] : vector<8x8xf32> to vector<8xf32>
    %74 = vector.shape_cast %73 : vector<8xf32> to vector<8x1xf32>
    %75 = tpu.reciprocal %74 {approx = true} : vector<8x1xf32> -> vector<8x1xf32>
    %76 = vector.broadcast %75 : vector<8x1xf32> to vector<8x8xf32>
    %77 = arith.mulf %72, %76 : vector<8x8xf32>
    %78 = arith.truncf %77 : vector<8x8xf32> to vector<8x8xbf16>
    %cst_35 = arith.constant dense<0.000000e+00> : vector<8x128xf32>
    %79 = tpu.matmul %78, %66, %cst_35 {dimension_numbers = #tpu.dot_dimension_numbers<[1], [0], [0], [1], [0, 0, 1, 1], [], []>} : vector<8x8xbf16>, vector<8x128xbf16>, vector<8x128xf32> -> vector<8x128xf32>
    %80 = arith.truncf %79 : vector<8x128xf32> to vector<8x128xbf16>
    %c0_36 = arith.constant 0 : index
    %c256 = arith.constant 256 : index
    %c0_37 = arith.constant 0 : index
    %81 = vector.load %arg7[%c0_36, %c256, %c0_37] : memref<2x512x128xbf16, #tpu.memory_space<vmem>>, vector<1x128x128xbf16>
    %82 = vector.shape_cast %81 : vector<1x128x128xbf16> to vector<128x128xbf16>
    %cst_38 = arith.constant dense<0.000000e+00> : vector<8x128xf32>
    %83 = tpu.matmul %80, %82, %cst_38 {dimension_numbers = #tpu.dot_dimension_numbers<[1], [0], [0], [1], [0, 0, 1, 1], [], []>} : vector<8x128xbf16>, vector<128x128xbf16>, vector<8x128xf32> -> vector<8x128xf32>
    %84 = arith.addf %63, %83 : vector<8x128xf32>
    %85 = vector.extract_strided_slice %20 {offsets = [0, 384], sizes = [8, 128], strides = [1, 1]} : vector<8x1536xbf16> to vector<8x128xbf16>
    %86 = vector.extract_strided_slice %20 {offsets = [0, 896], sizes = [8, 128], strides = [1, 1]} : vector<8x1536xbf16> to vector<8x128xbf16>
    %87 = vector.extract_strided_slice %20 {offsets = [0, 1408], sizes = [8, 128], strides = [1, 1]} : vector<8x1536xbf16> to vector<8x128xbf16>
    %cst_39 = arith.constant dense<0.000000e+00> : vector<8x8xf32>
    %88 = tpu.matmul %85, %86, %cst_39 {dimension_numbers = #tpu.dot_dimension_numbers<[1], [1], [0], [0], [0, 0, 1, 0], [], []>} : vector<8x128xbf16>, vector<8x128xbf16>, vector<8x8xf32> -> vector<8x8xf32>
    %cst_40 = arith.constant dense<0xFF800000> : vector<8xf32>
    %89 = vector.multi_reduction <maximumf>, %88, %cst_40 [1] : vector<8x8xf32> to vector<8xf32>
    %90 = vector.shape_cast %89 : vector<8xf32> to vector<8x1xf32>
    %91 = vector.broadcast %90 : vector<8x1xf32> to vector<8x8xf32>
    %92 = arith.subf %88, %91 : vector<8x8xf32>
    %93 = math.exp %92 : vector<8x8xf32>
    %cst_41 = arith.constant dense<0.000000e+00> : vector<8xf32>
    %94 = vector.multi_reduction <add>, %93, %cst_41 [1] : vector<8x8xf32> to vector<8xf32>
    %95 = vector.shape_cast %94 : vector<8xf32> to vector<8x1xf32>
    %96 = tpu.reciprocal %95 {approx = true} : vector<8x1xf32> -> vector<8x1xf32>
    %97 = vector.broadcast %96 : vector<8x1xf32> to vector<8x8xf32>
    %98 = arith.mulf %93, %97 : vector<8x8xf32>
    %99 = arith.truncf %98 : vector<8x8xf32> to vector<8x8xbf16>
    %cst_42 = arith.constant dense<0.000000e+00> : vector<8x128xf32>
    %100 = tpu.matmul %99, %87, %cst_42 {dimension_numbers = #tpu.dot_dimension_numbers<[1], [0], [0], [1], [0, 0, 1, 1], [], []>} : vector<8x8xbf16>, vector<8x128xbf16>, vector<8x128xf32> -> vector<8x128xf32>
    %101 = arith.truncf %100 : vector<8x128xf32> to vector<8x128xbf16>
    %c0_43 = arith.constant 0 : index
    %c384 = arith.constant 384 : index
    %c0_44 = arith.constant 0 : index
    %102 = vector.load %arg7[%c0_43, %c384, %c0_44] : memref<2x512x128xbf16, #tpu.memory_space<vmem>>, vector<1x128x128xbf16>
    %103 = vector.shape_cast %102 : vector<1x128x128xbf16> to vector<128x128xbf16>
    %cst_45 = arith.constant dense<0.000000e+00> : vector<8x128xf32>
    %104 = tpu.matmul %101, %103, %cst_45 {dimension_numbers = #tpu.dot_dimension_numbers<[1], [0], [0], [1], [0, 0, 1, 1], [], []>} : vector<8x128xbf16>, vector<128x128xbf16>, vector<8x128xf32> -> vector<8x128xf32>
    %105 = arith.addf %84, %104 : vector<8x128xf32>
    %106 = arith.addf %11, %105 : vector<8x128xf32>
    %c0_46 = arith.constant 0 : index
    %c0_47 = arith.constant 0 : index
    %c0_48 = arith.constant 0 : index
    %107 = vector.load %arg8[%c0_46, %c0_47, %c0_48] : memref<2x1x128xf32, #tpu.memory_space<vmem>>, vector<1x1x128xf32>
    %108 = vector.shape_cast %107 : vector<1x1x128xf32> to vector<1x128xf32>
    %109 = vector.broadcast %108 : vector<1x128xf32> to vector<8x128xf32>
    %110 = arith.addf %106, %109 : vector<8x128xf32>
    %c0_49 = arith.constant 0 : index
    %c0_50 = arith.constant 0 : index
    %c0_51 = arith.constant 0 : index
    %111 = vector.load %arg9[%c0_49, %c0_50, %c0_51] : memref<2x1x128xf32, #tpu.memory_space<vmem>>, vector<1x1x128xf32>
    %112 = vector.shape_cast %111 : vector<1x1x128xf32> to vector<1x128xf32>
    %c0_52 = arith.constant 0 : index
    %c0_53 = arith.constant 0 : index
    %c0_54 = arith.constant 0 : index
    %113 = vector.load %arg10[%c0_52, %c0_53, %c0_54] : memref<2x1x128xf32, #tpu.memory_space<vmem>>, vector<1x1x128xf32>
    %114 = vector.shape_cast %113 : vector<1x1x128xf32> to vector<1x128xf32>
    %cst_55 = arith.constant dense<0.000000e+00> : vector<8xf32>
    %115 = vector.multi_reduction <add>, %110, %cst_55 [1] : vector<8x128xf32> to vector<8xf32>
    %116 = vector.shape_cast %115 : vector<8xf32> to vector<8x1xf32>
    %cst_56 = arith.constant 1.280000e+02 : f32
    %117 = vector.broadcast %cst_56 : f32 to vector<8x1xf32>
    %118 = arith.divf %116, %117 : vector<8x1xf32>
    %119 = vector.broadcast %118 : vector<8x1xf32> to vector<8x128xf32>
    %120 = arith.subf %110, %119 : vector<8x128xf32>
    %121 = arith.mulf %120, %120 : vector<8x128xf32>
    %cst_57 = arith.constant dense<0.000000e+00> : vector<8xf32>
    %122 = vector.multi_reduction <add>, %121, %cst_57 [1] : vector<8x128xf32> to vector<8xf32>
    %123 = vector.shape_cast %122 : vector<8xf32> to vector<8x1xf32>
    %cst_58 = arith.constant 1.280000e+02 : f32
    %124 = vector.broadcast %cst_58 : f32 to vector<8x1xf32>
    %125 = arith.divf %123, %124 : vector<8x1xf32>
    %cst_59 = arith.constant 9.99999974E-6 : f32
    %126 = vector.broadcast %cst_59 : f32 to vector<8x1xf32>
    %127 = arith.addf %125, %126 : vector<8x1xf32>
    %128 = math.rsqrt %127 : vector<8x1xf32>
    %129 = vector.broadcast %128 : vector<8x1xf32> to vector<8x128xf32>
    %130 = arith.mulf %120, %129 : vector<8x128xf32>
    %131 = vector.broadcast %112 : vector<1x128xf32> to vector<8x128xf32>
    %132 = arith.mulf %130, %131 : vector<8x128xf32>
    %133 = vector.broadcast %114 : vector<1x128xf32> to vector<8x128xf32>
    %134 = arith.addf %132, %133 : vector<8x128xf32>
    %135 = arith.truncf %134 : vector<8x128xf32> to vector<8x128xbf16>
    %c0_60 = arith.constant 0 : index
    %c0_61 = arith.constant 0 : index
    %c0_62 = arith.constant 0 : index
    %136 = vector.load %arg11[%c0_60, %c0_61, %c0_62] : memref<2x128x2048xbf16, #tpu.memory_space<vmem>>, vector<1x128x2048xbf16>
    %137 = vector.shape_cast %136 : vector<1x128x2048xbf16> to vector<128x2048xbf16>
    %cst_63 = arith.constant dense<0.000000e+00> : vector<8x2048xf32>
    %138 = tpu.matmul %135, %137, %cst_63 {dimension_numbers = #tpu.dot_dimension_numbers<[1], [0], [0], [1], [0, 0, 1, 1], [], []>} : vector<8x128xbf16>, vector<128x2048xbf16>, vector<8x2048xf32> -> vector<8x2048xf32>
    %c0_64 = arith.constant 0 : index
    %c0_65 = arith.constant 0 : index
    %c0_66 = arith.constant 0 : index
    %139 = vector.load %arg12[%c0_64, %c0_65, %c0_66] : memref<2x1x2048xf32, #tpu.memory_space<vmem>>, vector<1x1x2048xf32>
    %140 = vector.shape_cast %139 : vector<1x1x2048xf32> to vector<1x2048xf32>
    %141 = vector.broadcast %140 : vector<1x2048xf32> to vector<8x2048xf32>
    %142 = arith.addf %138, %141 : vector<8x2048xf32>
    %cst_67 = arith.constant 0.000000e+00 : f32
    %143 = vector.broadcast %cst_67 : f32 to vector<8x2048xf32>
    %144 = arith.maximumf %142, %143 : vector<8x2048xf32>
    %145 = arith.truncf %144 : vector<8x2048xf32> to vector<8x2048xbf16>
    %c0_68 = arith.constant 0 : index
    %c0_69 = arith.constant 0 : index
    %c0_70 = arith.constant 0 : index
    %146 = vector.load %arg13[%c0_68, %c0_69, %c0_70] : memref<2x2048x128xbf16, #tpu.memory_space<vmem>>, vector<1x2048x128xbf16>
    %147 = vector.shape_cast %146 : vector<1x2048x128xbf16> to vector<2048x128xbf16>
    %cst_71 = arith.constant dense<0.000000e+00> : vector<8x128xf32>
    %148 = tpu.matmul %145, %147, %cst_71 {dimension_numbers = #tpu.dot_dimension_numbers<[1], [0], [0], [1], [0, 0, 1, 1], [], []>} : vector<8x2048xbf16>, vector<2048x128xbf16>, vector<8x128xf32> -> vector<8x128xf32>
    %149 = arith.addf %134, %148 : vector<8x128xf32>
    %c0_72 = arith.constant 0 : index
    %c0_73 = arith.constant 0 : index
    %c0_74 = arith.constant 0 : index
    %150 = vector.load %arg14[%c0_72, %c0_73, %c0_74] : memref<2x1x128xf32, #tpu.memory_space<vmem>>, vector<1x1x128xf32>
    %151 = vector.shape_cast %150 : vector<1x1x128xf32> to vector<1x128xf32>
    %152 = vector.broadcast %151 : vector<1x128xf32> to vector<8x128xf32>
    %153 = arith.addf %149, %152 : vector<8x128xf32>
    %c0_75 = arith.constant 0 : index
    %c0_76 = arith.constant 0 : index
    %c0_77 = arith.constant 0 : index
    %154 = vector.load %arg15[%c0_75, %c0_76, %c0_77] : memref<2x1x128xf32, #tpu.memory_space<vmem>>, vector<1x1x128xf32>
    %155 = vector.shape_cast %154 : vector<1x1x128xf32> to vector<1x128xf32>
    %c0_78 = arith.constant 0 : index
    %c0_79 = arith.constant 0 : index
    %c0_80 = arith.constant 0 : index
    %156 = vector.load %arg16[%c0_78, %c0_79, %c0_80] : memref<2x1x128xf32, #tpu.memory_space<vmem>>, vector<1x1x128xf32>
    %157 = vector.shape_cast %156 : vector<1x1x128xf32> to vector<1x128xf32>
    %cst_81 = arith.constant dense<0.000000e+00> : vector<8xf32>
    %158 = vector.multi_reduction <add>, %153, %cst_81 [1] : vector<8x128xf32> to vector<8xf32>
    %159 = vector.shape_cast %158 : vector<8xf32> to vector<8x1xf32>
    %cst_82 = arith.constant 1.280000e+02 : f32
    %160 = vector.broadcast %cst_82 : f32 to vector<8x1xf32>
    %161 = arith.divf %159, %160 : vector<8x1xf32>
    %162 = vector.broadcast %161 : vector<8x1xf32> to vector<8x128xf32>
    %163 = arith.subf %153, %162 : vector<8x128xf32>
    %164 = arith.mulf %163, %163 : vector<8x128xf32>
    %cst_83 = arith.constant dense<0.000000e+00> : vector<8xf32>
    %165 = vector.multi_reduction <add>, %164, %cst_83 [1] : vector<8x128xf32> to vector<8xf32>
    %166 = vector.shape_cast %165 : vector<8xf32> to vector<8x1xf32>
    %cst_84 = arith.constant 1.280000e+02 : f32
    %167 = vector.broadcast %cst_84 : f32 to vector<8x1xf32>
    %168 = arith.divf %166, %167 : vector<8x1xf32>
    %cst_85 = arith.constant 9.99999974E-6 : f32
    %169 = vector.broadcast %cst_85 : f32 to vector<8x1xf32>
    %170 = arith.addf %168, %169 : vector<8x1xf32>
    %171 = math.rsqrt %170 : vector<8x1xf32>
    %172 = vector.broadcast %171 : vector<8x1xf32> to vector<8x128xf32>
    %173 = arith.mulf %163, %172 : vector<8x128xf32>
    %174 = vector.broadcast %155 : vector<1x128xf32> to vector<8x128xf32>
    %175 = arith.mulf %173, %174 : vector<8x128xf32>
    %176 = vector.broadcast %157 : vector<1x128xf32> to vector<8x128xf32>
    %177 = arith.addf %175, %176 : vector<8x128xf32>
    %178 = arith.truncf %177 : vector<8x128xf32> to vector<8x128xbf16>
    %c1 = arith.constant 1 : index
    %c0_86 = arith.constant 0 : index
    %c0_87 = arith.constant 0 : index
    %179 = vector.load %arg5[%c1, %c0_86, %c0_87] : memref<2x128x1536xbf16, #tpu.memory_space<vmem>>, vector<1x128x1536xbf16>
    %180 = vector.shape_cast %179 : vector<1x128x1536xbf16> to vector<128x1536xbf16>
    %cst_88 = arith.constant dense<0.000000e+00> : vector<8x1536xf32>
    %181 = tpu.matmul %178, %180, %cst_88 {dimension_numbers = #tpu.dot_dimension_numbers<[1], [0], [0], [1], [0, 0, 1, 1], [], []>} : vector<8x128xbf16>, vector<128x1536xbf16>, vector<8x1536xf32> -> vector<8x1536xf32>
    %c1_89 = arith.constant 1 : index
    %c0_90 = arith.constant 0 : index
    %c0_91 = arith.constant 0 : index
    %182 = vector.load %arg6[%c1_89, %c0_90, %c0_91] : memref<2x1x1536xf32, #tpu.memory_space<vmem>>, vector<1x1x1536xf32>
    %183 = vector.shape_cast %182 : vector<1x1x1536xf32> to vector<1x1536xf32>
    %184 = vector.broadcast %183 : vector<1x1536xf32> to vector<8x1536xf32>
    %185 = arith.addf %181, %184 : vector<8x1536xf32>
    %186 = arith.truncf %185 : vector<8x1536xf32> to vector<8x1536xbf16>
    %cst_92 = arith.constant 0.000000e+00 : f32
    %187 = vector.broadcast %cst_92 : f32 to vector<8x128xf32>
    %188 = vector.extract_strided_slice %186 {offsets = [0, 0], sizes = [8, 128], strides = [1, 1]} : vector<8x1536xbf16> to vector<8x128xbf16>
    %189 = vector.extract_strided_slice %186 {offsets = [0, 512], sizes = [8, 128], strides = [1, 1]} : vector<8x1536xbf16> to vector<8x128xbf16>
    %190 = vector.extract_strided_slice %186 {offsets = [0, 1024], sizes = [8, 128], strides = [1, 1]} : vector<8x1536xbf16> to vector<8x128xbf16>
    %cst_93 = arith.constant dense<0.000000e+00> : vector<8x8xf32>
    %191 = tpu.matmul %188, %189, %cst_93 {dimension_numbers = #tpu.dot_dimension_numbers<[1], [1], [0], [0], [0, 0, 1, 0], [], []>} : vector<8x128xbf16>, vector<8x128xbf16>, vector<8x8xf32> -> vector<8x8xf32>
    %cst_94 = arith.constant dense<0xFF800000> : vector<8xf32>
    %192 = vector.multi_reduction <maximumf>, %191, %cst_94 [1] : vector<8x8xf32> to vector<8xf32>
    %193 = vector.shape_cast %192 : vector<8xf32> to vector<8x1xf32>
    %194 = vector.broadcast %193 : vector<8x1xf32> to vector<8x8xf32>
    %195 = arith.subf %191, %194 : vector<8x8xf32>
    %196 = math.exp %195 : vector<8x8xf32>
    %cst_95 = arith.constant dense<0.000000e+00> : vector<8xf32>
    %197 = vector.multi_reduction <add>, %196, %cst_95 [1] : vector<8x8xf32> to vector<8xf32>
    %198 = vector.shape_cast %197 : vector<8xf32> to vector<8x1xf32>
    %199 = tpu.reciprocal %198 {approx = true} : vector<8x1xf32> -> vector<8x1xf32>
    %200 = vector.broadcast %199 : vector<8x1xf32> to vector<8x8xf32>
    %201 = arith.mulf %196, %200 : vector<8x8xf32>
    %202 = arith.truncf %201 : vector<8x8xf32> to vector<8x8xbf16>
    %cst_96 = arith.constant dense<0.000000e+00> : vector<8x128xf32>
    %203 = tpu.matmul %202, %190, %cst_96 {dimension_numbers = #tpu.dot_dimension_numbers<[1], [0], [0], [1], [0, 0, 1, 1], [], []>} : vector<8x8xbf16>, vector<8x128xbf16>, vector<8x128xf32> -> vector<8x128xf32>
    %204 = arith.truncf %203 : vector<8x128xf32> to vector<8x128xbf16>
    %c1_97 = arith.constant 1 : index
    %c0_98 = arith.constant 0 : index
    %c0_99 = arith.constant 0 : index
    %205 = vector.load %arg7[%c1_97, %c0_98, %c0_99] : memref<2x512x128xbf16, #tpu.memory_space<vmem>>, vector<1x128x128xbf16>
    %206 = vector.shape_cast %205 : vector<1x128x128xbf16> to vector<128x128xbf16>
    %cst_100 = arith.constant dense<0.000000e+00> : vector<8x128xf32>
    %207 = tpu.matmul %204, %206, %cst_100 {dimension_numbers = #tpu.dot_dimension_numbers<[1], [0], [0], [1], [0, 0, 1, 1], [], []>} : vector<8x128xbf16>, vector<128x128xbf16>, vector<8x128xf32> -> vector<8x128xf32>
    %208 = arith.addf %187, %207 : vector<8x128xf32>
    %209 = vector.extract_strided_slice %186 {offsets = [0, 128], sizes = [8, 128], strides = [1, 1]} : vector<8x1536xbf16> to vector<8x128xbf16>
    %210 = vector.extract_strided_slice %186 {offsets = [0, 640], sizes = [8, 128], strides = [1, 1]} : vector<8x1536xbf16> to vector<8x128xbf16>
    %211 = vector.extract_strided_slice %186 {offsets = [0, 1152], sizes = [8, 128], strides = [1, 1]} : vector<8x1536xbf16> to vector<8x128xbf16>
    %cst_101 = arith.constant dense<0.000000e+00> : vector<8x8xf32>
    %212 = tpu.matmul %209, %210, %cst_101 {dimension_numbers = #tpu.dot_dimension_numbers<[1], [1], [0], [0], [0, 0, 1, 0], [], []>} : vector<8x128xbf16>, vector<8x128xbf16>, vector<8x8xf32> -> vector<8x8xf32>
    %cst_102 = arith.constant dense<0xFF800000> : vector<8xf32>
    %213 = vector.multi_reduction <maximumf>, %212, %cst_102 [1] : vector<8x8xf32> to vector<8xf32>
    %214 = vector.shape_cast %213 : vector<8xf32> to vector<8x1xf32>
    %215 = vector.broadcast %214 : vector<8x1xf32> to vector<8x8xf32>
    %216 = arith.subf %212, %215 : vector<8x8xf32>
    %217 = math.exp %216 : vector<8x8xf32>
    %cst_103 = arith.constant dense<0.000000e+00> : vector<8xf32>
    %218 = vector.multi_reduction <add>, %217, %cst_103 [1] : vector<8x8xf32> to vector<8xf32>
    %219 = vector.shape_cast %218 : vector<8xf32> to vector<8x1xf32>
    %220 = tpu.reciprocal %219 {approx = true} : vector<8x1xf32> -> vector<8x1xf32>
    %221 = vector.broadcast %220 : vector<8x1xf32> to vector<8x8xf32>
    %222 = arith.mulf %217, %221 : vector<8x8xf32>
    %223 = arith.truncf %222 : vector<8x8xf32> to vector<8x8xbf16>
    %cst_104 = arith.constant dense<0.000000e+00> : vector<8x128xf32>
    %224 = tpu.matmul %223, %211, %cst_104 {dimension_numbers = #tpu.dot_dimension_numbers<[1], [0], [0], [1], [0, 0, 1, 1], [], []>} : vector<8x8xbf16>, vector<8x128xbf16>, vector<8x128xf32> -> vector<8x128xf32>
    %225 = arith.truncf %224 : vector<8x128xf32> to vector<8x128xbf16>
    %c1_105 = arith.constant 1 : index
    %c128_106 = arith.constant 128 : index
    %c0_107 = arith.constant 0 : index
    %226 = vector.load %arg7[%c1_105, %c128_106, %c0_107] : memref<2x512x128xbf16, #tpu.memory_space<vmem>>, vector<1x128x128xbf16>
    %227 = vector.shape_cast %226 : vector<1x128x128xbf16> to vector<128x128xbf16>
    %cst_108 = arith.constant dense<0.000000e+00> : vector<8x128xf32>
    %228 = tpu.matmul %225, %227, %cst_108 {dimension_numbers = #tpu.dot_dimension_numbers<[1], [0], [0], [1], [0, 0, 1, 1], [], []>} : vector<8x128xbf16>, vector<128x128xbf16>, vector<8x128xf32> -> vector<8x128xf32>
    %229 = arith.addf %208, %228 : vector<8x128xf32>
    %230 = vector.extract_strided_slice %186 {offsets = [0, 256], sizes = [8, 128], strides = [1, 1]} : vector<8x1536xbf16> to vector<8x128xbf16>
    %231 = vector.extract_strided_slice %186 {offsets = [0, 768], sizes = [8, 128], strides = [1, 1]} : vector<8x1536xbf16> to vector<8x128xbf16>
    %232 = vector.extract_strided_slice %186 {offsets = [0, 1280], sizes = [8, 128], strides = [1, 1]} : vector<8x1536xbf16> to vector<8x128xbf16>
    %cst_109 = arith.constant dense<0.000000e+00> : vector<8x8xf32>
    %233 = tpu.matmul %230, %231, %cst_109 {dimension_numbers = #tpu.dot_dimension_numbers<[1], [1], [0], [0], [0, 0, 1, 0], [], []>} : vector<8x128xbf16>, vector<8x128xbf16>, vector<8x8xf32> -> vector<8x8xf32>
    %cst_110 = arith.constant dense<0xFF800000> : vector<8xf32>
    %234 = vector.multi_reduction <maximumf>, %233, %cst_110 [1] : vector<8x8xf32> to vector<8xf32>
    %235 = vector.shape_cast %234 : vector<8xf32> to vector<8x1xf32>
    %236 = vector.broadcast %235 : vector<8x1xf32> to vector<8x8xf32>
    %237 = arith.subf %233, %236 : vector<8x8xf32>
    %238 = math.exp %237 : vector<8x8xf32>
    %cst_111 = arith.constant dense<0.000000e+00> : vector<8xf32>
    %239 = vector.multi_reduction <add>, %238, %cst_111 [1] : vector<8x8xf32> to vector<8xf32>
    %240 = vector.shape_cast %239 : vector<8xf32> to vector<8x1xf32>
    %241 = tpu.reciprocal %240 {approx = true} : vector<8x1xf32> -> vector<8x1xf32>
    %242 = vector.broadcast %241 : vector<8x1xf32> to vector<8x8xf32>
    %243 = arith.mulf %238, %242 : vector<8x8xf32>
    %244 = arith.truncf %243 : vector<8x8xf32> to vector<8x8xbf16>
    %cst_112 = arith.constant dense<0.000000e+00> : vector<8x128xf32>
    %245 = tpu.matmul %244, %232, %cst_112 {dimension_numbers = #tpu.dot_dimension_numbers<[1], [0], [0], [1], [0, 0, 1, 1], [], []>} : vector<8x8xbf16>, vector<8x128xbf16>, vector<8x128xf32> -> vector<8x128xf32>
    %246 = arith.truncf %245 : vector<8x128xf32> to vector<8x128xbf16>
    %c1_113 = arith.constant 1 : index
    %c256_114 = arith.constant 256 : index
    %c0_115 = arith.constant 0 : index
    %247 = vector.load %arg7[%c1_113, %c256_114, %c0_115] : memref<2x512x128xbf16, #tpu.memory_space<vmem>>, vector<1x128x128xbf16>
    %248 = vector.shape_cast %247 : vector<1x128x128xbf16> to vector<128x128xbf16>
    %cst_116 = arith.constant dense<0.000000e+00> : vector<8x128xf32>
    %249 = tpu.matmul %246, %248, %cst_116 {dimension_numbers = #tpu.dot_dimension_numbers<[1], [0], [0], [1], [0, 0, 1, 1], [], []>} : vector<8x128xbf16>, vector<128x128xbf16>, vector<8x128xf32> -> vector<8x128xf32>
    %250 = arith.addf %229, %249 : vector<8x128xf32>
    %251 = vector.extract_strided_slice %186 {offsets = [0, 384], sizes = [8, 128], strides = [1, 1]} : vector<8x1536xbf16> to vector<8x128xbf16>
    %252 = vector.extract_strided_slice %186 {offsets = [0, 896], sizes = [8, 128], strides = [1, 1]} : vector<8x1536xbf16> to vector<8x128xbf16>
    %253 = vector.extract_strided_slice %186 {offsets = [0, 1408], sizes = [8, 128], strides = [1, 1]} : vector<8x1536xbf16> to vector<8x128xbf16>
    %cst_117 = arith.constant dense<0.000000e+00> : vector<8x8xf32>
    %254 = tpu.matmul %251, %252, %cst_117 {dimension_numbers = #tpu.dot_dimension_numbers<[1], [1], [0], [0], [0, 0, 1, 0], [], []>} : vector<8x128xbf16>, vector<8x128xbf16>, vector<8x8xf32> -> vector<8x8xf32>
    %cst_118 = arith.constant dense<0xFF800000> : vector<8xf32>
    %255 = vector.multi_reduction <maximumf>, %254, %cst_118 [1] : vector<8x8xf32> to vector<8xf32>
    %256 = vector.shape_cast %255 : vector<8xf32> to vector<8x1xf32>
    %257 = vector.broadcast %256 : vector<8x1xf32> to vector<8x8xf32>
    %258 = arith.subf %254, %257 : vector<8x8xf32>
    %259 = math.exp %258 : vector<8x8xf32>
    %cst_119 = arith.constant dense<0.000000e+00> : vector<8xf32>
    %260 = vector.multi_reduction <add>, %259, %cst_119 [1] : vector<8x8xf32> to vector<8xf32>
    %261 = vector.shape_cast %260 : vector<8xf32> to vector<8x1xf32>
    %262 = tpu.reciprocal %261 {approx = true} : vector<8x1xf32> -> vector<8x1xf32>
    %263 = vector.broadcast %262 : vector<8x1xf32> to vector<8x8xf32>
    %264 = arith.mulf %259, %263 : vector<8x8xf32>
    %265 = arith.truncf %264 : vector<8x8xf32> to vector<8x8xbf16>
    %cst_120 = arith.constant dense<0.000000e+00> : vector<8x128xf32>
    %266 = tpu.matmul %265, %253, %cst_120 {dimension_numbers = #tpu.dot_dimension_numbers<[1], [0], [0], [1], [0, 0, 1, 1], [], []>} : vector<8x8xbf16>, vector<8x128xbf16>, vector<8x128xf32> -> vector<8x128xf32>
    %267 = arith.truncf %266 : vector<8x128xf32> to vector<8x128xbf16>
    %c1_121 = arith.constant 1 : index
    %c384_122 = arith.constant 384 : index
    %c0_123 = arith.constant 0 : index
    %268 = vector.load %arg7[%c1_121, %c384_122, %c0_123] : memref<2x512x128xbf16, #tpu.memory_space<vmem>>, vector<1x128x128xbf16>
    %269 = vector.shape_cast %268 : vector<1x128x128xbf16> to vector<128x128xbf16>
    %cst_124 = arith.constant dense<0.000000e+00> : vector<8x128xf32>
    %270 = tpu.matmul %267, %269, %cst_124 {dimension_numbers = #tpu.dot_dimension_numbers<[1], [0], [0], [1], [0, 0, 1, 1], [], []>} : vector<8x128xbf16>, vector<128x128xbf16>, vector<8x128xf32> -> vector<8x128xf32>
    %271 = arith.addf %250, %270 : vector<8x128xf32>
    %272 = arith.addf %177, %271 : vector<8x128xf32>
    %c1_125 = arith.constant 1 : index
    %c0_126 = arith.constant 0 : index
    %c0_127 = arith.constant 0 : index
    %273 = vector.load %arg8[%c1_125, %c0_126, %c0_127] : memref<2x1x128xf32, #tpu.memory_space<vmem>>, vector<1x1x128xf32>
    %274 = vector.shape_cast %273 : vector<1x1x128xf32> to vector<1x128xf32>
    %275 = vector.broadcast %274 : vector<1x128xf32> to vector<8x128xf32>
    %276 = arith.addf %272, %275 : vector<8x128xf32>
    %c1_128 = arith.constant 1 : index
    %c0_129 = arith.constant 0 : index
    %c0_130 = arith.constant 0 : index
    %277 = vector.load %arg9[%c1_128, %c0_129, %c0_130] : memref<2x1x128xf32, #tpu.memory_space<vmem>>, vector<1x1x128xf32>
    %278 = vector.shape_cast %277 : vector<1x1x128xf32> to vector<1x128xf32>
    %c1_131 = arith.constant 1 : index
    %c0_132 = arith.constant 0 : index
    %c0_133 = arith.constant 0 : index
    %279 = vector.load %arg10[%c1_131, %c0_132, %c0_133] : memref<2x1x128xf32, #tpu.memory_space<vmem>>, vector<1x1x128xf32>
    %280 = vector.shape_cast %279 : vector<1x1x128xf32> to vector<1x128xf32>
    %cst_134 = arith.constant dense<0.000000e+00> : vector<8xf32>
    %281 = vector.multi_reduction <add>, %276, %cst_134 [1] : vector<8x128xf32> to vector<8xf32>
    %282 = vector.shape_cast %281 : vector<8xf32> to vector<8x1xf32>
    %cst_135 = arith.constant 1.280000e+02 : f32
    %283 = vector.broadcast %cst_135 : f32 to vector<8x1xf32>
    %284 = arith.divf %282, %283 : vector<8x1xf32>
    %285 = vector.broadcast %284 : vector<8x1xf32> to vector<8x128xf32>
    %286 = arith.subf %276, %285 : vector<8x128xf32>
    %287 = arith.mulf %286, %286 : vector<8x128xf32>
    %cst_136 = arith.constant dense<0.000000e+00> : vector<8xf32>
    %288 = vector.multi_reduction <add>, %287, %cst_136 [1] : vector<8x128xf32> to vector<8xf32>
    %289 = vector.shape_cast %288 : vector<8xf32> to vector<8x1xf32>
    %cst_137 = arith.constant 1.280000e+02 : f32
    %290 = vector.broadcast %cst_137 : f32 to vector<8x1xf32>
    %291 = arith.divf %289, %290 : vector<8x1xf32>
    %cst_138 = arith.constant 9.99999974E-6 : f32
    %292 = vector.broadcast %cst_138 : f32 to vector<8x1xf32>
    %293 = arith.addf %291, %292 : vector<8x1xf32>
    %294 = math.rsqrt %293 : vector<8x1xf32>
    %295 = vector.broadcast %294 : vector<8x1xf32> to vector<8x128xf32>
    %296 = arith.mulf %286, %295 : vector<8x128xf32>
    %297 = vector.broadcast %278 : vector<1x128xf32> to vector<8x128xf32>
    %298 = arith.mulf %296, %297 : vector<8x128xf32>
    %299 = vector.broadcast %280 : vector<1x128xf32> to vector<8x128xf32>
    %300 = arith.addf %298, %299 : vector<8x128xf32>
    %301 = arith.truncf %300 : vector<8x128xf32> to vector<8x128xbf16>
    %c1_139 = arith.constant 1 : index
    %c0_140 = arith.constant 0 : index
    %c0_141 = arith.constant 0 : index
    %302 = vector.load %arg11[%c1_139, %c0_140, %c0_141] : memref<2x128x2048xbf16, #tpu.memory_space<vmem>>, vector<1x128x2048xbf16>
    %303 = vector.shape_cast %302 : vector<1x128x2048xbf16> to vector<128x2048xbf16>
    %cst_142 = arith.constant dense<0.000000e+00> : vector<8x2048xf32>
    %304 = tpu.matmul %301, %303, %cst_142 {dimension_numbers = #tpu.dot_dimension_numbers<[1], [0], [0], [1], [0, 0, 1, 1], [], []>} : vector<8x128xbf16>, vector<128x2048xbf16>, vector<8x2048xf32> -> vector<8x2048xf32>
    %c1_143 = arith.constant 1 : index
    %c0_144 = arith.constant 0 : index
    %c0_145 = arith.constant 0 : index
    %305 = vector.load %arg12[%c1_143, %c0_144, %c0_145] : memref<2x1x2048xf32, #tpu.memory_space<vmem>>, vector<1x1x2048xf32>
    %306 = vector.shape_cast %305 : vector<1x1x2048xf32> to vector<1x2048xf32>
    %307 = vector.broadcast %306 : vector<1x2048xf32> to vector<8x2048xf32>
    %308 = arith.addf %304, %307 : vector<8x2048xf32>
    %cst_146 = arith.constant 0.000000e+00 : f32
    %309 = vector.broadcast %cst_146 : f32 to vector<8x2048xf32>
    %310 = arith.maximumf %308, %309 : vector<8x2048xf32>
    %311 = arith.truncf %310 : vector<8x2048xf32> to vector<8x2048xbf16>
    %c1_147 = arith.constant 1 : index
    %c0_148 = arith.constant 0 : index
    %c0_149 = arith.constant 0 : index
    %312 = vector.load %arg13[%c1_147, %c0_148, %c0_149] : memref<2x2048x128xbf16, #tpu.memory_space<vmem>>, vector<1x2048x128xbf16>
    %313 = vector.shape_cast %312 : vector<1x2048x128xbf16> to vector<2048x128xbf16>
    %cst_150 = arith.constant dense<0.000000e+00> : vector<8x128xf32>
    %314 = tpu.matmul %311, %313, %cst_150 {dimension_numbers = #tpu.dot_dimension_numbers<[1], [0], [0], [1], [0, 0, 1, 1], [], []>} : vector<8x2048xbf16>, vector<2048x128xbf16>, vector<8x128xf32> -> vector<8x128xf32>
    %315 = arith.addf %300, %314 : vector<8x128xf32>
    %c1_151 = arith.constant 1 : index
    %c0_152 = arith.constant 0 : index
    %c0_153 = arith.constant 0 : index
    %316 = vector.load %arg14[%c1_151, %c0_152, %c0_153] : memref<2x1x128xf32, #tpu.memory_space<vmem>>, vector<1x1x128xf32>
    %317 = vector.shape_cast %316 : vector<1x1x128xf32> to vector<1x128xf32>
    %318 = vector.broadcast %317 : vector<1x128xf32> to vector<8x128xf32>
    %319 = arith.addf %315, %318 : vector<8x128xf32>
    %c1_154 = arith.constant 1 : index
    %c0_155 = arith.constant 0 : index
    %c0_156 = arith.constant 0 : index
    %320 = vector.load %arg15[%c1_154, %c0_155, %c0_156] : memref<2x1x128xf32, #tpu.memory_space<vmem>>, vector<1x1x128xf32>
    %321 = vector.shape_cast %320 : vector<1x1x128xf32> to vector<1x128xf32>
    %c1_157 = arith.constant 1 : index
    %c0_158 = arith.constant 0 : index
    %c0_159 = arith.constant 0 : index
    %322 = vector.load %arg16[%c1_157, %c0_158, %c0_159] : memref<2x1x128xf32, #tpu.memory_space<vmem>>, vector<1x1x128xf32>
    %323 = vector.shape_cast %322 : vector<1x1x128xf32> to vector<1x128xf32>
    %cst_160 = arith.constant dense<0.000000e+00> : vector<8xf32>
    %324 = vector.multi_reduction <add>, %319, %cst_160 [1] : vector<8x128xf32> to vector<8xf32>
    %325 = vector.shape_cast %324 : vector<8xf32> to vector<8x1xf32>
    %cst_161 = arith.constant 1.280000e+02 : f32
    %326 = vector.broadcast %cst_161 : f32 to vector<8x1xf32>
    %327 = arith.divf %325, %326 : vector<8x1xf32>
    %328 = vector.broadcast %327 : vector<8x1xf32> to vector<8x128xf32>
    %329 = arith.subf %319, %328 : vector<8x128xf32>
    %330 = arith.mulf %329, %329 : vector<8x128xf32>
    %cst_162 = arith.constant dense<0.000000e+00> : vector<8xf32>
    %331 = vector.multi_reduction <add>, %330, %cst_162 [1] : vector<8x128xf32> to vector<8xf32>
    %332 = vector.shape_cast %331 : vector<8xf32> to vector<8x1xf32>
    %cst_163 = arith.constant 1.280000e+02 : f32
    %333 = vector.broadcast %cst_163 : f32 to vector<8x1xf32>
    %334 = arith.divf %332, %333 : vector<8x1xf32>
    %cst_164 = arith.constant 9.99999974E-6 : f32
    %335 = vector.broadcast %cst_164 : f32 to vector<8x1xf32>
    %336 = arith.addf %334, %335 : vector<8x1xf32>
    %337 = math.rsqrt %336 : vector<8x1xf32>
    %338 = vector.broadcast %337 : vector<8x1xf32> to vector<8x128xf32>
    %339 = arith.mulf %329, %338 : vector<8x128xf32>
    %340 = vector.broadcast %321 : vector<1x128xf32> to vector<8x128xf32>
    %341 = arith.mulf %339, %340 : vector<8x128xf32>
    %342 = vector.broadcast %323 : vector<1x128xf32> to vector<8x128xf32>
    %343 = arith.addf %341, %342 : vector<8x128xf32>
    %344 = vector.extract_strided_slice %343 {offsets = [7, 0], sizes = [1, 128], strides = [1, 1]} : vector<8x128xf32> to vector<1x128xf32>
    %345 = arith.truncf %344 : vector<1x128xf32> to vector<1x128xbf16>
    %c0_165 = arith.constant 0 : index
    %c0_166 = arith.constant 0 : index
    %346 = vector.load %arg17[%c0_165, %c0_166] : memref<128x128xbf16, #tpu.memory_space<vmem>>, vector<128x128xbf16>
    %cst_167 = arith.constant dense<0.000000e+00> : vector<1x128xf32>
    %347 = tpu.matmul %345, %346, %cst_167 {dimension_numbers = #tpu.dot_dimension_numbers<[1], [0], [0], [1], [0, 0, 1, 1], [], []>} : vector<1x128xbf16>, vector<128x128xbf16>, vector<1x128xf32> -> vector<1x128xf32>
    %c0_168 = arith.constant 0 : index
    %c0_169 = arith.constant 0 : index
    %348 = vector.load %arg18[%c0_168, %c0_169] : memref<1x128xf32, #tpu.memory_space<vmem>>, vector<1x128xf32>
    %349 = arith.addf %347, %348 : vector<1x128xf32>
    %c0_170 = arith.constant 0 : index
    %c0_171 = arith.constant 0 : index
    %c0_172 = arith.constant 0 : index
    %350 = vector.load %arg19[%c0_170, %c0_171, %c0_172] : memref<1x1x128xf32, #tpu.memory_space<vmem>>, vector<1x1x128xf32>
    %351 = vector.shape_cast %350 : vector<1x1x128xf32> to vector<1x128xf32>
    %352 = vector.shape_cast %349 : vector<1x128xf32> to vector<1x1x128xf32>
    tpu.vector_store %arg19[%c0_170, %c0_171, %c0_172], %352 {strides = array<i32>} : memref<1x1x128xf32, #tpu.memory_space<vmem>>, vector<1x1x128xf32>,
    return
  }
  func.func @transform_0(%arg0: i32) -> (i32, i32, i32) {
    %c0_i32 = arith.constant 0 : i32
    %c0_i32_0 = arith.constant 0 : i32
    %c0_i32_1 = arith.constant 0 : i32
    return %arg0, %c0_i32, %c0_i32_0 : i32, i32, i32
  }
  func.func @transform_1(%arg0: i32) -> (i32, i32, i32) {
    %c0_i32 = arith.constant 0 : i32
    %c0_i32_0 = arith.constant 0 : i32
    %c0_i32_1 = arith.constant 0 : i32
    return %arg0, %c0_i32, %c0_i32_0 : i32, i32, i32
  }
  func.func @transform_2(%arg0: i32) -> (i32, i32) {
    %c0_i32 = arith.constant 0 : i32
    %c0_i32_0 = arith.constant 0 : i32
    %c0_i32_1 = arith.constant 0 : i32
    return %c0_i32, %c0_i32_0 : i32, i32
  }
  func.func @transform_3(%arg0: i32) -> (i32, i32) {
    %c0_i32 = arith.constant 0 : i32
    %c0_i32_0 = arith.constant 0 : i32
    %c0_i32_1 = arith.constant 0 : i32
    return %c0_i32, %c0_i32_0 : i32, i32
  }
  func.func @transform_4(%arg0: i32) -> (i32, i32, i32) {
    %c0_i32 = arith.constant 0 : i32
    %c0_i32_0 = arith.constant 0 : i32
    %c0_i32_1 = arith.constant 0 : i32
    %c0_i32_2 = arith.constant 0 : i32
    return %c0_i32, %c0_i32_0, %c0_i32_1 : i32, i32, i32
  }
  func.func @transform_5(%arg0: i32) -> (i32, i32, i32) {
    %c0_i32 = arith.constant 0 : i32
    %c0_i32_0 = arith.constant 0 : i32
    %c0_i32_1 = arith.constant 0 : i32
    %c0_i32_2 = arith.constant 0 : i32
    return %c0_i32, %c0_i32_0, %c0_i32_1 : i32, i32, i32
  }
  func.func @transform_6(%arg0: i32) -> (i32, i32, i32) {
    %c0_i32 = arith.constant 0 : i32
    %c0_i32_0 = arith.constant 0 : i32
    %c0_i32_1 = arith.constant 0 : i32
    %c0_i32_2 = arith.constant 0 : i32
    return %c0_i32, %c0_i32_0, %c0_i32_1 : i32, i32, i32
  }
  func.func @transform_7(%arg0: i32) -> (i32, i32, i32) {
    %c0_i32 = arith.constant 0 : i32
    %c0_i32_0 = arith.constant 0 : i32
    %c0_i32_1 = arith.constant 0 : i32
    %c0_i32_2 = arith.constant 0 : i32
    return %c0_i32, %c0_i32_0, %c0_i32_1 : i32, i32, i32
  }
  func.func @transform_8(%arg0: i32) -> (i32, i32, i32) {
    %c0_i32 = arith.constant 0 : i32
    %c0_i32_0 = arith.constant 0 : i32
    %c0_i32_1 = arith.constant 0 : i32
    %c0_i32_2 = arith.constant 0 : i32
    return %c0_i32, %c0_i32_0, %c0_i32_1 : i32, i32, i32
  }
  func.func @transform_9(%arg0: i32) -> (i32, i32, i32) {
    %c0_i32 = arith.constant 0 : i32
    %c0_i32_0 = arith.constant 0 : i32
    %c0_i32_1 = arith.constant 0 : i32
    %c0_i32_2 = arith.constant 0 : i32
    return %c0_i32, %c0_i32_0, %c0_i32_1 : i32, i32, i32
  }
  func.func @transform_10(%arg0: i32) -> (i32, i32, i32) {
    %c0_i32 = arith.constant 0 : i32
    %c0_i32_0 = arith.constant 0 : i32
    %c0_i32_1 = arith.constant 0 : i32
    %c0_i32_2 = arith.constant 0 : i32
    return %c0_i32, %c0_i32_0, %c0_i32_1 : i32, i32, i32
  }
  func.func @transform_11(%arg0: i32) -> (i32, i32, i32) {
    %c0_i32 = arith.constant 0 : i32
    %c0_i32_0 = arith.constant 0 : i32
    %c0_i32_1 = arith.constant 0 : i32
    %c0_i32_2 = arith.constant 0 : i32
    return %c0_i32, %c0_i32_0, %c0_i32_1 : i32, i32, i32
  }
  func.func @transform_12(%arg0: i32) -> (i32, i32, i32) {
    %c0_i32 = arith.constant 0 : i32
    %c0_i32_0 = arith.constant 0 : i32
    %c0_i32_1 = arith.constant 0 : i32
    %c0_i32_2 = arith.constant 0 : i32
    return %c0_i32, %c0_i32_0, %c0_i32_1 : i32, i32, i32
  }
  func.func @transform_13(%arg0: i32) -> (i32, i32, i32) {
    %c0_i32 = arith.constant 0 : i32
    %c0_i32_0 = arith.constant 0 : i32
    %c0_i32_1 = arith.constant 0 : i32
    %c0_i32_2 = arith.constant 0 : i32
    return %c0_i32, %c0_i32_0, %c0_i32_1 : i32, i32, i32
  }
  func.func @transform_14(%arg0: i32) -> (i32, i32, i32) {
    %c0_i32 = arith.constant 0 : i32
    %c0_i32_0 = arith.constant 0 : i32
    %c0_i32_1 = arith.constant 0 : i32
    %c0_i32_2 = arith.constant 0 : i32
    return %c0_i32, %c0_i32_0, %c0_i32_1 : i32, i32, i32
  }
  func.func @transform_15(%arg0: i32) -> (i32, i32, i32) {
    %c0_i32 = arith.constant 0 : i32
    %c0_i32_0 = arith.constant 0 : i32
    %c0_i32_1 = arith.constant 0 : i32
    %c0_i32_2 = arith.constant 0 : i32
    return %c0_i32, %c0_i32_0, %c0_i32_1 : i32, i32, i32
  }
  func.func @transform_16(%arg0: i32) -> (i32, i32) {
    %c0_i32 = arith.constant 0 : i32
    %c0_i32_0 = arith.constant 0 : i32
    %c0_i32_1 = arith.constant 0 : i32
    return %c0_i32, %c0_i32_0 : i32, i32
  }
  func.func @transform_17(%arg0: i32) -> (i32, i32) {
    %c0_i32 = arith.constant 0 : i32
    %c0_i32_0 = arith.constant 0 : i32
    %c0_i32_1 = arith.constant 0 : i32
    return %c0_i32, %c0_i32_0 : i32, i32
  }
  func.func @transform_18(%arg0: i32) -> (i32, i32, i32) {
    %c0_i32 = arith.constant 0 : i32
    %c0_i32_0 = arith.constant 0 : i32
    %c0_i32_1 = arith.constant 0 : i32
    return %arg0, %c0_i32, %c0_i32_0 : i32, i32, i32
  }
}

</mosaic_0001>

<bundles_post_ra>
// kernel: transformer_forward.1
= control target key start
LH: loop header
LB: loop body
LE: loop exit
PB: predicated region body
PF: predicated region fallthrough
CT: control target
= control target key end

     0   :  { %s13985_s0 = inlined_call_operand.hbm [shape: f32[2,8,16], index: 0, kind: input, shape index: {}]   ;;  %s13986_s1 = inlined_call_operand.vmem [shape: f32[2,1,128], index: 1, kind: input, shape index: {}]   ;;  %s13987_s2 = inlined_call_operand.hbm [shape: bf16[16,128], index: 2, kind: input, shape index: {}]   ;;  %s13988_s3 = inlined_call_operand.hbm [shape: f32[1,128], index: 3, kind: input, shape index: {}]   ;;  %s13989_s4 = inlined_call_operand.hbm [shape: bf16[2,128,1536], index: 4, kind: input, shape index: {}]   ;;  %s13990_s5 = inlined_call_operand.hbm [shape: f32[2,1,1536], index: 5, kind: input, shape index: {}]   ;;  %s13991_s6 = inlined_call_operand.hbm [shape: bf16[2,512,128], index: 6, kind: input, shape index: {}]   ;;  %s13992_s7 = inlined_call_operand.hbm [shape: f32[2,1,128], index: 7, kind: input, shape index: {}]   ;;  %s13993_s8 = inlined_call_operand.hbm [shape: f32[2,1,128], index: 8, kind: input, shape index: {}]   ;;  %s13994_s9 = inlined_call_operand.hbm [shape: f32[2,1,128], index: 9, kind: input, shape index: {}]   ;;  %s13995_s10 = inlined_call_operand.hbm [shape: bf16[2,128,2048], index: 10, kind: input, shape index: {}]   ;;  %s13996_s11 = inlined_call_operand.hbm [shape: f32[2,1,2048], index: 11, kind: input, shape index: {}]   ;;  %s13997_s12 = inlined_call_operand.hbm [shape: bf16[2,2048,128], index: 12, kind: input, shape index: {}]   ;;  %s13998_s13 = inlined_call_operand.hbm [shape: f32[2,1,128], index: 13, kind: input, shape index: {}]   ;;  %s13999_s14 = inlined_call_operand.hbm [shape: f32[2,1,128], index: 14, kind: input, shape index: {}]   ;;  %s14000_s15 = inlined_call_operand.hbm [shape: f32[2,1,128], index: 15, kind: input, shape index: {}]   ;;  %s14001_s16 = inlined_call_operand.hbm [shape: bf16[128,128], index: 16, kind: input, shape index: {}]   ;;  %s14002_s17 = inlined_call_operand.hbm [shape: f32[1,128], index: 17, kind: input, shape index: {}]   ;;  %s14003_s18 = inlined_call_operand.hbm [shape: f32[2,1,128], index: 18, kind: output, shape index: {}]  }
   0x1   :  { %14018 = sst [smem:[#allocation44_spill]] %s13985_s0 }
   0x2   :  { %14019 = sst [smem:[#allocation45_spill]] %s13986_s1 }
   0x3   :  { %14020 = sst [smem:[#allocation46_spill]] %s13987_s2 }
   0x4   :  { %14021 = sst [smem:[#allocation47_spill]] %s13988_s3 }
   0x5   :  { %14022 = sst [smem:[#allocation48_spill]] %s13989_s4 }
   0x6   :  { %14023 = sst [smem:[#allocation49_spill]] %s13990_s5 }
   0x7   :  { %14024 = sst [smem:[#allocation50_spill]] %s13991_s6 }
   0x8   :  { %14025 = sst [smem:[#allocation51_spill]] %s13992_s7 }
   0x9   :  { %14026 = sst [smem:[#allocation52_spill]] %s13993_s8 }
   0xa   :  { %14027 = sst [smem:[#allocation53_spill]] %s14003_s18 }
   0xb   :  { %23 = vsyncpa [#allocation3], 0 }
   0xc   :  { %25 = vsyncpa [#allocation3 + $0x1], 0 }
   0xd   :  { %26 = vsyncpa [#allocation6], 0 }
   0xe   :  { %27 = vsyncpa [#allocation9], 0 }
   0xf   :  { %28 = vsyncpa [#allocation12], 0 }
  0x10   :  { %29 = vsyncpa [#allocation15], 0 }
  0x11   :  { %30 = vsyncpa [#allocation18], 0 }
  0x12   :  { %31 = vsyncpa [#allocation21], 0 }
  0x13   :  { %32 = vsyncpa [#allocation24], 0 }
  0x14   :  { %33 = vsyncpa [#allocation27], 0 }
  0x15   :  { %34 = vsyncpa [#allocation4], 0 }
  0x16   :  { %36 = vsyncpa [#allocation4 + $0x1], 0  ;;  %s13446_s27 = smov 0   ;;  %s13448_s28 = smov 0  }
  0x17   :  { %s13450_s29 = smov 0   ;;  %s13452_s30 = smov 0  }
  0x18 LB: > { %14028 = sst [smem:[#allocation40_spill]] %s13310_s27  ;;  %s13470_s21 = sadd.s32 4294967295, %s13322_s30   ;;  %s13322_s30 = sphi %s13452_s30, %s14064_s30   ;;  %s13318_s29 = sphi %s13450_s29, %s14063_s29   ;;  %s13314_s28 = sphi %s13448_s28, %s14062_s28   ;;  %s13310_s27 = sphi %s13446_s27, %s14061_s27  }
  0x19   : > { %14029 = sst [smem:[#allocation41_spill]] %s13314_s28  ;;  %p8506_p0 = scmp.ge.s32.totalorder %s13322_s30, 1 }
  0x1a   : > { %s14030_s1 = sld [smem:[#allocation46_spill]]  ;;  %p63_p1 = scmp.eq.s32.totalorder %s13470_s21, 0 }
  0x1b   : > { %14031 = sst [smem:[#allocation42_spill]] %s13470_s21  ;;  %p461_p2 = scmp.lt.s32.totalorder %s13322_s30, 3 }
  0x1c   : > { %s13324_s2 = smov [#allocation5]   ;;  %s14034_s4 = sld [smem:[#allocation48_spill]] }
  0x1d   : > { %p13475_p3 = pnand %p8506_p0, %p461_p2  ;;  %s474_s23 = sshll.u32 %s13324_s2, 4  ;;  %s475_s23 = int_to_ptr.vmem [resolvable:$true] %s474_s23 }
  0x1e   : > { %s13325_s19 = smov [#allocation8]   ;;  %s13326_s2 = smov 64  }
  0x1f   : > { %s14032_s22 = scalar_select %p13475_p3, 1, 0 }
  0x20   : > { %s472_s20 = sshll.u32 %s14030_s1, 4  ;;  %p12508_p4 = pneg %p13475_p3  ;;  %s473_s20 = int_to_ptr.hbm [resolvable:$true] %s472_s20 }
  0x21   : > { %14033 = sst [smem:[#allocation43_spill]] %s14032_s22  ;;  %s500_s1 = sshll.u32 %s13325_s19, 4  ;;  %s501_s1 = int_to_ptr.vmem [resolvable:$true] %s500_s1 }
  0x22   : > { %s498_s26 = sshll.u32 %s14034_s4, 4  ;;  %p13487_p6 = pnand %p12508_p4, %p63_p1  ;;  %s499_s26 = int_to_ptr.hbm [resolvable:$true] %s498_s26 }
  0x23   : > { %s14012_s18 = smov 4   ;;  %s13328_s24 = smov 768  }
  0x24   : > { %12511 = dma.hbm_to_vmem [thread:$0]  (!%p13487_p6), %s473_s20, 128, %s475_s23, [#allocation6], %s13326_s2, %s13326_s2, %s14012_s18  }
  0x25   : > { %s13329_s25 = smov 48   ;;  %s14036_s6 = sld [smem:[#allocation50_spill]] }
  0x26   : > { %12517 = dma.hbm_to_vmem [thread:$0]  (!%p13487_p6), %s499_s26, 24576, %s501_s1, [#allocation9], %s13328_s24, %s13328_s24, %s13329_s25  }
  0x27   : > { %s13330_s27 = smov [#allocation11]   ;;  %s14037_s8 = sld [smem:[#allocation52_spill]] }
  0x28   : > { %s528_s19 = sshll.u32 %s13330_s27, 4  ;;  %s13331_s26 = smov [#allocation14]   ;;  %s529_s19 = int_to_ptr.vmem [resolvable:$true] %s528_s19 }
  0x29   : > { %s556_s1 = sshll.u32 %s13331_s26, 4  ;;  %s582_s24 = sshll.u32 %s13995_s10, 4  ;;  %s557_s1 = int_to_ptr.vmem [resolvable:$true] %s556_s1  ;;  %s583_s24 = int_to_ptr.hbm [resolvable:$true] %s582_s24 }
  0x2a   : > { %s14014_s27 = smov 16   ;;  %s14016_s25 = smov 1  }
  0x2b   : > { %s526_s21 = sshll.u32 %s14036_s6, 4  ;;  %s610_s26 = sshll.u32 %s13997_s12, 4  ;;  %s527_s21 = int_to_ptr.hbm [resolvable:$true] %s526_s21  ;;  %s611_s26 = int_to_ptr.hbm [resolvable:$true] %s610_s26 }
  0x2c   : > { %12523 = dma.hbm_to_vmem [thread:$0]  (!%p13487_p6), %s527_s21, 8192, %s529_s19, [#allocation12], %s13326_s2, %s13326_s2, %s14012_s18  }
  0x2d   : > { %s554_s28 = sshll.u32 %s14037_s8, 4  ;;  %s13334_s21 = smov [#allocation17]   ;;  %s555_s28 = int_to_ptr.hbm [resolvable:$true] %s554_s28 }
  0x2e   : > { %12529 = dma.hbm_to_vmem [thread:$0]  (!%p13487_p6), %s555_s28, 32, %s557_s1, [#allocation15], %s14014_s27, %s14014_s27, %s14016_s25  }
  0x2f   : > { %s584_s19 = sshll.u32 %s13334_s21, 4  ;;  %s13335_s4 = smov 1024   ;;  %s585_s19 = int_to_ptr.vmem [resolvable:$true] %s584_s19 }
  0x30   : > { %12535 = dma.hbm_to_vmem [thread:$0]  (!%p13487_p6), %s583_s24, 32768, %s585_s19, [#allocation18], %s13335_s4, %s13335_s4, %s13326_s2  }
  0x31   : > { %s638_s6 = sshll.u32 %s13999_s14, 4  ;;  %s13336_s8 = smov [#allocation20]   ;;  %s639_s6 = int_to_ptr.hbm [resolvable:$true] %s638_s6 }
  0x32   : > { %s612_s28 = sshll.u32 %s13336_s8, 4  ;;  %s14038_s1 = smov 4   ;;  %s613_s28 = int_to_ptr.vmem [resolvable:$true] %s612_s28 }
  0x33   : > { %12541 = dma.hbm_to_vmem [thread:$0]  (!%p13487_p6), %s611_s26, 32768, %s613_s28, [#allocation21], %s13326_s2, %s13326_s2, %s14038_s1  }
  0x34   : > { %s13337_s21 = smov [#allocation23]   ;;  %s666_s24 = sshll.u32 %s14001_s16, 4  ;;  %s667_s24 = int_to_ptr.hbm [resolvable:$true] %s666_s24 }
  0x35   : > { %s640_s20 = sshll.u32 %s13337_s21, 4  ;;  %s14039_s18 = smov 16   ;;  %s641_s20 = int_to_ptr.vmem [resolvable:$true] %s640_s20 }
  0x36   : > { %12547 = dma.hbm_to_vmem [thread:$0]  (!%p13487_p6), %s639_s6, 32, %s641_s20, [#allocation24], %s14039_s18, %s14039_s18, %s14016_s25  }
  0x37   : > { %s14040_s3 = sld [smem:[#allocation47_spill]]  ;;  %s13338_s22 = smov [#allocation26]  }
  0x38   : > { %s668_s26 = sshll.u32 %s13338_s22, 4  ;;  %s13339_s27 = smov [#allocation7]   ;;  %s669_s26 = int_to_ptr.vmem [resolvable:$true] %s668_s26 }
  0x39   : > { %12553 = dma.hbm_to_vmem [thread:$0]  (!%p13487_p6), %s667_s24, 1024, %s669_s26, [#allocation27], %s13326_s2, %s13326_s2, %s14038_s1  }
  0x3a   : > { %s489_s28 = sshll.u32 %s13339_s27, 4  ;;  %s14041_s5 = sld [smem:[#allocation49_spill]]  ;;  %s490_s28 = int_to_ptr.vmem [resolvable:$true] %s489_s28 }
  0x3b   : > { %s13340_s20 = smov [#allocation10]   ;;  %s14042_s7 = sld [smem:[#allocation51_spill]] }
  0x3c   : > { %s514_s8 = sshll.u32 %s13340_s20, 4  ;;  %s13341_s2 = smov 192   ;;  %s515_s8 = int_to_ptr.vmem [resolvable:$true] %s514_s8 }
  0x3d   : > { %s487_s4 = sshll.u32 %s14040_s3, 4  ;;  %s13342_s1 = smov 12   ;;  %s488_s4 = int_to_ptr.hbm [resolvable:$true] %s487_s4 }
  0x3e   : > { %12514 = dma.hbm_to_vmem [thread:$0]  (!%p13487_p6), %s488_s4, 16, %s490_s28, [#allocation6]  }
  0x3f   : > { %s13343_s24 = smov [#allocation13]   ;;  %s568_s4 = sshll.u32 %s13994_s9, 4  ;;  %s569_s4 = int_to_ptr.hbm [resolvable:$true] %s568_s4 }
  0x40   : > { %s512_s6 = sshll.u32 %s14041_s5, 4  ;;  %s542_s26 = sshll.u32 %s13343_s24, 4  ;;  %s513_s6 = int_to_ptr.hbm [resolvable:$true] %s512_s6  ;;  %s543_s26 = int_to_ptr.vmem [resolvable:$true] %s542_s26 }
  0x41   : > { %s540_s25 = sshll.u32 %s14042_s7, 4  ;;  %s14043_s28 = smov 1   ;;  %s541_s25 = int_to_ptr.hbm [resolvable:$true] %s540_s25 }
  0x42   : > { %12520 = dma.hbm_to_vmem [thread:$0]  (!%p13487_p6), %s513_s6, 384, %s515_s8, [#allocation9], %s13341_s2, %s13341_s2, %s13342_s1  }
  0x43   : > { %12526 = dma.hbm_to_vmem [thread:$0]  (!%p13487_p6), %s541_s25, 32, %s543_s26, [#allocation12], %s14039_s18, %s14039_s18, %s14043_s28  }
  0x44   : > { %s596_s19 = sshll.u32 %s13996_s11, 4  ;;  %s13344_s6 = smov [#allocation16]   ;;  %s597_s19 = int_to_ptr.hbm [resolvable:$true] %s596_s19 }
  0x45   : > { %s570_s8 = sshll.u32 %s13344_s6, 4  ;;  %s13345_s22 = smov [#allocation19]   ;;  %s571_s8 = int_to_ptr.vmem [resolvable:$true] %s570_s8 }
  0x46   : > { %12532 = dma.hbm_to_vmem [thread:$0]  (!%p13487_p6), %s569_s4, 32, %s571_s8, [#allocation15], %s14039_s18, %s14039_s18, %s14043_s28  }
  0x47   : > { %s598_s2 = sshll.u32 %s13345_s22, 4  ;;  %s624_s25 = sshll.u32 %s13998_s13, 4  ;;  %s599_s2 = int_to_ptr.vmem [resolvable:$true] %s598_s2  ;;  %s625_s25 = int_to_ptr.hbm [resolvable:$true] %s624_s25 }
  0x48   : > { %s13346_s26 = smov 256   ;;  %s13347_s27 = smov [#allocation22]  }
  0x49   : > { %12538 = dma.hbm_to_vmem [thread:$0]  (!%p13487_p6), %s597_s19, 512, %s599_s2, [#allocation18], %s13346_s26, %s13346_s26, %s14039_s18  }
  0x4a   : > { %s626_s21 = sshll.u32 %s13347_s27, 4  ;;  %s652_s4 = sshll.u32 %s14000_s15, 4  ;;  %s627_s21 = int_to_ptr.vmem [resolvable:$true] %s626_s21  ;;  %s653_s4 = int_to_ptr.hbm [resolvable:$true] %s652_s4 }
  0x4b   : > { %12544 = dma.hbm_to_vmem [thread:$0]  (!%p13487_p6), %s625_s25, 32, %s627_s21, [#allocation21], %s14039_s18, %s14039_s18, %s14043_s28  }
  0x4c   : > { %s14044_s8 = sld [smem:[#allocation41_spill]]  ;;  %s681_s22 = sshll.u32 %s14002_s17, 4  ;;  %s682_s22 = int_to_ptr.hbm [resolvable:$true] %s681_s22 }
  0x4d   : > { %s13348_s2 = smov [#allocation25]   ;;  %s14045_s1 = sld [smem:[#allocation40_spill]] }
  0x4e   : > { %s654_s24 = sshll.u32 %s13348_s2, 4  ;;  %s14046_s26 = sld [smem:[#allocation42_spill]]  ;;  %s655_s24 = int_to_ptr.vmem [resolvable:$true] %s654_s24 }
  0x4f   : > { %12550 = dma.hbm_to_vmem [thread:$0]  (!%p13487_p6), %s653_s4, 32, %s655_s24, [#allocation24], %s14039_s18, %s14039_s18, %s14043_s28  }
  0x50   : > { %s13349_s25 = smov [#allocation28]   ;;  %s8505_s21 = sadd.s32 4294967294, %s13322_s30  }
  0x51   : > { %s683_s27 = sshll.u32 %s13349_s25, 4  ;;  %s13599_s23 = sadd.s32 1, %s13322_s30   ;;  %s684_s27 = int_to_ptr.vmem [resolvable:$true] %s683_s27 }
  0x52   : > { %12556 = dma.hbm_to_vmem [thread:$0]  (!%p13487_p6), %s682_s22, 16, %s684_s27, [#allocation27]  }
  0x53   : > { %s46_s20 = ssub.s32 %s13322_s30, %s13599_s23  ;;  %s49_s19 = sadd.s32 1, %s13318_s29 }
  0x54   : > { %p47_p7 = scmp.eq.s32.totalorder %s46_s20, 0  ;;  %p56_p8 = scmp.ne.s32.totalorder %s13318_s29, %s14044_s8 }
  0x55   : > { %p57_p9 = scmp.eq.s32.totalorder %s13322_s30, 0  ;;  %p62_p10 = scmp.ne.s32.totalorder %s14044_s8, %s14045_s1 }
  0x56   : > { %s13610_s18 = scalar_select %p47_p7, %s13318_s29, %s49_s19  }
  0x57   : > { %p13612_p11 = por %p57_p9, %p56_p8  ;;  %p13618_p12 = por %p63_p1, %p62_p10 }
  0x58   : > { %p448_p13 = scmp.eq.s32.totalorder %s14046_s26, 1  ;;  %p454_p0 = scmp.eq.s32.totalorder %s8505_s21, 1 }
  0x59   : > { %p12581_p2 = scmp.lt.s32.totalorder %s13322_s30, 2  ;;  %s694_s4 = sand.u32 1, %s13318_s29  }
  0x5a   : > { %p13625_p4 = por %p448_p13, %p56_p8  ;;  %p13629_p6 = por %p454_p0, %p62_p10 }
  0x5b   : > { %s8524_s22 = sshll.u32 %s694_s4, 3  ;;  %s8525_s2 = sshll.u32 %s13322_s30, 3 }
  0x5c   : > { %s14051_s25 = sld [smem:[#allocation44_spill]]  ;;  %s698_s20 = scalar_lea.vmem [#allocation2], %s8524_s22 }
  0x5d   : > { %s706_s19 = sshll.u32 %s698_s20, 4  ;;  %p13639_p7 = pnand %p12581_p2, %p13612_p11  ;;  %s707_s19 = int_to_ptr.vmem [resolvable:$true] %s706_s19 }
  0x5e   : > { %s695_s3 = scalar_lea.sflag [#allocation3], %s694_s4 }
  0x5f   : > { %p13198_p9 = pneg %p13639_p7 }
  0x62   : > { %s702_s27 = scalar_lea.hbm %s14051_s25, %s8525_s2  ;;  %s13201_s1 = scalar_lea.hbm %s14051_s25, 16 }
  0x63   : > { %s704_s26 = sshll.u32 %s702_s27, 4  ;;  %s705_s26 = int_to_ptr.hbm [resolvable:$true] %s704_s26 }
  0x64   : > { %s13194_s5 = sshra.s32 %s705_s26, 4  ;;  %s13195_s5 = int_to_ptr.hbm [resolvable:$true] %s13194_s5 }
  0x65   : > { %s13196_s7 = scalar_lea.hbm %s13195_s5, 8  ;;  %p13202_p11 = scmp.lt.s32.totalorder %s13195_s5, %s14051_s25 }
  0x66   : > { %p13197_p8 = scmp.ne.s32.totalorder %s13195_s5, %s13196_s7  ;;  %p13203_p0 = scmp.lt.s32.totalorder %s13201_s1, %s13196_s7 }
  0x68   : > { %p13199_p10 = pnand %p13198_p9, %p13197_p8  ;;  %p13204_p2 = por %p13203_p0, %p13202_p11 }
  0x6a   : > { %p13200_p13 = pneg %p13199_p10 }
  0x6c   : > { %p13205_p5 = pnand %p13204_p2, %p13200_p13 }
  0x6e   : > { %13208 = shalt.err (!%p13205_p5)
}
  0x6f   : > { %12560 = dma.hbm_to_vmem [thread:$0]  (!%p13639_p7), %s705_s26, 128, %s707_s19, %s695_s3  }
  0x70   : > { %721 = sbr.rel (%p13475_p3) target bundleno = 4630 (0x1216), region = 92  ;;  %s14054_s27 = sld [smem:[#allocation41_spill]] (!%p13475_p3) }
  0x76   : > { %s13656_s20 = sand.u32 1, %s14054_s27  }
  0x77   : > { %s8527_s22 = sshll.u32 %s13656_s20, 3  ;;  %s724_s2 = scalar_lea.sflag [#allocation3], %s13656_s20 }
  0x78   : > { %s727_s24 = scalar_lea.vmem [#allocation2], %s8527_s22 }
  0x79   : > { %13269 = dma.done.wait (%p13618_p12), %s724_s2, 128  }
  0x7a   : > { %13271 = vsyncadd (%p13618_p12), %s724_s2, 4294967168  ;;  %s14055_s5 = sld [smem:[#allocation42_spill]] }
  0x7b   : > { %13273 = dma.done.wait (%p63_p1), [#allocation6], 144  }
  0x7c   : > { %13275 = vsyncadd (%p63_p1), [#allocation6], 4294967152 }
  0x7d   : > { %13277 = dma.done.wait (%p63_p1), [#allocation9], 24960  }
  0x7e   : > { %13279 = vsyncadd (%p63_p1), [#allocation9], 4294942336 }
  0x7f   : > { %13281 = dma.done.wait (%p63_p1), [#allocation12], 8224  }
  0x80   : > { %13283 = vsyncadd (%p63_p1), [#allocation12], 4294959072 }
  0x81   : > { %13285 = dma.done.wait (%p63_p1), [#allocation15], 64  }
  0x82   : > { %13287 = vsyncadd (%p63_p1), [#allocation15], 4294967232 }
  0x83   : > { %13289 = dma.done.wait (%p63_p1), [#allocation18], 33280  }
  0x84   : > { %13291 = vsyncadd (%p63_p1), [#allocation18], 4294934016 }
  0x85   : > { %13293 = dma.done.wait (%p63_p1), [#allocation21], 32800  }
  0x86   : > { %13295 = vsyncadd (%p63_p1), [#allocation21], 4294934496 }
  0x87   : > { %13297 = dma.done.wait (%p63_p1), [#allocation24], 64  }
  0x88   : > { %13299 = vsyncadd (%p63_p1), [#allocation24], 4294967232 }
  0x89   : > { %13301 = dma.done.wait (%p63_p1), [#allocation27], 1040  }
  0x8a   : > { %13303 = vsyncadd (%p63_p1), [#allocation27], 4294966256  ;;  %v11663_v0 = vld [vmem:[#allocation5] sm:$0xff]  ;;  %v867_v1 = vld [vmem:[%s727_s24] sm:$0xff]  ;;  %vm881_vm0 = vcmask 130048   ;;  %p863_p1 = scmp.lt.s32.totalorder %s14055_s5, 1 }
  0x8b   : > { %v8887_v2 = vld [vmem:[#allocation8 + $0x2a0] sm:$0xf]  ;;  %v868_v3 = vpack.c.bf16 %v867_v1, %v867_v1  ;;  %v11754_v4 = vld [vmem:[#allocation8 + $0x2cc] sm:$0xf0]  ;;  %v11748_v5 = vld [vmem:[#allocation8 + $0x2a4] sm:$0xf]  ;;  %892 = vmatpush.bf16.msra.mxu1 %v11663_v0 }
  0x8c   : > { %v8889_v6 = vld [vmem:[#allocation8 + $0x2d0] sm:$0xf0]  ;;  %v8888_v7 = vor.u32 %v11754_v4, %v8887_v2  ;;  %v8895_v9 = vld [vmem:[#allocation8 + $0x2a8] sm:$0xf]  ;;  %v11755_v10 = vld [vmem:[#allocation8 + $0x2d4] sm:$0xf0] }
  0x8d   : > { %v8892_v8 = vor.u32 %v11748_v5, %v8889_v6  ;;  %v11749_v11 = vld [vmem:[#allocation8 + $0x2ac] sm:$0xf]  ;;  %v8896_v12 = vor.u32 %v11755_v10, %v8895_v9  ;;  %v8897_v13 = vld [vmem:[#allocation8 + $0x2d8] sm:$0xf0]  ;;  %v8839_v14 = vld [vmem:[#allocation8 + $0x240] sm:$0xf] }
  0x8e   : > { %v11742_v15 = vld [vmem:[#allocation8 + $0x26c] sm:$0xf0]  ;;  %v8900_v16 = vor.u32 %v11749_v11, %v8897_v13  ;;  %v11736_v18 = vld [vmem:[#allocation8 + $0x244] sm:$0xf]  ;;  %v8841_v19 = vld [vmem:[#allocation8 + $0x270] sm:$0xf0]  ;;  %8548 = vmatmul.msk.bf16.vlgmr.msra.gmra.mxu1 %vm881_vm0, %v868_v3 }
  0x8f   : > { %1508 = vmatpush.bf16.msrb.mxu1 %v8888_v7  ;;  %1521 = vmatpush.bf16.msra.mxu2 %v8892_v8  ;;  %v8840_v17 = vor.u32 %v11742_v15, %v8839_v14  ;;  %v8847_v20 = vld [vmem:[#allocation8 + $0x248] sm:$0xf]  ;;  %v8844_v21 = vor.u32 %v11736_v18, %v8841_v19  ;;  %v11743_v22 = vld [vmem:[#allocation8 + $0x274] sm:$0xf0]  ;;  %v11737_v23 = vld [vmem:[#allocation8 + $0x24c] sm:$0xf] }
  0x90   : > { %1534 = vmatpush.bf16.msra.mxu3 %v8896_v12  ;;  %v8849_v24 = vld [vmem:[#allocation8 + $0x278] sm:$0xf0]  ;;  %1547 = vmatpush.bf16.msra.mxu0 %v8900_v16  ;;  %v8848_v25 = vor.u32 %v11743_v22, %v8847_v20  ;;  %v8791_v27 = vld [vmem:[#allocation8 + $0x1e0] sm:$0xf]  ;;  %v11730_v28 = vld [vmem:[#allocation8 + $0x20c] sm:$0xf0] }
  0x91   : > { %v8852_v26 = vor.u32 %v11737_v23, %v8849_v24  ;;  %v11724_v29 = vld [vmem:[#allocation8 + $0x1e4] sm:$0xf]  ;;  %v8793_v30 = vld [vmem:[#allocation8 + $0x210] sm:$0xf0]  ;;  %v8799_v31 = vld [vmem:[#allocation8 + $0x1e8] sm:$0xf]  ;;  %v8792_v33 = vor.u32 %v11730_v28, %v8791_v27 }
  0x92   : > { %v11731_v32 = vld [vmem:[#allocation8 + $0x214] sm:$0xf0]  ;;  %v8796_v34 = vor.u32 %v11724_v29, %v8793_v30  ;;  %v11725_v35 = vld [vmem:[#allocation8 + $0x1ec] sm:$0xf]  ;;  %v8801_v36 = vld [vmem:[#allocation8 + $0x218] sm:$0xf0] }
  0x93   : > { %1509 = vmatpush.bf16.msrb.mxu1 %v8840_v17  ;;  %1522 = vmatpush.bf16.msra.mxu2 %v8844_v21  ;;  %v8743_v37 = vld [vmem:[#allocation8 + $0x180] sm:$0xf]  ;;  %v8800_v38 = vor.u32 %v11731_v32, %v8799_v31  ;;  %v11718_v39 = vld [vmem:[#allocation8 + $0x1ac] sm:$0xf0]  ;;  %v11712_v40 = vld [vmem:[#allocation8 + $0x184] sm:$0xf]  ;;  %v8804_v42 = vor.u32 %v11725_v35, %v8801_v36 }
  0x94   : > { %1535 = vmatpush.bf16.msra.mxu3 %v8848_v25  ;;  %v8745_v41 = vld [vmem:[#allocation8 + $0x1b0] sm:$0xf0]  ;;  %1548 = vmatpush.bf16.msra.mxu0 %v8852_v26  ;;  %v8751_v43 = vld [vmem:[#allocation8 + $0x188] sm:$0xf]  ;;  %v11719_v44 = vld [vmem:[#allocation8 + $0x1b4] sm:$0xf0]  ;;  %v8744_v47 = vor.u32 %v11718_v39, %v8743_v37 }
  0x95   : > { %v11713_v45 = vld [vmem:[#allocation8 + $0x18c] sm:$0xf]  ;;  %v8753_v46 = vld [vmem:[#allocation8 + $0x1b8] sm:$0xf0]  ;;  %v8748_v48 = vor.u32 %v11712_v40, %v8745_v41  ;;  %v8695_v49 = vld [vmem:[#allocation8 + $0x120] sm:$0xf]  ;;  %v8752_v50 = vor.u32 %v11719_v44, %v8751_v43 }
  0x96   : > { %v11706_v51 = vld [vmem:[#allocation8 + $0x14c] sm:$0xf0]  ;;  %v11700_v52 = vld [vmem:[#allocation8 + $0x124] sm:$0xf]  ;;  %v8697_v53 = vld [vmem:[#allocation8 + $0x150] sm:$0xf0]  ;;  %v8756_v54 = vor.u32 %v11713_v45, %v8753_v46 }
  0x97   : > { %1510 = vmatpush.bf16.msrb.mxu1 %v8792_v33  ;;  %1523 = vmatpush.bf16.msra.mxu2 %v8796_v34  ;;  %v8703_v55 = vld [vmem:[#allocation8 + $0x128] sm:$0xf]  ;;  %v11707_v56 = vld [vmem:[#allocation8 + $0x154] sm:$0xf0]  ;;  %v11701_v57 = vld [vmem:[#allocation8 + $0x12c] sm:$0xf]  ;;  %v8696_v59 = vor.u32 %v11706_v51, %v8695_v49  ;;  %v8700_v60 = vor.u32 %v11700_v52, %v8697_v53 }
  0x98   : > { %1536 = vmatpush.bf16.msra.mxu3 %v8800_v38  ;;  %1549 = vmatpush.bf16.msra.mxu0 %v8804_v42  ;;  %v8705_v58 = vld [vmem:[#allocation8 + $0x158] sm:$0xf0]  ;;  %v8647_v61 = vld [vmem:[#allocation8 + $0xc0] sm:$0xf]  ;;  %v8704_v62 = vor.u32 %v11707_v56, %v8703_v55  ;;  %v11694_v63 = vld [vmem:[#allocation8 + $0xec] sm:$0xf0] }
  0x99   : > { %v11688_v0 = vld [vmem:[#allocation8 + $0xc4] sm:$0xf]  ;;  %v8649_v1 = vld [vmem:[#allocation8 + $0xf0] sm:$0xf0]  ;;  %v8708_v2 = vor.u32 %v11701_v57, %v8705_v58  ;;  %v8655_v3 = vld [vmem:[#allocation8 + $0xc8] sm:$0xf]  ;;  %v8648_v7 = vor.u32 %v11694_v63, %v8647_v61 }
  0x9a   : > { %v11695_v4 = vld [vmem:[#allocation8 + $0xf4] sm:$0xf0]  ;;  %v11689_v5 = vld [vmem:[#allocation8 + $0xcc] sm:$0xf]  ;;  %v8657_v6 = vld [vmem:[#allocation8 + $0xf8] sm:$0xf0]  ;;  %v8652_v8 = vor.u32 %v11688_v0, %v8649_v1 }
  0x9b   : > { %1511 = vmatpush.bf16.msrb.mxu1 %v8744_v47  ;;  %1524 = vmatpush.bf16.msra.mxu2 %v8748_v48  ;;  %v8599_v9 = vld [vmem:[#allocation8 + $0x60] sm:$0xf]  ;;  %v8656_v10 = vor.u32 %v11695_v4, %v8655_v3  ;;  %v11682_v11 = vld [vmem:[#allocation8 + $0x8c] sm:$0xf0]  ;;  %v11676_v12 = vld [vmem:[#allocation8 + $0x64] sm:$0xf]  ;;  %v8660_v14 = vor.u32 %v11689_v5, %v8657_v6 }
  0x9c   : > { %1537 = vmatpush.bf16.msra.mxu3 %v8752_v50  ;;  %1550 = vmatpush.bf16.msra.mxu0 %v8756_v54  ;;  %v8601_v13 = vld [vmem:[#allocation8 + $0x90] sm:$0xf0]  ;;  %v8607_v15 = vld [vmem:[#allocation8 + $0x68] sm:$0xf]  ;;  %v11683_v16 = vld [vmem:[#allocation8 + $0x94] sm:$0xf0]  ;;  %v8600_v20 = vor.u32 %v11682_v11, %v8599_v9 }
  0x9d   : > { %v11677_v17 = vld [vmem:[#allocation8 + $0x6c] sm:$0xf]  ;;  %v8609_v18 = vld [vmem:[#allocation8 + $0x98] sm:$0xf0]  ;;  %v8551_v19 = vld [vmem:[#allocation8] sm:$0xf]  ;;  %v8604_v21 = vor.u32 %v11676_v12, %v8601_v13  ;;  %v8608_v25 = vor.u32 %v11683_v16, %v8607_v15 }
  0x9e   : > { %v11670_v22 = vld [vmem:[#allocation8 + $0x2c] sm:$0xf0]  ;;  %v11664_v23 = vld [vmem:[#allocation8 + $0x4] sm:$0xf]  ;;  %v8553_v24 = vld [vmem:[#allocation8 + $0x30] sm:$0xf0]  ;;  %v8612_v29 = vor.u32 %v11677_v17, %v8609_v18 }
  0x9f   : > { %1512 = vmatpush.bf16.msrb.mxu1 %v8696_v59  ;;  %1525 = vmatpush.bf16.msra.mxu2 %v8700_v60  ;;  %v8559_v26 = vld [vmem:[#allocation8 + $0x8] sm:$0xf]  ;;  %v11671_v27 = vld [vmem:[#allocation8 + $0x34] sm:$0xf0]  ;;  %v11665_v28 = vld [vmem:[#allocation8 + $0xc] sm:$0xf]  ;;  %v8552_v36 = vor.u32 %v11670_v22, %v8551_v19  ;;  %v8556_v37 = vor.u32 %v11664_v23, %v8553_v24 }
  0xa0   : > { %1538 = vmatpush.bf16.msra.mxu3 %v8704_v62  ;;  %1551 = vmatpush.bf16.msra.mxu0 %v8708_v2  ;;  %v8561_v30 = vld [vmem:[#allocation8 + $0x38] sm:$0xf0]  ;;  %v8903_v31 = vld [vmem:[#allocation8 + $0x2b0] sm:$0xf]  ;;  %v11756_v32 = vld [vmem:[#allocation8 + $0x2dc] sm:$0xf0]  ;;  %v8560_v41 = vor.u32 %v11671_v27, %v8559_v26 }
  0xa1   : > { %v11750_v33 = vld [vmem:[#allocation8 + $0x2b4] sm:$0xf]  ;;  %v8905_v34 = vld [vmem:[#allocation8 + $0x2e0] sm:$0xf0]  ;;  %v8911_v35 = vld [vmem:[#allocation8 + $0x2b8] sm:$0xf]  ;;  %v8904_v42 = vor.u32 %v11756_v32, %v8903_v31  ;;  %v8564_v43 = vor.u32 %v11665_v28, %v8561_v30 }
  0xa2   : > { %v11757_v38 = vld [vmem:[#allocation8 + $0x2e4] sm:$0xf0]  ;;  %v11751_v39 = vld [vmem:[#allocation8 + $0x2bc] sm:$0xf]  ;;  %v8913_v40 = vld [vmem:[#allocation8 + $0x2e8] sm:$0xf0]  ;;  %v8908_v44 = vor.u32 %v11750_v33, %v8905_v34 }
  0xa3   : > { %1513 = vmatpush.bf16.msrb.mxu1 %v8648_v7  ;;  %1526 = vmatpush.bf16.msra.mxu2 %v8652_v8  ;;  %v8855_v45 = vld [vmem:[#allocation8 + $0x250] sm:$0xf]  ;;  %v11744_v46 = vld [vmem:[#allocation8 + $0x27c] sm:$0xf0]  ;;  %v8912_v47 = vor.u32 %v11757_v38, %v8911_v35  ;;  %v8916_v48 = vor.u32 %v11751_v39, %v8913_v40  ;;  %v11738_v49 = vld [vmem:[#allocation8 + $0x254] sm:$0xf] }
  0xa4   : > { %1539 = vmatpush.bf16.msra.mxu3 %v8656_v10  ;;  %1552 = vmatpush.bf16.msra.mxu0 %v8660_v14  ;;  %v8857_v50 = vld [vmem:[#allocation8 + $0x280] sm:$0xf0]  ;;  %v8863_v51 = vld [vmem:[#allocation8 + $0x258] sm:$0xf]  ;;  %v11745_v52 = vld [vmem:[#allocation8 + $0x284] sm:$0xf0]  ;;  %v8856_v55 = vor.u32 %v11744_v46, %v8855_v45 }
  0xa5   : > { %v11739_v53 = vld [vmem:[#allocation8 + $0x25c] sm:$0xf]  ;;  %v8865_v54 = vld [vmem:[#allocation8 + $0x288] sm:$0xf0]  ;;  %s13701_s3 = scalar_select %p863_p1, %s14055_s5, 1  ;;  %v8860_v56 = vor.u32 %v11738_v49, %v8857_v50  ;;  %v8864_v60 = vor.u32 %v11745_v52, %v8863_v51  ;;  %vm1699_vm1 = vcmask 1043456  }
  0xa6   : > { %v8807_v57 = vld [vmem:[#allocation8 + $0x1f0] sm:$0xf]  ;;  %v11732_v58 = vld [vmem:[#allocation8 + $0x21c] sm:$0xf0]  ;;  %v11726_v59 = vld [vmem:[#allocation8 + $0x1f4] sm:$0xf]  ;;  %v8868_v61 = vor.u32 %v11739_v53, %v8865_v54 }
  0xa7   : > { %1514 = vmatpush.bf16.msrb.mxu1 %v8600_v20  ;;  %1527 = vmatpush.bf16.msra.mxu2 %v8604_v21  ;;  %v8809_v62 = vld [vmem:[#allocation8 + $0x220] sm:$0xf0]  ;;  %v8815_v63 = vld [vmem:[#allocation8 + $0x1f8] sm:$0xf]  ;;  %v11733_v0 = vld [vmem:[#allocation8 + $0x224] sm:$0xf0]  ;;  %v8808_v4 = vor.u32 %v11732_v58, %v8807_v57 }
  0xa8   : > { %1540 = vmatpush.bf16.msra.mxu3 %v8608_v25  ;;  %1553 = vmatpush.bf16.msra.mxu0 %v8612_v29  ;;  %v11727_v1 = vld [vmem:[#allocation8 + $0x1fc] sm:$0xf]  ;;  %v8817_v2 = vld [vmem:[#allocation8 + $0x228] sm:$0xf0]  ;;  %v8759_v3 = vld [vmem:[#allocation8 + $0x190] sm:$0xf]  ;;  %v8812_v8 = vor.u32 %v11726_v59, %v8809_v62  ;;  %v8816_v13 = vor.u32 %v11733_v0, %v8815_v63 }
  0xa9   : > { %v11720_v5 = vld [vmem:[#allocation8 + $0x1bc] sm:$0xf0]  ;;  %v11714_v6 = vld [vmem:[#allocation8 + $0x194] sm:$0xf]  ;;  %v8761_v7 = vld [vmem:[#allocation8 + $0x1c0] sm:$0xf0]  ;;  %v8820_v14 = vor.u32 %v11727_v1, %v8817_v2 }
  0xaa   : > { %s14056_s19 = sld [smem:[#allocation45_spill]]  ;;  %v8767_v9 = vld [vmem:[#allocation8 + $0x198] sm:$0xf]  ;;  %v11721_v10 = vld [vmem:[#allocation8 + $0x1c4] sm:$0xf0]  ;;  %v8760_v17 = vor.u32 %v11720_v5, %v8759_v3  ;;  %v8764_v18 = vor.u32 %v11714_v6, %v8761_v7  ;;  %vm1683_vm2 = vcmask 64512  }
  0xab   : > { %1515 = vmatpush.bf16.msrb.mxu1 %v8552_v36  ;;  %1528 = vmatpush.bf16.msra.mxu2 %v8556_v37  ;;  %v11715_v11 = vld [vmem:[#allocation8 + $0x19c] sm:$0xf]  ;;  %v8769_v12 = vld [vmem:[#allocation8 + $0x1c8] sm:$0xf0]  ;;  %v8711_v15 = vld [vmem:[#allocation8 + $0x130] sm:$0xf]  ;;  %v8768_v19 = vor.u32 %v11721_v10, %v8767_v9 }
  0xac   : > { %1541 = vmatpush.bf16.msra.mxu3 %v8560_v41  ;;  %1554 = vmatpush.bf16.msra.mxu0 %v8564_v43  ;;  %v11708_v16 = vld [vmem:[#allocation8 + $0x15c] sm:$0xf0]  ;;  %v8772_v20 = vor.u32 %v11715_v11, %v8769_v12  ;;  %v11702_v21 = vld [vmem:[#allocation8 + $0x134] sm:$0xf]  ;;  %v8713_v22 = vld [vmem:[#allocation8 + $0x160] sm:$0xf0] }
  0xad   : > { %v8719_v23 = vld [vmem:[#allocation8 + $0x138] sm:$0xf]  ;;  %v11709_v24 = vld [vmem:[#allocation8 + $0x164] sm:$0xf0]  ;;  %v11703_v25 = vld [vmem:[#allocation8 + $0x13c] sm:$0xf]  ;;  %v8712_v27 = vor.u32 %v11708_v16, %v8711_v15  ;;  %v8716_v28 = vor.u32 %v11702_v21, %v8713_v22 }
  0xae   : > { %v8721_v26 = vld [vmem:[#allocation8 + $0x168] sm:$0xf0]  ;;  %v8663_v29 = vld [vmem:[#allocation8 + $0xd0] sm:$0xf]  ;;  %v11696_v30 = vld [vmem:[#allocation8 + $0xfc] sm:$0xf0]  ;;  %v8720_v31 = vor.u32 %v11709_v24, %v8719_v23 }
  0xaf   : > { %1560 = vmatpush.bf16.msra.mxu1 %v8904_v42  ;;  %1573 = vmatpush.bf16.msrb.mxu2 %v8908_v44  ;;  %v8724_v32 = vor.u32 %v11703_v25, %v8721_v26  ;;  %v11690_v33 = vld [vmem:[#allocation8 + $0xd4] sm:$0xf]  ;;  %v8665_v34 = vld [vmem:[#allocation8 + $0x100] sm:$0xf0]  ;;  %v8671_v35 = vld [vmem:[#allocation8 + $0xd8] sm:$0xf]  ;;  %v8664_v39 = vor.u32 %v11696_v30, %v8663_v29 }
  0xb0   : > { %1586 = vmatpush.bf16.msrb.mxu3 %v8912_v47  ;;  %1599 = vmatpush.bf16.msrb.mxu0 %v8916_v48  ;;  %s865_s26 = scalar_lea.vmem %s14056_s19, %s13701_s3  ;;  %v11697_v36 = vld [vmem:[#allocation8 + $0x104] sm:$0xf0]  ;;  %v11691_v37 = vld [vmem:[#allocation8 + $0xdc] sm:$0xf]  ;;  %v8673_v38 = vld [vmem:[#allocation8 + $0x108] sm:$0xf0]  ;;  %v8668_v40 = vor.u32 %v11690_v33, %v8665_v34 }
  0xb1   : > { %v8672_v41 = vor.u32 %v11697_v36, %v8671_v35  ;;  %v8676_v42 = vor.u32 %v11691_v37, %v8673_v38  ;;  %v8615_v43 = vld [vmem:[#allocation8 + $0x70] sm:$0xf]  ;;  %v11684_v44 = vld [vmem:[#allocation8 + $0x9c] sm:$0xf0]  ;;  %v11678_v45 = vld [vmem:[#allocation8 + $0x74] sm:$0xf] }
  0xb2   : > { %v8616_v46 = vor.u32 %v11684_v44, %v8615_v43  ;;  %v8617_v47 = vld [vmem:[#allocation8 + $0xa0] sm:$0xf0]  ;;  %v8623_v48 = vld [vmem:[#allocation8 + $0x78] sm:$0xf]  ;;  %v11685_v50 = vld [vmem:[#allocation8 + $0xa4] sm:$0xf0] }
  0xb3   : > { %1561 = vmatpush.bf16.msra.mxu1 %v8856_v55  ;;  %1574 = vmatpush.bf16.msrb.mxu2 %v8860_v56  ;;  %v8620_v49 = vor.u32 %v11678_v45, %v8617_v47  ;;  %v11679_v51 = vld [vmem:[#allocation8 + $0x7c] sm:$0xf]  ;;  %v8625_v52 = vld [vmem:[#allocation8 + $0xa8] sm:$0xf0]  ;;  %v8624_v53 = vor.u32 %v11685_v50, %v8623_v48  ;;  %v8567_v55 = vld [vmem:[#allocation8 + $0x10] sm:$0xf] }
  0xb4   : > { %1587 = vmatpush.bf16.msrb.mxu3 %v8864_v60  ;;  %1600 = vmatpush.bf16.msrb.mxu0 %v8868_v61  ;;  %v8628_v54 = vor.u32 %v11679_v51, %v8625_v52  ;;  %v11672_v56 = vld [vmem:[#allocation8 + $0x3c] sm:$0xf0]  ;;  %v11666_v57 = vld [vmem:[#allocation8 + $0x14] sm:$0xf]  ;;  %v8569_v59 = vld [vmem:[#allocation8 + $0x40] sm:$0xf0] }
  0xb5   : > { %v8568_v58 = vor.u32 %v11672_v56, %v8567_v55  ;;  %v8575_v60 = vld [vmem:[#allocation8 + $0x18] sm:$0xf]  ;;  %v11673_v61 = vld [vmem:[#allocation8 + $0x44] sm:$0xf0]  ;;  %v8572_v62 = vor.u32 %v11666_v57, %v8569_v59  ;;  %v11667_v0 = vld [vmem:[#allocation8 + $0x1c] sm:$0xf] }
  0xb6   : > { %v8576_v63 = vor.u32 %v11673_v61, %v8575_v60  ;;  %v8577_v1 = vld [vmem:[#allocation8 + $0x48] sm:$0xf0]  ;;  %v12658_v3 = vld [vmem:[#allocation7] ss:$0 sm:$0xff]  ;;  %v8919_v7 = vld [vmem:[#allocation8 + $0x2c0] sm:$0xf] }
  0xb7   : > { %1562 = vmatpush.bf16.msra.mxu1 %v8808_v4  ;;  %1575 = vmatpush.bf16.msrb.mxu2 %v8812_v8  ;;  %v8580_v2 = vor.u32 %v11667_v0, %v8577_v1  ;;  %v12659_v4 = vld [vmem:[%s865_s26] ss:$0 sm:$0xff]  ;;  %v11758_v8 = vld [vmem:[#allocation8 + $0x2ec] sm:$0xf0]  ;;  %v8921_v10 = vld [vmem:[#allocation8 + $0x2f0] sm:$0xf0] }
  0xb8   : > { %1588 = vmatpush.bf16.msrb.mxu3 %v8816_v13  ;;  %1601 = vmatpush.bf16.msrb.mxu0 %v8820_v14  ;;  %v11752_v9 = vld [vmem:[#allocation8 + $0x2c4] sm:$0xf]  ;;  %v8927_v11 = vld [vmem:[#allocation8 + $0x2c8] sm:$0xf]  ;;  %v11759_v13 = vld [vmem:[#allocation8 + $0x2f4] sm:$0xf0] }
  0xb9   : > { %v11753_v14 = vld [vmem:[#allocation8 + $0x2cc] sm:$0xf]  ;;  %v8929_v15 = vld [vmem:[#allocation8 + $0x2f8] sm:$0xf0]  ;;  %v8928_v21 = vor.u32 %v11759_v13, %v8927_v11  ;;  %v11740_v23 = vld [vmem:[#allocation8 + $0x264] sm:$0xf] }
  0xba   : > { %v8932_v22 = vor.u32 %v11753_v14, %v8929_v15  ;;  %v8873_v24 = vld [vmem:[#allocation8 + $0x290] sm:$0xf0]  ;;  %v8879_v25 = vld [vmem:[#allocation8 + $0x268] sm:$0xf]  ;;  %v11747_v26 = vld [vmem:[#allocation8 + $0x294] sm:$0xf0] }
  0xbb   : > { %1563 = vmatpush.bf16.msra.mxu1 %v8760_v17  ;;  %1576 = vmatpush.bf16.msrb.mxu2 %v8764_v18  ;;  %v8920_v17 = vor.u32 %v11758_v8, %v8919_v7  ;;  %v8924_v18 = vor.u32 %v11752_v9, %v8921_v10  ;;  %v11734_v33 = vld [vmem:[#allocation8 + $0x22c] sm:$0xf0]  ;;  %v8880_v34 = vor.u32 %v11747_v26, %v8879_v25  ;;  %v11728_v36 = vld [vmem:[#allocation8 + $0x204] sm:$0xf]  ;;  %v8825_v37 = vld [vmem:[#allocation8 + $0x230] sm:$0xf0] }
  0xbc   : > { %1589 = vmatpush.bf16.msrb.mxu3 %v8768_v19  ;;  %1602 = vmatpush.bf16.msrb.mxu0 %v8772_v20  ;;  %v8871_v19 = vld [vmem:[#allocation8 + $0x260] sm:$0xf]  ;;  %v11746_v20 = vld [vmem:[#allocation8 + $0x28c] sm:$0xf0]  ;;  %v8831_v38 = vld [vmem:[#allocation8 + $0x208] sm:$0xf]  ;;  %v8828_v43 = vor.u32 %v11728_v36, %v8825_v37 }
  0xbd   : > { %v8872_v30 = vor.u32 %v11746_v20, %v8871_v19  ;;  %v8775_v44 = vld [vmem:[#allocation8 + $0x1a0] sm:$0xf]  ;;  %v11722_v45 = vld [vmem:[#allocation8 + $0x1cc] sm:$0xf0]  ;;  %v11716_v48 = vld [vmem:[#allocation8 + $0x1a4] sm:$0xf] }
  0xbe   : > { %v8783_v50 = vld [vmem:[#allocation8 + $0x1a8] sm:$0xf]  ;;  %v11723_v51 = vld [vmem:[#allocation8 + $0x1d4] sm:$0xf0]  ;;  %v11717_v52 = vld [vmem:[#allocation8 + $0x1ac] sm:$0xf] }
  0xbf   : > { %1564 = vmatpush.bf16.msra.mxu1 %v8712_v27  ;;  %1577 = vmatpush.bf16.msrb.mxu2 %v8716_v28  ;;  %v11741_v27 = vld [vmem:[#allocation8 + $0x26c] sm:$0xf]  ;;  %v8881_v28 = vld [vmem:[#allocation8 + $0x298] sm:$0xf0]  ;;  %v8727_v56 = vld [vmem:[#allocation8 + $0x140] sm:$0xf] }
  0xc0   : > { %1590 = vmatpush.bf16.msrb.mxu3 %v8720_v31  ;;  %1603 = vmatpush.bf16.msrb.mxu0 %v8724_v32  ;;  %v8876_v31 = vor.u32 %v11740_v23, %v8873_v24  ;;  %v8823_v32 = vld [vmem:[#allocation8 + $0x200] sm:$0xf]  ;;  %v8884_v35 = vor.u32 %v11741_v27, %v8881_v28  ;;  %v11710_v57 = vld [vmem:[#allocation8 + $0x16c] sm:$0xf0]  ;;  %v11704_v60 = vld [vmem:[#allocation8 + $0x144] sm:$0xf] }
  0xc1   : > { %v8729_v61 = vld [vmem:[#allocation8 + $0x170] sm:$0xf0]  ;;  %v11705_v0 = vld [vmem:[#allocation8 + $0x14c] sm:$0xf]  ;;  %v8737_v1 = vld [vmem:[#allocation8 + $0x178] sm:$0xf0] }
  0xc2   : > { %v8740_v7 = vor.u32 %v11705_v0, %v8737_v1  ;;  %v11692_v8 = vld [vmem:[#allocation8 + $0xe4] sm:$0xf]  ;;  %v8681_v9 = vld [vmem:[#allocation8 + $0x110] sm:$0xf0]  ;;  %v8687_v10 = vld [vmem:[#allocation8 + $0xe8] sm:$0xf] }
  0xc3   : > { %1565 = vmatpush.bf16.msra.mxu1 %v8664_v39  ;;  %1578 = vmatpush.bf16.msrb.mxu2 %v8668_v40  ;;  %v11735_v39 = vld [vmem:[#allocation8 + $0x234] sm:$0xf0]  ;;  %v11729_v40 = vld [vmem:[#allocation8 + $0x20c] sm:$0xf]  ;;  %v8689_v14 = vld [vmem:[#allocation8 + $0x118] sm:$0xf0] }
  0xc4   : > { %1591 = vmatpush.bf16.msrb.mxu3 %v8672_v41  ;;  %1604 = vmatpush.bf16.msrb.mxu0 %v8676_v42  ;;  %v8833_v41 = vld [vmem:[#allocation8 + $0x238] sm:$0xf0]  ;;  %v8824_v42 = vor.u32 %v11734_v33, %v8823_v32  ;;  %v11699_v11 = vld [vmem:[#allocation8 + $0x114] sm:$0xf0]  ;;  %v11693_v13 = vld [vmem:[#allocation8 + $0xec] sm:$0xf] }
  0xc5   : > { %v8836_v47 = vor.u32 %v11729_v40, %v8833_v41  ;;  %v11686_v19 = vld [vmem:[#allocation8 + $0xac] sm:$0xf0]  ;;  %v8688_v20 = vor.u32 %v11699_v11, %v8687_v10  ;;  %v8633_v23 = vld [vmem:[#allocation8 + $0xb0] sm:$0xf0]  ;;  %v8639_v24 = vld [vmem:[#allocation8 + $0x88] sm:$0xf] }
  0xc6   : > { %v11687_v25 = vld [vmem:[#allocation8 + $0xb4] sm:$0xf0]  ;;  %v11681_v26 = vld [vmem:[#allocation8 + $0x8c] sm:$0xf]  ;;  %v8641_v27 = vld [vmem:[#allocation8 + $0xb8] sm:$0xf0] }
  0xc7   : > { %1566 = vmatpush.bf16.msra.mxu1 %v8616_v46  ;;  %1579 = vmatpush.bf16.msrb.mxu2 %v8620_v49  ;;  %v8832_v46 = vor.u32 %v11735_v39, %v8831_v38  ;;  %v8777_v49 = vld [vmem:[#allocation8 + $0x1d0] sm:$0xf0]  ;;  %v8640_v32 = vor.u32 %v11687_v25, %v8639_v24  ;;  %v8644_v33 = vor.u32 %v11681_v26, %v8641_v27  ;;  %v8591_v36 = vld [vmem:[#allocation8 + $0x28] sm:$0xf]  ;;  %v11675_v37 = vld [vmem:[#allocation8 + $0x54] sm:$0xf0] }
  0xc8   : > { %1592 = vmatpush.bf16.msrb.mxu3 %v8624_v53  ;;  %1605 = vmatpush.bf16.msrb.mxu0 %v8628_v54  ;;  %v8785_v53 = vld [vmem:[#allocation8 + $0x1d8] sm:$0xf0]  ;;  %v8776_v54 = vor.u32 %v11722_v45, %v8775_v44  ;;  %v8780_v55 = vor.u32 %v11716_v48, %v8777_v49  ;;  %v11669_v38 = vld [vmem:[#allocation8 + $0x2c] sm:$0xf]  ;;  %s14057_s27 = sld [smem:[#allocation53_spill]]  ;;  %s862_s24 = scalar_lea.vmem [#allocation29], %s13656_s20 }
  0xc9   : > { %v8788_v59 = vor.u32 %v11717_v52, %v8785_v53  ;;  %v8593_v39 = vld [vmem:[#allocation8 + $0x58] sm:$0xf0]  ;;  %v11774_v10 = vld [vmem:[#allocation11 + $0x70] sm:$0xff]  ;;  %s8276_s3 = sshll.u32 %s862_s24, 4  ;;  %s8266_s0 = scalar_lea.sflag [#allocation4], %s13656_s20  ;;  %s8277_s3 = int_to_ptr.vmem [resolvable:$true] %s8276_s3 }
  0xca   : > { %v11772_v25 = vld [vmem:[#allocation11 + $0x60] sm:$0xff] }
  0xcb   : > { %1567 = vmatpush.bf16.msra.mxu1 %v8568_v58  ;;  %1580 = vmatpush.bf16.msrb.mxu2 %v8572_v62  ;;  %v8784_v58 = vor.u32 %v11723_v51, %v8783_v50  ;;  %v8735_v62 = vld [vmem:[#allocation8 + $0x148] sm:$0xf] }
  0xcc   : > { %1593 = vmatpush.bf16.msrb.mxu3 %v8576_v63  ;;  %1606 = vmatpush.bf16.msrb.mxu0 %v8580_v2  ;;  %v11711_v63 = vld [vmem:[#allocation8 + $0x174] sm:$0xf0]  ;;  %v8728_v2 = vor.u32 %v11710_v57, %v8727_v56 }
  0xce   : > { %s14058_s22 = smov %s14057_s27  ;;  %s8274_s2 = scalar_lea.hbm %s14057_s27, %s14055_s5 }
  0xcf   : > { %s8278_s7 = sshll.u32 %s8274_s2, 4  ;;  %s13244_s5 = scalar_lea.hbm %s14058_s22, 2  ;;  %s8279_s7 = int_to_ptr.hbm [resolvable:$true] %s8278_s7 }
  0xd0   : > { %s13238_s26 = sshra.s32 %s8279_s7, 4  ;;  %s13239_s26 = int_to_ptr.hbm [resolvable:$true] %s13238_s26 }
  0xd1   : > { %s13240_s21 = scalar_lea.hbm %s13239_s26, 1  ;;  %p13245_p7 = scmp.lt.s32.totalorder %s13239_s26, %s14058_s22 }
  0xd2   : > { %p13241_p3 = scmp.ne.s32.totalorder %s13239_s26, %s13240_s21  ;;  %p13246_p8 = scmp.lt.s32.totalorder %s13244_s5, %s13240_s21 }
  0xd4   : > { %p13242_p5 = pnand %p13241_p3, %p13625_p4  ;;  %p13247_p9 = por %p13246_p8, %p13245_p7 }
  0xd6   : > { %p13243_p12 = pneg %p13242_p5 }
  0xd8   : > { %p13248_p10 = pnand %p13247_p9, %p13243_p12 }
 0x10b   : > { %v894_v5 = vpop.f32.mrf.mxu1 }
 0x10c   : > { %v895_v6 = vadd.f32 %v12658_v3, %v894_v5  ;;  %v8732_v3 = vor.u32 %v11704_v60, %v8729_v61  ;;  %v11698_v5 = vld [vmem:[#allocation8 + $0x10c] sm:$0xf0] }
 0x10e   : > { %v13712_v12 = vadd.f32 %v12659_v4, %v895_v6  ;;  %v8679_v4 = vld [vmem:[#allocation8 + $0xe0] sm:$0xf]  ;;  %v8736_v6 = vor.u32 %v11711_v63, %v8735_v62 }
 0x10f   : > { %v8680_v15 = vor.u32 %v11698_v5, %v8679_v4 }
 0x110   : > { %v13716_v16 = vpack.c.bf16 %v13712_v12, %v13712_v12 }
 0x112   : > { %1516 = vmatmul.bf16.vlgmr.msrb.gmra.mxu1 %v13716_v16  ;;  %1529 = vmatmul.bf16.vlgmr.msra.gmra.mxu2 %v13716_v16 }
 0x113   : > { %1542 = vmatmul.bf16.vlgmr.msra.gmra.mxu3 %v13716_v16  ;;  %1555 = vmatmul.bf16.vlgmr.msra.gmra.mxu0 %v13716_v16  ;;  %v896_v29 = vpop.f32.mrf.mxu1 }
 0x114   : > { %1612 = vmatpush.bf16.msrb.mxu1 %v8920_v17  ;;  %1625 = vmatpush.bf16.msra.mxu2 %v8924_v18  ;;  %v8684_v17 = vor.u32 %v11692_v8, %v8681_v9  ;;  %v8631_v18 = vld [vmem:[#allocation8 + $0x80] sm:$0xf] }
 0x115   : > { %1638 = vmatpush.bf16.msra.mxu3 %v8928_v21  ;;  %1651 = vmatpush.bf16.msra.mxu0 %v8932_v22  ;;  %v8692_v21 = vor.u32 %v11693_v13, %v8689_v14  ;;  %v11680_v22 = vld [vmem:[#allocation8 + $0x84] sm:$0xf]  ;;  %v8632_v28 = vor.u32 %v11686_v19, %v8631_v18  ;;  %v1001_v19 = vld [vmem:[#allocation10 + $0x8] sm:$0xf] }
 0x116   : > { %v8636_v29 = vor.u32 %v11680_v22, %v8633_v23  ;;  %v11773_v18 = vld [vmem:[#allocation11 + $0x68] sm:$0xff]  ;;  %v1012_v23 = vperm.slane %v1001_v19, 0  ;;  %v1013_v24 = vperm.slane %v1001_v19, 1  ;;  %v1014_v26 = vperm.slane %v1001_v19, 2 }
 0x117   : > { %v1015_v27 = vperm.slane %v1001_v19, 3 }
 0x118   : > { %1613 = vmatpush.bf16.msrb.mxu1 %v8872_v30  ;;  %1626 = vmatpush.bf16.msra.mxu2 %v8876_v31  ;;  %v8583_v30 = vld [vmem:[#allocation8 + $0x20] sm:$0xf]  ;;  %v11674_v31 = vld [vmem:[#allocation8 + $0x4c] sm:$0xf0] }
 0x119   : > { %1639 = vmatpush.bf16.msra.mxu3 %v8880_v34  ;;  %1652 = vmatpush.bf16.msra.mxu0 %v8884_v35  ;;  %v11668_v34 = vld [vmem:[#allocation8 + $0x24] sm:$0xf]  ;;  %v8585_v35 = vld [vmem:[#allocation8 + $0x50] sm:$0xf0]  ;;  %v8584_v40 = vor.u32 %v11674_v31, %v8583_v30 }
 0x11a   : > { %v8588_v41 = vor.u32 %v11668_v34, %v8585_v35 }
 0x11c   : > { %1614 = vmatpush.bf16.msrb.mxu1 %v8824_v42  ;;  %1627 = vmatpush.bf16.msra.mxu2 %v8828_v43  ;;  %v8592_v42 = vor.u32 %v11675_v37, %v8591_v36  ;;  %v8596_v43 = vor.u32 %v11669_v38, %v8593_v39 }
 0x11d   : > { %1640 = vmatpush.bf16.msra.mxu3 %v8832_v46  ;;  %1653 = vmatpush.bf16.msra.mxu0 %v8836_v47 }
 0x120   : > { %1615 = vmatpush.bf16.msrb.mxu1 %v8776_v54  ;;  %1628 = vmatpush.bf16.msra.mxu2 %v8780_v55  ;;  %v13734_v54 = vld [vmem:[#allocation10] sm:$0xff] }
 0x121   : > { %1641 = vmatpush.bf16.msra.mxu3 %v8784_v58  ;;  %1654 = vmatpush.bf16.msra.mxu0 %v8788_v59  ;;  %v1008_v55 = vperm.slane %v13734_v54, 4  ;;  %v1009_v56 = vperm.slane %v13734_v54, 5  ;;  %v1004_v57 = vperm.slane %v13734_v54, 0  ;;  %v1010_v59 = vperm.slane %v13734_v54, 6 }
 0x122   : > { %1568 = vmatmul.bf16.vlgmr.msra.gmra.mxu1 %v13716_v16  ;;  %1581 = vmatmul.bf16.vlgmr.msrb.gmra.mxu2 %v13716_v16  ;;  %v1011_v0 = vperm.slane %v13734_v54, 7  ;;  %v1006_v38 = vperm.slane %v13734_v54, 2 }
 0x123   : > { %1594 = vmatmul.bf16.vlgmr.msrb.gmra.mxu3 %v13716_v16  ;;  %1607 = vmatmul.bf16.vlgmr.msrb.gmra.mxu0 %v13716_v16 }
 0x124   : > { %1616 = vmatpush.bf16.msrb.mxu1 %v8728_v2  ;;  %1629 = vmatpush.bf16.msra.mxu2 %v8732_v3  ;;  %v11775_v2 = vld [vmem:[#allocation11 + $0x78] sm:$0xff] }
 0x125   : > { %1642 = vmatpush.bf16.msra.mxu3 %v8736_v6  ;;  %1655 = vmatpush.bf16.msra.mxu0 %v8740_v7 }
 0x128   : > { %1617 = vmatpush.bf16.msrb.mxu1 %v8680_v15  ;;  %1630 = vmatpush.bf16.msra.mxu2 %v8684_v17 }
 0x129   : > { %1643 = vmatpush.bf16.msra.mxu3 %v8688_v20  ;;  %1656 = vmatpush.bf16.msra.mxu0 %v8692_v21 }
 0x12c   : > { %1618 = vmatpush.bf16.msrb.mxu1 %v8632_v28  ;;  %1631 = vmatpush.bf16.msra.mxu2 %v8636_v29 }
 0x12d   : > { %1644 = vmatpush.bf16.msra.mxu3 %v8640_v32  ;;  %1657 = vmatpush.bf16.msra.mxu0 %v8644_v33  ;;  %v11771_v32 = vld [vmem:[#allocation11 + $0x58] sm:$0xff] }
 0x130   : > { %1619 = vmatpush.bf16.msrb.mxu1 %v8584_v40  ;;  %1632 = vmatpush.bf16.msra.mxu2 %v8588_v41 }
 0x131   : > { %1645 = vmatpush.bf16.msra.mxu3 %v8592_v42  ;;  %1658 = vmatpush.bf16.msra.mxu0 %v8596_v43  ;;  %v11770_v42 = vld [vmem:[#allocation11 + $0x50] sm:$0xff]  ;;  %v1007_v43 = vperm.slane %v13734_v54, 3 }
 0x133   : > { %1620 = vmatmul.bf16.vlgmr.msrb.gmra.mxu1 %v13716_v16  ;;  %1633 = vmatmul.bf16.vlgmr.msra.gmra.mxu2 %v13716_v16 }
 0x134   : > { %1646 = vmatmul.bf16.vlgmr.msra.gmra.mxu3 %v13716_v16  ;;  %1659 = vmatmul.bf16.vlgmr.msra.gmra.mxu0 %v13716_v16  ;;  %v1005_v16 = vperm.slane %v13734_v54, 1  ;;  %v11768_v54 = vld [vmem:[#allocation11 + $0x40] sm:$0xff] }
 0x18f   : > { %v1517_v44 = vpop.f32.mrf.mxu1 }
 0x190   : > { %v13730_v45 = vpop.f32.mrf.mxu0  ;;  %v1518_v5 = vadd.f32 %v1517_v44, %v1004_v57 }
 0x195   : > { %v1530_v46 = vpop.f32.mrf.mxu2 }
 0x196   : > { %v13732_v47 = vpop.f32.mrf.mxu3  ;;  %v1531_v63 = vadd.f32 %v1530_v46, %v1005_v16 }
 0x197   : > { %v1519_v48 = vpop.f32.mrf.mxu1 }
 0x198   : > { %v1558_v49 = vpop.f32.mrf.mxu0  ;;  %v1664_v8 = vpack.c.bf16 %v1531_v63, %v1518_v5  ;;  %v1544_v48 = vadd.f32 %v13732_v47, %v1006_v38  ;;  %v11763_v38 = vld [vmem:[#allocation11 + $0x18] sm:$0xff] }
 0x19a   : > { %v1734_v17 = vunpack.c.h.b16 %v1664_v8 }
 0x19c   : > { %v1735_v22 = vpack.c.b16 %v1734_v17, %v1734_v17 }
 0x19d   : > { %v1532_v50 = vpop.f32.mrf.mxu2 }
 0x19e   : > { %v1545_v51 = vpop.f32.mrf.mxu3 }
 0x19f   : > { %v1569_v52 = vpop.f32.mrf.mxu1 }
 0x1a0   : > { %v1608_v53 = vpop.f32.mrf.mxu0  ;;  %v1570_v60 = vadd.f32 %v1569_v52, %v1008_v55  ;;  %v11769_v52 = vld [vmem:[#allocation11 + $0x48] sm:$0xff]  ;;  %v1557_v55 = vadd.f32 %v13730_v45, %v1007_v43  ;;  %v11760_v43 = vld [vmem:[#allocation11] sm:$0xff] }
 0x1a1   : > { %v1609_v9 = vadd.f32 %v1608_v53, %v1011_v0 }
 0x1a5   : > { %v1582_v58 = vpop.f32.mrf.mxu2 }
 0x1a6   : > { %v1583_v61 = vadd.f32 %v1582_v58, %v1009_v56  ;;  %v1595_v62 = vpop.f32.mrf.mxu3  ;;  %v13752_v56 = vpack.c.bf16 %v1557_v55, %v1544_v48  ;;  %v11779_v48 = vld [vmem:[#allocation11 + $0x98] sm:$0xff] }
 0x1a7   : > { %v1571_v1 = vpop.f32.mrf.mxu1  ;;  %v1596_v6 = vadd.f32 %v1595_v62, %v1010_v59 }
 0x1a8   : > { %v1666_v3 = vpack.c.bf16 %v1583_v61, %v1570_v60  ;;  %v1610_v4 = vpop.f32.mrf.mxu0 }
 0x1a9   : > { %v13742_v13 = vpack.c.bf16 %v1609_v9, %v1596_v6 }
 0x1aa   : > { %v1738_v7 = vunpack.c.h.b16 %v1666_v3  ;;  %1677 = vmatpush.bf16.xpose.msra.mxu1 %v1666_v3 }
 0x1ac   : > { %v1739_v11 = vpack.c.b16 %v1738_v7, %v1738_v7 }
 0x1ad   : > { %v1584_v14 = vpop.f32.mrf.mxu2 }
 0x1ae   : > { %v1597_v15 = vpop.f32.mrf.mxu3  ;;  %1748 = vmatpush.bf16.xpose.msrb.mxu3 %v1739_v11 }
 0x1b0   : > { %v1621_v20 = vpop.f32.mrf.mxu1 }
 0x1b1   : > { %v1660_v21 = vpop.f32.mrf.mxu0  ;;  %1678 = vmatmul.bf16.vlgmr.msra.gmra.mxu1 %v1664_v8  ;;  %v1622_v29 = vadd.f32 %v1621_v20, %v1012_v23 }
 0x1b2   : > { %1853 = vmatpush.bf16.msrb.mxu1 %v11775_v2  ;;  %v1661_v35 = vadd.f32 %v1660_v21, %v1015_v27 }
 0x1b5   : > { %1749 = vmatmul.bf16.vlgmr.msrb.gmra.mxu3 %v1735_v22 }
 0x1b6   : > { %1854 = vmatpush.bf16.msrb.mxu1 %v11774_v10  ;;  %1934 = vmatpush.bf16.xpose.msra.mxu3 %v13742_v13  ;;  %v1634_v28 = vpop.f32.mrf.mxu2 }
 0x1b7   : > { %v1635_v30 = vadd.f32 %v1634_v28, %v1013_v24  ;;  %v1647_v31 = vpop.f32.mrf.mxu3 }
 0x1b8   : > { %v1648_v33 = vadd.f32 %v1647_v31, %v1014_v26  ;;  %v1623_v34 = vpop.f32.mrf.mxu1  ;;  %v11783_v31 = vld [vmem:[#allocation11 + $0xb8] sm:$0xff] }
 0x1b9   : > { %v1668_v36 = vpack.c.bf16 %v1635_v30, %v1622_v29  ;;  %v1662_v37 = vpop.f32.mrf.mxu0  ;;  %v11767_v29 = vld [vmem:[#allocation11 + $0x38] sm:$0xff]  ;;  %v11766_v30 = vld [vmem:[#allocation11 + $0x30] sm:$0xff]  ;;  %v11765_v34 = vld [vmem:[#allocation11 + $0x28] sm:$0xff] }
 0x1ba   : > { %1855 = vmatpush.bf16.msrb.mxu1 %v11773_v18  ;;  %v1669_v40 = vpack.c.bf16 %v1661_v35, %v1648_v33  ;;  %v11782_v33 = vld [vmem:[#allocation11 + $0xb0] sm:$0xff]  ;;  %v11764_v35 = vld [vmem:[#allocation11 + $0x20] sm:$0xff] }
 0x1bb   : > { %v1767_v39 = vunpack.c.h.b16 %v1668_v36  ;;  %v1701_v41 = vsel %vm1699_vm1, %v1668_v36, 0 }
 0x1bc   : > { %1710 = vmatpush.bf16.msrb.mxu2 %v1701_v41  ;;  %v2084_v49 = vunpack.c.h.b16 %v1669_v40  ;;  %v1956_v53 = vsel %vm1699_vm1, %v1669_v40, 0  ;;  %v11761_v40 = vld [vmem:[#allocation11 + $0x8] sm:$0xff]  ;;  %v2051_v41 = vunpack.c.h.b16 %v13752_v56 }
 0x1bd   : > { %v1768_v44 = vpack.c.b16 %v1767_v39, %v1767_v39  ;;  %v11762_v39 = vld [vmem:[#allocation11 + $0x10] sm:$0xff] }
 0x1be   : > { %1856 = vmatpush.bf16.msrb.mxu1 %v11772_v25  ;;  %v1636_v46 = vpop.f32.mrf.mxu2  ;;  %v2085_v16 = vpack.c.b16 %v2084_v49, %v2084_v49  ;;  %v2055_v25 = vunpack.c.h.b16 %v13742_v13  ;;  %2036 = vmatpush.bf16.msrb.mxu3 %v11783_v31  ;;  %v11778_v49 = vld [vmem:[#allocation11 + $0x90] sm:$0xff] }
 0x1bf   : > { %v1649_v50 = vpop.f32.mrf.mxu3  ;;  %v1773_v51 = vsel %vm1699_vm1, %v1768_v44, 0  ;;  %v11781_v44 = vld [vmem:[#allocation11 + $0xa8] sm:$0xff]  ;;  %v11780_v46 = vld [vmem:[#allocation11 + $0xa0] sm:$0xff] }
 0x1c0   : > { %1782 = vmatpush.bf16.msrb.mxu0 %v1773_v51  ;;  %v2090_v47 = vsel %vm1699_vm1, %v2085_v16, 0  ;;  %v2056_v28 = vpack.c.b16 %v2055_v25, %v2055_v25  ;;  %1914 = vmatpush.bf16.msra.mxu2 %v11767_v29  ;;  %v11777_v50 = vld [vmem:[#allocation11 + $0x88] sm:$0xff]  ;;  %v11776_v51 = vld [vmem:[#allocation11 + $0x80] sm:$0xff] }
 0x1c2   : > { %1857 = vmatpush.bf16.msrb.mxu1 %v11771_v32  ;;  %2037 = vmatpush.bf16.msrb.mxu3 %v11782_v33 }
 0x1c4   : > { %1965 = vmatpush.bf16.msra.mxu0 %v1956_v53  ;;  %1915 = vmatpush.bf16.msra.mxu2 %v11766_v30  ;;  %v12660_v30 = vld [vmem:[#allocation13] ss:$0 sm:$0xff] }
 0x1c5   : > { %1935 = vmatmul.bf16.vlgmr.msra.gmra.mxu3 %v13752_v56 }
 0x1c6   : > { %1858 = vmatpush.bf16.msrb.mxu1 %v11770_v42  ;;  %v2052_v42 = vpack.c.b16 %v2051_v41, %v2051_v41  ;;  %2038 = vmatpush.bf16.msrb.mxu3 %v11781_v44  ;;  %v9523_v41 = vld [vmem:[#allocation17 + $0x388] sm:$0xf]  ;;  %v11905_v44 = vld [vmem:[#allocation17 + $0x38c] sm:$0xf] }
 0x1c8   : > { %1916 = vmatpush.bf16.msra.mxu2 %v11765_v34  ;;  %v13350_v34 = vmov 128.0  }
 0x1ca   : > { %1859 = vmatpush.bf16.msrb.mxu1 %v11769_v52  ;;  %2039 = vmatpush.bf16.msrb.mxu3 %v11780_v46  ;;  %v9525_v46 = vld [vmem:[#allocation17 + $0x3c8] sm:$0xf0] }
 0x1cc   : > { %1917 = vmatpush.bf16.msra.mxu2 %v11764_v35 }
 0x1ce   : > { %1860 = vmatpush.bf16.msrb.mxu1 %v11768_v54  ;;  %2040 = vmatpush.bf16.msrb.mxu3 %v11779_v48  ;;  %v9451_v48 = vld [vmem:[#allocation17 + $0x300] sm:$0xf] }
 0x1d0   : > { %1918 = vmatpush.bf16.msra.mxu2 %v11763_v38  ;;  %v11904_v38 = vld [vmem:[#allocation17 + $0x384] sm:$0xf] }
 0x1d2   : > { %2099 = vmatpush.bf16.msra.mxu1 %v2090_v47  ;;  %2041 = vmatpush.bf16.msrb.mxu3 %v11778_v49  ;;  %v9528_v49 = vor.u32 %v11905_v44, %v9525_v46 }
 0x1d4   : > { %1919 = vmatpush.bf16.msra.mxu2 %v11762_v39 }
 0x1d6   : > { %2042 = vmatpush.bf16.msrb.mxu3 %v11777_v50  ;;  %v11896_v50 = vld [vmem:[#allocation17 + $0x33c] sm:$0xf0] }
 0x1d8   : > { %1920 = vmatpush.bf16.msra.mxu2 %v11761_v40  ;;  %v9517_v40 = vld [vmem:[#allocation17 + $0x3c0] sm:$0xf0] }
 0x1da   : > { %2043 = vmatpush.bf16.msrb.mxu3 %v11776_v51  ;;  %v11888_v51 = vld [vmem:[#allocation17 + $0x304] sm:$0xf] }
 0x1dc   : > { %1921 = vmatpush.bf16.msra.mxu2 %v11760_v43 }
 0x22e   : > { %v1679_v57 = vpop.f32.mrf.mxu1 }
 0x22f   : > { %v1684_v58 = vsel %vm1683_vm2, %v1679_v57, -inf }
 0x230   : > { %1685 = vmax.xlane.f32.xlu2 %v1684_v58 }
 0x236   : > { %v1681_v59 = vpop.f32.mrf.mxu1 }
 0x238   : > { %v1750_v60 = vpop.f32.mrf.mxu3 }
 0x239   : > { %v1754_v45 = vsel %vm1683_vm2, %v1750_v60, -inf }
 0x23a   : > { %1755 = vmax.xlane.f32.xlu0 %v1754_v45 }
 0x240   : > { %v1752_v61 = vpop.f32.mrf.mxu3 }
 0x248   : > { %v1936_v62 = vpop.f32.mrf.mxu3 }
 0x249   : > { %v1940_v63 = vsel %vm1683_vm2, %v1936_v62, -inf }
 0x24a   : > { %1941 = vmax.xlane.f32.xlu0 %v1940_v63 }
 0x250   : > { %v1938_v0 = vpop.f32.mrf.mxu3 }
 0x2a3   : > { %v1686_v1 = vpop.xlane.xlu2 %1685 }
 0x2a4   : > { %v1687_v2 = vsub.f32 %v1679_v57, %v1686_v1 }
 0x2a6   : > { %v1688_v3 = vmul.f32 1.442695, %v1687_v2 }
 0x2a8   : > { %12672 = vpow2.f32 %v1688_v3 }
 0x2ad   : > { %v1756_v4 = vpop.xlane.xlu0 %1755 }
 0x2ae   : > { %v12673_v5 = vpop.eup %12672  ;;  %v1757_v6 = vsub.f32 %v1750_v60, %v1756_v4 }
 0x2af   : > { %v1690_v7 = vsel %vm1683_vm2, %v12673_v5, 0.0 }
 0x2b0   : > { %v1758_v8 = vmul.f32 1.442695, %v1757_v6  ;;  %1691 = vadd.xlane.f32.xlu0 %v1690_v7 }
 0x2b2   : > { %12674 = vpow2.f32 %v1758_v8 }
 0x2b8   : > { %v12675_v9 = vpop.eup %12674 }
 0x2b9   : > { %v1760_v10 = vsel %vm1683_vm2, %v12675_v9, 0.0 }
 0x2ba   : > { %1761 = vadd.xlane.f32.xlu1 %v1760_v10  ;;  %v11791_v10 = vld [vmem:[#allocation11 + $0xf8] sm:$0xff] }
 0x2bd   : > { %v1942_v11 = vpop.xlane.xlu0 %1941 }
 0x2be   : > { %v1943_v14 = vsub.f32 %v1936_v62, %v1942_v11  ;;  %v11790_v11 = vld [vmem:[#allocation11 + $0xf0] sm:$0xff] }
 0x2c0   : > { %v1944_v15 = vmul.f32 1.442695, %v1943_v14  ;;  %v11789_v14 = vld [vmem:[#allocation11 + $0xe8] sm:$0xff] }
 0x2c2   : > { %12676 = vpow2.f32 %v1944_v15  ;;  %v11788_v15 = vld [vmem:[#allocation11 + $0xe0] sm:$0xff] }
 0x2c8   : > { %v12677_v17 = vpop.eup %12676 }
 0x2c9   : > { %v1946_v18 = vsel %vm1683_vm2, %v12677_v17, 0.0 }
 0x2ca   : > { %1947 = vadd.xlane.f32.xlu1 %v1946_v18  ;;  %v11786_v18 = vld [vmem:[#allocation11 + $0xd0] sm:$0xff] }
 0x323   : > { %v1692_v19 = vpop.xlane.xlu0 %1691 }
 0x324   : > { %12678 = vrcp.f32 %v1692_v19 }
 0x32a   : > { %v12679_v20 = vpop.eup %12678 }
 0x32b   : > { %v1694_v21 = vmul.f32 %v12679_v20, %v12673_v5  ;;  %v11785_v20 = vld [vmem:[#allocation11 + $0xc8] sm:$0xff] }
 0x32d   : > { %v1695_v22 = vpack.c.bf16 %v1694_v21, %v1694_v21  ;;  %v1762_v23 = vpop.xlane.xlu1 %1761 }
 0x32e   : > { %12680 = vrcp.f32 %v1762_v23 }
 0x32f   : > { %8933 = vmatmul.msk.bf16.vlgmr.msrb.gmra.mxu2 %vm1683_vm2, %v1695_v22 }
 0x330   : > { %2170 = vmatpush.bf16.msrb.mxu2 %v11791_v10  ;;  %v9331_v10 = vld [vmem:[#allocation17 + $0x208] sm:$0xf] }
 0x334   : > { %v12681_v24 = vpop.eup %12680  ;;  %2171 = vmatpush.bf16.msrb.mxu2 %v11790_v11  ;;  %v11865_v11 = vld [vmem:[#allocation17 + $0x244] sm:$0xf0] }
 0x335   : > { %v1764_v26 = vmul.f32 %v12681_v24, %v12675_v9  ;;  %v11784_v24 = vld [vmem:[#allocation11 + $0xc0] sm:$0xff] }
 0x337   : > { %v1765_v27 = vpack.c.bf16 %v1764_v26, %v1764_v26 }
 0x338   : > { %2172 = vmatpush.bf16.msrb.mxu2 %v11789_v14  ;;  %v11857_v14 = vld [vmem:[#allocation17 + $0x20c] sm:$0xf] }
 0x339   : > { %8934 = vmatmul.msk.bf16.vlgmr.msrb.gmra.mxu0 %vm1683_vm2, %v1765_v27 }
 0x33a   : > { %2065 = vmatpush.bf16.xpose.msrb.mxu0 %v2056_v28 }
 0x33c   : > { %2173 = vmatpush.bf16.msrb.mxu2 %v11788_v15  ;;  %v9333_v15 = vld [vmem:[#allocation17 + $0x248] sm:$0xf0] }
 0x33d   : > { %v1948_v32 = vpop.xlane.xlu1 %1947 }
 0x33e   : > { %12682 = vrcp.f32 %v1948_v32 }
 0x344   : > { %v12683_v13 = vpop.eup %12682 }
 0x345   : > { %v1950_v36 = vmul.f32 %v12683_v13, %v12677_v17  ;;  %v11787_v17 = vld [vmem:[#allocation11 + $0xd8] sm:$0xff] }
 0x346   : > { %2174 = vmatpush.bf16.msrb.mxu2 %v11787_v17 }
 0x347   : > { %v1951_v37 = vpack.c.bf16 %v1950_v36, %v1950_v36  ;;  %v9515_v36 = vld [vmem:[#allocation17 + $0x380] sm:$0xf] }
 0x349   : > { %8999 = vmatmul.msk.bf16.vlgmr.msra.gmra.mxu0 %vm1683_vm2, %v1951_v37  ;;  %v11912_v37 = vld [vmem:[#allocation17 + $0x3bc] sm:$0xf0] }
 0x34a   : > { %2175 = vmatpush.bf16.msrb.mxu2 %v11786_v18  ;;  %v9516_v39 = vor.u32 %v11912_v37, %v9515_v36  ;;  %v11832_v36 = vld [vmem:[#allocation17 + $0x13c] sm:$0xf0]  ;;  %v11824_v37 = vld [vmem:[#allocation17 + $0x104] sm:$0xf] }
 0x34c   : > { %3032 = vmatpush.bf16.msra.mxu0 %v9516_v39  ;;  %v9197_v39 = vld [vmem:[#allocation17 + $0x140] sm:$0xf0] }
 0x34d   : > { %v9200_v46 = vor.u32 %v11824_v37, %v9197_v39  ;;  %v11882_v39 = vld [vmem:[#allocation17 + $0x2cc] sm:$0xf0] }
 0x34e   : > { %2176 = vmatpush.bf16.msrb.mxu2 %v11785_v20  ;;  %v9332_v20 = vor.u32 %v11865_v11, %v9331_v10  ;;  %v11914_v11 = vld [vmem:[#allocation17 + $0x3cc] sm:$0xf0] }
 0x352   : > { %2177 = vmatpush.bf16.msrb.mxu2 %v11784_v24  ;;  %v9336_v24 = vor.u32 %v11857_v14, %v9333_v15  ;;  %v11906_v14 = vld [vmem:[#allocation17 + $0x394] sm:$0xf] }
 0x353   : > { %v9533_v15 = vld [vmem:[#allocation17 + $0x3d0] sm:$0xf0] }
 0x359   : > { %2066 = vmatmul.bf16.vlgmr.msrb.gmra.mxu0 %v2052_v42  ;;  %v11913_v42 = vld [vmem:[#allocation17 + $0x3c4] sm:$0xf0] }
 0x35a   : > { %v9524_v43 = vor.u32 %v11913_v42, %v9523_v41  ;;  %v11833_v41 = vld [vmem:[#allocation17 + $0x144] sm:$0xf0]  ;;  %v11825_v42 = vld [vmem:[#allocation17 + $0x10c] sm:$0xf] }
 0x35c   : > { %3058 = vmatpush.bf16.msra.mxu3 %v9524_v43 }
 0x3b2   : > { %v1712_v52 = vpop.f32.mrf.mxu2 }
 0x3b3   : > { %v1716_v53 = vpack.c.bf16 %v1712_v52, %v1712_v52  ;;  %v9453_v52 = vld [vmem:[#allocation17 + $0x340] sm:$0xf0] }
 0x3b5   : > { %1922 = vmatmul.bf16.vlgmr.msra.gmra.mxu2 %v1716_v53  ;;  %v9452_v53 = vor.u32 %v11896_v50, %v9451_v48  ;;  %v11816_v50 = vld [vmem:[#allocation17 + $0xbc] sm:$0xf0] }
 0x3b6   : > { %v1784_v55 = vpop.f32.mrf.mxu0  ;;  %3071 = vmatpush.bf16.msra.mxu2 %v9528_v49  ;;  %v9131_v49 = vld [vmem:[#allocation17 + $0x80] sm:$0xf] }
 0x3b7   : > { %v1788_v56 = vpack.c.bf16 %v1784_v55, %v1784_v55  ;;  %v9456_v55 = vor.u32 %v11888_v51, %v9453_v52  ;;  %3033 = vmatpush.bf16.msra.mxu0 %v9452_v53  ;;  %v11808_v51 = vld [vmem:[#allocation17 + $0x84] sm:$0xf] }
 0x3b8   : > { %v9133_v53 = vld [vmem:[#allocation17 + $0xc0] sm:$0xf0] }
 0x3b9   : > { %1861 = vmatmul.bf16.vlgmr.msrb.gmra.mxu1 %v1788_v56  ;;  %v9459_v56 = vld [vmem:[#allocation17 + $0x308] sm:$0xf] }
 0x3ba   : > { %v1714_v16 = vpop.f32.mrf.mxu2 }
 0x3bb   : > { %v11897_v16 = vld [vmem:[#allocation17 + $0x344] sm:$0xf0] }
 0x3be   : > { %v1786_v54 = vpop.f32.mrf.mxu0 }
 0x3bf   : > { %v11889_v54 = vld [vmem:[#allocation17 + $0x30c] sm:$0xf] }
 0x3c6   : > { %v1967_v47 = vpop.f32.mrf.mxu0 }
 0x3c7   : > { %v1971_v57 = vpack.c.bf16 %v1967_v47, %v1967_v47  ;;  %v9460_v47 = vor.u32 %v11897_v16, %v9459_v56  ;;  %v11817_v56 = vld [vmem:[#allocation17 + $0xc4] sm:$0xf0]  ;;  %v11809_v16 = vld [vmem:[#allocation17 + $0x8c] sm:$0xf] }
 0x3c9   : > { %2044 = vmatmul.bf16.vlgmr.msrb.gmra.mxu3 %v1971_v57  ;;  %v9461_v57 = vld [vmem:[#allocation17 + $0x348] sm:$0xf0] }
 0x3ca   : > { %3059 = vmatpush.bf16.msra.mxu3 %v9460_v47 }
 0x3ce   : > { %v1969_v58 = vpop.f32.mrf.mxu0 }
 0x3cf   : > { %v9387_v58 = vld [vmem:[#allocation17 + $0x280] sm:$0xf] }
 0x3d6   : > { %v2067_v59 = vpop.f32.mrf.mxu0 }
 0x3d7   : > { %v2071_v60 = vsel %vm1683_vm2, %v2067_v59, -inf }
 0x3d8   : > { %2072 = vmax.xlane.f32.xlu2 %v2071_v60  ;;  %v9464_v60 = vor.u32 %v11889_v54, %v9461_v57  ;;  %v9141_v54 = vld [vmem:[#allocation17 + $0xc8] sm:$0xf0]  ;;  %v9132_v57 = vor.u32 %v11816_v50, %v9131_v49  ;;  %v9413_v49 = vld [vmem:[#allocation17 + $0x2d8] sm:$0xf0] }
 0x3da   : > { %3072 = vmatpush.bf16.msra.mxu2 %v9464_v60 }
 0x3de   : > { %v2069_v45 = vpop.f32.mrf.mxu0 }
 0x3df   : > { %v11872_v45 = vld [vmem:[#allocation17 + $0x284] sm:$0xf] }
 0x436   : > { %v1862_v61 = vpop.f32.mrf.mxu1 }
 0x438   : > { %v1923_v62 = vpop.f32.mrf.mxu2 }
 0x439   : > { %v1924_v63 = vadd.f32 %v1923_v62, %v1862_v61  ;;  %v9389_v61 = vld [vmem:[#allocation17 + $0x2c0] sm:$0xf0]  ;;  %v9395_v62 = vld [vmem:[#allocation17 + $0x288] sm:$0xf] }
 0x43e   : > { %v1864_v0 = vpop.f32.mrf.mxu1 }
 0x43f   : > { %v11881_v0 = vld [vmem:[#allocation17 + $0x2c4] sm:$0xf0] }
 0x440   : > { %v1925_v1 = vpop.f32.mrf.mxu2 }
 0x441   : > { %v11873_v1 = vld [vmem:[#allocation17 + $0x28c] sm:$0xf] }
 0x44b   : > { %v2073_v2 = vpop.xlane.xlu2 %2072 }
 0x44c   : > { %v2074_v3 = vsub.f32 %v2067_v59, %v2073_v2  ;;  %v2045_v4 = vpop.f32.mrf.mxu3  ;;  %v11880_v59 = vld [vmem:[#allocation17 + $0x2bc] sm:$0xf0]  ;;  %v9397_v2 = vld [vmem:[#allocation17 + $0x2c8] sm:$0xf0] }
 0x44d   : > { %v2049_v5 = vadd.f32 %v2045_v4, %v1924_v63  ;;  %v9388_v63 = vor.u32 %v11880_v59, %v9387_v58  ;;  %v9396_v4 = vor.u32 %v11881_v0, %v9395_v62  ;;  %v9136_v58 = vor.u32 %v11808_v51, %v9133_v53  ;;  %v11800_v0 = vld [vmem:[#allocation17 + $0x3c] sm:$0xf0]  ;;  %v9339_v51 = vld [vmem:[#allocation17 + $0x210] sm:$0xf]  ;;  %v11858_v53 = vld [vmem:[#allocation17 + $0x214] sm:$0xf] }
 0x44e   : > { %v2075_v6 = vmul.f32 1.442695, %v2074_v3  ;;  %v9392_v3 = vor.u32 %v11872_v45, %v9389_v61  ;;  %v9144_v45 = vor.u32 %v11809_v16, %v9141_v54  ;;  %v9347_v16 = vld [vmem:[#allocation17 + $0x218] sm:$0xf] }
 0x44f   : > { %3034 = vmatpush.bf16.msra.mxu0 %v9388_v63  ;;  %3060 = vmatpush.bf16.msra.mxu3 %v9396_v4  ;;  %v9067_v63 = vld [vmem:[#allocation17] sm:$0xf]  ;;  %v9075_v4 = vld [vmem:[#allocation17 + $0x8] sm:$0xf]  ;;  %v11867_v54 = vld [vmem:[#allocation17 + $0x254] sm:$0xf0] }
 0x450   : > { %12684 = vpow2.f32 %v2075_v6  ;;  %v11864_v6 = vld [vmem:[#allocation17 + $0x23c] sm:$0xf0] }
 0x453   : > { %3061 = vmatpush.bf16.msra.mxu3 %v9332_v20  ;;  %v11915_v20 = vld [vmem:[#allocation17 + $0x3d4] sm:$0xf0] }
 0x454   : > { %v2047_v7 = vpop.f32.mrf.mxu3 }
 0x455   : > { %v11856_v7 = vld [vmem:[#allocation17 + $0x204] sm:$0xf] }
 0x456   : > { %v12685_v8 = vpop.eup %12684 }
 0x457   : > { %v2077_v9 = vsel %vm1683_vm2, %v12685_v8, 0.0 }
 0x458   : > { %2078 = vadd.xlane.f32.xlu1 %v2077_v9  ;;  %v9325_v9 = vld [vmem:[#allocation17 + $0x240] sm:$0xf0] }
 0x4cb   : > { %v2079_v19 = vpop.xlane.xlu1 %2078 }
 0x4cc   : > { %12686 = vrcp.f32 %v2079_v19  ;;  %v9328_v19 = vor.u32 %v11856_v7, %v9325_v9  ;;  %v9077_v9 = vld [vmem:[#allocation17 + $0x48] sm:$0xf0] }
 0x4cd   : > { %12688 = vrcp.f32 %v13350_v34 }
 0x4d2   : > { %v12687_v21 = vpop.eup %12686 }
 0x4d3   : > { %v2081_v22 = vmul.f32 %v12687_v21, %v12685_v8  ;;  %v13774_v35 = vpop.eup %12688  ;;  %v9400_v8 = vor.u32 %v11873_v1, %v9397_v2  ;;  %v9259_v21 = vld [vmem:[#allocation17 + $0x180] sm:$0xf]  ;;  %v11792_v1 = vld [vmem:[#allocation17 + $0x4] sm:$0xf]  ;;  %v9068_v2 = vor.u32 %v11800_v0, %v9067_v63  ;;  %v11842_v63 = vld [vmem:[#allocation17 + $0x194] sm:$0xf] }
 0x4d4   : > { %v13777_v13 = vmul.f32 128.0, %v13774_v35  ;;  %vm2199_vm3 = vweird.f32 %v13774_v35 }
 0x4d5   : > { %v2082_v23 = vpack.c.bf16 %v2081_v22, %v2081_v22  ;;  %v11848_v22 = vld [vmem:[#allocation17 + $0x1bc] sm:$0xf0]  ;;  %3073 = vmatpush.bf16.msra.mxu2 %v9400_v8  ;;  %v11793_v8 = vld [vmem:[#allocation17 + $0xc] sm:$0xf] }
 0x4d6   : > { %v2196_v17 = vsub.f32 1.0, %v13777_v13  ;;  %v9195_v13 = vld [vmem:[#allocation17 + $0x100] sm:$0xf]  ;;  %v9080_v10 = vor.u32 %v11793_v8, %v9077_v9  ;;  %v9211_v9 = vld [vmem:[#allocation17 + $0x110] sm:$0xf] }
 0x4d7   : > { %9032 = vmatmul.msk.bf16.vlgmr.msra.gmra.mxu1 %vm1683_vm2, %v2082_v23  ;;  %v11840_v23 = vld [vmem:[#allocation17 + $0x184] sm:$0xf]  ;;  %v9196_v44 = vor.u32 %v11832_v36, %v9195_v13  ;;  %v9477_v13 = vld [vmem:[#allocation17 + $0x358] sm:$0xf0] }
 0x4d9   : > { %3074 = vmatpush.bf16.msra.mxu2 %v9336_v24  ;;  %v9467_v24 = vld [vmem:[#allocation17 + $0x310] sm:$0xf] }
 0x554   : > { %v2101_v25 = vpop.f32.mrf.mxu1 }
 0x555   : > { %v2105_v26 = vpack.c.bf16 %v2101_v25, %v2101_v25  ;;  %v9261_v25 = vld [vmem:[#allocation17 + $0x1c0] sm:$0xf0] }
 0x557   : > { %2178 = vmatmul.bf16.vlgmr.msrb.gmra.mxu2 %v2105_v26  ;;  %v9267_v26 = vld [vmem:[#allocation17 + $0x188] sm:$0xf] }
 0x55c   : > { %v2103_v27 = vpop.f32.mrf.mxu1 }
 0x55d   : > { %v11849_v27 = vld [vmem:[#allocation17 + $0x1c4] sm:$0xf0] }
 0x55e   : > { %v9268_v34 = vor.u32 %v11849_v27, %v9267_v26 }
 0x560   : > { %3062 = vmatpush.bf16.msra.mxu3 %v9268_v34  ;;  %v11891_v34 = vld [vmem:[#allocation17 + $0x31c] sm:$0xf] }
 0x561   : > { %v9480_v37 = vor.u32 %v11891_v34, %v9477_v13  ;;  %v9157_v34 = vld [vmem:[#allocation17 + $0xd8] sm:$0xf0] }
 0x5da   : > { %v2179_v28 = vpop.f32.mrf.mxu2 }
 0x5db   : > { %v2183_v29 = vadd.f32 %v2179_v28, %v2049_v5  ;;  %v9323_v5 = vld [vmem:[#allocation17 + $0x200] sm:$0xf]  ;;  %v11841_v28 = vld [vmem:[#allocation17 + $0x18c] sm:$0xf] }
 0x5dc   : > { %v9324_v18 = vor.u32 %v11864_v6, %v9323_v5  ;;  %v11801_v5 = vld [vmem:[#allocation17 + $0x44] sm:$0xf0] }
 0x5dd   : > { %v2184_v31 = vadd.f32 %v2183_v29, %v13712_v12  ;;  %v9520_v12 = vor.u32 %v11904_v38, %v9517_v40  ;;  %v9269_v29 = vld [vmem:[#allocation17 + $0x1c8] sm:$0xf0]  ;;  %v9203_v40 = vld [vmem:[#allocation17 + $0x108] sm:$0xf]  ;;  %v9076_v7 = vor.u32 %v11801_v5, %v9075_v4 }
 0x5de   : > { %3035 = vmatpush.bf16.msra.mxu0 %v9324_v18  ;;  %v9272_v38 = vor.u32 %v11841_v28, %v9269_v29  ;;  %v9204_v48 = vor.u32 %v11833_v41, %v9203_v40  ;;  %v9536_v18 = vor.u32 %v11906_v14, %v9533_v15  ;;  %v11890_v28 = vld [vmem:[#allocation17 + $0x314] sm:$0xf]  ;;  %v9219_v15 = vld [vmem:[#allocation17 + $0x118] sm:$0xf] }
 0x5df   : > { %v13771_v32 = vadd.f32 %v12660_v30, %v2184_v31  ;;  %3045 = vmatpush.bf16.msrb.mxu1 %v9520_v12  ;;  %v2197_v30 = vmul.f32 %v13774_v35, %v2196_v17  ;;  %v9260_v31 = vor.u32 %v11848_v22, %v9259_v21  ;;  %v9205_v12 = vld [vmem:[#allocation17 + $0x148] sm:$0xf0]  ;;  %v11907_v21 = vld [vmem:[#allocation17 + $0x39c] sm:$0xf]  ;;  %v9469_v29 = vld [vmem:[#allocation17 + $0x350] sm:$0xf0] }
 0x5e0   : > { %3075 = vmatpush.bf16.msra.mxu2 %v9272_v38  ;;  %v9208_v52 = vor.u32 %v11825_v42, %v9205_v12  ;;  %3063 = vmatpush.bf16.msra.mxu3 %v9204_v48  ;;  %v9403_v38 = vld [vmem:[#allocation17 + $0x290] sm:$0xf]  ;;  %v11874_v40 = vld [vmem:[#allocation17 + $0x294] sm:$0xf]  ;;  %v9411_v12 = vld [vmem:[#allocation17 + $0x298] sm:$0xf] }
 0x5e1   : > { %2192 = vadd.xlane.f32.xlu2 %v13771_v32  ;;  %v2198_v43 = vadd.f32 %v13774_v35, %v2197_v30  ;;  %v9475_v30 = vld [vmem:[#allocation17 + $0x318] sm:$0xf]  ;;  %v9404_v41 = vor.u32 %v11882_v39, %v9403_v38  ;;  %v9405_v42 = vld [vmem:[#allocation17 + $0x2d0] sm:$0xf0]  ;;  %v11875_v48 = vld [vmem:[#allocation17 + $0x29c] sm:$0xf] }
 0x5e2   : > { %v2181_v33 = vpop.f32.mrf.mxu2  ;;  %3036 = vmatpush.bf16.msra.mxu0 %v9260_v31  ;;  %v9472_v31 = vor.u32 %v11890_v28, %v9469_v29  ;;  %v9416_v50 = vor.u32 %v11875_v48, %v9413_v49  ;;  %v9213_v14 = vld [vmem:[#allocation17 + $0x150] sm:$0xf0]  ;;  %v9155_v28 = vld [vmem:[#allocation17 + $0x98] sm:$0xf] }
 0x5e3   : > { %3046 = vmatpush.bf16.msrb.mxu1 %v9456_v55  ;;  %v9264_v33 = vor.u32 %v11840_v23, %v9261_v25  ;;  %v9139_v55 = vld [vmem:[#allocation17 + $0x88] sm:$0xf]  ;;  %v13784_v47 = vsel %vm2199_vm3, %v13774_v35, %v2198_v43  ;;  %v9541_v23 = vld [vmem:[#allocation17 + $0x3d8] sm:$0xf0]  ;;  %v11898_v25 = vld [vmem:[#allocation17 + $0x34c] sm:$0xf0] }
 0x5e4   : > { %v9140_v59 = vor.u32 %v11817_v56, %v9139_v55  ;;  %3076 = vmatpush.bf16.msra.mxu2 %v9208_v52  ;;  %v9544_v26 = vor.u32 %v11907_v21, %v9541_v23  ;;  %v9468_v27 = vor.u32 %v11898_v25, %v9467_v24  ;;  %v11883_v43 = vld [vmem:[#allocation17 + $0x2d4] sm:$0xf0]  ;;  %v11866_v52 = vld [vmem:[#allocation17 + $0x24c] sm:$0xf0]  ;;  %v9341_v56 = vld [vmem:[#allocation17 + $0x250] sm:$0xf0] }
 0x5e5   : > { %v9340_v55 = vor.u32 %v11866_v52, %v9339_v51  ;;  %v9221_v21 = vld [vmem:[#allocation17 + $0x158] sm:$0xf0]  ;;  %v9147_v23 = vld [vmem:[#allocation17 + $0x90] sm:$0xf]  ;;  %v11810_v25 = vld [vmem:[#allocation17 + $0x94] sm:$0xf] }
 0x5e6   : > { %3037 = vmatpush.bf16.msra.mxu0 %v9196_v44  ;;  %3064 = vmatpush.bf16.msra.mxu3 %v9140_v59  ;;  %v9408_v44 = vor.u32 %v11874_v40, %v9405_v42  ;;  %v11859_v59 = vld [vmem:[#allocation17 + $0x21c] sm:$0xf]  ;;  %v11818_v24 = vld [vmem:[#allocation17 + $0xcc] sm:$0xf0]  ;;  %v11819_v29 = vld [vmem:[#allocation17 + $0xd4] sm:$0xf0] }
 0x5e7   : > { %3047 = vmatpush.bf16.msrb.mxu1 %v9392_v3  ;;  %v9069_v3 = vld [vmem:[#allocation17 + $0x40] sm:$0xf0]  ;;  %v11794_v38 = vld [vmem:[#allocation17 + $0x14] sm:$0xf]  ;;  %v11803_v42 = vld [vmem:[#allocation17 + $0x54] sm:$0xf0] }
 0x5e8   : > { %3077 = vmatpush.bf16.msra.mxu2 %v9144_v45  ;;  %v9072_v6 = vor.u32 %v11792_v1, %v9069_v3  ;;  %v9277_v1 = vld [vmem:[#allocation17 + $0x1d0] sm:$0xf0]  ;;  %v11851_v3 = vld [vmem:[#allocation17 + $0x1d4] sm:$0xf0] }
 0x5e9   : > { %v9280_v4 = vor.u32 %v11842_v63, %v9277_v1  ;;  %v9085_v40 = vld [vmem:[#allocation17 + $0x50] sm:$0xf0]  ;;  %v11908_v63 = vld [vmem:[#allocation17 + $0x3a4] sm:$0xf]  ;;  %v9555_v1 = vld [vmem:[#allocation17 + $0x3a8] sm:$0xf] }
 0x5ea   : > { %3038 = vmatpush.bf16.msra.mxu0 %v9132_v57  ;;  %3065 = vmatpush.bf16.msra.mxu3 %v9076_v7  ;;  %v9344_v57 = vor.u32 %v11858_v53, %v9341_v56  ;;  %v9285_v7 = vld [vmem:[#allocation17 + $0x1d8] sm:$0xf0] }
 0x5eb   : > { %3048 = vmatpush.bf16.msrb.mxu1 %v9328_v19  ;;  %v9539_v19 = vld [vmem:[#allocation17 + $0x398] sm:$0xf] }
 0x5ec   : > { %3078 = vmatpush.bf16.msra.mxu2 %v9080_v10  ;;  %v9540_v22 = vor.u32 %v11915_v20, %v9539_v19  ;;  %v11826_v10 = vld [vmem:[#allocation17 + $0x114] sm:$0xf]  ;;  %v11827_v20 = vld [vmem:[#allocation17 + $0x11c] sm:$0xf] }
 0x5ee   : > { %3039 = vmatpush.bf16.msra.mxu0 %v9068_v2  ;;  %3110 = vmatpush.bf16.msrb.mxu3 %v9540_v22  ;;  %v9283_v2 = vld [vmem:[#allocation17 + $0x198] sm:$0xf]  ;;  %v9224_v22 = vor.u32 %v11827_v20, %v9221_v21 }
 0x5ef   : > { %3049 = vmatpush.bf16.msrb.mxu1 %v9264_v33  ;;  %v11899_v33 = vld [vmem:[#allocation17 + $0x354] sm:$0xf0]  ;;  %v9284_v5 = vor.u32 %v11851_v3, %v9283_v2  ;;  %v11917_v3 = vld [vmem:[#allocation17 + $0x3e4] sm:$0xf0] }
 0x5f0   : > { %3123 = vmatpush.bf16.msrb.mxu2 %v9544_v26  ;;  %v9476_v36 = vor.u32 %v11899_v33, %v9475_v30  ;;  %v9148_v26 = vor.u32 %v11818_v24, %v9147_v23  ;;  %v11811_v33 = vld [vmem:[#allocation17 + $0x9c] sm:$0xf]  ;;  %v11884_v23 = vld [vmem:[#allocation17 + $0x2dc] sm:$0xf0] }
 0x5f1   : > { %v9160_v13 = vor.u32 %v11811_v33, %v9157_v34 }
 0x5f2   : > { %3111 = vmatpush.bf16.msrb.mxu3 %v9476_v36  ;;  %v9083_v36 = vld [vmem:[#allocation17 + $0x10] sm:$0xf] }
 0x5f3   : > { %3050 = vmatpush.bf16.msrb.mxu1 %v9200_v46  ;;  %v9412_v46 = vor.u32 %v11883_v43, %v9411_v12  ;;  %v9088_v12 = vor.u32 %v11794_v38, %v9085_v40  ;;  %v9357_v40 = vld [vmem:[#allocation17 + $0x260] sm:$0xf0] }
 0x5f4   : > { %3124 = vmatpush.bf16.msrb.mxu2 %v9480_v37  ;;  %v11802_v37 = vld [vmem:[#allocation17 + $0x4c] sm:$0xf0] }
 0x5f5   : > { %v9084_v39 = vor.u32 %v11802_v37, %v9083_v36  ;;  %v11868_v36 = vld [vmem:[#allocation17 + $0x25c] sm:$0xf0] }
 0x5f6   : > { %3112 = vmatpush.bf16.msrb.mxu3 %v9412_v46  ;;  %v9093_v46 = vld [vmem:[#allocation17 + $0x58] sm:$0xf0] }
 0x5f7   : > { %3051 = vmatpush.bf16.msrb.mxu1 %v9136_v58  ;;  %v9348_v58 = vor.u32 %v11867_v54, %v9347_v16 }
 0x5f8   : > { %3125 = vmatpush.bf16.msrb.mxu2 %v9416_v50 }
 0x5fa   : > { %3113 = vmatpush.bf16.msrb.mxu3 %v9348_v58 }
 0x5fb   : > { %3052 = vmatpush.bf16.msrb.mxu1 %v9072_v6  ;;  %v11843_v6 = vld [vmem:[#allocation17 + $0x19c] sm:$0xf] }
 0x5fc   : > { %v9288_v8 = vor.u32 %v11843_v6, %v9285_v7 }
 0x5fe   : > { %3114 = vmatpush.bf16.msrb.mxu3 %v9284_v5  ;;  %v9557_v5 = vld [vmem:[#allocation17 + $0x3e8] sm:$0xf0] }
 0x5ff   : > { %3097 = vmatpush.bf16.msra.mxu1 %v9536_v18  ;;  %v9216_v18 = vor.u32 %v11826_v10, %v9213_v14  ;;  %v9485_v14 = vld [vmem:[#allocation17 + $0x360] sm:$0xf0] }
 0x603   : > { %3098 = vmatpush.bf16.msra.mxu1 %v9472_v31  ;;  %v9156_v31 = vor.u32 %v11819_v29, %v9155_v28  ;;  %v9427_v28 = vld [vmem:[#allocation17 + $0x2a8] sm:$0xf] }
 0x604   : > { %v11885_v29 = vld [vmem:[#allocation17 + $0x2e4] sm:$0xf0] }
 0x605   : > { %v9428_v37 = vor.u32 %v11885_v29, %v9427_v28  ;;  %v11805_v28 = vld [vmem:[#allocation17 + $0x64] sm:$0xf0]  ;;  %v11797_v29 = vld [vmem:[#allocation17 + $0x2c] sm:$0xf] }
 0x607   : > { %3099 = vmatpush.bf16.msra.mxu1 %v9408_v44  ;;  %v11795_v44 = vld [vmem:[#allocation17 + $0x1c] sm:$0xf] }
 0x608   : > { %v9096_v49 = vor.u32 %v11795_v44, %v9093_v46 }
 0x60b   : > { %3100 = vmatpush.bf16.msra.mxu1 %v9344_v57  ;;  %v12661_v57 = vld [vmem:[#allocation14] ss:$0 sm:$0xff] }
 0x60f   : > { %3101 = vmatpush.bf16.msra.mxu1 %v9280_v4  ;;  %v11909_v4 = vld [vmem:[#allocation17 + $0x3ac] sm:$0xf] }
 0x610   : > { %v9560_v10 = vor.u32 %v11909_v4, %v9557_v5  ;;  %v9237_v4 = vld [vmem:[#allocation17 + $0x168] sm:$0xf0] }
 0x613   : > { %3102 = vmatpush.bf16.msra.mxu1 %v9216_v18  ;;  %v11893_v18 = vld [vmem:[#allocation17 + $0x32c] sm:$0xf] }
 0x654   : > { %v2193_v60 = vpop.xlane.xlu2 %2192 }
 0x655   : > { %v2201_v61 = vmul.f32 %v13784_v47, %v2193_v60  ;;  %v9349_v60 = vld [vmem:[#allocation17 + $0x258] sm:$0xf0] }
 0x656   : > { %v9352_v45 = vor.u32 %v11859_v59, %v9349_v60  ;;  %v12662_v59 = vld [vmem:[#allocation16] ss:$0 sm:$0xff] }
 0x657   : > { %v13788_v62 = vsub.f32 %v13771_v32, %v2201_v61  ;;  %v9531_v32 = vld [vmem:[#allocation17 + $0x390] sm:$0xf] }
 0x658   : > { %v9532_v17 = vor.u32 %v11914_v11, %v9531_v32  ;;  %v9275_v61 = vld [vmem:[#allocation17 + $0x190] sm:$0xf]  ;;  %3126 = vmatpush.bf16.msrb.mxu2 %v9352_v45 }
 0x659   : > { %v2203_v35 = vmul.f32 %v13788_v62, %v13788_v62  ;;  %v11834_v32 = vld [vmem:[#allocation17 + $0x14c] sm:$0xf0] }
 0x65a   : > { %3084 = vmatpush.bf16.msrb.mxu0 %v9532_v17  ;;  %v9212_v11 = vor.u32 %v11834_v32, %v9211_v9  ;;  %v11835_v17 = vld [vmem:[#allocation17 + $0x154] sm:$0xf0]  ;;  %v9483_v9 = vld [vmem:[#allocation17 + $0x320] sm:$0xf] }
 0x65b   : > { %2204 = vadd.xlane.f32.xlu0 %v2203_v35  ;;  %v11850_v35 = vld [vmem:[#allocation17 + $0x1cc] sm:$0xf0]  ;;  %v9220_v19 = vor.u32 %v11835_v17, %v9219_v15  ;;  %v11900_v32 = vld [vmem:[#allocation17 + $0x35c] sm:$0xf0]  ;;  %v9491_v15 = vld [vmem:[#allocation17 + $0x328] sm:$0xf] }
 0x65c   : > { %v9276_v0 = vor.u32 %v11850_v35, %v9275_v61  ;;  %3127 = vmatpush.bf16.msrb.mxu2 %v9288_v8  ;;  %v9547_v61 = vld [vmem:[#allocation17 + $0x3a0] sm:$0xf]  ;;  %v11901_v17 = vld [vmem:[#allocation17 + $0x364] sm:$0xf0]  ;;  %v9484_v20 = vor.u32 %v11900_v32, %v9483_v9 }
 0x65d   : > { %3115 = vmatpush.bf16.msrb.mxu3 %v9220_v19  ;;  %v11916_v35 = vld [vmem:[#allocation17 + $0x3dc] sm:$0xf0]  ;;  %v9493_v19 = vld [vmem:[#allocation17 + $0x368] sm:$0xf0]  ;;  %v9492_v24 = vor.u32 %v11901_v17, %v9491_v15  ;;  %v11821_v15 = vld [vmem:[#allocation17 + $0xe4] sm:$0xf0] }
 0x65e   : > { %3085 = vmatpush.bf16.msrb.mxu0 %v9468_v27  ;;  %v9149_v27 = vld [vmem:[#allocation17 + $0xd0] sm:$0xf0]  ;;  %v9548_v7 = vor.u32 %v11916_v35, %v9547_v61  ;;  %v11828_v35 = vld [vmem:[#allocation17 + $0x124] sm:$0xf]  ;;  %v11820_v9 = vld [vmem:[#allocation17 + $0xdc] sm:$0xf0] }
 0x65f   : > { %v9152_v30 = vor.u32 %v11810_v25, %v9149_v27  ;;  %v9496_v25 = vor.u32 %v11893_v18, %v9493_v19  ;;  %v9421_v27 = vld [vmem:[#allocation17 + $0x2e0] sm:$0xf0]  ;;  %v11813_v17 = vld [vmem:[#allocation17 + $0xac] sm:$0xf]  ;;  %v9099_v19 = vld [vmem:[#allocation17 + $0x20] sm:$0xf] }
 0x660   : > { %3128 = vmatpush.bf16.msrb.mxu2 %v9224_v22  ;;  %v9419_v22 = vld [vmem:[#allocation17 + $0x2a0] sm:$0xf]  ;;  %v9173_v18 = vld [vmem:[#allocation17 + $0xe8] sm:$0xf0] }
 0x661   : > { %3103 = vmatpush.bf16.msra.mxu1 %v9152_v30  ;;  %3116 = vmatpush.bf16.msrb.mxu3 %v9156_v31  ;;  %v11877_v30 = vld [vmem:[#allocation17 + $0x2ac] sm:$0xf]  ;;  %v9420_v33 = vor.u32 %v11884_v23, %v9419_v22  ;;  %v11804_v22 = vld [vmem:[#allocation17 + $0x5c] sm:$0xf0]  ;;  %v11796_v23 = vld [vmem:[#allocation17 + $0x24] sm:$0xf] }
 0x662   : > { %3086 = vmatpush.bf16.msrb.mxu0 %v9404_v41  ;;  %v9091_v41 = vld [vmem:[#allocation17 + $0x18] sm:$0xf]  ;;  %v9429_v31 = vld [vmem:[#allocation17 + $0x2e8] sm:$0xf0] }
 0x663   : > { %v9092_v43 = vor.u32 %v11803_v42, %v9091_v41  ;;  %v9432_v38 = vor.u32 %v11877_v30, %v9429_v31  ;;  %v9363_v41 = vld [vmem:[#allocation17 + $0x228] sm:$0xf]  ;;  %v9109_v30 = vld [vmem:[#allocation17 + $0x68] sm:$0xf0]  ;;  %v9563_v31 = vld [vmem:[#allocation17 + $0x3b0] sm:$0xf] }
 0x664   : > { %3129 = vmatpush.bf16.msrb.mxu2 %v9160_v13  ;;  %v9355_v13 = vld [vmem:[#allocation17 + $0x220] sm:$0xf]  ;;  %v11869_v42 = vld [vmem:[#allocation17 + $0x264] sm:$0xf0] }
 0x665   : > { %3104 = vmatpush.bf16.msra.mxu1 %v9088_v12  ;;  %3117 = vmatpush.bf16.msrb.mxu3 %v9092_v43  ;;  %v11861_v12 = vld [vmem:[#allocation17 + $0x22c] sm:$0xf]  ;;  %v9356_v44 = vor.u32 %v11868_v36, %v9355_v13  ;;  %v9565_v13 = vld [vmem:[#allocation17 + $0x3f0] sm:$0xf0]  ;;  %v9571_v36 = vld [vmem:[#allocation17 + $0x3b8] sm:$0xf] }
 0x666   : > { %3087 = vmatpush.bf16.msrb.mxu0 %v9340_v55  ;;  %v9365_v43 = vld [vmem:[#allocation17 + $0x268] sm:$0xf0] }
 0x668   : > { %3130 = vmatpush.bf16.msrb.mxu2 %v9096_v49  ;;  %v11852_v49 = vld [vmem:[#allocation17 + $0x1dc] sm:$0xf0] }
 0x66a   : > { %3088 = vmatpush.bf16.msrb.mxu0 %v9276_v0  ;;  %v9549_v0 = vld [vmem:[#allocation17 + $0x3e0] sm:$0xf0] }
 0x66b   : > { %v9552_v8 = vor.u32 %v11908_v63, %v9549_v0  ;;  %v9229_v63 = vld [vmem:[#allocation17 + $0x160] sm:$0xf0]  ;;  %v9235_v0 = vld [vmem:[#allocation17 + $0x128] sm:$0xf] }
 0x66e   : > { %3089 = vmatpush.bf16.msrb.mxu0 %v9212_v11  ;;  %v11892_v11 = vld [vmem:[#allocation17 + $0x324] sm:$0xf] }
 0x66f   : > { %v9488_v21 = vor.u32 %v11892_v11, %v9485_v14  ;;  %v9165_v11 = vld [vmem:[#allocation17 + $0xe0] sm:$0xf0]  ;;  %v9171_v14 = vld [vmem:[#allocation17 + $0xa8] sm:$0xf] }
 0x672   : > { %3090 = vmatpush.bf16.msrb.mxu0 %v9148_v26  ;;  %v11876_v26 = vld [vmem:[#allocation17 + $0x2a4] sm:$0xf] }
 0x673   : > { %v9424_v34 = vor.u32 %v11876_v26, %v9421_v27  ;;  %v9176_v26 = vor.u32 %v11813_v17, %v9173_v18  ;;  %v9107_v27 = vld [vmem:[#allocation17 + $0x28] sm:$0xf]  ;;  %v9381_v17 = vld [vmem:[#allocation17 + $0x278] sm:$0xf0] }
 0x676   : > { %3091 = vmatpush.bf16.msrb.mxu0 %v9084_v39  ;;  %v11860_v39 = vld [vmem:[#allocation17 + $0x224] sm:$0xf] }
 0x677   : > { %v9360_v46 = vor.u32 %v11860_v39, %v9357_v40  ;;  %v11919_v39 = vld [vmem:[#allocation17 + $0x3f4] sm:$0xf0]  ;;  %v11911_v40 = vld [vmem:[#allocation17 + $0x3bc] sm:$0xf] }
 0x6ce   : > { %v2205_v48 = vpop.xlane.xlu0 %2204 }
 0x6cf   : > { %v2206_v50 = vmul.f32 %v2205_v48, %v13784_v47  ;;  %v9291_v48 = vld [vmem:[#allocation17 + $0x1a0] sm:$0xf] }
 0x6d1   : > { %v2207_v51 = vadd.f32 1e-05, %v2206_v50  ;;  %v9364_v50 = vor.u32 %v11869_v42, %v9363_v41  ;;  %v9573_v41 = vld [vmem:[#allocation17 + $0x3f8] sm:$0xf0]  ;;  %v9108_v42 = vor.u32 %v11805_v28, %v9107_v27  ;;  %v11855_v27 = vld [vmem:[#allocation17 + $0x1f4] sm:$0xf0] }
 0x6d2   : > { %v11847_v28 = vld [vmem:[#allocation17 + $0x1bc] sm:$0xf] }
 0x6d3   : > { %12690 = vrsqrt.f32 %v2207_v51  ;;  %vm2214_vm5 = vweird.f32 %v2207_v51 }
 0x6d9   : > { %v12691_v52 = vpop.eup %12690 }
 0x6da   : > { %v2209_v53 = vmul.f32 %v12691_v52, %v2207_v51  ;;  %vm2215_vm4 = vweird.f32 %v12691_v52  ;;  %v9368_v51 = vor.u32 %v11861_v12, %v9365_v43  ;;  %v9112_v12 = vor.u32 %v11797_v29, %v9109_v30  ;;  %v9317_v29 = vld [vmem:[#allocation17 + $0x1f8] sm:$0xf0] }
 0x6db   : > { %vm2216_vm6 = vmor %vm2214_vm5, %vm2215_vm4 }
 0x6dc   : > { %v2210_v55 = vmul.f32 %v12691_v52, %v2209_v53  ;;  %v9293_v53 = vld [vmem:[#allocation17 + $0x1e0] sm:$0xf0] }
 0x6de   : > { %v2211_v56 = vmul.f32 0.5, %v2210_v55  ;;  %v9299_v55 = vld [vmem:[#allocation17 + $0x1a8] sm:$0xf] }
 0x6e0   : > { %v2212_v16 = vsub.f32 1.5, %v2211_v56  ;;  %v11853_v56 = vld [vmem:[#allocation17 + $0x1e4] sm:$0xf0] }
 0x6e2   : > { %v2213_v54 = vmul.f32 %v12691_v52, %v2212_v16  ;;  %v11845_v16 = vld [vmem:[#allocation17 + $0x1ac] sm:$0xf] }
 0x6e4   : > { %v2217_v58 = vsel %vm2216_vm6, %v12691_v52, %v2213_v54  ;;  %v11844_v52 = vld [vmem:[#allocation17 + $0x1a4] sm:$0xf]  ;;  %v9301_v54 = vld [vmem:[#allocation17 + $0x1e8] sm:$0xf0] }
 0x6e5   : > { %v2218_v60 = vmul.f32 %v2217_v58, %v13788_v62  ;;  %v9556_v62 = vor.u32 %v11917_v3, %v9555_v1  ;;  %v9296_v58 = vor.u32 %v11844_v52, %v9293_v53  ;;  %v9304_v61 = vor.u32 %v11845_v16, %v9301_v54  ;;  %v11837_v1 = vld [vmem:[#allocation17 + $0x164] sm:$0xf0]  ;;  %v11829_v3 = vld [vmem:[#allocation17 + $0x12c] sm:$0xf]  ;;  %v9501_v52 = vld [vmem:[#allocation17 + $0x370] sm:$0xf0] }
 0x6e6   : > { %v9236_v32 = vor.u32 %v11837_v1, %v9235_v0  ;;  %v9507_v53 = vld [vmem:[#allocation17 + $0x338] sm:$0xf]  ;;  %v9509_v16 = vld [vmem:[#allocation17 + $0x378] sm:$0xf0] }
 0x6e7   : > { %v2222_v45 = vmul.f32 %v12661_v57, %v2218_v60  ;;  %v9292_v57 = vor.u32 %v11852_v49, %v9291_v48  ;;  %v11836_v60 = vld [vmem:[#allocation17 + $0x15c] sm:$0xf0]  ;;  %v11902_v48 = vld [vmem:[#allocation17 + $0x36c] sm:$0xf0]  ;;  %v9572_v49 = vor.u32 %v11919_v39, %v9571_v36  ;;  %v11887_v0 = vld [vmem:[#allocation17 + $0x2f4] sm:$0xf0]  ;;  %v9320_v36 = vor.u32 %v11847_v28, %v9317_v29 }
 0x6e8   : > { %v11879_v1 = vld [vmem:[#allocation17 + $0x2bc] sm:$0xf]  ;;  %v9251_v39 = vld [vmem:[#allocation17 + $0x138] sm:$0xf]  ;;  %v11922_v28 = vld [vmem:[#allocation20 + $0x10] sm:$0xff] }
 0x6e9   : > { %v13794_v2 = vadd.f32 %v12662_v59, %v2222_v45  ;;  %v9227_v59 = vld [vmem:[#allocation17 + $0x120] sm:$0xf]  ;;  %v9300_v45 = vor.u32 %v11853_v56, %v9299_v55  ;;  %v11903_v55 = vld [vmem:[#allocation17 + $0x374] sm:$0xf0]  ;;  %v11895_v56 = vld [vmem:[#allocation17 + $0x33c] sm:$0xf] }
 0x6ea   : > { %v9228_v5 = vor.u32 %v11836_v60, %v9227_v59  ;;  %v11886_v59 = vld [vmem:[#allocation17 + $0x2ec] sm:$0xf0]  ;;  %v9508_v60 = vor.u32 %v11903_v55, %v9507_v53  ;;  %v11823_v53 = vld [vmem:[#allocation17 + $0xf4] sm:$0xf0]  ;;  %v11815_v55 = vld [vmem:[#allocation17 + $0xbc] sm:$0xf] }
 0x6eb   : > { %v13798_v6 = vpack.c.bf16 %v13794_v2, %v13794_v2  ;;  %v11930_v29 = vld [vmem:[#allocation20 + $0x50] sm:$0xff] }
 0x6ed   : > { %3040 = vmatmul.bf16.vlgmr.msra.gmra.mxu0 %v13798_v6  ;;  %3053 = vmatmul.bf16.vlgmr.msrb.gmra.mxu1 %v13798_v6 }
 0x6ee   : > { %3066 = vmatmul.bf16.vlgmr.msra.gmra.mxu3 %v13798_v6  ;;  %3079 = vmatmul.bf16.vlgmr.msra.gmra.mxu2 %v13798_v6 }
 0x6ef   : > { %3136 = vmatpush.bf16.msra.mxu0 %v9548_v7  ;;  %3149 = vmatpush.bf16.msrb.mxu1 %v9552_v8  ;;  %v9232_v7 = vor.u32 %v11828_v35, %v9229_v63  ;;  %v9163_v8 = vld [vmem:[#allocation17 + $0xa0] sm:$0xf]  ;;  %v9437_v35 = vld [vmem:[#allocation17 + $0x2f0] sm:$0xf0]  ;;  %v9443_v63 = vld [vmem:[#allocation17 + $0x2b8] sm:$0xf] }
 0x6f0   : > { %3162 = vmatpush.bf16.msra.mxu3 %v9556_v62  ;;  %3175 = vmatpush.bf16.msra.mxu2 %v9560_v10  ;;  %v9240_v62 = vor.u32 %v11829_v3, %v9237_v4  ;;  %v11812_v10 = vld [vmem:[#allocation17 + $0xa4] sm:$0xf]  ;;  %v9445_v3 = vld [vmem:[#allocation17 + $0x2f8] sm:$0xf0] }
 0x6f3   : > { %3137 = vmatpush.bf16.msra.mxu0 %v9484_v20  ;;  %3150 = vmatpush.bf16.msrb.mxu1 %v9488_v21  ;;  %v9164_v20 = vor.u32 %v11820_v9, %v9163_v8  ;;  %v9168_v21 = vor.u32 %v11812_v10, %v9165_v11  ;;  %v11870_v8 = vld [vmem:[#allocation17 + $0x26c] sm:$0xf0]  ;;  %v9444_v9 = vor.u32 %v11887_v0, %v9443_v63  ;;  %v9373_v10 = vld [vmem:[#allocation17 + $0x270] sm:$0xf0]  ;;  %v9379_v11 = vld [vmem:[#allocation17 + $0x238] sm:$0xf] }
 0x6f4   : > { %3163 = vmatpush.bf16.msra.mxu3 %v9492_v24  ;;  %3176 = vmatpush.bf16.msra.mxu2 %v9496_v25  ;;  %v9101_v24 = vld [vmem:[#allocation17 + $0x60] sm:$0xf0]  ;;  %v9172_v25 = vor.u32 %v11821_v15, %v9171_v14  ;;  %v11871_v14 = vld [vmem:[#allocation17 + $0x274] sm:$0xf0]  ;;  %v11863_v15 = vld [vmem:[#allocation17 + $0x23c] sm:$0xf] }
 0x6f5   : > { %v11807_v63 = vld [vmem:[#allocation17 + $0x74] sm:$0xf0]  ;;  %v11799_v0 = vld [vmem:[#allocation17 + $0x3c] sm:$0xf] }
 0x6f7   : > { %3138 = vmatpush.bf16.msra.mxu0 %v9420_v33  ;;  %3151 = vmatpush.bf16.msrb.mxu1 %v9424_v34  ;;  %v11918_v33 = vld [vmem:[#allocation17 + $0x3ec] sm:$0xf0]  ;;  %v11910_v34 = vld [vmem:[#allocation17 + $0x3b4] sm:$0xf] }
 0x6f8   : > { %3164 = vmatpush.bf16.msra.mxu3 %v9428_v37  ;;  %3177 = vmatpush.bf16.msra.mxu2 %v9432_v38  ;;  %v9100_v37 = vor.u32 %v11804_v22, %v9099_v19  ;;  %v9104_v38 = vor.u32 %v11796_v23, %v9101_v24  ;;  %v9564_v43 = vor.u32 %v11918_v33, %v9563_v31  ;;  %v11846_v24 = vld [vmem:[#allocation17 + $0x1b4] sm:$0xf]  ;;  %v9243_v33 = vld [vmem:[#allocation17 + $0x130] sm:$0xf] }
 0x6f9   : > { %v9380_v22 = vor.u32 %v11871_v14, %v9379_v11  ;;  %v9384_v23 = vor.u32 %v11863_v15, %v9381_v17  ;;  %v11934_v11 = vld [vmem:[#allocation20 + $0x70] sm:$0xff]  ;;  %v11925_v17 = vld [vmem:[#allocation20 + $0x28] sm:$0xff] }
 0x6fa   : > { %v11942_v14 = vld [vmem:[#allocation20 + $0xb0] sm:$0xff] }
 0x6fb   : > { %3139 = vmatpush.bf16.msra.mxu0 %v9356_v44  ;;  %3152 = vmatpush.bf16.msrb.mxu1 %v9360_v46  ;;  %v9568_v44 = vor.u32 %v11910_v34, %v9565_v13  ;;  %v9499_v46 = vld [vmem:[#allocation17 + $0x330] sm:$0xf] }
 0x6fc   : > { %3165 = vmatpush.bf16.msra.mxu3 %v9364_v50  ;;  %3178 = vmatpush.bf16.msra.mxu2 %v9368_v51  ;;  %v9576_v50 = vor.u32 %v11911_v40, %v9573_v41  ;;  %v11894_v51 = vld [vmem:[#allocation17 + $0x334] sm:$0xf]  ;;  %v9500_v54 = vor.u32 %v11902_v48, %v9499_v46  ;;  %v11838_v34 = vld [vmem:[#allocation17 + $0x16c] sm:$0xf0]  ;;  %v11839_v40 = vld [vmem:[#allocation17 + $0x174] sm:$0xf0] }
 0x6fd   : > { %3092 = vmatmul.bf16.vlgmr.msrb.gmra.mxu0 %v13798_v6  ;;  %3105 = vmatmul.bf16.vlgmr.msra.gmra.mxu1 %v13798_v6  ;;  %v11831_v41 = vld [vmem:[#allocation17 + $0x13c] sm:$0xf]  ;;  %v11822_v46 = vld [vmem:[#allocation17 + $0xec] sm:$0xf0]  ;;  %v9252_v48 = vor.u32 %v11839_v40, %v9251_v39 }
 0x6fe   : > { %3118 = vmatmul.bf16.vlgmr.msrb.gmra.mxu3 %v13798_v6  ;;  %3131 = vmatmul.bf16.vlgmr.msrb.gmra.mxu2 %v13798_v6  ;;  %v11950_v15 = vld [vmem:[#allocation20 + $0xf0] sm:$0xff]  ;;  %v11959_v39 = vld [vmem:[#allocation20 + $0x138] sm:$0xff] }
 0x6ff   : > { %3140 = vmatpush.bf16.msra.mxu0 %v9292_v57  ;;  %3153 = vmatpush.bf16.msrb.mxu1 %v9296_v58  ;;  %v9504_v57 = vor.u32 %v11894_v51, %v9501_v52  ;;  %v9435_v58 = vld [vmem:[#allocation17 + $0x2b0] sm:$0xf]  ;;  %v9181_v51 = vld [vmem:[#allocation17 + $0xf0] sm:$0xf0]  ;;  %v9187_v52 = vld [vmem:[#allocation17 + $0xb8] sm:$0xf] }
 0x700   : > { %3166 = vmatpush.bf16.msra.mxu3 %v9300_v45  ;;  %3179 = vmatpush.bf16.msra.mxu2 %v9304_v61  ;;  %v9512_v45 = vor.u32 %v11895_v56, %v9509_v16  ;;  %v11878_v61 = vld [vmem:[#allocation17 + $0x2b4] sm:$0xf]  ;;  %v9436_v4 = vor.u32 %v11886_v59, %v9435_v58  ;;  %v9189_v56 = vld [vmem:[#allocation17 + $0xf8] sm:$0xf0]  ;;  %v11806_v58 = vld [vmem:[#allocation17 + $0x6c] sm:$0xf0]  ;;  %v9188_v59 = vor.u32 %v11823_v53, %v9187_v52 }
 0x701   : > { %v11967_v40 = vld [vmem:[#allocation20 + $0x178] sm:$0xff]  ;;  %v11973_v52 = vld [vmem:[#allocation20 + $0x1a8] sm:$0xff] }
 0x702   : > { %v11981_v53 = vld [vmem:[#allocation20 + $0x1e8] sm:$0xff] }
 0x703   : > { %3141 = vmatpush.bf16.msra.mxu0 %v9228_v5  ;;  %3154 = vmatpush.bf16.msrb.mxu1 %v9232_v7  ;;  %v9440_v5 = vor.u32 %v11878_v61, %v9437_v35  ;;  %v9371_v7 = vld [vmem:[#allocation17 + $0x230] sm:$0xf]  ;;  %v9117_v61 = vld [vmem:[#allocation17 + $0x70] sm:$0xf0]  ;;  %v9123_v35 = vld [vmem:[#allocation17 + $0x38] sm:$0xf] }
 0x704   : > { %3167 = vmatpush.bf16.msra.mxu3 %v9236_v32  ;;  %3180 = vmatpush.bf16.msra.mxu2 %v9240_v62  ;;  %v9448_v32 = vor.u32 %v11879_v1, %v9445_v3  ;;  %v11862_v62 = vld [vmem:[#allocation17 + $0x234] sm:$0xf]  ;;  %v9372_v18 = vor.u32 %v11870_v8, %v9371_v7  ;;  %v9125_v1 = vld [vmem:[#allocation17 + $0x78] sm:$0xf0] }
 0x705   : > { %v9376_v19 = vor.u32 %v11862_v62, %v9373_v10  ;;  %v9128_v7 = vor.u32 %v11799_v0, %v9125_v1  ;;  %v11927_v8 = vld [vmem:[#allocation20 + $0x38] sm:$0xff]  ;;  %v11926_v10 = vld [vmem:[#allocation20 + $0x30] sm:$0xff]  ;;  %v11953_v0 = vld [vmem:[#allocation20 + $0x108] sm:$0xff] }
 0x706   : > { %v11951_v62 = vld [vmem:[#allocation20 + $0xf8] sm:$0xff]  ;;  %v11961_v1 = vld [vmem:[#allocation20 + $0x148] sm:$0xff] }
 0x707   : > { %3142 = vmatpush.bf16.msra.mxu0 %v9164_v20  ;;  %3155 = vmatpush.bf16.msrb.mxu1 %v9168_v21  ;;  %v9307_v20 = vld [vmem:[#allocation17 + $0x1b0] sm:$0xf] }
 0x708   : > { %3168 = vmatpush.bf16.msra.mxu3 %v9172_v25  ;;  %3181 = vmatpush.bf16.msra.mxu2 %v9176_v26  ;;  %v11854_v21 = vld [vmem:[#allocation17 + $0x1ec] sm:$0xf0]  ;;  %v9309_v25 = vld [vmem:[#allocation17 + $0x1f0] sm:$0xf0]  ;;  %v9315_v26 = vld [vmem:[#allocation17 + $0x1b8] sm:$0xf] }
 0x709   : > { %v9308_v30 = vor.u32 %v11854_v21, %v9307_v20  ;;  %v9312_v31 = vor.u32 %v11846_v24, %v9309_v25  ;;  %v9316_v13 = vor.u32 %v11855_v27, %v9315_v26  ;;  %v11949_v20 = vld [vmem:[#allocation20 + $0xe8] sm:$0xff]  ;;  %v11924_v21 = vld [vmem:[#allocation20 + $0x20] sm:$0xff]  ;;  %v11923_v24 = vld [vmem:[#allocation20 + $0x18] sm:$0xff] }
 0x70a   : > { %v11931_v25 = vld [vmem:[#allocation20 + $0x58] sm:$0xff] }
 0x70b   : > { %3143 = vmatpush.bf16.msra.mxu0 %v9100_v37  ;;  %3156 = vmatpush.bf16.msrb.mxu1 %v9104_v38  ;;  %v11830_v37 = vld [vmem:[#allocation17 + $0x134] sm:$0xf]  ;;  %v11939_v26 = vld [vmem:[#allocation20 + $0x98] sm:$0xff] }
 0x70c   : > { %3169 = vmatpush.bf16.msra.mxu3 %v9108_v42  ;;  %3182 = vmatpush.bf16.msra.mxu2 %v9112_v12  ;;  %v9245_v38 = vld [vmem:[#allocation17 + $0x170] sm:$0xf0]  ;;  %v9253_v42 = vld [vmem:[#allocation17 + $0x178] sm:$0xf0]  ;;  %v9244_v12 = vor.u32 %v11838_v34, %v9243_v33  ;;  %v11921_v33 = vld [vmem:[#allocation20 + $0x8] sm:$0xff] }
 0x70d   : > { %v11947_v27 = vld [vmem:[#allocation20 + $0xd8] sm:$0xff]  ;;  %v11929_v34 = vld [vmem:[#allocation20 + $0x48] sm:$0xff] }
 0x70e   : > { %3144 = vmatmul.bf16.vlgmr.msra.gmra.mxu0 %v13798_v6  ;;  %3157 = vmatmul.bf16.vlgmr.msrb.gmra.mxu1 %v13798_v6 }
 0x70f   : > { %3188 = vmatpush.bf16.msrb.mxu0 %v9564_v43  ;;  %3201 = vmatpush.bf16.msra.mxu1 %v9568_v44  ;;  %v9248_v43 = vor.u32 %v11830_v37, %v9245_v38  ;;  %v9179_v44 = vld [vmem:[#allocation17 + $0xb0] sm:$0xf]  ;;  %v11920_v37 = vld [vmem:[#allocation20] sm:$0xff] }
 0x710   : > { %3214 = vmatpush.bf16.msrb.mxu3 %v9572_v49  ;;  %3227 = vmatpush.bf16.msrb.mxu2 %v9576_v50  ;;  %v9256_v49 = vor.u32 %v11831_v41, %v9253_v42  ;;  %v11814_v50 = vld [vmem:[#allocation17 + $0xb4] sm:$0xf]  ;;  %v9180_v16 = vor.u32 %v11822_v46, %v9179_v44  ;;  %v11928_v38 = vld [vmem:[#allocation20 + $0x40] sm:$0xff] }
 0x711   : > { %3170 = vmatmul.bf16.vlgmr.msra.gmra.mxu3 %v13798_v6  ;;  %3183 = vmatmul.bf16.vlgmr.msra.gmra.mxu2 %v13798_v6  ;;  %v11936_v41 = vld [vmem:[#allocation20 + $0x80] sm:$0xff]  ;;  %v11958_v44 = vld [vmem:[#allocation20 + $0x130] sm:$0xff] }
 0x712   : > { %v11944_v42 = vld [vmem:[#allocation20 + $0xc0] sm:$0xff]  ;;  %v11966_v46 = vld [vmem:[#allocation20 + $0x170] sm:$0xff] }
 0x713   : > { %3189 = vmatpush.bf16.msrb.mxu0 %v9500_v54  ;;  %3202 = vmatpush.bf16.msra.mxu1 %v9504_v57  ;;  %v9184_v54 = vor.u32 %v11814_v50, %v9181_v51  ;;  %v9115_v57 = vld [vmem:[#allocation17 + $0x30] sm:$0xf]  ;;  %v11957_v50 = vld [vmem:[#allocation20 + $0x128] sm:$0xff] }
 0x714   : > { %3215 = vmatpush.bf16.msrb.mxu3 %v9508_v60  ;;  %3228 = vmatpush.bf16.msrb.mxu2 %v9512_v45  ;;  %v9192_v60 = vor.u32 %v11815_v55, %v9189_v56  ;;  %v11798_v45 = vld [vmem:[#allocation17 + $0x34] sm:$0xf]  ;;  %v9116_v3 = vor.u32 %v11806_v58, %v9115_v57  ;;  %v11965_v51 = vld [vmem:[#allocation20 + $0x168] sm:$0xff]  ;;  %v11956_v55 = vld [vmem:[#allocation20 + $0x120] sm:$0xff] }
 0x715   : > { %v11964_v56 = vld [vmem:[#allocation20 + $0x160] sm:$0xff]  ;;  %v11955_v57 = vld [vmem:[#allocation20 + $0x118] sm:$0xff] }
 0x716   : > { %v11963_v58 = vld [vmem:[#allocation20 + $0x158] sm:$0xff] }
 0x717   : > { %3190 = vmatpush.bf16.msrb.mxu0 %v9436_v4  ;;  %3203 = vmatpush.bf16.msra.mxu1 %v9440_v5  ;;  %v9120_v4 = vor.u32 %v11798_v45, %v9117_v61  ;;  %v9124_v5 = vor.u32 %v11807_v63, %v9123_v35  ;;  %v11954_v45 = vld [vmem:[#allocation20 + $0x110] sm:$0xff] }
 0x718   : > { %3216 = vmatpush.bf16.msrb.mxu3 %v9444_v9  ;;  %3229 = vmatpush.bf16.msrb.mxu2 %v9448_v32  ;;  %v11935_v9 = vld [vmem:[#allocation20 + $0x78] sm:$0xff]  ;;  %v11962_v61 = vld [vmem:[#allocation20 + $0x150] sm:$0xff] }
 0x719   : > { %v11943_v32 = vld [vmem:[#allocation20 + $0xb8] sm:$0xff]  ;;  %v11970_v35 = vld [vmem:[#allocation20 + $0x190] sm:$0xff] }
 0x71a   : > { %v11978_v63 = vld [vmem:[#allocation20 + $0x1d0] sm:$0xff] }
 0x71b   : > { %3191 = vmatpush.bf16.msrb.mxu0 %v9372_v18  ;;  %3204 = vmatpush.bf16.msra.mxu1 %v9376_v19  ;;  %v11933_v18 = vld [vmem:[#allocation20 + $0x68] sm:$0xff] }
 0x71c   : > { %3217 = vmatpush.bf16.msrb.mxu3 %v9380_v22  ;;  %3230 = vmatpush.bf16.msrb.mxu2 %v9384_v23  ;;  %v11941_v19 = vld [vmem:[#allocation20 + $0xa8] sm:$0xff]  ;;  %v11932_v22 = vld [vmem:[#allocation20 + $0x60] sm:$0xff] }
 0x71d   : > { %v11940_v23 = vld [vmem:[#allocation20 + $0xa0] sm:$0xff] }
 0x71f   : > { %3192 = vmatpush.bf16.msrb.mxu0 %v9308_v30  ;;  %3205 = vmatpush.bf16.msra.mxu1 %v9312_v31  ;;  %v11938_v30 = vld [vmem:[#allocation20 + $0x90] sm:$0xff] }
 0x720   : > { %3218 = vmatpush.bf16.msrb.mxu3 %v9316_v13  ;;  %3231 = vmatpush.bf16.msrb.mxu2 %v9320_v36  ;;  %v11946_v31 = vld [vmem:[#allocation20 + $0xd0] sm:$0xff]  ;;  %v11937_v13 = vld [vmem:[#allocation20 + $0x88] sm:$0xff] }
 0x721   : > { %v11945_v36 = vld [vmem:[#allocation20 + $0xc8] sm:$0xff] }
 0x723   : > { %3193 = vmatpush.bf16.msrb.mxu0 %v9244_v12  ;;  %3206 = vmatpush.bf16.msra.mxu1 %v9248_v43  ;;  %v11975_v12 = vld [vmem:[#allocation20 + $0x1b8] sm:$0xff] }
 0x724   : > { %3219 = vmatpush.bf16.msrb.mxu3 %v9252_v48  ;;  %3232 = vmatpush.bf16.msrb.mxu2 %v9256_v49  ;;  %v11983_v43 = vld [vmem:[#allocation20 + $0x1f8] sm:$0xff]  ;;  %v11974_v48 = vld [vmem:[#allocation20 + $0x1b0] sm:$0xff] }
 0x725   : > { %v11982_v49 = vld [vmem:[#allocation20 + $0x1f0] sm:$0xff] }
 0x727   : > { %3194 = vmatpush.bf16.msrb.mxu0 %v9180_v16  ;;  %3207 = vmatpush.bf16.msra.mxu1 %v9184_v54  ;;  %v11972_v16 = vld [vmem:[#allocation20 + $0x1a0] sm:$0xff] }
 0x728   : > { %3220 = vmatpush.bf16.msrb.mxu3 %v9188_v59  ;;  %3233 = vmatpush.bf16.msrb.mxu2 %v9192_v60  ;;  %v11980_v54 = vld [vmem:[#allocation20 + $0x1e0] sm:$0xff]  ;;  %v11971_v59 = vld [vmem:[#allocation20 + $0x198] sm:$0xff] }
 0x729   : > { %v11979_v60 = vld [vmem:[#allocation20 + $0x1d8] sm:$0xff] }
 0x72b   : > { %3195 = vmatpush.bf16.msrb.mxu0 %v9116_v3  ;;  %3208 = vmatpush.bf16.msra.mxu1 %v9120_v4  ;;  %v11969_v3 = vld [vmem:[#allocation20 + $0x188] sm:$0xff] }
 0x72c   : > { %3221 = vmatpush.bf16.msrb.mxu3 %v9124_v5  ;;  %3234 = vmatpush.bf16.msrb.mxu2 %v9128_v7  ;;  %v11977_v4 = vld [vmem:[#allocation20 + $0x1c8] sm:$0xff]  ;;  %v11952_v5 = vld [vmem:[#allocation20 + $0x100] sm:$0xff] }
 0x72d   : > { %v11960_v7 = vld [vmem:[#allocation20 + $0x140] sm:$0xff] }
 0x72e   : > { %3196 = vmatmul.bf16.vlgmr.msrb.gmra.mxu0 %v13798_v6  ;;  %3209 = vmatmul.bf16.vlgmr.msra.gmra.mxu1 %v13798_v6 }
 0x72f   : > { %4296 = vmatpush.bf16.msra.mxu0 %v11927_v8  ;;  %4309 = vmatpush.bf16.msrb.mxu1 %v11935_v9  ;;  %v11968_v8 = vld [vmem:[#allocation20 + $0x180] sm:$0xff] }
 0x730   : > { %3222 = vmatmul.bf16.vlgmr.msrb.gmra.mxu3 %v13798_v6  ;;  %3235 = vmatmul.bf16.vlgmr.msrb.gmra.mxu2 %v13798_v6  ;;  %v11948_v6 = vld [vmem:[#allocation20 + $0xe0] sm:$0xff] }
 0x731   : > { %4322 = vmatpush.bf16.msra.mxu3 %v11943_v32  ;;  %4335 = vmatpush.bf16.msra.mxu2 %v11951_v62  ;;  %v11976_v9 = vld [vmem:[#allocation20 + $0x1c0] sm:$0xff] }
 0x732   : > { %v13816_v32 = vld [vmem:[#allocation19] sm:$0xff] }
 0x733   : > { %4297 = vmatpush.bf16.msra.mxu0 %v11926_v10  ;;  %4310 = vmatpush.bf16.msrb.mxu1 %v11934_v11  ;;  %v2360_v62 = vperm.slane %v13816_v32, 0  ;;  %v2361_v10 = vperm.slane %v13816_v32, 1 }
 0x735   : > { %4323 = vmatpush.bf16.msra.mxu3 %v11942_v14  ;;  %4336 = vmatpush.bf16.msra.mxu2 %v11950_v15 }
 0x737   : > { %4298 = vmatpush.bf16.msra.mxu0 %v11925_v17  ;;  %4311 = vmatpush.bf16.msrb.mxu1 %v11933_v18 }
 0x739   : > { %4324 = vmatpush.bf16.msra.mxu3 %v11941_v19  ;;  %4337 = vmatpush.bf16.msra.mxu2 %v11949_v20  ;;  %v2362_v20 = vperm.slane %v13816_v32, 2 }
 0x73b   : > { %4299 = vmatpush.bf16.msra.mxu0 %v11924_v21  ;;  %4312 = vmatpush.bf16.msrb.mxu1 %v11932_v22  ;;  %v2363_v21 = vperm.slane %v13816_v32, 3  ;;  %v11991_v22 = vld [vmem:[#allocation20 + $0x238] sm:$0xff] }
 0x73d   : > { %4325 = vmatpush.bf16.msra.mxu3 %v11940_v23  ;;  %4338 = vmatpush.bf16.msra.mxu2 %v11948_v6  ;;  %v11999_v23 = vld [vmem:[#allocation20 + $0x278] sm:$0xff] }
 0x73f   : > { %4300 = vmatpush.bf16.msra.mxu0 %v11923_v24  ;;  %4313 = vmatpush.bf16.msrb.mxu1 %v11931_v25 }
 0x741   : > { %4326 = vmatpush.bf16.msra.mxu3 %v11939_v26  ;;  %4339 = vmatpush.bf16.msra.mxu2 %v11947_v27 }
 0x743   : > { %4301 = vmatpush.bf16.msra.mxu0 %v11922_v28  ;;  %4314 = vmatpush.bf16.msrb.mxu1 %v11930_v29 }
 0x745   : > { %4327 = vmatpush.bf16.msra.mxu3 %v11938_v30  ;;  %4340 = vmatpush.bf16.msra.mxu2 %v11946_v31  ;;  %v11990_v31 = vld [vmem:[#allocation20 + $0x230] sm:$0xff] }
 0x747   : > { %4302 = vmatpush.bf16.msra.mxu0 %v11921_v33  ;;  %4315 = vmatpush.bf16.msrb.mxu1 %v11929_v34  ;;  %v11998_v33 = vld [vmem:[#allocation20 + $0x270] sm:$0xff] }
 0x749   : > { %4328 = vmatpush.bf16.msra.mxu3 %v11937_v13  ;;  %4341 = vmatpush.bf16.msra.mxu2 %v11945_v36  ;;  %v12007_v36 = vld [vmem:[#allocation20 + $0x2b8] sm:$0xff] }
 0x74b   : > { %4303 = vmatpush.bf16.msra.mxu0 %v11920_v37  ;;  %4316 = vmatpush.bf16.msrb.mxu1 %v11928_v38  ;;  %v12015_v37 = vld [vmem:[#allocation20 + $0x2f8] sm:$0xff] }
 0x74d   : > { %4329 = vmatpush.bf16.msra.mxu3 %v11936_v41  ;;  %4342 = vmatpush.bf16.msra.mxu2 %v11944_v42  ;;  %v11997_v41 = vld [vmem:[#allocation20 + $0x268] sm:$0xff]  ;;  %v2364_v42 = vperm.slane %v13816_v32, 4 }
 0x74f   : > { %4348 = vmatpush.bf16.msrb.mxu0 %v11959_v39  ;;  %4361 = vmatpush.bf16.msra.mxu1 %v11967_v40  ;;  %v11989_v40 = vld [vmem:[#allocation20 + $0x228] sm:$0xff] }
 0x751   : > { %4374 = vmatpush.bf16.msrb.mxu3 %v11975_v12  ;;  %4387 = vmatpush.bf16.msrb.mxu2 %v11983_v43  ;;  %v2365_v12 = vperm.slane %v13816_v32, 5 }
 0x753   : > { %4349 = vmatpush.bf16.msrb.mxu0 %v11958_v44  ;;  %4362 = vmatpush.bf16.msra.mxu1 %v11966_v46  ;;  %v12006_v46 = vld [vmem:[#allocation20 + $0x2b0] sm:$0xff] }
 0x755   : > { %4375 = vmatpush.bf16.msrb.mxu3 %v11974_v48  ;;  %4388 = vmatpush.bf16.msrb.mxu2 %v11982_v49  ;;  %v12014_v48 = vld [vmem:[#allocation20 + $0x2f0] sm:$0xff] }
 0x757   : > { %4350 = vmatpush.bf16.msrb.mxu0 %v11957_v50  ;;  %4363 = vmatpush.bf16.msra.mxu1 %v11965_v51  ;;  %v11988_v51 = vld [vmem:[#allocation20 + $0x220] sm:$0xff] }
 0x759   : > { %4376 = vmatpush.bf16.msrb.mxu3 %v11973_v52  ;;  %4389 = vmatpush.bf16.msrb.mxu2 %v11981_v53  ;;  %v11996_v52 = vld [vmem:[#allocation20 + $0x260] sm:$0xff] }
 0x75b   : > { %4351 = vmatpush.bf16.msrb.mxu0 %v11956_v55  ;;  %4364 = vmatpush.bf16.msra.mxu1 %v11964_v56 }
 0x75d   : > { %4377 = vmatpush.bf16.msrb.mxu3 %v11972_v16  ;;  %4390 = vmatpush.bf16.msrb.mxu2 %v11980_v54  ;;  %v12005_v54 = vld [vmem:[#allocation20 + $0x2a8] sm:$0xff] }
 0x75f   : > { %4352 = vmatpush.bf16.msrb.mxu0 %v11955_v57  ;;  %4365 = vmatpush.bf16.msra.mxu1 %v11963_v58  ;;  %v12013_v57 = vld [vmem:[#allocation20 + $0x2e8] sm:$0xff]  ;;  %v2366_v58 = vperm.slane %v13816_v32, 6 }
 0x761   : > { %4378 = vmatpush.bf16.msrb.mxu3 %v11971_v59  ;;  %4391 = vmatpush.bf16.msrb.mxu2 %v11979_v60  ;;  %v2367_v59 = vperm.slane %v13816_v32, 7  ;;  %v11994_v32 = vld [vmem:[#allocation20 + $0x250] sm:$0xff] }
 0x763   : > { %4353 = vmatpush.bf16.msrb.mxu0 %v11954_v45  ;;  %4366 = vmatpush.bf16.msra.mxu1 %v11962_v61  ;;  %v11987_v61 = vld [vmem:[#allocation20 + $0x218] sm:$0xff] }
 0x765   : > { %4379 = vmatpush.bf16.msrb.mxu3 %v11970_v35  ;;  %4392 = vmatpush.bf16.msrb.mxu2 %v11978_v63  ;;  %v11995_v35 = vld [vmem:[#allocation20 + $0x258] sm:$0xff] }
 0x767   : > { %4354 = vmatpush.bf16.msrb.mxu0 %v11953_v0  ;;  %4367 = vmatpush.bf16.msra.mxu1 %v11961_v1  ;;  %v12004_v1 = vld [vmem:[#allocation20 + $0x2a0] sm:$0xff] }
 0x769   : > { %4380 = vmatpush.bf16.msrb.mxu3 %v11969_v3  ;;  %4393 = vmatpush.bf16.msrb.mxu2 %v11977_v4  ;;  %v12012_v3 = vld [vmem:[#allocation20 + $0x2e0] sm:$0xff] }
 0x76a   : > { %v3041_v11 = vpop.f32.mrf.mxu0  ;;  %v3054_v14 = vpop.f32.mrf.mxu1 }
 0x76b   : > { %4355 = vmatpush.bf16.msrb.mxu0 %v11952_v5  ;;  %4368 = vmatpush.bf16.msra.mxu1 %v11960_v7  ;;  %v3042_v15 = vadd.f32 %v3041_v11, %v2360_v62  ;;  %v3055_v17 = vadd.f32 %v3054_v14, %v2361_v10  ;;  %v12003_v11 = vld [vmem:[#allocation20 + $0x298] sm:$0xff] }
 0x76c   : > { %v12011_v14 = vld [vmem:[#allocation20 + $0x2d8] sm:$0xff] }
 0x76d   : > { %4381 = vmatpush.bf16.msrb.mxu3 %v11968_v8  ;;  %4394 = vmatpush.bf16.msrb.mxu2 %v11976_v9  ;;  %v3240_v18 = vmax.f32 %v3042_v15, 0.0  ;;  %v3241_v19 = vmax.f32 %v3055_v17, 0.0  ;;  %v11986_v9 = vld [vmem:[#allocation20 + $0x210] sm:$0xff] }
 0x76f   : > { %v3256_v6 = vpack.c.bf16 %v3240_v18, %v3240_v18  ;;  %v3257_v24 = vpack.c.bf16 %v3241_v19, %v3241_v19  ;;  %v13826_v18 = vld [vmem:[#allocation19 + $0x8] sm:$0xff] }
 0x770   : > { %v11985_v19 = vld [vmem:[#allocation20 + $0x208] sm:$0xff] }
 0x771   : > { %v3067_v25 = vpop.f32.mrf.mxu3  ;;  %v3080_v26 = vpop.f32.mrf.mxu2  ;;  %4304 = vmatmul.bf16.vlgmr.msra.gmra.mxu0 %v3256_v6  ;;  %4317 = vmatmul.bf16.vlgmr.msrb.gmra.mxu1 %v3257_v24  ;;  %v2369_v6 = vperm.slane %v13826_v18, 1  ;;  %v12002_v24 = vld [vmem:[#allocation20 + $0x290] sm:$0xff] }
 0x772   : > { %v3068_v27 = vadd.f32 %v3067_v25, %v2362_v20  ;;  %v3081_v28 = vadd.f32 %v3080_v26, %v2363_v21  ;;  %4400 = vmatpush.bf16.msra.mxu0 %v11991_v22  ;;  %4413 = vmatpush.bf16.msrb.mxu1 %v11999_v23  ;;  %v3043_v29 = vpop.f32.mrf.mxu0  ;;  %v3056_v30 = vpop.f32.mrf.mxu1  ;;  %v11993_v20 = vld [vmem:[#allocation20 + $0x248] sm:$0xff]  ;;  %v2368_v23 = vperm.slane %v13826_v18, 0  ;;  %v12010_v25 = vld [vmem:[#allocation20 + $0x2d0] sm:$0xff]  ;;  %v11984_v26 = vld [vmem:[#allocation20 + $0x200] sm:$0xff] }
 0x773   : > { %v12023_v30 = vld [vmem:[#allocation20 + $0x338] sm:$0xff] }
 0x774   : > { %v3242_v34 = vmax.f32 %v3068_v27, 0.0  ;;  %v3243_v13 = vmax.f32 %v3081_v28, 0.0  ;;  %v11992_v27 = vld [vmem:[#allocation20 + $0x240] sm:$0xff] }
 0x776   : > { %v3258_v38 = vpack.c.bf16 %v3242_v34, %v3242_v34  ;;  %v3259_v39 = vpack.c.bf16 %v3243_v13, %v3243_v13  ;;  %4401 = vmatpush.bf16.msra.mxu0 %v11990_v31  ;;  %4414 = vmatpush.bf16.msrb.mxu1 %v11998_v33  ;;  %v12031_v31 = vld [vmem:[#allocation20 + $0x378] sm:$0xff]  ;;  %v12001_v13 = vld [vmem:[#allocation20 + $0x288] sm:$0xff] }
 0x778   : > { %4330 = vmatmul.bf16.vlgmr.msra.gmra.mxu3 %v3258_v38  ;;  %4343 = vmatmul.bf16.vlgmr.msra.gmra.mxu2 %v3259_v39  ;;  %v2370_v39 = vperm.slane %v13826_v18, 2 }
 0x779   : > { %4426 = vmatpush.bf16.msra.mxu3 %v12007_v36  ;;  %4439 = vmatpush.bf16.msra.mxu2 %v12015_v37  ;;  %v3069_v43 = vpop.f32.mrf.mxu3  ;;  %v3082_v44 = vpop.f32.mrf.mxu2  ;;  %v12009_v36 = vld [vmem:[#allocation20 + $0x2c8] sm:$0xff] }
 0x77a   : > { %4402 = vmatpush.bf16.msra.mxu0 %v11989_v40  ;;  %4415 = vmatpush.bf16.msrb.mxu1 %v11997_v41  ;;  %v3093_v49 = vpop.f32.mrf.mxu0  ;;  %v3106_v50 = vpop.f32.mrf.mxu1  ;;  %v2371_v40 = vperm.slane %v13826_v18, 3  ;;  %v12022_v41 = vld [vmem:[#allocation20 + $0x330] sm:$0xff]  ;;  %v12000_v44 = vld [vmem:[#allocation20 + $0x280] sm:$0xff] }
 0x77b   : > { %v3094_v53 = vadd.f32 %v3093_v49, %v2364_v42  ;;  %v3107_v55 = vadd.f32 %v3106_v50, %v2365_v12  ;;  %v12030_v42 = vld [vmem:[#allocation20 + $0x370] sm:$0xff]  ;;  %v12047_v49 = vld [vmem:[#allocation20 + $0x3f8] sm:$0xff] }
 0x77d   : > { %v3244_v56 = vmax.f32 %v3094_v53, 0.0  ;;  %v3245_v16 = vmax.f32 %v3107_v55, 0.0  ;;  %4427 = vmatpush.bf16.msra.mxu3 %v12006_v46  ;;  %4440 = vmatpush.bf16.msra.mxu2 %v12014_v48  ;;  %v12008_v46 = vld [vmem:[#allocation20 + $0x2c0] sm:$0xff]  ;;  %v12039_v48 = vld [vmem:[#allocation20 + $0x3b8] sm:$0xff] }
 0x77e   : > { %4403 = vmatpush.bf16.msra.mxu0 %v11988_v51  ;;  %4416 = vmatpush.bf16.msrb.mxu1 %v11996_v52 }
 0x77f   : > { %v3260_v60 = vpack.c.bf16 %v3244_v56, %v3244_v56  ;;  %v3261_v45 = vpack.c.bf16 %v3245_v16, %v3245_v16  ;;  %v12021_v16 = vld [vmem:[#allocation20 + $0x328] sm:$0xff] }
 0x781   : > { %4428 = vmatpush.bf16.msra.mxu3 %v12005_v54  ;;  %4441 = vmatpush.bf16.msra.mxu2 %v12013_v57  ;;  %v3119_v63 = vpop.f32.mrf.mxu3  ;;  %v3132_v0 = vpop.f32.mrf.mxu2  ;;  %v12029_v54 = vld [vmem:[#allocation20 + $0x368] sm:$0xff] }
 0x782   : > { %v3120_v4 = vadd.f32 %v3119_v63, %v2366_v58  ;;  %v3133_v5 = vadd.f32 %v3132_v0, %v2367_v59  ;;  %4356 = vmatmul.bf16.vlgmr.msrb.gmra.mxu0 %v3260_v60  ;;  %4369 = vmatmul.bf16.vlgmr.msra.gmra.mxu1 %v3261_v45  ;;  %v3095_v7 = vpop.f32.mrf.mxu0  ;;  %v3108_v8 = vpop.f32.mrf.mxu1  ;;  %v12038_v59 = vld [vmem:[#allocation20 + $0x3b0] sm:$0xff]  ;;  %v12028_v63 = vld [vmem:[#allocation20 + $0x360] sm:$0xff] }
 0x783   : > { %4404 = vmatpush.bf16.msra.mxu0 %v11987_v61  ;;  %4417 = vmatpush.bf16.msrb.mxu1 %v11995_v35  ;;  %v12046_v60 = vld [vmem:[#allocation20 + $0x3f0] sm:$0xff]  ;;  %v12020_v35 = vld [vmem:[#allocation20 + $0x320] sm:$0xff]  ;;  %v12027_v7 = vld [vmem:[#allocation20 + $0x358] sm:$0xff] }
 0x784   : > { %v3246_v62 = vmax.f32 %v3120_v4, 0.0  ;;  %v3247_v10 = vmax.f32 %v3133_v5, 0.0  ;;  %v12045_v4 = vld [vmem:[#allocation20 + $0x3e8] sm:$0xff]  ;;  %v12019_v5 = vld [vmem:[#allocation20 + $0x318] sm:$0xff]  ;;  %v12036_v8 = vld [vmem:[#allocation20 + $0x3a0] sm:$0xff] }
 0x785   : > { %4429 = vmatpush.bf16.msra.mxu3 %v12004_v1  ;;  %4442 = vmatpush.bf16.msra.mxu2 %v12012_v3  ;;  %v12037_v3 = vld [vmem:[#allocation20 + $0x3a8] sm:$0xff] }
 0x786   : > { %v3262_v15 = vpack.c.bf16 %v3246_v62, %v3246_v62  ;;  %v3263_v17 = vpack.c.bf16 %v3247_v10, %v3247_v10  ;;  %v12026_v62 = vld [vmem:[#allocation20 + $0x350] sm:$0xff]  ;;  %v12035_v10 = vld [vmem:[#allocation20 + $0x398] sm:$0xff] }
 0x787   : > { %4405 = vmatpush.bf16.msra.mxu0 %v11986_v9  ;;  %4418 = vmatpush.bf16.msrb.mxu1 %v11994_v32  ;;  %v12044_v9 = vld [vmem:[#allocation20 + $0x3e0] sm:$0xff]  ;;  %v12018_v32 = vld [vmem:[#allocation20 + $0x310] sm:$0xff] }
 0x788   : > { %4382 = vmatmul.bf16.vlgmr.msrb.gmra.mxu3 %v3262_v15  ;;  %4395 = vmatmul.bf16.vlgmr.msrb.gmra.mxu2 %v3263_v17  ;;  %v12025_v15 = vld [vmem:[#allocation20 + $0x348] sm:$0xff]  ;;  %v2372_v17 = vperm.slane %v13826_v18, 4 }
 0x789   : > { %4430 = vmatpush.bf16.msra.mxu3 %v12003_v11  ;;  %4443 = vmatpush.bf16.msra.mxu2 %v12011_v14  ;;  %v3121_v21 = vpop.f32.mrf.mxu3  ;;  %v3134_v22 = vpop.f32.mrf.mxu2  ;;  %v12043_v11 = vld [vmem:[#allocation20 + $0x3d8] sm:$0xff]  ;;  %v12017_v14 = vld [vmem:[#allocation20 + $0x308] sm:$0xff] }
 0x78a   : > { %v12042_v21 = vld [vmem:[#allocation20 + $0x3d0] sm:$0xff]  ;;  %v12016_v22 = vld [vmem:[#allocation20 + $0x300] sm:$0xff] }
 0x78b   : > { %4406 = vmatpush.bf16.msra.mxu0 %v11985_v19  ;;  %4419 = vmatpush.bf16.msrb.mxu1 %v11993_v20  ;;  %v3145_v28 = vpop.f32.mrf.mxu0  ;;  %v3158_v29 = vpop.f32.mrf.mxu1  ;;  %v2373_v19 = vperm.slane %v13826_v18, 5  ;;  %v12034_v20 = vld [vmem:[#allocation20 + $0x390] sm:$0xff] }
 0x78c   : > { %v3146_v33 = vadd.f32 %v3145_v28, %v2368_v23  ;;  %v3159_v34 = vadd.f32 %v3158_v29, %v2369_v6  ;;  %v12024_v23 = vld [vmem:[#allocation20 + $0x340] sm:$0xff]  ;;  %v12041_v28 = vld [vmem:[#allocation20 + $0x3c8] sm:$0xff] }
 0x78d   : > { %4431 = vmatpush.bf16.msra.mxu3 %v12002_v24  ;;  %4444 = vmatpush.bf16.msra.mxu2 %v12010_v25 }
 0x78e   : > { %v3248_v37 = vmax.f32 %v3146_v33, 0.0  ;;  %v3249_v38 = vmax.f32 %v3159_v34, 0.0  ;;  %v2375_v33 = vperm.slane %v13826_v18, 7 }
 0x78f   : > { %4407 = vmatpush.bf16.msra.mxu0 %v11984_v26  ;;  %4420 = vmatpush.bf16.msrb.mxu1 %v11992_v27  ;;  %v12033_v27 = vld [vmem:[#allocation20 + $0x388] sm:$0xff] }
 0x790   : > { %v3264_v12 = vpack.c.bf16 %v3248_v37, %v3248_v37  ;;  %v3265_v43 = vpack.c.bf16 %v3249_v38, %v3249_v38  ;;  %v12040_v37 = vld [vmem:[#allocation20 + $0x3c0] sm:$0xff] }
 0x791   : > { %4432 = vmatpush.bf16.msra.mxu3 %v12001_v13  ;;  %4445 = vmatpush.bf16.msra.mxu2 %v12009_v36  ;;  %v12032_v36 = vld [vmem:[#allocation20 + $0x380] sm:$0xff] }
 0x792   : > { %4408 = vmatmul.bf16.vlgmr.msra.gmra.mxu0 %v3264_v12  ;;  %4421 = vmatmul.bf16.vlgmr.msrb.gmra.mxu1 %v3265_v43 }
 0x793   : > { %4452 = vmatpush.bf16.msrb.mxu0 %v12023_v30  ;;  %4465 = vmatpush.bf16.msra.mxu1 %v12031_v31  ;;  %v3147_v55 = vpop.f32.mrf.mxu0  ;;  %v3160_v56 = vpop.f32.mrf.mxu1  ;;  %v2374_v31 = vperm.slane %v13826_v18, 6 }
 0x794   : > { %v3171_v50 = vpop.f32.mrf.mxu3  ;;  %v3184_v51 = vpop.f32.mrf.mxu2 }
 0x795   : > { %v3172_v52 = vadd.f32 %v3171_v50, %v2370_v39  ;;  %v3185_v53 = vadd.f32 %v3184_v51, %v2371_v40  ;;  %4433 = vmatpush.bf16.msra.mxu3 %v12000_v44  ;;  %4446 = vmatpush.bf16.msra.mxu2 %v12008_v46 }
 0x797   : > { %4453 = vmatpush.bf16.msrb.mxu0 %v12022_v41  ;;  %4466 = vmatpush.bf16.msra.mxu1 %v12030_v42  ;;  %v3250_v57 = vmax.f32 %v3172_v52, 0.0  ;;  %v3251_v58 = vmax.f32 %v3185_v53, 0.0 }
 0x799   : > { %4478 = vmatpush.bf16.msrb.mxu3 %v12039_v48  ;;  %4491 = vmatpush.bf16.msrb.mxu2 %v12047_v49  ;;  %v3266_v45 = vpack.c.bf16 %v3250_v57, %v3250_v57  ;;  %v3267_v61 = vpack.c.bf16 %v3251_v58, %v3251_v58 }
 0x79b   : > { %4454 = vmatpush.bf16.msrb.mxu0 %v12021_v16  ;;  %4467 = vmatpush.bf16.msra.mxu1 %v12029_v54 }
 0x79c   : > { %4434 = vmatmul.bf16.vlgmr.msra.gmra.mxu3 %v3266_v45  ;;  %4447 = vmatmul.bf16.vlgmr.msra.gmra.mxu2 %v3267_v61  ;;  %v3173_v0 = vpop.f32.mrf.mxu3  ;;  %v3186_v1 = vpop.f32.mrf.mxu2 }
 0x79d   : > { %4479 = vmatpush.bf16.msrb.mxu3 %v12038_v59  ;;  %4492 = vmatpush.bf16.msrb.mxu2 %v12046_v60 }
 0x79f   : > { %4455 = vmatpush.bf16.msrb.mxu0 %v12020_v35  ;;  %4468 = vmatpush.bf16.msra.mxu1 %v12028_v63 }
 0x7a1   : > { %4480 = vmatpush.bf16.msrb.mxu3 %v12037_v3  ;;  %4493 = vmatpush.bf16.msrb.mxu2 %v12045_v4 }
 0x7a3   : > { %4456 = vmatpush.bf16.msrb.mxu0 %v12019_v5  ;;  %4469 = vmatpush.bf16.msra.mxu1 %v12027_v7 }
 0x7a5   : > { %4481 = vmatpush.bf16.msrb.mxu3 %v12036_v8  ;;  %4494 = vmatpush.bf16.msrb.mxu2 %v12044_v9 }
 0x7a7   : > { %4457 = vmatpush.bf16.msrb.mxu0 %v12018_v32  ;;  %4470 = vmatpush.bf16.msra.mxu1 %v12026_v62 }
 0x7a9   : > { %4482 = vmatpush.bf16.msrb.mxu3 %v12035_v10  ;;  %4495 = vmatpush.bf16.msrb.mxu2 %v12043_v11 }
 0x7ab   : > { %4458 = vmatpush.bf16.msrb.mxu0 %v12017_v14  ;;  %4471 = vmatpush.bf16.msra.mxu1 %v12025_v15  ;;  %v3197_v6 = vpop.f32.mrf.mxu0  ;;  %v3210_v24 = vpop.f32.mrf.mxu1 }
 0x7ac   : > { %v3198_v25 = vadd.f32 %v3197_v6, %v2372_v17  ;;  %v3211_v26 = vadd.f32 %v3210_v24, %v2373_v19 }
 0x7ad   : > { %4483 = vmatpush.bf16.msrb.mxu3 %v12034_v20  ;;  %4496 = vmatpush.bf16.msrb.mxu2 %v12042_v21 }
 0x7ae   : > { %v3252_v29 = vmax.f32 %v3198_v25, 0.0  ;;  %v3253_v30 = vmax.f32 %v3211_v26, 0.0 }
 0x7af   : > { %4459 = vmatpush.bf16.msrb.mxu0 %v12016_v22  ;;  %4472 = vmatpush.bf16.msra.mxu1 %v12024_v23 }
 0x7b0   : > { %v3268_v34 = vpack.c.bf16 %v3252_v29, %v3252_v29  ;;  %v3269_v13 = vpack.c.bf16 %v3253_v30, %v3253_v30 }
 0x7b1   : > { %4484 = vmatpush.bf16.msrb.mxu3 %v12033_v27  ;;  %4497 = vmatpush.bf16.msrb.mxu2 %v12041_v28 }
 0x7b2   : > { %4460 = vmatmul.bf16.vlgmr.msrb.gmra.mxu0 %v3268_v34  ;;  %4473 = vmatmul.bf16.vlgmr.msra.gmra.mxu1 %v3269_v13 }
 0x7b3   : > { %v3223_v38 = vpop.f32.mrf.mxu3  ;;  %v3236_v39 = vpop.f32.mrf.mxu2 }
 0x7b4   : > { %v3224_v40 = vadd.f32 %v3223_v38, %v2374_v31  ;;  %v3237_v41 = vadd.f32 %v3236_v39, %v2375_v33  ;;  %v3199_v42 = vpop.f32.mrf.mxu0  ;;  %v3212_v12 = vpop.f32.mrf.mxu1  ;;  %v12663_v33 = vld [vmem:[#allocation22] ss:$0 sm:$0xff]  ;;  %v10427_v38 = vld [vmem:[#allocation8 + $0x5a0] sm:$0xf]  ;;  %v12138_v39 = vld [vmem:[#allocation8 + $0x5cc] sm:$0xf0] }
 0x7b5   : > { %4485 = vmatpush.bf16.msrb.mxu3 %v12032_v36  ;;  %4498 = vmatpush.bf16.msrb.mxu2 %v12040_v37  ;;  %v10429_v42 = vld [vmem:[#allocation8 + $0x5d0] sm:$0xf0]  ;;  %v10435_v12 = vld [vmem:[#allocation8 + $0x5a8] sm:$0xf] }
 0x7b6   : > { %v3254_v43 = vmax.f32 %v3224_v40, 0.0  ;;  %v3255_v44 = vmax.f32 %v3237_v41, 0.0  ;;  %v12132_v40 = vld [vmem:[#allocation8 + $0x5a4] sm:$0xf]  ;;  %v10428_v41 = vor.u32 %v12138_v39, %v10427_v38  ;;  %v10189_v39 = vld [vmem:[#allocation8 + $0x3f0] sm:$0xf0] }
 0x7b8   : > { %v3270_v46 = vpack.c.bf16 %v3254_v43, %v3254_v43  ;;  %v3271_v18 = vpack.c.bf16 %v3255_v44, %v3255_v44  ;;  %v12139_v43 = vld [vmem:[#allocation8 + $0x5d4] sm:$0xf0]  ;;  %v10432_v44 = vor.u32 %v12132_v40, %v10429_v42  ;;  %5147 = vmatpush.bf16.msra.mxu0 %v10428_v41  ;;  %v10195_v40 = vld [vmem:[#allocation8 + $0x3c8] sm:$0xf]  ;;  %v12073_v42 = vld [vmem:[#allocation8 + $0x3cc] sm:$0xf] }
 0x7b9   : > { %v12079_v41 = vld [vmem:[#allocation8 + $0x3f4] sm:$0xf0] }
 0x7ba   : > { %4486 = vmatmul.bf16.vlgmr.msrb.gmra.mxu3 %v3270_v46  ;;  %4499 = vmatmul.bf16.vlgmr.msrb.gmra.mxu2 %v3271_v18  ;;  %v10436_v46 = vor.u32 %v12139_v43, %v10435_v12  ;;  %v12133_v18 = vld [vmem:[#allocation8 + $0x5ac] sm:$0xf]  ;;  %v10197_v12 = vld [vmem:[#allocation8 + $0x3f8] sm:$0xf0] }
 0x7bb   : > { %v3225_v48 = vpop.f32.mrf.mxu3  ;;  %v3238_v49 = vpop.f32.mrf.mxu2  ;;  %5160 = vmatpush.bf16.msrb.mxu1 %v10432_v44 }
 0x7bc   : > { %v10437_v48 = vld [vmem:[#allocation8 + $0x5d8] sm:$0xf0]  ;;  %v10379_v49 = vld [vmem:[#allocation8 + $0x540] sm:$0xf]  ;;  %5173 = vmatpush.bf16.msra.mxu3 %v10436_v46  ;;  %v10196_v46 = vor.u32 %v12079_v41, %v10195_v40  ;;  %v10349_v41 = vld [vmem:[#allocation8 + $0x520] sm:$0xf0] }
 0x7ee   : > { %v4305_v50 = vpop.f32.mrf.mxu0  ;;  %v4318_v51 = vpop.f32.mrf.mxu1 }
 0x7ef   : > { %v4319_v0 = vadd.f32 %v4318_v51, %v4305_v50  ;;  %v12126_v50 = vld [vmem:[#allocation8 + $0x56c] sm:$0xf0]  ;;  %v12120_v51 = vld [vmem:[#allocation8 + $0x544] sm:$0xf] }
 0x7f6   : > { %v4307_v52 = vpop.f32.mrf.mxu0  ;;  %v4320_v53 = vpop.f32.mrf.mxu1 }
 0x7f7   : > { %v10381_v52 = vld [vmem:[#allocation8 + $0x570] sm:$0xf0]  ;;  %v10380_v53 = vor.u32 %v12126_v50, %v10379_v49  ;;  %v12060_v49 = vld [vmem:[#allocation8 + $0x364] sm:$0xf] }
 0x7f8   : > { %v10141_v50 = vld [vmem:[#allocation8 + $0x390] sm:$0xf0] }
 0x7f9   : > { %5148 = vmatpush.bf16.msra.mxu0 %v10380_v53  ;;  %v12061_v53 = vld [vmem:[#allocation8 + $0x36c] sm:$0xf] }
 0x7fb   : > { %v4331_v55 = vpop.f32.mrf.mxu3  ;;  %v4344_v56 = vpop.f32.mrf.mxu2 }
 0x7fc   : > { %v4332_v1 = vadd.f32 %v4331_v55, %v4319_v0  ;;  %v10384_v55 = vor.u32 %v12120_v51, %v10381_v52  ;;  %v10147_v51 = vld [vmem:[#allocation8 + $0x368] sm:$0xf]  ;;  %v12067_v52 = vld [vmem:[#allocation8 + $0x394] sm:$0xf0] }
 0x7fe   : > { %v4345_v5 = vadd.f32 %v4344_v56, %v4332_v1  ;;  %v10387_v56 = vld [vmem:[#allocation8 + $0x548] sm:$0xf]  ;;  %v12115_v1 = vld [vmem:[#allocation8 + $0x514] sm:$0xf0]  ;;  %5161 = vmatpush.bf16.msrb.mxu1 %v10384_v55  ;;  %v10149_v55 = vld [vmem:[#allocation8 + $0x398] sm:$0xf0] }
 0x7ff   : > { %v4357_v16 = vpop.f32.mrf.mxu0  ;;  %v4370_v54 = vpop.f32.mrf.mxu1 }
 0x800   : > { %v4358_v9 = vadd.f32 %v4357_v16, %v4345_v5  ;;  %v12127_v16 = vld [vmem:[#allocation8 + $0x574] sm:$0xf0] }
 0x802   : > { %v4371_v10 = vadd.f32 %v4370_v54, %v4358_v9  ;;  %v12121_v54 = vld [vmem:[#allocation8 + $0x54c] sm:$0xf]  ;;  %v12102_v9 = vld [vmem:[#allocation8 + $0x4ac] sm:$0xf0] }
 0x803   : > { %v4333_v57 = vpop.f32.mrf.mxu3  ;;  %v4346_v58 = vpop.f32.mrf.mxu2 }
 0x804   : > { %v10388_v57 = vor.u32 %v12127_v16, %v10387_v56  ;;  %v10389_v58 = vld [vmem:[#allocation8 + $0x578] sm:$0xf0]  ;;  %v10144_v16 = vor.u32 %v12060_v49, %v10141_v50  ;;  %v10299_v49 = vld [vmem:[#allocation8 + $0x490] sm:$0xf]  ;;  %v12098_v50 = vld [vmem:[#allocation8 + $0x494] sm:$0xf] }
 0x806   : > { %5174 = vmatpush.bf16.msra.mxu3 %v10388_v57 }
 0x807   : > { %v4359_v59 = vpop.f32.mrf.mxu0  ;;  %v4372_v60 = vpop.f32.mrf.mxu1 }
 0x808   : > { %v10331_v59 = vld [vmem:[#allocation8 + $0x4e0] sm:$0xf]  ;;  %v12114_v60 = vld [vmem:[#allocation8 + $0x50c] sm:$0xf0] }
 0x809   : > { %v10332_v0 = vor.u32 %v12114_v60, %v10331_v59 }
 0x80b   : > { %v4383_v45 = vpop.f32.mrf.mxu3  ;;  %v4396_v61 = vpop.f32.mrf.mxu2  ;;  %5149 = vmatpush.bf16.msra.mxu0 %v10332_v0 }
 0x80c   : > { %v4384_v11 = vadd.f32 %v4383_v45, %v4371_v10  ;;  %v10392_v45 = vor.u32 %v12121_v54, %v10389_v58  ;;  %v10285_v10 = vld [vmem:[#allocation8 + $0x4b0] sm:$0xf0]  ;;  %v10148_v54 = vor.u32 %v12067_v52, %v10147_v51  ;;  %v10152_v58 = vor.u32 %v12061_v53, %v10149_v55  ;;  %v10301_v52 = vld [vmem:[#allocation8 + $0x4c0] sm:$0xf0]  ;;  %v10307_v53 = vld [vmem:[#allocation8 + $0x498] sm:$0xf] }
 0x80d   : > { %v12105_v55 = vld [vmem:[#allocation8 + $0x4c4] sm:$0xf0] }
 0x80e   : > { %v4397_v14 = vadd.f32 %v4396_v61, %v4384_v11  ;;  %v12108_v61 = vld [vmem:[#allocation8 + $0x4e4] sm:$0xf]  ;;  %v10291_v11 = vld [vmem:[#allocation8 + $0x488] sm:$0xf] }
 0x80f   : > { %v4409_v35 = vpop.f32.mrf.mxu0  ;;  %v4422_v63 = vpop.f32.mrf.mxu1 }
 0x810   : > { %v4410_v19 = vadd.f32 %v4409_v35, %v4397_v14  ;;  %v10333_v35 = vld [vmem:[#allocation8 + $0x510] sm:$0xf0]  ;;  %v12103_v14 = vld [vmem:[#allocation8 + $0x4b4] sm:$0xf0] }
 0x811   : > { %v10336_v5 = vor.u32 %v12108_v61, %v10333_v35  ;;  %v10091_v61 = vld [vmem:[#allocation8 + $0x300] sm:$0xf]  ;;  %v12054_v35 = vld [vmem:[#allocation8 + $0x32c] sm:$0xf0] }
 0x812   : > { %v4423_v20 = vadd.f32 %v4422_v63, %v4410_v19  ;;  %v10339_v63 = vld [vmem:[#allocation8 + $0x4e8] sm:$0xf]  ;;  %v10092_v0 = vor.u32 %v12054_v35, %v10091_v61  ;;  %v12086_v61 = vld [vmem:[#allocation8 + $0x434] sm:$0xf] }
 0x813   : > { %v4385_v3 = vpop.f32.mrf.mxu3  ;;  %v4398_v4 = vpop.f32.mrf.mxu2  ;;  %5162 = vmatpush.bf16.msrb.mxu1 %v10336_v5 }
 0x814   : > { %v12109_v3 = vld [vmem:[#allocation8 + $0x4ec] sm:$0xf]  ;;  %v10341_v4 = vld [vmem:[#allocation8 + $0x518] sm:$0xf0] }
 0x817   : > { %v4411_v7 = vpop.f32.mrf.mxu0  ;;  %v4424_v8 = vpop.f32.mrf.mxu1 }
 0x818   : > { %v10340_v7 = vor.u32 %v12115_v1, %v10339_v63  ;;  %v10283_v8 = vld [vmem:[#allocation8 + $0x480] sm:$0xf]  ;;  %v12048_v63 = vld [vmem:[#allocation8 + $0x304] sm:$0xf]  ;;  %v10093_v1 = vld [vmem:[#allocation8 + $0x330] sm:$0xf0] }
 0x819   : > { %v10284_v19 = vor.u32 %v12102_v9, %v10283_v8  ;;  %v10096_v5 = vor.u32 %v12048_v63, %v10093_v1  ;;  %v12049_v8 = vld [vmem:[#allocation8 + $0x30c] sm:$0xf]  ;;  %v10101_v9 = vld [vmem:[#allocation8 + $0x338] sm:$0xf0]  ;;  %v10253_v63 = vld [vmem:[#allocation8 + $0x460] sm:$0xf0] }
 0x81a   : > { %5175 = vmatpush.bf16.msra.mxu3 %v10340_v7  ;;  %v12093_v1 = vld [vmem:[#allocation8 + $0x464] sm:$0xf0] }
 0x81b   : > { %5150 = vmatpush.bf16.msra.mxu0 %v10284_v19  ;;  %v12141_v19 = vld [vmem:[#allocation8 + $0x5e4] sm:$0xf0] }
 0x81f   : > { %v4435_v32 = vpop.f32.mrf.mxu3  ;;  %v4448_v62 = vpop.f32.mrf.mxu2 }
 0x820   : > { %v4436_v23 = vadd.f32 %v4435_v32, %v4423_v20  ;;  %v12096_v32 = vld [vmem:[#allocation8 + $0x484] sm:$0xf] }
 0x821   : > { %v10288_v20 = vor.u32 %v12096_v32, %v10285_v10  ;;  %v10104_v32 = vor.u32 %v12049_v8, %v10101_v9  ;;  %v12134_v10 = vld [vmem:[#allocation8 + $0x5b4] sm:$0xf]  ;;  %v10203_v9 = vld [vmem:[#allocation8 + $0x3d0] sm:$0xf] }
 0x822   : > { %v4449_v6 = vadd.f32 %v4448_v62, %v4436_v23  ;;  %v10344_v62 = vor.u32 %v12109_v3, %v10341_v4  ;;  %v12090_v23 = vld [vmem:[#allocation8 + $0x44c] sm:$0xf0]  ;;  %v10099_v3 = vld [vmem:[#allocation8 + $0x308] sm:$0xf]  ;;  %v12055_v4 = vld [vmem:[#allocation8 + $0x334] sm:$0xf0] }
 0x823   : > { %5163 = vmatpush.bf16.msrb.mxu1 %v10288_v20  ;;  %v10100_v7 = vor.u32 %v12055_v4, %v10099_v3  ;;  %v12135_v20 = vld [vmem:[#allocation8 + $0x5bc] sm:$0xf]  ;;  %v10256_v3 = vor.u32 %v12086_v61, %v10253_v63  ;;  %v12136_v61 = vld [vmem:[#allocation8 + $0x5c4] sm:$0xf]  ;;  %v10467_v63 = vld [vmem:[#allocation8 + $0x5c8] sm:$0xf] }
 0x827   : > { %v4437_v15 = vpop.f32.mrf.mxu3  ;;  %v4450_v17 = vpop.f32.mrf.mxu2 }
 0x828   : > { %v12097_v15 = vld [vmem:[#allocation8 + $0x48c] sm:$0xf]  ;;  %v10293_v17 = vld [vmem:[#allocation8 + $0x4b8] sm:$0xf0] }
 0x82f   : > { %v4461_v21 = vpop.f32.mrf.mxu0  ;;  %v4474_v22 = vpop.f32.mrf.mxu1 }
 0x830   : > { %v4462_v24 = vadd.f32 %v4461_v21, %v4449_v6  ;;  %v10292_v21 = vor.u32 %v12103_v14, %v10291_v11  ;;  %v12084_v6 = vld [vmem:[#allocation8 + $0x424] sm:$0xf] }
 0x831   : > { %v10445_v11 = vld [vmem:[#allocation8 + $0x5e0] sm:$0xf0] }
 0x832   : > { %v4475_v27 = vadd.f32 %v4474_v22, %v4462_v24  ;;  %v10235_v22 = vld [vmem:[#allocation8 + $0x420] sm:$0xf]  ;;  %v10296_v24 = vor.u32 %v12097_v15, %v10293_v17  ;;  %5176 = vmatpush.bf16.msra.mxu3 %v10292_v21  ;;  %v10448_v15 = vor.u32 %v12134_v10, %v10445_v11  ;;  %v10451_v17 = vld [vmem:[#allocation8 + $0x5b8] sm:$0xf]  ;;  %v10205_v10 = vld [vmem:[#allocation8 + $0x400] sm:$0xf0] }
 0x833   : > { %v10452_v21 = vor.u32 %v12141_v19, %v10451_v17  ;;  %v10211_v11 = vld [vmem:[#allocation8 + $0x3d8] sm:$0xf]  ;;  %v12075_v19 = vld [vmem:[#allocation8 + $0x3dc] sm:$0xf] }
 0x837   : > { %v4463_v25 = vpop.f32.mrf.mxu0  ;;  %v4476_v26 = vpop.f32.mrf.mxu1 }
 0x838   : > { %v10237_v25 = vld [vmem:[#allocation8 + $0x450] sm:$0xf0]  ;;  %v10243_v26 = vld [vmem:[#allocation8 + $0x428] sm:$0xf] }
 0x83d   : > { %v4487_v28 = vpop.f32.mrf.mxu3  ;;  %v4500_v29 = vpop.f32.mrf.mxu2 }
 0x83e   : > { %v4488_v30 = vadd.f32 %v4487_v28, %v4475_v27  ;;  %v12091_v27 = vld [vmem:[#allocation8 + $0x454] sm:$0xf0]  ;;  %v12085_v28 = vld [vmem:[#allocation8 + $0x42c] sm:$0xf] }
 0x840   : > { %v4501_v31 = vadd.f32 %v4500_v29, %v4488_v30  ;;  %v10245_v29 = vld [vmem:[#allocation8 + $0x458] sm:$0xf0]  ;;  %v10236_v30 = vor.u32 %v12090_v23, %v10235_v22  ;;  %v10453_v22 = vld [vmem:[#allocation8 + $0x5e8] sm:$0xf0]  ;;  %v10395_v23 = vld [vmem:[#allocation8 + $0x550] sm:$0xf] }
 0x841   : > { %v10248_v38 = vor.u32 %v12085_v28, %v10245_v29  ;;  %v10403_v28 = vld [vmem:[#allocation8 + $0x558] sm:$0xf] }
 0x842   : > { %v4504_v34 = vadd.f32 %v4501_v31, %v13794_v2  ;;  %v10440_v2 = vor.u32 %v12133_v18, %v10437_v48  ;;  %v10240_v31 = vor.u32 %v12084_v6, %v10237_v25  ;;  %5151 = vmatpush.bf16.msra.mxu0 %v10236_v30  ;;  %v10139_v18 = vld [vmem:[#allocation8 + $0x360] sm:$0xf]  ;;  %v12066_v48 = vld [vmem:[#allocation8 + $0x38c] sm:$0xf0]  ;;  %v12129_v30 = vld [vmem:[#allocation8 + $0x584] sm:$0xf0] }
 0x843   : > { %v10140_v56 = vor.u32 %v12066_v48, %v10139_v18  ;;  %v12128_v6 = vld [vmem:[#allocation8 + $0x57c] sm:$0xf0]  ;;  %v10357_v18 = vld [vmem:[#allocation8 + $0x528] sm:$0xf0] }
 0x844   : > { %v13837_v13 = vadd.f32 %v12663_v33, %v4504_v34  ;;  %5186 = vmatpush.bf16.msra.mxu2 %v10440_v2  ;;  %v10244_v33 = vor.u32 %v12091_v27, %v10243_v26  ;;  %v10187_v34 = vld [vmem:[#allocation8 + $0x3c0] sm:$0xf]  ;;  %5164 = vmatpush.bf16.msrb.mxu1 %v10240_v31  ;;  %v10200_v2 = vor.u32 %v12073_v42, %v10197_v12  ;;  %v12122_v26 = vld [vmem:[#allocation8 + $0x554] sm:$0xf]  ;;  %v10397_v27 = vld [vmem:[#allocation8 + $0x580] sm:$0xf0] }
 0x845   : > { %v4489_v36 = vpop.f32.mrf.mxu3  ;;  %v4502_v37 = vpop.f32.mrf.mxu2  ;;  %v10396_v25 = vor.u32 %v12128_v6, %v10395_v23  ;;  %v10400_v29 = vor.u32 %v12122_v26, %v10397_v27  ;;  %v12123_v31 = vld [vmem:[#allocation8 + $0x55c] sm:$0xf]  ;;  %v10355_v42 = vld [vmem:[#allocation8 + $0x4f8] sm:$0xf]  ;;  %v12117_v12 = vld [vmem:[#allocation8 + $0x524] sm:$0xf0] }
 0x846   : > { %4512 = vadd.xlane.f32.xlu1 %v13837_v13  ;;  %v12078_v36 = vld [vmem:[#allocation8 + $0x3ec] sm:$0xf0]  ;;  %v12072_v37 = vld [vmem:[#allocation8 + $0x3c4] sm:$0xf]  ;;  %5177 = vmatpush.bf16.msra.mxu3 %v10244_v33  ;;  %v10405_v33 = vld [vmem:[#allocation8 + $0x588] sm:$0xf0] }
 0x847   : > { %v10188_v43 = vor.u32 %v12078_v36, %v10187_v34  ;;  %v10192_v44 = vor.u32 %v12072_v37, %v10189_v39  ;;  %v10404_v34 = vor.u32 %v12129_v30, %v10403_v28  ;;  %v10408_v36 = vor.u32 %v12123_v31, %v10405_v33  ;;  %v10347_v37 = vld [vmem:[#allocation8 + $0x4f0] sm:$0xf]  ;;  %v12110_v39 = vld [vmem:[#allocation8 + $0x4f4] sm:$0xf]  ;;  %v12068_v23 = vld [vmem:[#allocation8 + $0x39c] sm:$0xf0] }
 0x848   : > { %5187 = vmatpush.bf16.msra.mxu2 %v10392_v45  ;;  %v12062_v6 = vld [vmem:[#allocation8 + $0x374] sm:$0xf]  ;;  %v10163_v26 = vld [vmem:[#allocation8 + $0x378] sm:$0xf]  ;;  %v12069_v27 = vld [vmem:[#allocation8 + $0x3a4] sm:$0xf0] }
 0x849   : > { %5152 = vmatpush.bf16.msra.mxu0 %v10188_v43  ;;  %5165 = vmatpush.bf16.msrb.mxu1 %v10192_v44  ;;  %v10352_v43 = vor.u32 %v12110_v39, %v10349_v41  ;;  %v10356_v44 = vor.u32 %v12117_v12, %v10355_v42  ;;  %v12063_v30 = vld [vmem:[#allocation8 + $0x37c] sm:$0xf]  ;;  %v10165_v31 = vld [vmem:[#allocation8 + $0x3a8] sm:$0xf0]  ;;  %v10109_v39 = vld [vmem:[#allocation8 + $0x340] sm:$0xf0] }
 0x84a   : > { %5178 = vmatpush.bf16.msra.mxu3 %v10196_v46  ;;  %v12111_v46 = vld [vmem:[#allocation8 + $0x4fc] sm:$0xf]  ;;  %v10168_v33 = vor.u32 %v12063_v30, %v10165_v31  ;;  %v12057_v41 = vld [vmem:[#allocation8 + $0x344] sm:$0xf0] }
 0x84b   : > { %v10360_v48 = vor.u32 %v12111_v46, %v10357_v18 }
 0x84c   : > { %5188 = vmatpush.bf16.msra.mxu2 %v10344_v62  ;;  %v12140_v62 = vld [vmem:[#allocation8 + $0x5dc] sm:$0xf0] }
 0x84d   : > { %5153 = vmatpush.bf16.msra.mxu0 %v10140_v56  ;;  %5166 = vmatpush.bf16.msrb.mxu1 %v10144_v16  ;;  %v10304_v56 = vor.u32 %v12098_v50, %v10301_v52  ;;  %v10308_v16 = vor.u32 %v12105_v55, %v10307_v53 }
 0x84e   : > { %5179 = vmatpush.bf16.msra.mxu3 %v10148_v54  ;;  %v12099_v54 = vld [vmem:[#allocation8 + $0x49c] sm:$0xf] }
 0x850   : > { %5189 = vmatpush.bf16.msra.mxu2 %v10296_v24  ;;  %v10456_v24 = vor.u32 %v12135_v20, %v10453_v22  ;;  %v10213_v20 = vld [vmem:[#allocation8 + $0x408] sm:$0xf0]  ;;  %v10155_v22 = vld [vmem:[#allocation8 + $0x370] sm:$0xf] }
 0x851   : > { %5154 = vmatpush.bf16.msra.mxu0 %v10092_v0  ;;  %5167 = vmatpush.bf16.msrb.mxu1 %v10096_v5  ;;  %v10259_v0 = vld [vmem:[#allocation8 + $0x438] sm:$0xf]  ;;  %v12087_v5 = vld [vmem:[#allocation8 + $0x43c] sm:$0xf] }
 0x852   : > { %5180 = vmatpush.bf16.msra.mxu3 %v10100_v7  ;;  %v10260_v4 = vor.u32 %v12093_v1, %v10259_v0  ;;  %v10261_v7 = vld [vmem:[#allocation8 + $0x468] sm:$0xf0]  ;;  %v12143_v1 = vld [vmem:[#allocation8 + $0x5f4] sm:$0xf0] }
 0x853   : > { %v10264_v8 = vor.u32 %v12087_v5, %v10261_v7 }
 0x854   : > { %5190 = vmatpush.bf16.msra.mxu2 %v10248_v38  ;;  %v12116_v38 = vld [vmem:[#allocation8 + $0x51c] sm:$0xf0] }
 0x855   : > { %5212 = vmatpush.bf16.msra.mxu1 %v10448_v15  ;;  %v10348_v40 = vor.u32 %v12116_v38, %v10347_v37  ;;  %v12050_v37 = vld [vmem:[#allocation8 + $0x314] sm:$0xf] }
 0x856   : > { %5225 = vmatpush.bf16.msrb.mxu3 %v10452_v21  ;;  %v10216_v21 = vor.u32 %v12075_v19, %v10213_v20  ;;  %v10112_v42 = vor.u32 %v12050_v37, %v10109_v39  ;;  %v10317_v39 = vld [vmem:[#allocation8 + $0x4d0] sm:$0xf0] }
 0x858   : > { %5191 = vmatpush.bf16.msra.mxu2 %v10200_v2  ;;  %v12104_v2 = vld [vmem:[#allocation8 + $0x4bc] sm:$0xf0] }
 0x859   : > { %5213 = vmatpush.bf16.msra.mxu1 %v10400_v29  ;;  %v10300_v51 = vor.u32 %v12104_v2, %v10299_v49  ;;  %v10164_v29 = vor.u32 %v12069_v27, %v10163_v26  ;;  %v10371_v26 = vld [vmem:[#allocation8 + $0x508] sm:$0xf]  ;;  %v12119_v27 = vld [vmem:[#allocation8 + $0x534] sm:$0xf0] }
 0x85a   : > { %5226 = vmatpush.bf16.msrb.mxu3 %v10404_v34  ;;  %v10107_v34 = vld [vmem:[#allocation8 + $0x310] sm:$0xf] }
 0x85c   : > { %5192 = vmatpush.bf16.msra.mxu2 %v10152_v58 }
 0x85d   : > { %5214 = vmatpush.bf16.msra.mxu1 %v10352_v43  ;;  %v12051_v43 = vld [vmem:[#allocation8 + $0x31c] sm:$0xf] }
 0x85e   : > { %5227 = vmatpush.bf16.msrb.mxu3 %v10356_v44  ;;  %v10117_v44 = vld [vmem:[#allocation8 + $0x348] sm:$0xf0] }
 0x85f   : > { %v10120_v18 = vor.u32 %v12051_v43, %v10117_v44 }
 0x860   : > { %5193 = vmatpush.bf16.msra.mxu2 %v10104_v32  ;;  %v12074_v32 = vld [vmem:[#allocation8 + $0x3d4] sm:$0xf] }
 0x861   : > { %5215 = vmatpush.bf16.msra.mxu1 %v10304_v56  ;;  %v10208_v15 = vor.u32 %v12074_v32, %v10205_v10  ;;  %v12664_v56 = vld [vmem:[#allocation23] ss:$0 sm:$0xff]  ;;  %v10413_v10 = vld [vmem:[#allocation8 + $0x590] sm:$0xf0] }
 0x862   : > { %5228 = vmatpush.bf16.msrb.mxu3 %v10308_v16 }
 0x864   : > { %5238 = vmatpush.bf16.msrb.mxu2 %v10456_v24  ;;  %v10156_v24 = vor.u32 %v12068_v23, %v10155_v22  ;;  %v12118_v22 = vld [vmem:[#allocation8 + $0x52c] sm:$0xf0] }
 0x865   : > { %5216 = vmatpush.bf16.msra.mxu1 %v10256_v3  ;;  %v12137_v3 = vld [vmem:[#allocation8 + $0x5cc] sm:$0xf] }
 0x866   : > { %5229 = vmatpush.bf16.msrb.mxu3 %v10260_v4  ;;  %v10469_v4 = vld [vmem:[#allocation8 + $0x5f8] sm:$0xf0] }
 0x867   : > { %v10472_v32 = vor.u32 %v12137_v3, %v10469_v4  ;;  %v10229_v3 = vld [vmem:[#allocation8 + $0x418] sm:$0xf0] }
 0x868   : > { %5239 = vmatpush.bf16.msrb.mxu2 %v10408_v36  ;;  %v12056_v36 = vld [vmem:[#allocation8 + $0x33c] sm:$0xf0] }
 0x869   : > { %5217 = vmatpush.bf16.msra.mxu1 %v10208_v15  ;;  %v10108_v38 = vor.u32 %v12056_v36, %v10107_v34  ;;  %v12125_v15 = vld [vmem:[#allocation8 + $0x56c] sm:$0xf]  ;;  %v12106_v34 = vld [vmem:[#allocation8 + $0x4cc] sm:$0xf0]  ;;  %v10372_v36 = vor.u32 %v12119_v27, %v10371_v26  ;;  %v12059_v26 = vld [vmem:[#allocation8 + $0x354] sm:$0xf0] }
 0x86a   : > { %v12053_v27 = vld [vmem:[#allocation8 + $0x32c] sm:$0xf] }
 0x86c   : > { %5240 = vmatpush.bf16.msrb.mxu2 %v10360_v48 }
 0x8b9   : > { %v4513_v57 = vpop.xlane.xlu1 %4512 }
 0x8ba   : > { %v4514_v59 = vmul.f32 %v4513_v57, %v13784_v47  ;;  %v10309_v57 = vld [vmem:[#allocation8 + $0x4c8] sm:$0xf0] }
 0x8bb   : > { %v10312_v58 = vor.u32 %v12099_v54, %v10309_v57  ;;  %v12665_v54 = vld [vmem:[#allocation25] ss:$0 sm:$0xff] }
 0x8bc   : > { %v13842_v60 = vsub.f32 %v13837_v13, %v4514_v59  ;;  %v10443_v13 = vld [vmem:[#allocation8 + $0x5b0] sm:$0xf] }
 0x8bd   : > { %v10444_v14 = vor.u32 %v12140_v62, %v10443_v13  ;;  %v10251_v59 = vld [vmem:[#allocation8 + $0x430] sm:$0xf]  ;;  %5241 = vmatpush.bf16.msrb.mxu2 %v10312_v58  ;;  %v12080_v13 = vld [vmem:[#allocation8 + $0x3fc] sm:$0xf0] }
 0x8be   : > { %v4516_v45 = vmul.f32 %v13842_v60, %v13842_v60  ;;  %v10204_v62 = vor.u32 %v12080_v13, %v10203_v9  ;;  %v10411_v9 = vld [vmem:[#allocation8 + $0x560] sm:$0xf]  ;;  %v12130_v13 = vld [vmem:[#allocation8 + $0x58c] sm:$0xf0] }
 0x8bf   : > { %5199 = vmatpush.bf16.msrb.mxu0 %v10444_v14  ;;  %v12081_v14 = vld [vmem:[#allocation8 + $0x404] sm:$0xf0]  ;;  %v10412_v19 = vor.u32 %v12130_v13, %v10411_v9  ;;  %v12070_v9 = vld [vmem:[#allocation8 + $0x3ac] sm:$0xf0] }
 0x8c0   : > { %4517 = vadd.xlane.f32.xlu2 %v4516_v45  ;;  %v12092_v45 = vld [vmem:[#allocation8 + $0x45c] sm:$0xf0]  ;;  %v10212_v17 = vor.u32 %v12081_v14, %v10211_v11  ;;  %v10419_v11 = vld [vmem:[#allocation8 + $0x568] sm:$0xf]  ;;  %v12131_v14 = vld [vmem:[#allocation8 + $0x594] sm:$0xf0] }
 0x8c1   : > { %v10252_v35 = vor.u32 %v12092_v45, %v10251_v59  ;;  %5242 = vmatpush.bf16.msrb.mxu2 %v10264_v8  ;;  %v10459_v59 = vld [vmem:[#allocation8 + $0x5c0] sm:$0xf]  ;;  %v12142_v45 = vld [vmem:[#allocation8 + $0x5ec] sm:$0xf0]  ;;  %v10420_v23 = vor.u32 %v12131_v14, %v10419_v11  ;;  %v12071_v11 = vld [vmem:[#allocation8 + $0x3b4] sm:$0xf0] }
 0x8c2   : > { %5230 = vmatpush.bf16.msrb.mxu3 %v10212_v17  ;;  %v10460_v7 = vor.u32 %v12142_v45, %v10459_v59  ;;  %v10421_v17 = vld [vmem:[#allocation8 + $0x598] sm:$0xf0]  ;;  %v12076_v45 = vld [vmem:[#allocation8 + $0x3e4] sm:$0xf]  ;;  %v12065_v14 = vld [vmem:[#allocation8 + $0x38c] sm:$0xf] }
 0x8c3   : > { %5200 = vmatpush.bf16.msrb.mxu0 %v10396_v25  ;;  %v10157_v25 = vld [vmem:[#allocation8 + $0x3a0] sm:$0xf0] }
 0x8c4   : > { %v10160_v28 = vor.u32 %v12062_v6, %v10157_v25  ;;  %v10424_v6 = vor.u32 %v12125_v15, %v10421_v17  ;;  %v10365_v25 = vld [vmem:[#allocation8 + $0x530] sm:$0xf0]  ;;  %v10181_v15 = vld [vmem:[#allocation8 + $0x3b8] sm:$0xf0] }
 0x8c5   : > { %5243 = vmatpush.bf16.msrb.mxu2 %v10216_v21  ;;  %v10363_v21 = vld [vmem:[#allocation8 + $0x500] sm:$0xf] }
 0x8c6   : > { %5218 = vmatpush.bf16.msra.mxu1 %v10160_v28  ;;  %5231 = vmatpush.bf16.msrb.mxu3 %v10164_v29  ;;  %v12113_v28 = vld [vmem:[#allocation8 + $0x50c] sm:$0xf]  ;;  %v10373_v29 = vld [vmem:[#allocation8 + $0x538] sm:$0xf0]  ;;  %v10364_v30 = vor.u32 %v12118_v22, %v10363_v21  ;;  %v12058_v21 = vld [vmem:[#allocation8 + $0x34c] sm:$0xf0] }
 0x8c7   : > { %5201 = vmatpush.bf16.msrb.mxu0 %v10348_v40  ;;  %v10115_v40 = vld [vmem:[#allocation8 + $0x318] sm:$0xf]  ;;  %v10376_v37 = vor.u32 %v12113_v28, %v10373_v29  ;;  %v10133_v28 = vld [vmem:[#allocation8 + $0x358] sm:$0xf0] }
 0x8c8   : > { %v10116_v12 = vor.u32 %v12057_v41, %v10115_v40  ;;  %v10323_v40 = vld [vmem:[#allocation8 + $0x4a8] sm:$0xf]  ;;  %v12107_v41 = vld [vmem:[#allocation8 + $0x4d4] sm:$0xf0] }
 0x8c9   : > { %5244 = vmatpush.bf16.msrb.mxu2 %v10168_v33  ;;  %v10315_v33 = vld [vmem:[#allocation8 + $0x4a0] sm:$0xf] }
 0x8ca   : > { %5219 = vmatpush.bf16.msra.mxu1 %v10112_v42  ;;  %5232 = vmatpush.bf16.msrb.mxu3 %v10116_v12  ;;  %v12101_v42 = vld [vmem:[#allocation8 + $0x4ac] sm:$0xf]  ;;  %v10325_v12 = vld [vmem:[#allocation8 + $0x4d8] sm:$0xf0]  ;;  %v10316_v43 = vor.u32 %v12106_v34, %v10315_v33  ;;  %v10136_v33 = vor.u32 %v12053_v27, %v10133_v28 }
 0x8cb   : > { %5202 = vmatpush.bf16.msrb.mxu0 %v10300_v51 }
 0x8cd   : > { %5245 = vmatpush.bf16.msrb.mxu2 %v10120_v18  ;;  %v12094_v18 = vld [vmem:[#allocation8 + $0x46c] sm:$0xf0] }
 0x8cf   : > { %5203 = vmatpush.bf16.msrb.mxu0 %v10252_v35  ;;  %v10461_v35 = vld [vmem:[#allocation8 + $0x5f0] sm:$0xf0] }
 0x8d0   : > { %v10464_v8 = vor.u32 %v12136_v61, %v10461_v35  ;;  %v10221_v61 = vld [vmem:[#allocation8 + $0x410] sm:$0xf0]  ;;  %v10227_v35 = vld [vmem:[#allocation8 + $0x3e8] sm:$0xf] }
 0x8d3   : > { %5204 = vmatpush.bf16.msrb.mxu0 %v10204_v62  ;;  %v12124_v62 = vld [vmem:[#allocation8 + $0x564] sm:$0xf] }
 0x8d4   : > { %v10416_v20 = vor.u32 %v12124_v62, %v10413_v10  ;;  %v10173_v62 = vld [vmem:[#allocation8 + $0x3b0] sm:$0xf0]  ;;  %v10179_v10 = vld [vmem:[#allocation8 + $0x388] sm:$0xf] }
 0x8d5   : > { %v10180_v22 = vor.u32 %v12071_v11, %v10179_v10 }
 0x8d7   : > { %5205 = vmatpush.bf16.msrb.mxu0 %v10156_v24  ;;  %v12112_v24 = vld [vmem:[#allocation8 + $0x504] sm:$0xf] }
 0x8d8   : > { %v10368_v31 = vor.u32 %v12112_v24, %v10365_v25  ;;  %v10125_v24 = vld [vmem:[#allocation8 + $0x350] sm:$0xf0]  ;;  %v10131_v25 = vld [vmem:[#allocation8 + $0x328] sm:$0xf] }
 0x8db   : > { %5206 = vmatpush.bf16.msrb.mxu0 %v10108_v38  ;;  %v12100_v38 = vld [vmem:[#allocation8 + $0x4a4] sm:$0xf] }
 0x8dc   : > { %v10320_v44 = vor.u32 %v12100_v38, %v10317_v39 }
 0x933   : > { %v4518_v46 = vpop.xlane.xlu2 %4517 }
 0x934   : > { %v4519_v48 = vmul.f32 %v4518_v46, %v13784_v47  ;;  %v10267_v46 = vld [vmem:[#allocation8 + $0x440] sm:$0xf] }
 0x936   : > { %v4520_v49 = vadd.f32 1e-05, %v4519_v48  ;;  %v10324_v48 = vor.u32 %v12107_v41, %v10323_v40  ;;  %v4639_v41 = vld [vmem:[#allocation10 + $0xc] sm:$0xff] }
 0x938   : > { %12692 = vrsqrt.f32 %v4520_v49  ;;  %vm4527_vm8 = vweird.f32 %v4520_v49 }
 0x93e   : > { %v12693_v2 = vpop.eup %12692 }
 0x93f   : > { %v4522_v50 = vmul.f32 %v12693_v2, %v4520_v49  ;;  %vm4528_vm7 = vweird.f32 %v12693_v2  ;;  %v10328_v49 = vor.u32 %v12101_v42, %v10325_v12  ;;  %v4647_v42 = vperm.slane %v4639_v41, 4 }
 0x940   : > { %vm4529_vm9 = vmor %vm4527_vm8, %vm4528_vm7  ;;  %v4648_v12 = vperm.slane %v4639_v41, 5 }
 0x941   : > { %v4523_v51 = vmul.f32 %v12693_v2, %v4522_v50  ;;  %v10269_v50 = vld [vmem:[#allocation8 + $0x470] sm:$0xf0] }
 0x943   : > { %v4524_v52 = vmul.f32 0.5, %v4523_v51  ;;  %v10275_v51 = vld [vmem:[#allocation8 + $0x448] sm:$0xf] }
 0x945   : > { %v4525_v53 = vsub.f32 1.5, %v4524_v52  ;;  %v12095_v52 = vld [vmem:[#allocation8 + $0x474] sm:$0xf0] }
 0x947   : > { %v4526_v55 = vmul.f32 %v12693_v2, %v4525_v53  ;;  %v12089_v53 = vld [vmem:[#allocation8 + $0x44c] sm:$0xf] }
 0x949   : > { %v4530_v16 = vsel %vm4529_vm9, %v12693_v2, %v4526_v55  ;;  %v12088_v2 = vld [vmem:[#allocation8 + $0x444] sm:$0xf]  ;;  %v10277_v55 = vld [vmem:[#allocation8 + $0x478] sm:$0xf0] }
 0x94a   : > { %v4531_v57 = vmul.f32 %v4530_v16, %v13842_v60  ;;  %v10468_v60 = vor.u32 %v12143_v1, %v10467_v63  ;;  %v10272_v16 = vor.u32 %v12088_v2, %v10269_v50  ;;  %v10280_v59 = vor.u32 %v12089_v53, %v10277_v55  ;;  %v12083_v63 = vld [vmem:[#allocation8 + $0x414] sm:$0xf0]  ;;  %v12077_v1 = vld [vmem:[#allocation8 + $0x3ec] sm:$0xf] }
 0x94b   : > { %v10228_v13 = vor.u32 %v12083_v63, %v10227_v35  ;;  %v4649_v53 = vperm.slane %v4639_v41, 6  ;;  %v4650_v55 = vperm.slane %v4639_v41, 7 }
 0x94c   : > { %v4535_v58 = vmul.f32 %v12664_v56, %v4531_v57  ;;  %v10268_v56 = vor.u32 %v12094_v18, %v10267_v46  ;;  %v12082_v57 = vld [vmem:[#allocation8 + $0x40c] sm:$0xf0] }
 0x94e   : > { %v13848_v0 = vadd.f32 %v12665_v54, %v4535_v58  ;;  %v10219_v54 = vld [vmem:[#allocation8 + $0x3e0] sm:$0xf]  ;;  %v10276_v58 = vor.u32 %v12095_v52, %v10275_v51 }
 0x94f   : > { %v10220_v4 = vor.u32 %v12082_v57, %v10219_v54 }
 0x950   : > { %v13852_v5 = vpack.c.bf16 %v13848_v0, %v13848_v0 }
 0x952   : > { %5155 = vmatmul.bf16.vlgmr.msra.gmra.mxu0 %v13852_v5  ;;  %5168 = vmatmul.bf16.vlgmr.msrb.gmra.mxu1 %v13852_v5 }
 0x953   : > { %5181 = vmatmul.bf16.vlgmr.msra.gmra.mxu3 %v13852_v5  ;;  %5194 = vmatmul.bf16.vlgmr.msra.gmra.mxu2 %v13852_v5 }
 0x954   : > { %5251 = vmatpush.bf16.msra.mxu0 %v10460_v7  ;;  %5264 = vmatpush.bf16.msrb.mxu1 %v10464_v8  ;;  %v10224_v7 = vor.u32 %v12076_v45, %v10221_v61  ;;  %v10171_v8 = vld [vmem:[#allocation8 + $0x380] sm:$0xf] }
 0x955   : > { %5277 = vmatpush.bf16.msra.mxu3 %v10468_v60  ;;  %5290 = vmatpush.bf16.msra.mxu2 %v10472_v32  ;;  %v10232_v60 = vor.u32 %v12077_v1, %v10229_v3  ;;  %v12064_v32 = vld [vmem:[#allocation8 + $0x384] sm:$0xf]  ;;  %v10172_v17 = vor.u32 %v12070_v9, %v10171_v8  ;;  %v4640_v3 = vld [vmem:[#allocation10 + $0x14] sm:$0xf] }
 0x956   : > { %v4652_v8 = vperm.slane %v4640_v3, 1 }
 0x958   : > { %5252 = vmatpush.bf16.msra.mxu0 %v10412_v19  ;;  %5265 = vmatpush.bf16.msrb.mxu1 %v10416_v20  ;;  %v10176_v19 = vor.u32 %v12064_v32, %v10173_v62  ;;  %v10123_v20 = vld [vmem:[#allocation8 + $0x320] sm:$0xf] }
 0x959   : > { %5278 = vmatpush.bf16.msra.mxu3 %v10420_v23  ;;  %5291 = vmatpush.bf16.msra.mxu2 %v10424_v6  ;;  %v10184_v23 = vor.u32 %v12065_v14, %v10181_v15  ;;  %v12052_v6 = vld [vmem:[#allocation8 + $0x324] sm:$0xf]  ;;  %v10124_v29 = vor.u32 %v12058_v21, %v10123_v20  ;;  %v4653_v14 = vperm.slane %v4640_v3, 2  ;;  %v4654_v15 = vperm.slane %v4640_v3, 3 }
 0x95c   : > { %5253 = vmatpush.bf16.msra.mxu0 %v10364_v30  ;;  %5266 = vmatpush.bf16.msrb.mxu1 %v10368_v31  ;;  %v10128_v30 = vor.u32 %v12052_v6, %v10125_v24  ;;  %v10132_v31 = vor.u32 %v12059_v26, %v10131_v25 }
 0x95d   : > { %5279 = vmatpush.bf16.msra.mxu3 %v10372_v36  ;;  %5292 = vmatpush.bf16.msra.mxu2 %v10376_v37 }
 0x960   : > { %5254 = vmatpush.bf16.msra.mxu0 %v10316_v43  ;;  %5267 = vmatpush.bf16.msrb.mxu1 %v10320_v44  ;;  %v4643_v43 = vperm.slane %v4639_v41, 0  ;;  %v4644_v44 = vperm.slane %v4639_v41, 1 }
 0x961   : > { %5280 = vmatpush.bf16.msra.mxu3 %v10324_v48  ;;  %5293 = vmatpush.bf16.msra.mxu2 %v10328_v49 }
 0x962   : > { %5207 = vmatmul.bf16.vlgmr.msrb.gmra.mxu0 %v13852_v5  ;;  %5220 = vmatmul.bf16.vlgmr.msra.gmra.mxu1 %v13852_v5 }
 0x963   : > { %5233 = vmatmul.bf16.vlgmr.msrb.gmra.mxu3 %v13852_v5  ;;  %5246 = vmatmul.bf16.vlgmr.msrb.gmra.mxu2 %v13852_v5 }
 0x964   : > { %5255 = vmatpush.bf16.msra.mxu0 %v10268_v56  ;;  %5268 = vmatpush.bf16.msrb.mxu1 %v10272_v16 }
 0x965   : > { %5281 = vmatpush.bf16.msra.mxu3 %v10276_v58  ;;  %5294 = vmatpush.bf16.msra.mxu2 %v10280_v59 }
 0x968   : > { %5256 = vmatpush.bf16.msra.mxu0 %v10220_v4  ;;  %5269 = vmatpush.bf16.msrb.mxu1 %v10224_v7  ;;  %v4651_v7 = vperm.slane %v4640_v3, 0  ;;  %v12154_v3 = vld [vmem:[#allocation11 + $0x150] sm:$0xff] }
 0x969   : > { %5282 = vmatpush.bf16.msra.mxu3 %v10228_v13  ;;  %5295 = vmatpush.bf16.msra.mxu2 %v10232_v60 }
 0x96c   : > { %5257 = vmatpush.bf16.msra.mxu0 %v10172_v17  ;;  %5270 = vmatpush.bf16.msrb.mxu1 %v10176_v19  ;;  %v4645_v17 = vperm.slane %v4639_v41, 2  ;;  %v4646_v19 = vperm.slane %v4639_v41, 3 }
 0x96d   : > { %5283 = vmatpush.bf16.msra.mxu3 %v10180_v22  ;;  %5296 = vmatpush.bf16.msra.mxu2 %v10184_v23 }
 0x970   : > { %5258 = vmatpush.bf16.msra.mxu0 %v10124_v29  ;;  %5271 = vmatpush.bf16.msrb.mxu1 %v10128_v30 }
 0x971   : > { %5284 = vmatpush.bf16.msra.mxu3 %v10132_v31  ;;  %5297 = vmatpush.bf16.msra.mxu2 %v10136_v33 }
 0x973   : > { %5259 = vmatmul.bf16.vlgmr.msra.gmra.mxu0 %v13852_v5  ;;  %5272 = vmatmul.bf16.vlgmr.msrb.gmra.mxu1 %v13852_v5 }
 0x974   : > { %5285 = vmatmul.bf16.vlgmr.msra.gmra.mxu3 %v13852_v5  ;;  %5298 = vmatmul.bf16.vlgmr.msra.gmra.mxu2 %v13852_v5 }
 0x9cf   : > { %v5156_v34 = vpop.f32.mrf.mxu0  ;;  %v5169_v36 = vpop.f32.mrf.mxu1 }
 0x9d0   : > { %v5157_v51 = vadd.f32 %v5156_v34, %v4643_v43  ;;  %v5170_v52 = vadd.f32 %v5169_v36, %v4644_v44 }
 0x9d2   : > { %v5303_v16 = vpack.c.bf16 %v5170_v52, %v5157_v51 }
 0x9d4   : > { %v5372_v63 = vunpack.c.h.b16 %v5303_v16 }
 0x9d6   : > { %v5182_v37 = vpop.f32.mrf.mxu3  ;;  %v5195_v38 = vpop.f32.mrf.mxu2  ;;  %v5373_v4 = vpack.c.b16 %v5372_v63, %v5372_v63  ;;  %v12155_v63 = vld [vmem:[#allocation11 + $0x158] sm:$0xff] }
 0x9d7   : > { %v5158_v39 = vpop.f32.mrf.mxu0  ;;  %v5171_v40 = vpop.f32.mrf.mxu1  ;;  %v5183_v28 = vadd.f32 %v5182_v37, %v4645_v17  ;;  %v5196_v29 = vadd.f32 %v5195_v38, %v4646_v19  ;;  %v12165_v17 = vld [vmem:[#allocation11 + $0x1a8] sm:$0xff] }
 0x9d9   : > { %v13875_v34 = vpack.c.bf16 %v5196_v29, %v5183_v28  ;;  %v12150_v29 = vld [vmem:[#allocation11 + $0x130] sm:$0xff] }
 0x9de   : > { %v5184_v46 = vpop.f32.mrf.mxu3  ;;  %v5197_v18 = vpop.f32.mrf.mxu2 }
 0x9df   : > { %v5208_v48 = vpop.f32.mrf.mxu0  ;;  %v5221_v49 = vpop.f32.mrf.mxu1 }
 0x9e0   : > { %v5209_v2 = vadd.f32 %v5208_v48, %v4647_v42  ;;  %v5222_v50 = vadd.f32 %v5221_v49, %v4648_v12 }
 0x9e2   : > { %v5305_v5 = vpack.c.bf16 %v5222_v50, %v5209_v2 }
 0x9e4   : > { %v5376_v56 = vunpack.c.h.b16 %v5305_v5  ;;  %5316 = vmatpush.bf16.xpose.msrb.mxu0 %v5305_v5 }
 0x9e6   : > { %v5377_v54 = vpack.c.b16 %v5376_v56, %v5376_v56  ;;  %v5234_v57 = vpop.f32.mrf.mxu3  ;;  %v5247_v58 = vpop.f32.mrf.mxu2 }
 0x9e7   : > { %v5235_v59 = vadd.f32 %v5234_v57, %v4649_v53  ;;  %v5248_v45 = vadd.f32 %v5247_v58, %v4650_v55  ;;  %v5210_v61 = vpop.f32.mrf.mxu0  ;;  %v5223_v35 = vpop.f32.mrf.mxu1 }
 0x9e8   : > { %5386 = vmatpush.bf16.xpose.msrb.mxu3 %v5377_v54  ;;  %v12157_v61 = vld [vmem:[#allocation11 + $0x168] sm:$0xff]  ;;  %v12156_v35 = vld [vmem:[#allocation11 + $0x160] sm:$0xff] }
 0x9e9   : > { %v13866_v1 = vpack.c.bf16 %v5248_v45, %v5235_v59  ;;  %v12159_v59 = vld [vmem:[#allocation11 + $0x178] sm:$0xff]  ;;  %v12158_v45 = vld [vmem:[#allocation11 + $0x170] sm:$0xff] }
 0x9eb   : > { %5317 = vmatmul.bf16.vlgmr.msrb.gmra.mxu0 %v5303_v16 }
 0x9ee   : > { %v5236_v9 = vpop.f32.mrf.mxu3  ;;  %v5249_v13 = vpop.f32.mrf.mxu2 }
 0x9ef   : > { %5387 = vmatmul.bf16.vlgmr.msrb.gmra.mxu3 %v5373_v4  ;;  %v12153_v4 = vld [vmem:[#allocation11 + $0x148] sm:$0xff]  ;;  %v5693_v13 = vunpack.c.h.b16 %v13866_v1 }
 0x9f0   : > { %5572 = vmatpush.bf16.xpose.msra.mxu3 %v13866_v1  ;;  %v5260_v60 = vpop.f32.mrf.mxu0  ;;  %v5273_v32 = vpop.f32.mrf.mxu1 }
 0x9f1   : > { %v5261_v62 = vadd.f32 %v5260_v60, %v4651_v7  ;;  %v5274_v10 = vadd.f32 %v5273_v32, %v4652_v8  ;;  %v12152_v8 = vld [vmem:[#allocation11 + $0x140] sm:$0xff] }
 0x9f3   : > { %v5307_v11 = vpack.c.bf16 %v5274_v10, %v5261_v62  ;;  %v5694_v62 = vpack.c.b16 %v5693_v13, %v5693_v13  ;;  %v12167_v10 = vld [vmem:[#allocation11 + $0x1b8] sm:$0xff] }
 0x9f4   : > { %v12171_v13 = vld [vmem:[#allocation11 + $0x1d8] sm:$0xff] }
 0x9f5   : > { %v5405_v20 = vunpack.c.h.b16 %v5307_v11  ;;  %v5338_v21 = vsel %vm1699_vm1, %v5307_v11, 0  ;;  %v12151_v11 = vld [vmem:[#allocation11 + $0x138] sm:$0xff] }
 0x9f6   : > { %5347 = vmatpush.bf16.msra.mxu1 %v5338_v21  ;;  %5552 = vmatpush.bf16.msrb.mxu2 %v12151_v11 }
 0x9f7   : > { %v5406_v22 = vpack.c.b16 %v5405_v20, %v5405_v20  ;;  %v5286_v23 = vpop.f32.mrf.mxu3  ;;  %v5299_v6 = vpop.f32.mrf.mxu2 }
 0x9f8   : > { %v5287_v24 = vadd.f32 %v5286_v23, %v4653_v14  ;;  %v5300_v25 = vadd.f32 %v5299_v6, %v4654_v15  ;;  %v5262_v26 = vpop.f32.mrf.mxu0  ;;  %v5275_v27 = vpop.f32.mrf.mxu1  ;;  %5674 = vmatpush.bf16.msrb.mxu3 %v12167_v10  ;;  %v12166_v14 = vld [vmem:[#allocation11 + $0x1b0] sm:$0xff] }
 0x9f9   : > { %v5411_v30 = vsel %vm1699_vm1, %v5406_v22, 0  ;;  %v5689_v27 = vunpack.c.h.b16 %v13875_v34 }
 0x9fa   : > { %v13871_v31 = vpack.c.bf16 %v5300_v25, %v5287_v24  ;;  %5420 = vmatpush.bf16.msra.mxu0 %v5411_v30  ;;  %5491 = vmatpush.bf16.msrb.mxu1 %v12159_v59  ;;  %v12164_v30 = vld [vmem:[#allocation11 + $0x1a0] sm:$0xff] }
 0x9fb   : > { %v5690_v28 = vpack.c.b16 %v5689_v27, %v5689_v27  ;;  %5553 = vmatpush.bf16.msrb.mxu2 %v12150_v29  ;;  %v12288_v27 = vld [vmem:[#allocation17 + $0x784] sm:$0xf] }
 0x9fc   : > { %v5594_v33 = vsel %vm1699_vm1, %v13871_v31, 0  ;;  %5675 = vmatpush.bf16.msrb.mxu3 %v12166_v14  ;;  %v5722_v22 = vunpack.c.h.b16 %v13871_v31  ;;  %v12149_v31 = vld [vmem:[#allocation11 + $0x128] sm:$0xff] }
 0x9fd   : > { %v11057_v29 = vld [vmem:[#allocation17 + $0x7c0] sm:$0xf0] }
 0x9fe   : > { %5603 = vmatpush.bf16.msrb.mxu0 %v5594_v33  ;;  %5492 = vmatpush.bf16.msrb.mxu1 %v12158_v45  ;;  %v5723_v6 = vpack.c.b16 %v5722_v22, %v5722_v22  ;;  %v12163_v33 = vld [vmem:[#allocation11 + $0x198] sm:$0xff]  ;;  %v12666_v22 = vld [vmem:[#allocation13 + $0x1] ss:$0 sm:$0xff] }
 0x9ff   : > { %v5288_v36 = vpop.f32.mrf.mxu3  ;;  %v5301_v39 = vpop.f32.mrf.mxu2  ;;  %5573 = vmatmul.bf16.vlgmr.msra.gmra.mxu3 %v13875_v34  ;;  %5554 = vmatpush.bf16.msrb.mxu2 %v12149_v31  ;;  %v12160_v34 = vld [vmem:[#allocation11 + $0x180] sm:$0xff]  ;;  %v12297_v31 = vld [vmem:[#allocation17 + $0x7c4] sm:$0xf0] }
 0xa00   : > { %5676 = vmatpush.bf16.msrb.mxu3 %v12165_v17  ;;  %v5728_v26 = vsel %vm1699_vm1, %v5723_v6, 0  ;;  %v12148_v36 = vld [vmem:[#allocation11 + $0x120] sm:$0xff]  ;;  %v12162_v39 = vld [vmem:[#allocation11 + $0x190] sm:$0xff] }
 0xa02   : > { %5493 = vmatpush.bf16.msrb.mxu1 %v12157_v61 }
 0xa03   : > { %5555 = vmatpush.bf16.msrb.mxu2 %v12148_v36 }
 0xa04   : > { %5677 = vmatpush.bf16.msrb.mxu3 %v12164_v30  ;;  %v11063_v30 = vld [vmem:[#allocation17 + $0x788] sm:$0xf] }
 0xa05   : > { %v11064_v36 = vor.u32 %v12297_v31, %v11063_v30  ;;  %v10745_v30 = vld [vmem:[#allocation17 + $0x548] sm:$0xf0] }
 0xa06   : > { %5494 = vmatpush.bf16.msrb.mxu1 %v12156_v35 }
 0xa08   : > { %5678 = vmatpush.bf16.msrb.mxu3 %v12163_v33  ;;  %v11060_v33 = vor.u32 %v12288_v27, %v11057_v29  ;;  %v10743_v27 = vld [vmem:[#allocation17 + $0x508] sm:$0xf]  ;;  %v12209_v29 = vld [vmem:[#allocation17 + $0x50c] sm:$0xf] }
 0xa0a   : > { %5495 = vmatpush.bf16.msrb.mxu1 %v12155_v63 }
 0xa0c   : > { %5679 = vmatpush.bf16.msrb.mxu3 %v12162_v39  ;;  %v12289_v39 = vld [vmem:[#allocation17 + $0x78c] sm:$0xf] }
 0xa0e   : > { %5496 = vmatpush.bf16.msrb.mxu1 %v12154_v3 }
 0xa12   : > { %5497 = vmatpush.bf16.msrb.mxu1 %v12153_v4  ;;  %v12175_v4 = vld [vmem:[#allocation11 + $0x1f8] sm:$0xff] }
 0xa16   : > { %5498 = vmatpush.bf16.msrb.mxu1 %v12152_v8  ;;  %v12173_v8 = vld [vmem:[#allocation11 + $0x1e8] sm:$0xff] }
 0xa68   : > { %v5318_v40 = vpop.f32.mrf.mxu0 }
 0xa69   : > { %v5322_v46 = vsel %vm1683_vm2, %v5318_v40, -inf }
 0xa70   : > { %v5320_v41 = vpop.f32.mrf.mxu0 }
 0xa71   : > { %v12161_v41 = vld [vmem:[#allocation11 + $0x188] sm:$0xff] }
 0xa72   : > { %v5388_v42 = vpop.f32.mrf.mxu3  ;;  %5680 = vmatpush.bf16.msrb.mxu3 %v12161_v41  ;;  %v10991_v41 = vld [vmem:[#allocation17 + $0x700] sm:$0xf] }
 0xa73   : > { %v5392_v37 = vsel %vm1683_vm2, %v5388_v42, -inf }
 0xa74   : > { %5393 = vmax.xlane.f32.xlu0 %v5392_v37  ;;  %v12145_v37 = vld [vmem:[#allocation11 + $0x108] sm:$0xff] }
 0xa76   : > { %5681 = vmatpush.bf16.msrb.mxu3 %v12160_v34  ;;  %v12272_v34 = vld [vmem:[#allocation17 + $0x704] sm:$0xf] }
 0xa7a   : > { %v5390_v38 = vpop.f32.mrf.mxu3  ;;  %6694 = vmatpush.bf16.msra.mxu3 %v11064_v36 }
 0xa7b   : > { %v12144_v38 = vld [vmem:[#allocation11 + $0x100] sm:$0xff] }
 0xa82   : > { %v5574_v12 = vpop.f32.mrf.mxu3 }
 0xa83   : > { %v5578_v43 = vsel %vm1683_vm2, %v5574_v12, -inf }
 0xa84   : > { %5579 = vmax.xlane.f32.xlu1 %v5578_v43 }
 0xa8a   : > { %v5576_v44 = vpop.f32.mrf.mxu3 }
 0xa8c   : > { %5323 = vmax.xlane.f32.xlu1 %v5322_v46 }
 0xae7   : > { %v5394_v18 = vpop.xlane.xlu0 %5393 }
 0xae8   : > { %v5395_v48 = vsub.f32 %v5388_v42, %v5394_v18  ;;  %v12146_v42 = vld [vmem:[#allocation11 + $0x110] sm:$0xff] }
 0xaea   : > { %v5396_v49 = vmul.f32 1.442695, %v5395_v48 }
 0xaec   : > { %12694 = vpow2.f32 %v5396_v49 }
 0xaf2   : > { %v12695_v2 = vpop.eup %12694 }
 0xaf3   : > { %v5398_v50 = vsel %vm1683_vm2, %v12695_v2, 0.0 }
 0xaf4   : > { %5399 = vadd.xlane.f32.xlu2 %v5398_v50 }
 0xaf7   : > { %v5580_v51 = vpop.xlane.xlu1 %5579 }
 0xaf8   : > { %v5581_v52 = vsub.f32 %v5574_v12, %v5580_v51 }
 0xafa   : > { %v5582_v5 = vmul.f32 1.442695, %v5581_v52 }
 0xafc   : > { %12696 = vpow2.f32 %v5582_v5 }
 0xaff   : > { %v5324_v53 = vpop.xlane.xlu1 %5323 }
 0xb00   : > { %v5325_v55 = vsub.f32 %v5318_v40, %v5324_v53  ;;  %v12147_v40 = vld [vmem:[#allocation11 + $0x118] sm:$0xff] }
 0xb01   : > { %5556 = vmatpush.bf16.msrb.mxu2 %v12147_v40  ;;  %v11065_v40 = vld [vmem:[#allocation17 + $0x7c8] sm:$0xf0] }
 0xb02   : > { %v12697_v56 = vpop.eup %12696  ;;  %v5326_v16 = vmul.f32 1.442695, %v5325_v55 }
 0xb03   : > { %v5584_v54 = vsel %vm1683_vm2, %v12697_v56, 0.0 }
 0xb04   : > { %12698 = vpow2.f32 %v5326_v16  ;;  %5585 = vadd.xlane.f32.xlu0 %v5584_v54 }
 0xb05   : > { %5557 = vmatpush.bf16.msrb.mxu2 %v12146_v42  ;;  %v11068_v42 = vor.u32 %v12289_v39, %v11065_v40  ;;  %v10671_v39 = vld [vmem:[#allocation17 + $0x480] sm:$0xf] }
 0xb06   : > { %v12200_v40 = vld [vmem:[#allocation17 + $0x4bc] sm:$0xf0] }
 0xb09   : > { %5558 = vmatpush.bf16.msrb.mxu2 %v12145_v37  ;;  %v10993_v37 = vld [vmem:[#allocation17 + $0x740] sm:$0xf0] }
 0xb0a   : > { %v12699_v57 = vpop.eup %12698 }
 0xb0b   : > { %v5328_v58 = vsel %vm1683_vm2, %v12699_v57, 0.0 }
 0xb0c   : > { %5329 = vadd.xlane.f32.xlu0 %v5328_v58 }
 0xb0d   : > { %5559 = vmatpush.bf16.msrb.mxu2 %v12144_v38 }
 0xb11   : > { %5808 = vmatpush.bf16.msra.mxu2 %v12175_v4  ;;  %v12241_v4 = vld [vmem:[#allocation17 + $0x60c] sm:$0xf] }
 0xb67   : > { %v5400_v7 = vpop.xlane.xlu2 %5399 }
 0xb68   : > { %12700 = vrcp.f32 %v5400_v7  ;;  %v12174_v7 = vld [vmem:[#allocation11 + $0x1f0] sm:$0xff] }
 0xb69   : > { %5809 = vmatpush.bf16.msra.mxu2 %v12174_v7  ;;  %v10873_v7 = vld [vmem:[#allocation17 + $0x648] sm:$0xf0] }
 0xb6d   : > { %5810 = vmatpush.bf16.msra.mxu2 %v12173_v8 }
 0xb6e   : > { %v12701_v9 = vpop.eup %12700 }
 0xb6f   : > { %v5402_v60 = vmul.f32 %v12701_v9, %v12695_v2  ;;  %v12172_v9 = vld [vmem:[#allocation11 + $0x1e0] sm:$0xff] }
 0xb71   : > { %v5403_v32 = vpack.c.bf16 %v5402_v60, %v5402_v60  ;;  %5811 = vmatpush.bf16.msra.mxu2 %v12172_v9  ;;  %v12170_v60 = vld [vmem:[#allocation11 + $0x1d0] sm:$0xff] }
 0xb73   : > { %10474 = vmatmul.msk.bf16.vlgmr.msra.gmra.mxu0 %vm1683_vm2, %v5403_v32 }
 0xb74   : > { %5703 = vmatpush.bf16.xpose.msra.mxu0 %v5694_v62  ;;  %v12169_v62 = vld [vmem:[#allocation11 + $0x1c8] sm:$0xff] }
 0xb75   : > { %5812 = vmatpush.bf16.msra.mxu2 %v12171_v13 }
 0xb77   : > { %v5586_v15 = vpop.xlane.xlu0 %5585 }
 0xb78   : > { %12702 = vrcp.f32 %v5586_v15  ;;  %v12168_v15 = vld [vmem:[#allocation11 + $0x1c0] sm:$0xff] }
 0xb79   : > { %5813 = vmatpush.bf16.msra.mxu2 %v12170_v60  ;;  %v10799_v60 = vld [vmem:[#allocation17 + $0x580] sm:$0xf] }
 0xb7d   : > { %5814 = vmatpush.bf16.msra.mxu2 %v12169_v62  ;;  %v12224_v62 = vld [vmem:[#allocation17 + $0x584] sm:$0xf] }
 0xb7e   : > { %v12703_v19 = vpop.eup %12702 }
 0xb7f   : > { %v5588_v20 = vmul.f32 %v12703_v19, %v12697_v56  ;;  %v5330_v21 = vpop.xlane.xlu0 %5329 }
 0xb80   : > { %12704 = vrcp.f32 %v5330_v21 }
 0xb81   : > { %v5589_v1 = vpack.c.bf16 %v5588_v20, %v5588_v20  ;;  %5815 = vmatpush.bf16.msra.mxu2 %v12168_v15  ;;  %v12233_v15 = vld [vmem:[#allocation17 + $0x5c4] sm:$0xf0] }
 0xb83   : > { %10539 = vmatmul.msk.bf16.vlgmr.msrb.gmra.mxu0 %vm1683_vm2, %v5589_v1 }
 0xb86   : > { %v12705_v23 = vpop.eup %12704 }
 0xb87   : > { %v5332_v24 = vmul.f32 %v12705_v23, %v12699_v57 }
 0xb89   : > { %v5333_v25 = vpack.c.bf16 %v5332_v24, %v5332_v24 }
 0xb8b   : > { %10473 = vmatmul.msk.bf16.vlgmr.msra.gmra.mxu1 %vm1683_vm2, %v5333_v25  ;;  %v11055_v25 = vld [vmem:[#allocation17 + $0x780] sm:$0xf] }
 0xb8c   : > { %5737 = vmatpush.bf16.msra.mxu1 %v5728_v26  ;;  %v12296_v26 = vld [vmem:[#allocation17 + $0x7bc] sm:$0xf0] }
 0xb93   : > { %5704 = vmatmul.bf16.vlgmr.msra.gmra.mxu0 %v5690_v28  ;;  %v11056_v28 = vor.u32 %v12296_v26, %v11055_v25  ;;  %v10737_v26 = vld [vmem:[#allocation17 + $0x540] sm:$0xf0] }
 0xb95   : > { %6668 = vmatpush.bf16.msrb.mxu0 %v11056_v28  ;;  %v12217_v28 = vld [vmem:[#allocation17 + $0x544] sm:$0xf0] }
 0xb96   : > { %v10744_v36 = vor.u32 %v12217_v28, %v10743_v27  ;;  %v10945_v28 = vld [vmem:[#allocation17 + $0x6d0] sm:$0xf0] }
 0xbf0   : > { %v5422_v12 = vpop.f32.mrf.mxu0 }
 0xbf1   : > { %v5426_v43 = vpack.c.bf16 %v5422_v12, %v5422_v12  ;;  %v10996_v12 = vor.u32 %v12272_v34, %v10993_v37  ;;  %v10679_v34 = vld [vmem:[#allocation17 + $0x488] sm:$0xf] }
 0xbf2   : > { %v12201_v37 = vld [vmem:[#allocation17 + $0x4c4] sm:$0xf0] }
 0xbf3   : > { %5499 = vmatmul.bf16.vlgmr.msrb.gmra.mxu1 %v5426_v43  ;;  %v10999_v43 = vld [vmem:[#allocation17 + $0x708] sm:$0xf] }
 0xbf4   : > { %6681 = vmatpush.bf16.msrb.mxu1 %v11060_v33 }
 0xbf8   : > { %v5424_v44 = vpop.f32.mrf.mxu0  ;;  %6682 = vmatpush.bf16.msrb.mxu1 %v10996_v12  ;;  %v10681_v12 = vld [vmem:[#allocation17 + $0x4c8] sm:$0xf0] }
 0xbf9   : > { %v12281_v44 = vld [vmem:[#allocation17 + $0x744] sm:$0xf0] }
 0xc00   : > { %v5605_v46 = vpop.f32.mrf.mxu0 }
 0xc01   : > { %v5609_v18 = vpack.c.bf16 %v5605_v46, %v5605_v46  ;;  %v12273_v46 = vld [vmem:[#allocation17 + $0x70c] sm:$0xf] }
 0xc03   : > { %5682 = vmatmul.bf16.vlgmr.msrb.gmra.mxu3 %v5609_v18  ;;  %v11000_v18 = vor.u32 %v12281_v44, %v10999_v43  ;;  %v10672_v43 = vor.u32 %v12200_v40, %v10671_v39  ;;  %v10953_v39 = vld [vmem:[#allocation17 + $0x6d8] sm:$0xf0] }
 0xc05   : > { %6695 = vmatpush.bf16.msra.mxu3 %v11000_v18 }
 0xc08   : > { %v5349_v48 = vpop.f32.mrf.mxu1  ;;  %v5607_v49 = vpop.f32.mrf.mxu0 }
 0xc09   : > { %v5353_v2 = vpack.c.bf16 %v5349_v48, %v5349_v48  ;;  %v11001_v48 = vld [vmem:[#allocation17 + $0x748] sm:$0xf0]  ;;  %v10927_v49 = vld [vmem:[#allocation17 + $0x680] sm:$0xf] }
 0xc0b   : > { %5560 = vmatmul.bf16.vlgmr.msrb.gmra.mxu2 %v5353_v2  ;;  %v12264_v2 = vld [vmem:[#allocation17 + $0x6bc] sm:$0xf0] }
 0xc0c   : > { %6707 = vmatpush.bf16.msrb.mxu2 %v11068_v42  ;;  %v10748_v42 = vor.u32 %v12209_v29, %v10745_v30  ;;  %v10951_v29 = vld [vmem:[#allocation17 + $0x698] sm:$0xf] }
 0xc0d   : > { %v12267_v30 = vld [vmem:[#allocation17 + $0x6d4] sm:$0xf0] }
 0xc10   : > { %v5351_v50 = vpop.f32.mrf.mxu1  ;;  %v5705_v51 = vpop.f32.mrf.mxu0 }
 0xc11   : > { %v5709_v52 = vsel %vm1683_vm2, %v5705_v51, -inf  ;;  %v11004_v50 = vor.u32 %v12273_v46, %v11001_v48  ;;  %v10680_v46 = vor.u32 %v12201_v37, %v10679_v34  ;;  %v10881_v37 = vld [vmem:[#allocation17 + $0x650] sm:$0xf0] }
 0xc12   : > { %5710 = vmax.xlane.f32.xlu2 %v5709_v52  ;;  %v10929_v52 = vld [vmem:[#allocation17 + $0x6c0] sm:$0xf0] }
 0xc13   : > { %6708 = vmatpush.bf16.msrb.mxu2 %v11004_v50 }
 0xc18   : > { %v5707_v5 = vpop.f32.mrf.mxu0 }
 0xc19   : > { %v10935_v5 = vld [vmem:[#allocation17 + $0x688] sm:$0xf] }
 0xc70   : > { %v5500_v53 = vpop.f32.mrf.mxu1 }
 0xc78   : > { %v5502_v55 = vpop.f32.mrf.mxu1 }
 0xc79   : > { %v12265_v55 = vld [vmem:[#allocation17 + $0x6c4] sm:$0xf0] }
 0xc85   : > { %v5711_v56 = vpop.xlane.xlu2 %5710 }
 0xc86   : > { %v5712_v16 = vsub.f32 %v5705_v51, %v5711_v56  ;;  %v5683_v54 = vpop.f32.mrf.mxu3  ;;  %v12256_v51 = vld [vmem:[#allocation17 + $0x684] sm:$0xf]  ;;  %v12257_v56 = vld [vmem:[#allocation17 + $0x68c] sm:$0xf] }
 0xc88   : > { %v5713_v57 = vmul.f32 1.442695, %v5712_v16  ;;  %v10937_v16 = vld [vmem:[#allocation17 + $0x6c8] sm:$0xf0] }
 0xc8a   : > { %12706 = vpow2.f32 %v5713_v57  ;;  %v10936_v57 = vor.u32 %v12265_v55, %v10935_v5  ;;  %v12176_v5 = vld [vmem:[#allocation17 + $0x404] sm:$0xf] }
 0xc8b   : > { %v10609_v55 = vld [vmem:[#allocation17 + $0x440] sm:$0xf0] }
 0xc8c   : > { %6696 = vmatpush.bf16.msra.mxu3 %v10936_v57 }
 0xc8e   : > { %v5561_v58 = vpop.f32.mrf.mxu2  ;;  %v5685_v59 = vpop.f32.mrf.mxu3 }
 0xc8f   : > { %v5562_v45 = vadd.f32 %v5561_v58, %v5500_v53  ;;  %v10928_v53 = vor.u32 %v12264_v2, %v10927_v49  ;;  %v10863_v58 = vld [vmem:[#allocation17 + $0x600] sm:$0xf] }
 0xc90   : > { %v12707_v61 = vpop.eup %12706  ;;  %v12248_v59 = vld [vmem:[#allocation17 + $0x63c] sm:$0xf0] }
 0xc91   : > { %v5715_v35 = vsel %vm1683_vm2, %v12707_v61, 0.0  ;;  %v5687_v63 = vadd.f32 %v5683_v54, %v5562_v45  ;;  %v10932_v54 = vor.u32 %v12256_v51, %v10929_v52  ;;  %v12240_v45 = vld [vmem:[#allocation17 + $0x604] sm:$0xf]  ;;  %v10864_v8 = vor.u32 %v12248_v59, %v10863_v58  ;;  %v10607_v51 = vld [vmem:[#allocation17 + $0x400] sm:$0xf] }
 0xc92   : > { %5716 = vadd.xlane.f32.xlu1 %v5715_v35  ;;  %v10865_v35 = vld [vmem:[#allocation17 + $0x640] sm:$0xf0]  ;;  %v12184_v52 = vld [vmem:[#allocation17 + $0x43c] sm:$0xf0]  ;;  %v12177_v58 = vld [vmem:[#allocation17 + $0x40c] sm:$0xf] }
 0xc93   : > { %6683 = vmatpush.bf16.msrb.mxu1 %v10932_v54  ;;  %v10868_v9 = vor.u32 %v12240_v45, %v10865_v35  ;;  %v10612_v54 = vor.u32 %v12176_v5, %v10609_v55  ;;  %v10617_v59 = vld [vmem:[#allocation17 + $0x448] sm:$0xf0]  ;;  %v12290_v35 = vld [vmem:[#allocation17 + $0x794] sm:$0xf]  ;;  %v12235_v55 = vld [vmem:[#allocation17 + $0x5d4] sm:$0xf0] }
 0xc94   : > { %v10620_v45 = vor.u32 %v12177_v58, %v10617_v59  ;;  %v10817_v5 = vld [vmem:[#allocation17 + $0x5d0] sm:$0xf0]  ;;  %v10751_v59 = vld [vmem:[#allocation17 + $0x510] sm:$0xf] }
 0xc96   : > { %v5563_v3 = vpop.f32.mrf.mxu2 }
 0xc97   : > { %v12249_v3 = vld [vmem:[#allocation17 + $0x644] sm:$0xf0]  ;;  %6684 = vmatpush.bf16.msrb.mxu1 %v10868_v9  ;;  %v12291_v9 = vld [vmem:[#allocation17 + $0x79c] sm:$0xf] }
 0xd05   : > { %v5717_v32 = vpop.xlane.xlu1 %5716 }
 0xd06   : > { %12708 = vrcp.f32 %v5717_v32  ;;  %v12232_v32 = vld [vmem:[#allocation17 + $0x5bc] sm:$0xf0] }
 0xd0c   : > { %v12709_v10 = vpop.eup %12708 }
 0xd0d   : > { %v5719_v11 = vmul.f32 %v12709_v10, %v12707_v61  ;;  %v10940_v61 = vor.u32 %v12257_v56, %v10937_v16  ;;  %v10876_v10 = vor.u32 %v12241_v4, %v10873_v7  ;;  %v10615_v56 = vld [vmem:[#allocation17 + $0x408] sm:$0xf]  ;;  %v11079_v7 = vld [vmem:[#allocation17 + $0x798] sm:$0xf] }
 0xd0e   : > { %v12185_v16 = vld [vmem:[#allocation17 + $0x444] sm:$0xf0] }
 0xd0f   : > { %v5720_v14 = vpack.c.bf16 %v5719_v11, %v5719_v11  ;;  %6709 = vmatpush.bf16.msrb.mxu2 %v10940_v61  ;;  %v10801_v11 = vld [vmem:[#allocation17 + $0x5c0] sm:$0xf0]  ;;  %v10616_v57 = vor.u32 %v12185_v16, %v10615_v56  ;;  %v12298_v61 = vld [vmem:[#allocation17 + $0x7cc] sm:$0xf0] }
 0xd11   : > { %10572 = vmatmul.msk.bf16.vlgmr.msra.gmra.mxu1 %vm1683_vm2, %v5720_v14  ;;  %v10807_v14 = vld [vmem:[#allocation17 + $0x588] sm:$0xf] }
 0xd13   : > { %6710 = vmatpush.bf16.msrb.mxu2 %v10876_v10 }
 0xd8e   : > { %v5739_v17 = vpop.f32.mrf.mxu1 }
 0xd8f   : > { %v5743_v19 = vpack.c.bf16 %v5739_v17, %v5739_v17  ;;  %v12225_v17 = vld [vmem:[#allocation17 + $0x58c] sm:$0xf] }
 0xd91   : > { %5816 = vmatmul.bf16.vlgmr.msra.gmra.mxu2 %v5743_v19  ;;  %v10809_v19 = vld [vmem:[#allocation17 + $0x5c8] sm:$0xf0] }
 0xd92   : > { %v10812_v25 = vor.u32 %v12225_v17, %v10809_v19  ;;  %v11015_v17 = vld [vmem:[#allocation17 + $0x718] sm:$0xf] }
 0xd94   : > { %6711 = vmatpush.bf16.msrb.mxu2 %v10812_v25  ;;  %v12266_v25 = vld [vmem:[#allocation17 + $0x6cc] sm:$0xf0] }
 0xd96   : > { %v5741_v20 = vpop.f32.mrf.mxu1 }
 0xd97   : > { %v10800_v20 = vor.u32 %v12232_v32, %v10799_v60  ;;  %v11081_v60 = vld [vmem:[#allocation17 + $0x7d8] sm:$0xf0]  ;;  %v11007_v32 = vld [vmem:[#allocation17 + $0x710] sm:$0xf] }
 0xd98   : > { %6712 = vmatpush.bf16.msrb.mxu2 %v10748_v42  ;;  %v11084_v10 = vor.u32 %v12291_v9, %v11081_v60  ;;  %v12250_v42 = vld [vmem:[#allocation17 + $0x64c] sm:$0xf0]  ;;  %v10761_v9 = vld [vmem:[#allocation17 + $0x558] sm:$0xf0] }
 0xd99   : > { %v10687_v60 = vld [vmem:[#allocation17 + $0x490] sm:$0xf] }
 0xe14   : > { %v5817_v21 = vpop.f32.mrf.mxu2 }
 0xe15   : > { %v5821_v1 = vadd.f32 %v5817_v21, %v5687_v63  ;;  %v10871_v63 = vld [vmem:[#allocation17 + $0x608] sm:$0xf]  ;;  %v10804_v21 = vor.u32 %v12224_v62, %v10801_v11  ;;  %v12282_v62 = vld [vmem:[#allocation17 + $0x74c] sm:$0xf0] }
 0xe16   : > { %v10872_v13 = vor.u32 %v12249_v3, %v10871_v63  ;;  %v11073_v63 = vld [vmem:[#allocation17 + $0x7d0] sm:$0xf0]  ;;  %v11008_v11 = vor.u32 %v12282_v62, %v11007_v32  ;;  %v12202_v32 = vld [vmem:[#allocation17 + $0x4cc] sm:$0xf0] }
 0xe17   : > { %v5822_v23 = vadd.f32 %v5821_v1, %v13848_v0  ;;  %v12280_v0 = vld [vmem:[#allocation17 + $0x73c] sm:$0xf0]  ;;  %v10808_v1 = vor.u32 %v12233_v15, %v10807_v14  ;;  %6685 = vmatpush.bf16.msrb.mxu1 %v10804_v21  ;;  %v11076_v4 = vor.u32 %v12290_v35, %v11073_v63  ;;  %v12274_v14 = vld [vmem:[#allocation17 + $0x714] sm:$0xf]  ;;  %v12275_v21 = vld [vmem:[#allocation17 + $0x71c] sm:$0xf] }
 0xe18   : > { %v10992_v38 = vor.u32 %v12280_v0, %v10991_v41  ;;  %6697 = vmatpush.bf16.msra.mxu3 %v10872_v13  ;;  %v12192_v41 = vld [vmem:[#allocation17 + $0x484] sm:$0xf]  ;;  %v11009_v15 = vld [vmem:[#allocation17 + $0x750] sm:$0xf0]  ;;  %v10759_v63 = vld [vmem:[#allocation17 + $0x518] sm:$0xf] }
 0xe19   : > { %v13895_v6 = vadd.f32 %v12666_v22, %v5822_v23  ;;  %v10735_v22 = vld [vmem:[#allocation17 + $0x500] sm:$0xf]  ;;  %v10673_v0 = vld [vmem:[#allocation17 + $0x4c0] sm:$0xf0]  ;;  %v11012_v19 = vor.u32 %v12274_v14, %v11009_v15  ;;  %v10753_v35 = vld [vmem:[#allocation17 + $0x550] sm:$0xf0] }
 0xe1a   : > { %6669 = vmatpush.bf16.msrb.mxu0 %v10992_v38  ;;  %v12216_v23 = vld [vmem:[#allocation17 + $0x53c] sm:$0xf0]  ;;  %v12193_v38 = vld [vmem:[#allocation17 + $0x48c] sm:$0xf]  ;;  %v10676_v44 = vor.u32 %v12192_v41, %v10673_v0  ;;  %v10879_v41 = vld [vmem:[#allocation17 + $0x610] sm:$0xf] }
 0xe1b   : > { %5833 = vadd.xlane.f32.xlu2 %v13895_v6  ;;  %v10736_v31 = vor.u32 %v12216_v23, %v10735_v22  ;;  %v10684_v48 = vor.u32 %v12193_v38, %v10681_v12  ;;  %v12242_v0 = vld [vmem:[#allocation17 + $0x614] sm:$0xf]  ;;  %v10880_v34 = vor.u32 %v12250_v42, %v10879_v41  ;;  %v10887_v38 = vld [vmem:[#allocation17 + $0x618] sm:$0xf] }
 0xe1c   : > { %v5819_v24 = vpop.f32.mrf.mxu2  ;;  %6698 = vmatpush.bf16.msra.mxu3 %v10808_v1  ;;  %v11017_v1 = vld [vmem:[#allocation17 + $0x758] sm:$0xf0]  ;;  %v12251_v12 = vld [vmem:[#allocation17 + $0x654] sm:$0xf0]  ;;  %v12194_v62 = vld [vmem:[#allocation17 + $0x494] sm:$0xf] }
 0xe1d   : > { %v12208_v24 = vld [vmem:[#allocation17 + $0x504] sm:$0xf]  ;;  %6713 = vmatpush.bf16.msrb.mxu2 %v10684_v48  ;;  %v11020_v23 = vor.u32 %v12275_v21, %v11017_v1  ;;  %v10695_v14 = vld [vmem:[#allocation17 + $0x498] sm:$0xf]  ;;  %v10697_v21 = vld [vmem:[#allocation17 + $0x4d8] sm:$0xf0] }
 0xe1e   : > { %6670 = vmatpush.bf16.msrb.mxu0 %v10928_v53  ;;  %v10740_v33 = vor.u32 %v12208_v24, %v10737_v26  ;;  %v10608_v53 = vor.u32 %v12184_v52, %v10607_v51  ;;  %v10943_v24 = vld [vmem:[#allocation17 + $0x690] sm:$0xf]  ;;  %v12258_v26 = vld [vmem:[#allocation17 + $0x694] sm:$0xf]  ;;  %v12203_v15 = vld [vmem:[#allocation17 + $0x4d4] sm:$0xf0] }
 0xe1f   : > { %v10944_v27 = vor.u32 %v12266_v25, %v10943_v24  ;;  %v12226_v51 = vld [vmem:[#allocation17 + $0x594] sm:$0xf] }
 0xe20   : > { %6686 = vmatpush.bf16.msrb.mxu1 %v10740_v33  ;;  %6699 = vmatpush.bf16.msra.mxu3 %v10744_v36  ;;  %v10952_v33 = vor.u32 %v12267_v30, %v10951_v29  ;;  %v12259_v36 = vld [vmem:[#allocation17 + $0x69c] sm:$0xf]  ;;  %v10820_v56 = vor.u32 %v12226_v51, %v10817_v5  ;;  %v12178_v24 = vld [vmem:[#allocation17 + $0x414] sm:$0xf]  ;;  %v12292_v51 = vld [vmem:[#allocation17 + $0x7a4] sm:$0xf] }
 0xe21   : > { %6714 = vmatpush.bf16.msrb.mxu2 %v10620_v45  ;;  %v10956_v40 = vor.u32 %v12259_v36, %v10953_v39  ;;  %v12210_v45 = vld [vmem:[#allocation17 + $0x514] sm:$0xf]  ;;  %v11095_v5 = vld [vmem:[#allocation17 + $0x7a8] sm:$0xf] }
 0xe22   : > { %6671 = vmatpush.bf16.msrb.mxu0 %v10864_v8  ;;  %v12299_v8 = vld [vmem:[#allocation17 + $0x7d4] sm:$0xf0] }
 0xe23   : > { %v11080_v13 = vor.u32 %v12299_v8, %v11079_v7  ;;  %v12211_v8 = vld [vmem:[#allocation17 + $0x51c] sm:$0xf] }
 0xe24   : > { %6687 = vmatpush.bf16.msrb.mxu1 %v10676_v44  ;;  %6700 = vmatpush.bf16.msra.mxu3 %v10680_v46  ;;  %v10888_v44 = vor.u32 %v12251_v12, %v10887_v38  ;;  %v12243_v46 = vld [vmem:[#allocation17 + $0x61c] sm:$0xf] }
 0xe25   : > { %6759 = vmatpush.bf16.msra.mxu2 %v11084_v10  ;;  %v10688_v10 = vor.u32 %v12202_v32, %v10687_v60  ;;  %v12268_v60 = vld [vmem:[#allocation17 + $0x6dc] sm:$0xf0] }
 0xe26   : > { %6672 = vmatpush.bf16.msrb.mxu0 %v10800_v20  ;;  %v12283_v20 = vld [vmem:[#allocation17 + $0x754] sm:$0xf0] }
 0xe27   : > { %v11016_v22 = vor.u32 %v12283_v20, %v11015_v17  ;;  %v12195_v20 = vld [vmem:[#allocation17 + $0x49c] sm:$0xf] }
 0xe28   : > { %6688 = vmatpush.bf16.msrb.mxu1 %v10612_v54  ;;  %6701 = vmatpush.bf16.msra.mxu3 %v10616_v57  ;;  %v12227_v54 = vld [vmem:[#allocation17 + $0x59c] sm:$0xf]  ;;  %v10700_v1 = vor.u32 %v12195_v20, %v10697_v21 }
 0xe29   : > { %6760 = vmatpush.bf16.msra.mxu2 %v11020_v23  ;;  %v10825_v57 = vld [vmem:[#allocation17 + $0x5d8] sm:$0xf0]  ;;  %v12186_v23 = vld [vmem:[#allocation17 + $0x44c] sm:$0xf0] }
 0xe2a   : > { %6673 = vmatpush.bf16.msrb.mxu0 %v10736_v31  ;;  %v10948_v31 = vor.u32 %v12258_v26, %v10945_v28  ;;  %v10828_v58 = vor.u32 %v12227_v54, %v10825_v57  ;;  %v10625_v26 = vld [vmem:[#allocation17 + $0x450] sm:$0xf0]  ;;  %v12187_v28 = vld [vmem:[#allocation17 + $0x454] sm:$0xf0] }
 0xe2b   : > { %v10628_v29 = vor.u32 %v12178_v24, %v10625_v26  ;;  %v10897_v26 = vld [vmem:[#allocation17 + $0x660] sm:$0xf0] }
 0xe2c   : > { %6733 = vmatpush.bf16.msra.mxu1 %v11076_v4  ;;  %6746 = vmatpush.bf16.msrb.mxu3 %v11080_v13  ;;  %v10756_v4 = vor.u32 %v12210_v45, %v10753_v35  ;;  %v10764_v13 = vor.u32 %v12211_v8, %v10761_v9  ;;  %v11025_v35 = vld [vmem:[#allocation17 + $0x760] sm:$0xf0] }
 0xe2d   : > { %6761 = vmatpush.bf16.msra.mxu2 %v10956_v40 }
 0xe2e   : > { %6674 = vmatpush.bf16.msrb.mxu0 %v10672_v43  ;;  %v10884_v43 = vor.u32 %v12242_v0, %v10881_v37 }
 0xe30   : > { %6734 = vmatpush.bf16.msra.mxu1 %v11012_v19  ;;  %6747 = vmatpush.bf16.msrb.mxu3 %v11016_v22  ;;  %v10696_v19 = vor.u32 %v12203_v15, %v10695_v14  ;;  %v10623_v22 = vld [vmem:[#allocation17 + $0x410] sm:$0xf]  ;;  %v10967_v14 = vld [vmem:[#allocation17 + $0x6a8] sm:$0xf] }
 0xe31   : > { %v10624_v25 = vor.u32 %v12186_v23, %v10623_v22  ;;  %v12269_v15 = vld [vmem:[#allocation17 + $0x6e4] sm:$0xf0]  ;;  %v12252_v22 = vld [vmem:[#allocation17 + $0x65c] sm:$0xf0] }
 0xe32   : > { %6675 = vmatpush.bf16.msrb.mxu0 %v10608_v53  ;;  %v10823_v53 = vld [vmem:[#allocation17 + $0x598] sm:$0xf]  ;;  %v10968_v23 = vor.u32 %v12269_v15, %v10967_v14  ;;  %v12189_v14 = vld [vmem:[#allocation17 + $0x464] sm:$0xf0]  ;;  %v12181_v15 = vld [vmem:[#allocation17 + $0x42c] sm:$0xf] }
 0xe33   : > { %v10824_v16 = vor.u32 %v12235_v55, %v10823_v53  ;;  %v12301_v55 = vld [vmem:[#allocation17 + $0x7e4] sm:$0xf0] }
 0xe34   : > { %6735 = vmatpush.bf16.msra.mxu1 %v10948_v31  ;;  %6748 = vmatpush.bf16.msrb.mxu3 %v10952_v33  ;;  %v12179_v31 = vld [vmem:[#allocation17 + $0x41c] sm:$0xf] }
 0xe35   : > { %v10633_v33 = vld [vmem:[#allocation17 + $0x458] sm:$0xf0] }
 0xe36   : > { %v10636_v39 = vor.u32 %v12179_v31, %v10633_v33 }
 0xe38   : > { %6736 = vmatpush.bf16.msra.mxu1 %v10884_v43  ;;  %6749 = vmatpush.bf16.msrb.mxu3 %v10888_v44  ;;  %v12667_v43 = vld [vmem:[#allocation14 + $0x1] ss:$0 sm:$0xff] }
 0xe3c   : > { %6737 = vmatpush.bf16.msra.mxu1 %v10820_v56  ;;  %6750 = vmatpush.bf16.msrb.mxu3 %v10824_v16  ;;  %v12293_v56 = vld [vmem:[#allocation17 + $0x7ac] sm:$0xf] }
 0xe3d   : > { %v11097_v16 = vld [vmem:[#allocation17 + $0x7e8] sm:$0xf0] }
 0xe3e   : > { %v11100_v45 = vor.u32 %v12293_v56, %v11097_v16  ;;  %v10777_v56 = vld [vmem:[#allocation17 + $0x568] sm:$0xf0] }
 0xe40   : > { %6738 = vmatpush.bf16.msra.mxu1 %v10756_v4  ;;  %v12277_v4 = vld [vmem:[#allocation17 + $0x72c] sm:$0xf] }
 0xe8e   : > { %v5834_v18 = vpop.xlane.xlu2 %5833 }
 0xe8f   : > { %v5835_v49 = vmul.f32 %v5834_v18, %v13784_v47  ;;  %v10889_v18 = vld [vmem:[#allocation17 + $0x658] sm:$0xf0] }
 0xe90   : > { %v10892_v48 = vor.u32 %v12243_v46, %v10889_v18  ;;  %v12668_v46 = vld [vmem:[#allocation16 + $0x1] ss:$0 sm:$0xff] }
 0xe91   : > { %v13900_v2 = vsub.f32 %v13895_v6, %v5835_v49  ;;  %v11071_v6 = vld [vmem:[#allocation17 + $0x790] sm:$0xf] }
 0xe92   : > { %v11072_v3 = vor.u32 %v12298_v61, %v11071_v6  ;;  %v10815_v49 = vld [vmem:[#allocation17 + $0x590] sm:$0xf]  ;;  %6762 = vmatpush.bf16.msra.mxu2 %v10892_v48 }
 0xe93   : > { %v5837_v50 = vmul.f32 %v13900_v2, %v13900_v2  ;;  %v12218_v6 = vld [vmem:[#allocation17 + $0x54c] sm:$0xf0] }
 0xe94   : > { %6720 = vmatpush.bf16.msra.mxu0 %v11072_v3  ;;  %v10752_v61 = vor.u32 %v12218_v6, %v10751_v59  ;;  %v12219_v3 = vld [vmem:[#allocation17 + $0x554] sm:$0xf0]  ;;  %v11023_v59 = vld [vmem:[#allocation17 + $0x720] sm:$0xf] }
 0xe95   : > { %5838 = vadd.xlane.f32.xlu0 %v5837_v50  ;;  %v12234_v50 = vld [vmem:[#allocation17 + $0x5cc] sm:$0xf0]  ;;  %v10760_v7 = vor.u32 %v12219_v3, %v10759_v63  ;;  %v12284_v6 = vld [vmem:[#allocation17 + $0x75c] sm:$0xf0]  ;;  %v11031_v63 = vld [vmem:[#allocation17 + $0x728] sm:$0xf] }
 0xe96   : > { %v10816_v52 = vor.u32 %v12234_v50, %v10815_v49  ;;  %6763 = vmatpush.bf16.msra.mxu2 %v10828_v58  ;;  %v11087_v49 = vld [vmem:[#allocation17 + $0x7a0] sm:$0xf]  ;;  %v12285_v3 = vld [vmem:[#allocation17 + $0x764] sm:$0xf0]  ;;  %v11024_v8 = vor.u32 %v12284_v6, %v11023_v59 }
 0xe97   : > { %6751 = vmatpush.bf16.msrb.mxu3 %v10760_v7  ;;  %v12300_v50 = vld [vmem:[#allocation17 + $0x7dc] sm:$0xf0]  ;;  %v11033_v7 = vld [vmem:[#allocation17 + $0x768] sm:$0xf0]  ;;  %v11032_v32 = vor.u32 %v12285_v3, %v11031_v63  ;;  %v12205_v63 = vld [vmem:[#allocation17 + $0x4e4] sm:$0xf0] }
 0xe98   : > { %6721 = vmatpush.bf16.msra.mxu0 %v11008_v11  ;;  %v10689_v11 = vld [vmem:[#allocation17 + $0x4d0] sm:$0xf0]  ;;  %v11088_v57 = vor.u32 %v12300_v50, %v11087_v49  ;;  %v12212_v50 = vld [vmem:[#allocation17 + $0x524] sm:$0xf]  ;;  %v12204_v59 = vld [vmem:[#allocation17 + $0x4dc] sm:$0xf0] }
 0xe99   : > { %v10692_v17 = vor.u32 %v12194_v62, %v10689_v11  ;;  %v11036_v62 = vor.u32 %v12277_v4, %v11033_v7  ;;  %v10961_v11 = vld [vmem:[#allocation17 + $0x6e0] sm:$0xf0]  ;;  %v12197_v3 = vld [vmem:[#allocation17 + $0x4ac] sm:$0xf]  ;;  %v10639_v7 = vld [vmem:[#allocation17 + $0x420] sm:$0xf] }
 0xe9a   : > { %6764 = vmatpush.bf16.msra.mxu2 %v10764_v13  ;;  %v10959_v13 = vld [vmem:[#allocation17 + $0x6a0] sm:$0xf]  ;;  %v10713_v4 = vld [vmem:[#allocation17 + $0x4e8] sm:$0xf0] }
 0xe9b   : > { %6739 = vmatpush.bf16.msra.mxu1 %v10692_v17  ;;  %6752 = vmatpush.bf16.msrb.mxu3 %v10696_v19  ;;  %v12261_v17 = vld [vmem:[#allocation17 + $0x6ac] sm:$0xf]  ;;  %v10960_v20 = vor.u32 %v12268_v60, %v10959_v13  ;;  %v12188_v13 = vld [vmem:[#allocation17 + $0x45c] sm:$0xf0]  ;;  %v12180_v60 = vld [vmem:[#allocation17 + $0x424] sm:$0xf] }
 0xe9c   : > { %6722 = vmatpush.bf16.msra.mxu0 %v10944_v27  ;;  %v10631_v27 = vld [vmem:[#allocation17 + $0x418] sm:$0xf]  ;;  %v10969_v19 = vld [vmem:[#allocation17 + $0x6e8] sm:$0xf0] }
 0xe9d   : > { %v10632_v30 = vor.u32 %v12187_v28, %v10631_v27  ;;  %v10972_v24 = vor.u32 %v12261_v17, %v10969_v19  ;;  %v10903_v27 = vld [vmem:[#allocation17 + $0x628] sm:$0xf]  ;;  %v10649_v17 = vld [vmem:[#allocation17 + $0x468] sm:$0xf0]  ;;  %v11103_v19 = vld [vmem:[#allocation17 + $0x7b0] sm:$0xf] }
 0xe9e   : > { %6765 = vmatpush.bf16.msra.mxu2 %v10700_v1  ;;  %v10895_v1 = vld [vmem:[#allocation17 + $0x620] sm:$0xf]  ;;  %v12253_v28 = vld [vmem:[#allocation17 + $0x664] sm:$0xf0] }
 0xe9f   : > { %6740 = vmatpush.bf16.msra.mxu1 %v10628_v29  ;;  %6753 = vmatpush.bf16.msrb.mxu3 %v10632_v30  ;;  %v12245_v29 = vld [vmem:[#allocation17 + $0x62c] sm:$0xf]  ;;  %v10896_v31 = vor.u32 %v12252_v22, %v10895_v1  ;;  %v11105_v1 = vld [vmem:[#allocation17 + $0x7f0] sm:$0xf0]  ;;  %v11111_v22 = vld [vmem:[#allocation17 + $0x7b8] sm:$0xf] }
 0xea0   : > { %6723 = vmatpush.bf16.msra.mxu0 %v10880_v34  ;;  %v10905_v30 = vld [vmem:[#allocation17 + $0x668] sm:$0xf0] }
 0xea2   : > { %6766 = vmatpush.bf16.msra.mxu2 %v10636_v39  ;;  %v12236_v39 = vld [vmem:[#allocation17 + $0x5dc] sm:$0xf0] }
 0xea4   : > { %6724 = vmatpush.bf16.msra.mxu0 %v10816_v52  ;;  %v11089_v52 = vld [vmem:[#allocation17 + $0x7e0] sm:$0xf0] }
 0xea5   : > { %v11092_v58 = vor.u32 %v12292_v51, %v11089_v52  ;;  %v10769_v51 = vld [vmem:[#allocation17 + $0x560] sm:$0xf0]  ;;  %v10775_v52 = vld [vmem:[#allocation17 + $0x528] sm:$0xf] }
 0xea8   : > { %6725 = vmatpush.bf16.msra.mxu0 %v10752_v61  ;;  %v12276_v61 = vld [vmem:[#allocation17 + $0x724] sm:$0xf] }
 0xea9   : > { %v11028_v9 = vor.u32 %v12276_v61, %v11025_v35  ;;  %v10705_v61 = vld [vmem:[#allocation17 + $0x4e0] sm:$0xf0]  ;;  %v10711_v35 = vld [vmem:[#allocation17 + $0x4a8] sm:$0xf] }
 0xeac   : > { %6726 = vmatpush.bf16.msra.mxu0 %v10688_v10  ;;  %v12260_v10 = vld [vmem:[#allocation17 + $0x6a4] sm:$0xf] }
 0xead   : > { %v10964_v21 = vor.u32 %v12260_v10, %v10961_v11  ;;  %v10716_v10 = vor.u32 %v12197_v3, %v10713_v4  ;;  %v10647_v11 = vld [vmem:[#allocation17 + $0x428] sm:$0xf]  ;;  %v10921_v3 = vld [vmem:[#allocation17 + $0x678] sm:$0xf0] }
 0xeb0   : > { %6727 = vmatpush.bf16.msra.mxu0 %v10624_v25  ;;  %v12244_v25 = vld [vmem:[#allocation17 + $0x624] sm:$0xf] }
 0xeb1   : > { %v10900_v33 = vor.u32 %v12244_v25, %v10897_v26  ;;  %v12303_v25 = vld [vmem:[#allocation17 + $0x7f4] sm:$0xf0]  ;;  %v12295_v26 = vld [vmem:[#allocation17 + $0x7bc] sm:$0xf] }
 0xf08   : > { %v5839_v36 = vpop.xlane.xlu0 %5838 }
 0xf09   : > { %v5840_v40 = vmul.f32 %v5839_v36, %v13784_v47  ;;  %v10831_v36 = vld [vmem:[#allocation17 + $0x5a0] sm:$0xf] }
 0xf0b   : > { %v5841_v41 = vadd.f32 1e-05, %v5840_v40  ;;  %v10904_v40 = vor.u32 %v12253_v28, %v10903_v27  ;;  %v11113_v27 = vld [vmem:[#allocation17 + $0x7f8] sm:$0xf0]  ;;  %v10648_v28 = vor.u32 %v12189_v14, %v10647_v11  ;;  %v12239_v11 = vld [vmem:[#allocation17 + $0x5f4] sm:$0xf0] }
 0xf0c   : > { %v12231_v14 = vld [vmem:[#allocation17 + $0x5bc] sm:$0xf] }
 0xf0d   : > { %12710 = vrsqrt.f32 %v5841_v41  ;;  %vm5848_vm11 = vweird.f32 %v5841_v41 }
 0xf13   : > { %v12711_v42 = vpop.eup %12710 }
 0xf14   : > { %v5843_v0 = vmul.f32 %v12711_v42, %v5841_v41  ;;  %vm5849_vm10 = vweird.f32 %v12711_v42  ;;  %v10908_v41 = vor.u32 %v12245_v29, %v10905_v30  ;;  %v10652_v29 = vor.u32 %v12181_v15, %v10649_v17  ;;  %v10857_v15 = vld [vmem:[#allocation17 + $0x5f8] sm:$0xf0] }
 0xf15   : > { %vm5850_vm12 = vmor %vm5848_vm11, %vm5849_vm10 }
 0xf16   : > { %v5844_v34 = vmul.f32 %v12711_v42, %v5843_v0  ;;  %v10833_v0 = vld [vmem:[#allocation17 + $0x5e0] sm:$0xf0] }
 0xf18   : > { %v5845_v37 = vmul.f32 0.5, %v5844_v34  ;;  %v10839_v34 = vld [vmem:[#allocation17 + $0x5a8] sm:$0xf] }
 0xf1a   : > { %v5846_v38 = vsub.f32 1.5, %v5845_v37  ;;  %v12237_v37 = vld [vmem:[#allocation17 + $0x5e4] sm:$0xf0] }
 0xf1c   : > { %v5847_v12 = vmul.f32 %v12711_v42, %v5846_v38  ;;  %v12229_v38 = vld [vmem:[#allocation17 + $0x5ac] sm:$0xf] }
 0xf1e   : > { %v5851_v44 = vsel %vm5850_vm12, %v12711_v42, %v5847_v12  ;;  %v12228_v42 = vld [vmem:[#allocation17 + $0x5a4] sm:$0xf]  ;;  %v10841_v12 = vld [vmem:[#allocation17 + $0x5e8] sm:$0xf0] }
 0xf1f   : > { %v5852_v18 = vmul.f32 %v5851_v44, %v13900_v2  ;;  %v11096_v2 = vor.u32 %v12301_v55, %v11095_v5  ;;  %v10836_v44 = vor.u32 %v12228_v42, %v10833_v0  ;;  %v10844_v49 = vor.u32 %v12229_v38, %v10841_v12  ;;  %v12221_v5 = vld [vmem:[#allocation17 + $0x564] sm:$0xf0]  ;;  %v12213_v55 = vld [vmem:[#allocation17 + $0x52c] sm:$0xf]  ;;  %v11041_v42 = vld [vmem:[#allocation17 + $0x770] sm:$0xf0] }
 0xf20   : > { %v10776_v6 = vor.u32 %v12221_v5, %v10775_v52  ;;  %v11047_v0 = vld [vmem:[#allocation17 + $0x738] sm:$0xf]  ;;  %v11049_v38 = vld [vmem:[#allocation17 + $0x778] sm:$0xf0] }
 0xf21   : > { %v5856_v48 = vmul.f32 %v12667_v43, %v5852_v18  ;;  %v10832_v43 = vor.u32 %v12236_v39, %v10831_v36  ;;  %v12220_v18 = vld [vmem:[#allocation17 + $0x55c] sm:$0xf0]  ;;  %v12286_v36 = vld [vmem:[#allocation17 + $0x76c] sm:$0xf0]  ;;  %v11112_v39 = vor.u32 %v12303_v25, %v11111_v22  ;;  %v12271_v52 = vld [vmem:[#allocation17 + $0x6f4] sm:$0xf0]  ;;  %v10860_v22 = vor.u32 %v12231_v14, %v10857_v15 }
 0xf22   : > { %v12263_v5 = vld [vmem:[#allocation17 + $0x6bc] sm:$0xf]  ;;  %v10791_v25 = vld [vmem:[#allocation17 + $0x538] sm:$0xf]  ;;  %v12306_v14 = vld [vmem:[#allocation20 + $0x410] sm:$0xff] }
 0xf23   : > { %v13906_v53 = vadd.f32 %v12668_v46, %v5856_v48  ;;  %v10767_v46 = vld [vmem:[#allocation17 + $0x520] sm:$0xf]  ;;  %v10840_v48 = vor.u32 %v12237_v37, %v10839_v34  ;;  %v12287_v34 = vld [vmem:[#allocation17 + $0x774] sm:$0xf0]  ;;  %v12279_v37 = vld [vmem:[#allocation17 + $0x73c] sm:$0xf] }
 0xf24   : > { %v10768_v16 = vor.u32 %v12220_v18, %v10767_v46  ;;  %v12270_v46 = vld [vmem:[#allocation17 + $0x6ec] sm:$0xf0]  ;;  %v11048_v18 = vor.u32 %v12287_v34, %v11047_v0  ;;  %v12207_v0 = vld [vmem:[#allocation17 + $0x4f4] sm:$0xf0]  ;;  %v12199_v34 = vld [vmem:[#allocation17 + $0x4bc] sm:$0xf] }
 0xf25   : > { %v13910_v54 = vpack.c.bf16 %v13906_v53, %v13906_v53  ;;  %v12314_v15 = vld [vmem:[#allocation20 + $0x450] sm:$0xff] }
 0xf27   : > { %6676 = vmatmul.bf16.vlgmr.msrb.gmra.mxu0 %v13910_v54  ;;  %6689 = vmatmul.bf16.vlgmr.msrb.gmra.mxu1 %v13910_v54 }
 0xf28   : > { %6702 = vmatmul.bf16.vlgmr.msra.gmra.mxu3 %v13910_v54  ;;  %6715 = vmatmul.bf16.vlgmr.msrb.gmra.mxu2 %v13910_v54 }
 0xf29   : > { %6772 = vmatpush.bf16.msrb.mxu0 %v11088_v57  ;;  %6785 = vmatpush.bf16.msrb.mxu1 %v11092_v58  ;;  %v10772_v57 = vor.u32 %v12212_v50, %v10769_v51  ;;  %v10703_v58 = vld [vmem:[#allocation17 + $0x4a0] sm:$0xf]  ;;  %v10977_v50 = vld [vmem:[#allocation17 + $0x6f0] sm:$0xf0]  ;;  %v10983_v51 = vld [vmem:[#allocation17 + $0x6b8] sm:$0xf] }
 0xf2a   : > { %6798 = vmatpush.bf16.msra.mxu3 %v11096_v2  ;;  %6811 = vmatpush.bf16.msrb.mxu2 %v11100_v45  ;;  %v10780_v2 = vor.u32 %v12213_v55, %v10777_v56  ;;  %v12196_v45 = vld [vmem:[#allocation17 + $0x4a4] sm:$0xf]  ;;  %v10985_v55 = vld [vmem:[#allocation17 + $0x6f8] sm:$0xf0] }
 0xf2d   : > { %6773 = vmatpush.bf16.msrb.mxu0 %v11024_v8  ;;  %6786 = vmatpush.bf16.msrb.mxu1 %v11028_v9  ;;  %v10704_v8 = vor.u32 %v12204_v59, %v10703_v58  ;;  %v10708_v9 = vor.u32 %v12196_v45, %v10705_v61  ;;  %v12254_v58 = vld [vmem:[#allocation17 + $0x66c] sm:$0xf0]  ;;  %v10984_v59 = vor.u32 %v12271_v52, %v10983_v51  ;;  %v10913_v45 = vld [vmem:[#allocation17 + $0x670] sm:$0xf0]  ;;  %v10919_v61 = vld [vmem:[#allocation17 + $0x638] sm:$0xf] }
 0xf2e   : > { %6799 = vmatpush.bf16.msra.mxu3 %v11032_v32  ;;  %6812 = vmatpush.bf16.msrb.mxu2 %v11036_v62  ;;  %v10641_v32 = vld [vmem:[#allocation17 + $0x460] sm:$0xf0]  ;;  %v10712_v62 = vor.u32 %v12205_v63, %v10711_v35  ;;  %v12255_v35 = vld [vmem:[#allocation17 + $0x674] sm:$0xf0]  ;;  %v12247_v63 = vld [vmem:[#allocation17 + $0x63c] sm:$0xf] }
 0xf2f   : > { %v12191_v51 = vld [vmem:[#allocation17 + $0x474] sm:$0xf0]  ;;  %v12183_v52 = vld [vmem:[#allocation17 + $0x43c] sm:$0xf] }
 0xf31   : > { %6774 = vmatpush.bf16.msrb.mxu0 %v10960_v20  ;;  %6787 = vmatpush.bf16.msrb.mxu1 %v10964_v21  ;;  %v12302_v20 = vld [vmem:[#allocation17 + $0x7ec] sm:$0xf0]  ;;  %v12294_v21 = vld [vmem:[#allocation17 + $0x7b4] sm:$0xf] }
 0xf32   : > { %6800 = vmatpush.bf16.msra.mxu3 %v10968_v23  ;;  %6813 = vmatpush.bf16.msrb.mxu2 %v10972_v24  ;;  %v10640_v23 = vor.u32 %v12188_v13, %v10639_v7  ;;  %v10644_v24 = vor.u32 %v12180_v60, %v10641_v32  ;;  %v11104_v30 = vor.u32 %v12302_v20, %v11103_v19  ;;  %v12230_v32 = vld [vmem:[#allocation17 + $0x5b4] sm:$0xf]  ;;  %v10783_v20 = vld [vmem:[#allocation17 + $0x530] sm:$0xf] }
 0xf33   : > { %v10920_v13 = vor.u32 %v12255_v35, %v10919_v61  ;;  %v10924_v60 = vor.u32 %v12247_v63, %v10921_v3  ;;  %v12318_v61 = vld [vmem:[#allocation20 + $0x470] sm:$0xff]  ;;  %v12309_v3 = vld [vmem:[#allocation20 + $0x428] sm:$0xff] }
 0xf34   : > { %v12326_v35 = vld [vmem:[#allocation20 + $0x4b0] sm:$0xff] }
 0xf35   : > { %6775 = vmatpush.bf16.msrb.mxu0 %v10896_v31  ;;  %6788 = vmatpush.bf16.msrb.mxu1 %v10900_v33  ;;  %v11108_v31 = vor.u32 %v12294_v21, %v11105_v1  ;;  %v11039_v33 = vld [vmem:[#allocation17 + $0x730] sm:$0xf] }
 0xf36   : > { %6801 = vmatpush.bf16.msra.mxu3 %v10904_v40  ;;  %6814 = vmatpush.bf16.msrb.mxu2 %v10908_v41  ;;  %v11116_v40 = vor.u32 %v12295_v26, %v11113_v27  ;;  %v12278_v41 = vld [vmem:[#allocation17 + $0x734] sm:$0xf]  ;;  %v11040_v12 = vor.u32 %v12286_v36, %v11039_v33  ;;  %v12222_v21 = vld [vmem:[#allocation17 + $0x56c] sm:$0xf0]  ;;  %v12223_v26 = vld [vmem:[#allocation17 + $0x574] sm:$0xf0] }
 0xf37   : > { %6728 = vmatmul.bf16.vlgmr.msra.gmra.mxu0 %v13910_v54  ;;  %6741 = vmatmul.bf16.vlgmr.msra.gmra.mxu1 %v13910_v54  ;;  %v12215_v27 = vld [vmem:[#allocation17 + $0x53c] sm:$0xf]  ;;  %v12206_v33 = vld [vmem:[#allocation17 + $0x4ec] sm:$0xf0]  ;;  %v10792_v36 = vor.u32 %v12223_v26, %v10791_v25 }
 0xf38   : > { %6754 = vmatmul.bf16.vlgmr.msrb.gmra.mxu3 %v13910_v54  ;;  %6767 = vmatmul.bf16.vlgmr.msra.gmra.mxu2 %v13910_v54  ;;  %v12334_v63 = vld [vmem:[#allocation20 + $0x4f0] sm:$0xff]  ;;  %v12343_v25 = vld [vmem:[#allocation20 + $0x538] sm:$0xff] }
 0xf39   : > { %6776 = vmatpush.bf16.msrb.mxu0 %v10832_v43  ;;  %6789 = vmatpush.bf16.msrb.mxu1 %v10836_v44  ;;  %v11044_v43 = vor.u32 %v12278_v41, %v11041_v42  ;;  %v10975_v44 = vld [vmem:[#allocation17 + $0x6b0] sm:$0xf]  ;;  %v10721_v41 = vld [vmem:[#allocation17 + $0x4f0] sm:$0xf0]  ;;  %v10727_v42 = vld [vmem:[#allocation17 + $0x4b8] sm:$0xf] }
 0xf3a   : > { %6802 = vmatpush.bf16.msra.mxu3 %v10840_v48  ;;  %6815 = vmatpush.bf16.msrb.mxu2 %v10844_v49  ;;  %v11052_v48 = vor.u32 %v12279_v37, %v11049_v38  ;;  %v12262_v49 = vld [vmem:[#allocation17 + $0x6b4] sm:$0xf]  ;;  %v10976_v56 = vor.u32 %v12270_v46, %v10975_v44  ;;  %v10729_v37 = vld [vmem:[#allocation17 + $0x4f8] sm:$0xf0]  ;;  %v12190_v44 = vld [vmem:[#allocation17 + $0x46c] sm:$0xf0]  ;;  %v10728_v46 = vor.u32 %v12207_v0, %v10727_v42 }
 0xf3b   : > { %v12351_v26 = vld [vmem:[#allocation20 + $0x578] sm:$0xff]  ;;  %v12357_v42 = vld [vmem:[#allocation20 + $0x5a8] sm:$0xff] }
 0xf3c   : > { %v12365_v0 = vld [vmem:[#allocation20 + $0x5e8] sm:$0xff] }
 0xf3d   : > { %6777 = vmatpush.bf16.msrb.mxu0 %v10768_v16  ;;  %6790 = vmatpush.bf16.msrb.mxu1 %v10772_v57  ;;  %v10980_v16 = vor.u32 %v12262_v49, %v10977_v50  ;;  %v10911_v57 = vld [vmem:[#allocation17 + $0x630] sm:$0xf]  ;;  %v10657_v49 = vld [vmem:[#allocation17 + $0x470] sm:$0xf0]  ;;  %v10663_v50 = vld [vmem:[#allocation17 + $0x438] sm:$0xf] }
 0xf3e   : > { %6803 = vmatpush.bf16.msra.mxu3 %v10776_v6  ;;  %6816 = vmatpush.bf16.msrb.mxu2 %v10780_v2  ;;  %v10988_v6 = vor.u32 %v12263_v5, %v10985_v55  ;;  %v12246_v2 = vld [vmem:[#allocation17 + $0x634] sm:$0xf]  ;;  %v10912_v4 = vor.u32 %v12254_v58, %v10911_v57  ;;  %v10665_v5 = vld [vmem:[#allocation17 + $0x478] sm:$0xf0] }
 0xf3f   : > { %v10916_v7 = vor.u32 %v12246_v2, %v10913_v45  ;;  %v10668_v57 = vor.u32 %v12183_v52, %v10665_v5  ;;  %v12311_v58 = vld [vmem:[#allocation20 + $0x438] sm:$0xff]  ;;  %v12310_v45 = vld [vmem:[#allocation20 + $0x430] sm:$0xff]  ;;  %v12337_v52 = vld [vmem:[#allocation20 + $0x508] sm:$0xff] }
 0xf40   : > { %v12335_v2 = vld [vmem:[#allocation20 + $0x4f8] sm:$0xff]  ;;  %v12345_v5 = vld [vmem:[#allocation20 + $0x548] sm:$0xff] }
 0xf41   : > { %6778 = vmatpush.bf16.msrb.mxu0 %v10704_v8  ;;  %6791 = vmatpush.bf16.msrb.mxu1 %v10708_v9  ;;  %v10847_v8 = vld [vmem:[#allocation17 + $0x5b0] sm:$0xf] }
 0xf42   : > { %6804 = vmatpush.bf16.msra.mxu3 %v10712_v62  ;;  %6817 = vmatpush.bf16.msrb.mxu2 %v10716_v10  ;;  %v12238_v9 = vld [vmem:[#allocation17 + $0x5ec] sm:$0xf0]  ;;  %v10849_v62 = vld [vmem:[#allocation17 + $0x5f0] sm:$0xf0]  ;;  %v10855_v10 = vld [vmem:[#allocation17 + $0x5b8] sm:$0xf] }
 0xf43   : > { %v10848_v17 = vor.u32 %v12238_v9, %v10847_v8  ;;  %v10852_v19 = vor.u32 %v12230_v32, %v10849_v62  ;;  %v10856_v1 = vor.u32 %v12239_v11, %v10855_v10  ;;  %v12333_v8 = vld [vmem:[#allocation20 + $0x4e8] sm:$0xff]  ;;  %v12308_v9 = vld [vmem:[#allocation20 + $0x420] sm:$0xff]  ;;  %v12307_v32 = vld [vmem:[#allocation20 + $0x418] sm:$0xff] }
 0xf44   : > { %v12315_v62 = vld [vmem:[#allocation20 + $0x458] sm:$0xff] }
 0xf45   : > { %6779 = vmatpush.bf16.msrb.mxu0 %v10640_v23  ;;  %6792 = vmatpush.bf16.msrb.mxu1 %v10644_v24  ;;  %v12214_v23 = vld [vmem:[#allocation17 + $0x534] sm:$0xf]  ;;  %v12323_v10 = vld [vmem:[#allocation20 + $0x498] sm:$0xff] }
 0xf46   : > { %6805 = vmatpush.bf16.msra.mxu3 %v10648_v28  ;;  %6818 = vmatpush.bf16.msrb.mxu2 %v10652_v29  ;;  %v10785_v24 = vld [vmem:[#allocation17 + $0x570] sm:$0xf0]  ;;  %v10793_v28 = vld [vmem:[#allocation17 + $0x578] sm:$0xf0]  ;;  %v10784_v29 = vor.u32 %v12222_v21, %v10783_v20  ;;  %v12305_v20 = vld [vmem:[#allocation20 + $0x408] sm:$0xff] }
 0xf47   : > { %v12331_v11 = vld [vmem:[#allocation20 + $0x4d8] sm:$0xff]  ;;  %v12313_v21 = vld [vmem:[#allocation20 + $0x448] sm:$0xff] }
 0xf48   : > { %6780 = vmatmul.bf16.vlgmr.msrb.gmra.mxu0 %v13910_v54  ;;  %6793 = vmatmul.bf16.vlgmr.msrb.gmra.mxu1 %v13910_v54 }
 0xf49   : > { %6824 = vmatpush.bf16.msra.mxu0 %v11104_v30  ;;  %6837 = vmatpush.bf16.msra.mxu1 %v11108_v31  ;;  %v10788_v30 = vor.u32 %v12214_v23, %v10785_v24  ;;  %v10719_v31 = vld [vmem:[#allocation17 + $0x4b0] sm:$0xf]  ;;  %v12304_v23 = vld [vmem:[#allocation20 + $0x400] sm:$0xff] }
 0xf4a   : > { %6850 = vmatpush.bf16.msrb.mxu3 %v11112_v39  ;;  %6863 = vmatpush.bf16.msra.mxu2 %v11116_v40  ;;  %v10796_v39 = vor.u32 %v12215_v27, %v10793_v28  ;;  %v12198_v40 = vld [vmem:[#allocation17 + $0x4b4] sm:$0xf]  ;;  %v10720_v38 = vor.u32 %v12206_v33, %v10719_v31  ;;  %v12312_v24 = vld [vmem:[#allocation20 + $0x440] sm:$0xff] }
 0xf4b   : > { %6806 = vmatmul.bf16.vlgmr.msra.gmra.mxu3 %v13910_v54  ;;  %6819 = vmatmul.bf16.vlgmr.msrb.gmra.mxu2 %v13910_v54  ;;  %v12320_v27 = vld [vmem:[#allocation20 + $0x480] sm:$0xff]  ;;  %v12342_v31 = vld [vmem:[#allocation20 + $0x530] sm:$0xff] }
 0xf4c   : > { %v12328_v28 = vld [vmem:[#allocation20 + $0x4c0] sm:$0xff]  ;;  %v12350_v33 = vld [vmem:[#allocation20 + $0x570] sm:$0xff] }
 0xf4d   : > { %6825 = vmatpush.bf16.msra.mxu0 %v11040_v12  ;;  %6838 = vmatpush.bf16.msra.mxu1 %v11044_v43  ;;  %v10724_v12 = vor.u32 %v12198_v40, %v10721_v41  ;;  %v10655_v43 = vld [vmem:[#allocation17 + $0x430] sm:$0xf]  ;;  %v12341_v40 = vld [vmem:[#allocation20 + $0x528] sm:$0xff] }
 0xf4e   : > { %6851 = vmatpush.bf16.msrb.mxu3 %v11048_v18  ;;  %6864 = vmatpush.bf16.msra.mxu2 %v11052_v48  ;;  %v10732_v18 = vor.u32 %v12199_v34, %v10729_v37  ;;  %v12182_v48 = vld [vmem:[#allocation17 + $0x434] sm:$0xf]  ;;  %v10656_v55 = vor.u32 %v12190_v44, %v10655_v43  ;;  %v12349_v41 = vld [vmem:[#allocation20 + $0x568] sm:$0xff]  ;;  %v12340_v34 = vld [vmem:[#allocation20 + $0x520] sm:$0xff] }
 0xf4f   : > { %v12348_v37 = vld [vmem:[#allocation20 + $0x560] sm:$0xff]  ;;  %v12339_v43 = vld [vmem:[#allocation20 + $0x518] sm:$0xff] }
 0xf50   : > { %v12347_v44 = vld [vmem:[#allocation20 + $0x558] sm:$0xff] }
 0xf51   : > { %6826 = vmatpush.bf16.msra.mxu0 %v10976_v56  ;;  %6839 = vmatpush.bf16.msra.mxu1 %v10980_v16  ;;  %v10660_v56 = vor.u32 %v12182_v48, %v10657_v49  ;;  %v10664_v16 = vor.u32 %v12191_v51, %v10663_v50  ;;  %v12338_v48 = vld [vmem:[#allocation20 + $0x510] sm:$0xff] }
 0xf52   : > { %6852 = vmatpush.bf16.msrb.mxu3 %v10984_v59  ;;  %6865 = vmatpush.bf16.msra.mxu2 %v10988_v6  ;;  %v12319_v59 = vld [vmem:[#allocation20 + $0x478] sm:$0xff]  ;;  %v12346_v49 = vld [vmem:[#allocation20 + $0x550] sm:$0xff] }
 0xf53   : > { %v12327_v6 = vld [vmem:[#allocation20 + $0x4b8] sm:$0xff]  ;;  %v12354_v50 = vld [vmem:[#allocation20 + $0x590] sm:$0xff] }
 0xf54   : > { %v12362_v51 = vld [vmem:[#allocation20 + $0x5d0] sm:$0xff] }
 0xf55   : > { %6827 = vmatpush.bf16.msra.mxu0 %v10912_v4  ;;  %6840 = vmatpush.bf16.msra.mxu1 %v10916_v7  ;;  %v12317_v4 = vld [vmem:[#allocation20 + $0x468] sm:$0xff] }
 0xf56   : > { %6853 = vmatpush.bf16.msrb.mxu3 %v10920_v13  ;;  %6866 = vmatpush.bf16.msra.mxu2 %v10924_v60  ;;  %v12325_v7 = vld [vmem:[#allocation20 + $0x4a8] sm:$0xff]  ;;  %v12316_v13 = vld [vmem:[#allocation20 + $0x460] sm:$0xff] }
 0xf57   : > { %v12324_v60 = vld [vmem:[#allocation20 + $0x4a0] sm:$0xff] }
 0xf59   : > { %6828 = vmatpush.bf16.msra.mxu0 %v10848_v17  ;;  %6841 = vmatpush.bf16.msra.mxu1 %v10852_v19  ;;  %v12322_v17 = vld [vmem:[#allocation20 + $0x490] sm:$0xff] }
 0xf5a   : > { %6854 = vmatpush.bf16.msrb.mxu3 %v10856_v1  ;;  %6867 = vmatpush.bf16.msra.mxu2 %v10860_v22  ;;  %v12330_v19 = vld [vmem:[#allocation20 + $0x4d0] sm:$0xff]  ;;  %v12321_v1 = vld [vmem:[#allocation20 + $0x488] sm:$0xff] }
 0xf5b   : > { %v12329_v22 = vld [vmem:[#allocation20 + $0x4c8] sm:$0xff] }
 0xf5d   : > { %6829 = vmatpush.bf16.msra.mxu0 %v10784_v29  ;;  %6842 = vmatpush.bf16.msra.mxu1 %v10788_v30  ;;  %v12359_v29 = vld [vmem:[#allocation20 + $0x5b8] sm:$0xff] }
 0xf5e   : > { %6855 = vmatpush.bf16.msrb.mxu3 %v10792_v36  ;;  %6868 = vmatpush.bf16.msra.mxu2 %v10796_v39  ;;  %v12367_v30 = vld [vmem:[#allocation20 + $0x5f8] sm:$0xff]  ;;  %v12358_v36 = vld [vmem:[#allocation20 + $0x5b0] sm:$0xff] }
 0xf5f   : > { %v12366_v39 = vld [vmem:[#allocation20 + $0x5f0] sm:$0xff] }
 0xf61   : > { %6830 = vmatpush.bf16.msra.mxu0 %v10720_v38  ;;  %6843 = vmatpush.bf16.msra.mxu1 %v10724_v12  ;;  %v12356_v38 = vld [vmem:[#allocation20 + $0x5a0] sm:$0xff] }
 0xf62   : > { %6856 = vmatpush.bf16.msrb.mxu3 %v10728_v46  ;;  %6869 = vmatpush.bf16.msra.mxu2 %v10732_v18  ;;  %v12364_v12 = vld [vmem:[#allocation20 + $0x5e0] sm:$0xff]  ;;  %v12355_v46 = vld [vmem:[#allocation20 + $0x598] sm:$0xff] }
 0xf63   : > { %v12363_v18 = vld [vmem:[#allocation20 + $0x5d8] sm:$0xff] }
 0xf65   : > { %6831 = vmatpush.bf16.msra.mxu0 %v10656_v55  ;;  %6844 = vmatpush.bf16.msra.mxu1 %v10660_v56  ;;  %v12353_v55 = vld [vmem:[#allocation20 + $0x588] sm:$0xff] }
 0xf66   : > { %6857 = vmatpush.bf16.msrb.mxu3 %v10664_v16  ;;  %6870 = vmatpush.bf16.msra.mxu2 %v10668_v57  ;;  %v12361_v56 = vld [vmem:[#allocation20 + $0x5c8] sm:$0xff]  ;;  %v12336_v16 = vld [vmem:[#allocation20 + $0x500] sm:$0xff] }
 0xf67   : > { %v12344_v57 = vld [vmem:[#allocation20 + $0x540] sm:$0xff] }
 0xf68   : > { %6832 = vmatmul.bf16.vlgmr.msra.gmra.mxu0 %v13910_v54  ;;  %6845 = vmatmul.bf16.vlgmr.msra.gmra.mxu1 %v13910_v54 }
 0xf69   : > { %7933 = vmatpush.bf16.msrb.mxu0 %v12311_v58  ;;  %7946 = vmatpush.bf16.msrb.mxu1 %v12319_v59  ;;  %v12352_v58 = vld [vmem:[#allocation20 + $0x580] sm:$0xff] }
 0xf6a   : > { %6858 = vmatmul.bf16.vlgmr.msrb.gmra.mxu3 %v13910_v54  ;;  %6871 = vmatmul.bf16.vlgmr.msra.gmra.mxu2 %v13910_v54  ;;  %v12332_v54 = vld [vmem:[#allocation20 + $0x4e0] sm:$0xff] }
 0xf6b   : > { %7959 = vmatpush.bf16.msra.mxu3 %v12327_v6  ;;  %7972 = vmatpush.bf16.msrb.mxu2 %v12335_v2  ;;  %v12360_v59 = vld [vmem:[#allocation20 + $0x5c0] sm:$0xff]  ;;  %v13928_v6 = vld [vmem:[#allocation19 + $0x10] sm:$0xff] }
 0xf6c   : > { %v5996_v2 = vperm.slane %v13928_v6, 0 }
 0xf6d   : > { %7934 = vmatpush.bf16.msrb.mxu0 %v12310_v45  ;;  %7947 = vmatpush.bf16.msrb.mxu1 %v12318_v61  ;;  %v5997_v45 = vperm.slane %v13928_v6, 1 }
 0xf6f   : > { %7960 = vmatpush.bf16.msra.mxu3 %v12326_v35  ;;  %7973 = vmatpush.bf16.msrb.mxu2 %v12334_v63 }
 0xf71   : > { %7935 = vmatpush.bf16.msrb.mxu0 %v12309_v3  ;;  %7948 = vmatpush.bf16.msrb.mxu1 %v12317_v4 }
 0xf73   : > { %7961 = vmatpush.bf16.msra.mxu3 %v12325_v7  ;;  %7974 = vmatpush.bf16.msrb.mxu2 %v12333_v8  ;;  %v5998_v8 = vperm.slane %v13928_v6, 2 }
 0xf75   : > { %7936 = vmatpush.bf16.msrb.mxu0 %v12308_v9  ;;  %7949 = vmatpush.bf16.msrb.mxu1 %v12316_v13  ;;  %v5999_v9 = vperm.slane %v13928_v6, 3  ;;  %v12375_v13 = vld [vmem:[#allocation20 + $0x638] sm:$0xff] }
 0xf77   : > { %7962 = vmatpush.bf16.msra.mxu3 %v12324_v60  ;;  %7975 = vmatpush.bf16.msrb.mxu2 %v12332_v54  ;;  %v12383_v60 = vld [vmem:[#allocation20 + $0x678] sm:$0xff] }
 0xf79   : > { %7937 = vmatpush.bf16.msrb.mxu0 %v12307_v32  ;;  %7950 = vmatpush.bf16.msrb.mxu1 %v12315_v62 }
 0xf7b   : > { %7963 = vmatpush.bf16.msra.mxu3 %v12323_v10  ;;  %7976 = vmatpush.bf16.msrb.mxu2 %v12331_v11 }
 0xf7d   : > { %7938 = vmatpush.bf16.msrb.mxu0 %v12306_v14  ;;  %7951 = vmatpush.bf16.msrb.mxu1 %v12314_v15 }
 0xf7f   : > { %7964 = vmatpush.bf16.msra.mxu3 %v12322_v17  ;;  %7977 = vmatpush.bf16.msrb.mxu2 %v12330_v19  ;;  %v12374_v19 = vld [vmem:[#allocation20 + $0x630] sm:$0xff] }
 0xf81   : > { %7939 = vmatpush.bf16.msrb.mxu0 %v12305_v20  ;;  %7952 = vmatpush.bf16.msrb.mxu1 %v12313_v21  ;;  %v12382_v20 = vld [vmem:[#allocation20 + $0x670] sm:$0xff] }
 0xf83   : > { %7965 = vmatpush.bf16.msra.mxu3 %v12321_v1  ;;  %7978 = vmatpush.bf16.msrb.mxu2 %v12329_v22  ;;  %v12391_v22 = vld [vmem:[#allocation20 + $0x6b8] sm:$0xff] }
 0xf85   : > { %7940 = vmatpush.bf16.msrb.mxu0 %v12304_v23  ;;  %7953 = vmatpush.bf16.msrb.mxu1 %v12312_v24  ;;  %v12399_v23 = vld [vmem:[#allocation20 + $0x6f8] sm:$0xff] }
 0xf87   : > { %7966 = vmatpush.bf16.msra.mxu3 %v12320_v27  ;;  %7979 = vmatpush.bf16.msrb.mxu2 %v12328_v28  ;;  %v12381_v27 = vld [vmem:[#allocation20 + $0x668] sm:$0xff]  ;;  %v6000_v28 = vperm.slane %v13928_v6, 4 }
 0xf89   : > { %7985 = vmatpush.bf16.msra.mxu0 %v12343_v25  ;;  %7998 = vmatpush.bf16.msra.mxu1 %v12351_v26  ;;  %v12373_v26 = vld [vmem:[#allocation20 + $0x628] sm:$0xff] }
 0xf8b   : > { %8011 = vmatpush.bf16.msrb.mxu3 %v12359_v29  ;;  %8024 = vmatpush.bf16.msra.mxu2 %v12367_v30  ;;  %v6001_v29 = vperm.slane %v13928_v6, 5 }
 0xf8d   : > { %7986 = vmatpush.bf16.msra.mxu0 %v12342_v31  ;;  %7999 = vmatpush.bf16.msra.mxu1 %v12350_v33  ;;  %v12390_v33 = vld [vmem:[#allocation20 + $0x6b0] sm:$0xff] }
 0xf8f   : > { %8012 = vmatpush.bf16.msrb.mxu3 %v12358_v36  ;;  %8025 = vmatpush.bf16.msra.mxu2 %v12366_v39  ;;  %v12398_v36 = vld [vmem:[#allocation20 + $0x6f0] sm:$0xff] }
 0xf91   : > { %7987 = vmatpush.bf16.msra.mxu0 %v12341_v40  ;;  %8000 = vmatpush.bf16.msra.mxu1 %v12349_v41  ;;  %v12372_v41 = vld [vmem:[#allocation20 + $0x620] sm:$0xff] }
 0xf93   : > { %8013 = vmatpush.bf16.msrb.mxu3 %v12357_v42  ;;  %8026 = vmatpush.bf16.msra.mxu2 %v12365_v0  ;;  %v12380_v42 = vld [vmem:[#allocation20 + $0x660] sm:$0xff] }
 0xf95   : > { %7988 = vmatpush.bf16.msra.mxu0 %v12340_v34  ;;  %8001 = vmatpush.bf16.msra.mxu1 %v12348_v37 }
 0xf97   : > { %8014 = vmatpush.bf16.msrb.mxu3 %v12356_v38  ;;  %8027 = vmatpush.bf16.msra.mxu2 %v12364_v12  ;;  %v12389_v12 = vld [vmem:[#allocation20 + $0x6a8] sm:$0xff] }
 0xf99   : > { %7989 = vmatpush.bf16.msra.mxu0 %v12339_v43  ;;  %8002 = vmatpush.bf16.msra.mxu1 %v12347_v44  ;;  %v12397_v43 = vld [vmem:[#allocation20 + $0x6e8] sm:$0xff]  ;;  %v6002_v44 = vperm.slane %v13928_v6, 6 }
 0xf9b   : > { %8015 = vmatpush.bf16.msrb.mxu3 %v12355_v46  ;;  %8028 = vmatpush.bf16.msra.mxu2 %v12363_v18  ;;  %v6003_v46 = vperm.slane %v13928_v6, 7  ;;  %v12378_v6 = vld [vmem:[#allocation20 + $0x650] sm:$0xff] }
 0xf9d   : > { %7990 = vmatpush.bf16.msra.mxu0 %v12338_v48  ;;  %8003 = vmatpush.bf16.msra.mxu1 %v12346_v49  ;;  %v12371_v49 = vld [vmem:[#allocation20 + $0x618] sm:$0xff] }
 0xf9f   : > { %8016 = vmatpush.bf16.msrb.mxu3 %v12354_v50  ;;  %8029 = vmatpush.bf16.msra.mxu2 %v12362_v51  ;;  %v12379_v50 = vld [vmem:[#allocation20 + $0x658] sm:$0xff] }
 0xfa1   : > { %7991 = vmatpush.bf16.msra.mxu0 %v12337_v52  ;;  %8004 = vmatpush.bf16.msra.mxu1 %v12345_v5  ;;  %v12388_v5 = vld [vmem:[#allocation20 + $0x6a0] sm:$0xff] }
 0xfa3   : > { %8017 = vmatpush.bf16.msrb.mxu3 %v12353_v55  ;;  %8030 = vmatpush.bf16.msra.mxu2 %v12361_v56  ;;  %v12396_v55 = vld [vmem:[#allocation20 + $0x6e0] sm:$0xff] }
 0xfa4   : > { %v6677_v61 = vpop.f32.mrf.mxu0  ;;  %v6690_v35 = vpop.f32.mrf.mxu1 }
 0xfa5   : > { %7992 = vmatpush.bf16.msra.mxu0 %v12336_v16  ;;  %8005 = vmatpush.bf16.msra.mxu1 %v12344_v57  ;;  %v6678_v63 = vadd.f32 %v6677_v61, %v5996_v2  ;;  %v6691_v3 = vadd.f32 %v6690_v35, %v5997_v45  ;;  %v12387_v61 = vld [vmem:[#allocation20 + $0x698] sm:$0xff] }
 0xfa6   : > { %v12395_v35 = vld [vmem:[#allocation20 + $0x6d8] sm:$0xff] }
 0xfa7   : > { %8018 = vmatpush.bf16.msrb.mxu3 %v12352_v58  ;;  %8031 = vmatpush.bf16.msra.mxu2 %v12360_v59  ;;  %v6876_v4 = vmax.f32 %v6678_v63, 0.0  ;;  %v6877_v7 = vmax.f32 %v6691_v3, 0.0  ;;  %v12370_v59 = vld [vmem:[#allocation20 + $0x610] sm:$0xff] }
 0xfa9   : > { %v6892_v54 = vpack.c.bf16 %v6876_v4, %v6876_v4  ;;  %v6893_v32 = vpack.c.bf16 %v6877_v7, %v6877_v7  ;;  %v13938_v4 = vld [vmem:[#allocation19 + $0x18] sm:$0xff]  ;;  %v12369_v7 = vld [vmem:[#allocation20 + $0x608] sm:$0xff] }
 0xfab   : > { %v6703_v62 = vpop.f32.mrf.mxu3  ;;  %v6716_v10 = vpop.f32.mrf.mxu2  ;;  %7941 = vmatmul.bf16.vlgmr.msrb.gmra.mxu0 %v6892_v54  ;;  %7954 = vmatmul.bf16.vlgmr.msrb.gmra.mxu1 %v6893_v32  ;;  %v6005_v54 = vperm.slane %v13938_v4, 1  ;;  %v12386_v32 = vld [vmem:[#allocation20 + $0x690] sm:$0xff] }
 0xfac   : > { %v6704_v11 = vadd.f32 %v6703_v62, %v5998_v8  ;;  %v6717_v14 = vadd.f32 %v6716_v10, %v5999_v9  ;;  %8037 = vmatpush.bf16.msrb.mxu0 %v12375_v13  ;;  %8050 = vmatpush.bf16.msrb.mxu1 %v12383_v60  ;;  %v6679_v15 = vpop.f32.mrf.mxu0  ;;  %v6692_v17 = vpop.f32.mrf.mxu1  ;;  %v12377_v8 = vld [vmem:[#allocation20 + $0x648] sm:$0xff]  ;;  %v6004_v60 = vperm.slane %v13938_v4, 0  ;;  %v12394_v62 = vld [vmem:[#allocation20 + $0x6d0] sm:$0xff]  ;;  %v12368_v10 = vld [vmem:[#allocation20 + $0x600] sm:$0xff] }
 0xfad   : > { %v12407_v17 = vld [vmem:[#allocation20 + $0x738] sm:$0xff] }
 0xfae   : > { %v6878_v21 = vmax.f32 %v6704_v11, 0.0  ;;  %v6879_v1 = vmax.f32 %v6717_v14, 0.0  ;;  %v12376_v11 = vld [vmem:[#allocation20 + $0x640] sm:$0xff] }
 0xfb0   : > { %v6894_v24 = vpack.c.bf16 %v6878_v21, %v6878_v21  ;;  %v6895_v25 = vpack.c.bf16 %v6879_v1, %v6879_v1  ;;  %8038 = vmatpush.bf16.msrb.mxu0 %v12374_v19  ;;  %8051 = vmatpush.bf16.msrb.mxu1 %v12382_v20  ;;  %v12415_v19 = vld [vmem:[#allocation20 + $0x778] sm:$0xff]  ;;  %v12385_v1 = vld [vmem:[#allocation20 + $0x688] sm:$0xff] }
 0xfb2   : > { %7967 = vmatmul.bf16.vlgmr.msra.gmra.mxu3 %v6894_v24  ;;  %7980 = vmatmul.bf16.vlgmr.msrb.gmra.mxu2 %v6895_v25  ;;  %v6006_v25 = vperm.slane %v13938_v4, 2 }
 0xfb3   : > { %8063 = vmatpush.bf16.msra.mxu3 %v12391_v22  ;;  %8076 = vmatpush.bf16.msrb.mxu2 %v12399_v23  ;;  %v6705_v30 = vpop.f32.mrf.mxu3  ;;  %v6718_v31 = vpop.f32.mrf.mxu2  ;;  %v12393_v22 = vld [vmem:[#allocation20 + $0x6c8] sm:$0xff] }
 0xfb4   : > { %8039 = vmatpush.bf16.msrb.mxu0 %v12373_v26  ;;  %8052 = vmatpush.bf16.msrb.mxu1 %v12381_v27  ;;  %v6729_v39 = vpop.f32.mrf.mxu0  ;;  %v6742_v40 = vpop.f32.mrf.mxu1  ;;  %v6007_v26 = vperm.slane %v13938_v4, 3  ;;  %v12406_v27 = vld [vmem:[#allocation20 + $0x730] sm:$0xff]  ;;  %v12384_v31 = vld [vmem:[#allocation20 + $0x680] sm:$0xff] }
 0xfb5   : > { %v6730_v0 = vadd.f32 %v6729_v39, %v6000_v28  ;;  %v6743_v34 = vadd.f32 %v6742_v40, %v6001_v29  ;;  %v12414_v28 = vld [vmem:[#allocation20 + $0x770] sm:$0xff]  ;;  %v12431_v39 = vld [vmem:[#allocation20 + $0x7f8] sm:$0xff] }
 0xfb7   : > { %v6880_v37 = vmax.f32 %v6730_v0, 0.0  ;;  %v6881_v38 = vmax.f32 %v6743_v34, 0.0  ;;  %8064 = vmatpush.bf16.msra.mxu3 %v12390_v33  ;;  %8077 = vmatpush.bf16.msrb.mxu2 %v12398_v36  ;;  %v12392_v33 = vld [vmem:[#allocation20 + $0x6c0] sm:$0xff]  ;;  %v12423_v36 = vld [vmem:[#allocation20 + $0x7b8] sm:$0xff] }
 0xfb8   : > { %8040 = vmatpush.bf16.msrb.mxu0 %v12372_v41  ;;  %8053 = vmatpush.bf16.msrb.mxu1 %v12380_v42 }
 0xfb9   : > { %v6896_v18 = vpack.c.bf16 %v6880_v37, %v6880_v37  ;;  %v6897_v48 = vpack.c.bf16 %v6881_v38, %v6881_v38  ;;  %v12405_v38 = vld [vmem:[#allocation20 + $0x728] sm:$0xff] }
 0xfbb   : > { %8065 = vmatpush.bf16.msra.mxu3 %v12389_v12  ;;  %8078 = vmatpush.bf16.msrb.mxu2 %v12397_v43  ;;  %v6755_v51 = vpop.f32.mrf.mxu3  ;;  %v6768_v52 = vpop.f32.mrf.mxu2  ;;  %v12413_v12 = vld [vmem:[#allocation20 + $0x768] sm:$0xff] }
 0xfbc   : > { %v6756_v56 = vadd.f32 %v6755_v51, %v6002_v44  ;;  %v6769_v16 = vadd.f32 %v6768_v52, %v6003_v46  ;;  %7993 = vmatmul.bf16.vlgmr.msra.gmra.mxu0 %v6896_v18  ;;  %8006 = vmatmul.bf16.vlgmr.msra.gmra.mxu1 %v6897_v48  ;;  %v6731_v57 = vpop.f32.mrf.mxu0  ;;  %v6744_v58 = vpop.f32.mrf.mxu1  ;;  %v12422_v46 = vld [vmem:[#allocation20 + $0x7b0] sm:$0xff]  ;;  %v12412_v51 = vld [vmem:[#allocation20 + $0x760] sm:$0xff] }
 0xfbd   : > { %8041 = vmatpush.bf16.msrb.mxu0 %v12371_v49  ;;  %8054 = vmatpush.bf16.msrb.mxu1 %v12379_v50  ;;  %v12430_v18 = vld [vmem:[#allocation20 + $0x7f0] sm:$0xff]  ;;  %v12404_v50 = vld [vmem:[#allocation20 + $0x720] sm:$0xff]  ;;  %v12411_v57 = vld [vmem:[#allocation20 + $0x758] sm:$0xff] }
 0xfbe   : > { %v6882_v2 = vmax.f32 %v6756_v56, 0.0  ;;  %v6883_v45 = vmax.f32 %v6769_v16, 0.0  ;;  %v12429_v56 = vld [vmem:[#allocation20 + $0x7e8] sm:$0xff]  ;;  %v12403_v16 = vld [vmem:[#allocation20 + $0x718] sm:$0xff]  ;;  %v12420_v58 = vld [vmem:[#allocation20 + $0x7a0] sm:$0xff] }
 0xfbf   : > { %8066 = vmatpush.bf16.msra.mxu3 %v12388_v5  ;;  %8079 = vmatpush.bf16.msrb.mxu2 %v12396_v55  ;;  %v12421_v55 = vld [vmem:[#allocation20 + $0x7a8] sm:$0xff] }
 0xfc0   : > { %v6898_v63 = vpack.c.bf16 %v6882_v2, %v6882_v2  ;;  %v6899_v3 = vpack.c.bf16 %v6883_v45, %v6883_v45  ;;  %v12410_v2 = vld [vmem:[#allocation20 + $0x750] sm:$0xff]  ;;  %v12419_v45 = vld [vmem:[#allocation20 + $0x798] sm:$0xff] }
 0xfc1   : > { %8042 = vmatpush.bf16.msrb.mxu0 %v12370_v59  ;;  %8055 = vmatpush.bf16.msrb.mxu1 %v12378_v6  ;;  %v12428_v59 = vld [vmem:[#allocation20 + $0x7e0] sm:$0xff]  ;;  %v12402_v6 = vld [vmem:[#allocation20 + $0x710] sm:$0xff] }
 0xfc2   : > { %8019 = vmatmul.bf16.vlgmr.msrb.gmra.mxu3 %v6898_v63  ;;  %8032 = vmatmul.bf16.vlgmr.msra.gmra.mxu2 %v6899_v3  ;;  %v12409_v63 = vld [vmem:[#allocation20 + $0x748] sm:$0xff]  ;;  %v6008_v3 = vperm.slane %v13938_v4, 4 }
 0xfc3   : > { %8067 = vmatpush.bf16.msra.mxu3 %v12387_v61  ;;  %8080 = vmatpush.bf16.msrb.mxu2 %v12395_v35  ;;  %v6757_v9 = vpop.f32.mrf.mxu3  ;;  %v6770_v13 = vpop.f32.mrf.mxu2  ;;  %v12427_v61 = vld [vmem:[#allocation20 + $0x7d8] sm:$0xff]  ;;  %v12401_v35 = vld [vmem:[#allocation20 + $0x708] sm:$0xff] }
 0xfc4   : > { %v12426_v9 = vld [vmem:[#allocation20 + $0x7d0] sm:$0xff]  ;;  %v12400_v13 = vld [vmem:[#allocation20 + $0x700] sm:$0xff] }
 0xfc5   : > { %8043 = vmatpush.bf16.msrb.mxu0 %v12369_v7  ;;  %8056 = vmatpush.bf16.msrb.mxu1 %v12377_v8  ;;  %v6781_v14 = vpop.f32.mrf.mxu0  ;;  %v6794_v15 = vpop.f32.mrf.mxu1  ;;  %v6009_v7 = vperm.slane %v13938_v4, 5  ;;  %v12418_v8 = vld [vmem:[#allocation20 + $0x790] sm:$0xff] }
 0xfc6   : > { %v6782_v20 = vadd.f32 %v6781_v14, %v6004_v60  ;;  %v6795_v21 = vadd.f32 %v6794_v15, %v6005_v54  ;;  %v12408_v60 = vld [vmem:[#allocation20 + $0x740] sm:$0xff]  ;;  %v12425_v14 = vld [vmem:[#allocation20 + $0x7c8] sm:$0xff] }
 0xfc7   : > { %8068 = vmatpush.bf16.msra.mxu3 %v12386_v32  ;;  %8081 = vmatpush.bf16.msrb.mxu2 %v12394_v62 }
 0xfc8   : > { %v6884_v23 = vmax.f32 %v6782_v20, 0.0  ;;  %v6885_v24 = vmax.f32 %v6795_v21, 0.0  ;;  %v6011_v20 = vperm.slane %v13938_v4, 7 }
 0xfc9   : > { %8044 = vmatpush.bf16.msrb.mxu0 %v12368_v10  ;;  %8057 = vmatpush.bf16.msrb.mxu1 %v12376_v11  ;;  %v12417_v11 = vld [vmem:[#allocation20 + $0x788] sm:$0xff] }
 0xfca   : > { %v6900_v29 = vpack.c.bf16 %v6884_v23, %v6884_v23  ;;  %v6901_v30 = vpack.c.bf16 %v6885_v24, %v6885_v24  ;;  %v12424_v23 = vld [vmem:[#allocation20 + $0x7c0] sm:$0xff] }
 0xfcb   : > { %8069 = vmatpush.bf16.msra.mxu3 %v12385_v1  ;;  %8082 = vmatpush.bf16.msrb.mxu2 %v12393_v22  ;;  %v12416_v22 = vld [vmem:[#allocation20 + $0x780] sm:$0xff] }
 0xfcc   : > { %8045 = vmatmul.bf16.vlgmr.msrb.gmra.mxu0 %v6900_v29  ;;  %8058 = vmatmul.bf16.vlgmr.msrb.gmra.mxu1 %v6901_v30 }
 0xfcd   : > { %8089 = vmatpush.bf16.msra.mxu0 %v12407_v17  ;;  %8102 = vmatpush.bf16.msra.mxu1 %v12415_v19  ;;  %v6783_v34 = vpop.f32.mrf.mxu0  ;;  %v6796_v37 = vpop.f32.mrf.mxu1  ;;  %v6010_v19 = vperm.slane %v13938_v4, 6 }
 0xfce   : > { %v6807_v40 = vpop.f32.mrf.mxu3  ;;  %v6820_v41 = vpop.f32.mrf.mxu2 }
 0xfcf   : > { %v6808_v42 = vadd.f32 %v6807_v40, %v6006_v25  ;;  %v6821_v0 = vadd.f32 %v6820_v41, %v6007_v26  ;;  %8070 = vmatpush.bf16.msra.mxu3 %v12384_v31  ;;  %8083 = vmatpush.bf16.msrb.mxu2 %v12392_v33 }
 0xfd1   : > { %8090 = vmatpush.bf16.msra.mxu0 %v12406_v27  ;;  %8103 = vmatpush.bf16.msra.mxu1 %v12414_v28  ;;  %v6886_v43 = vmax.f32 %v6808_v42, 0.0  ;;  %v6887_v44 = vmax.f32 %v6821_v0, 0.0 }
 0xfd3   : > { %8115 = vmatpush.bf16.msrb.mxu3 %v12423_v36  ;;  %8128 = vmatpush.bf16.msra.mxu2 %v12431_v39  ;;  %v6902_v48 = vpack.c.bf16 %v6886_v43, %v6886_v43  ;;  %v6903_v49 = vpack.c.bf16 %v6887_v44, %v6887_v44 }
 0xfd5   : > { %8091 = vmatpush.bf16.msra.mxu0 %v12405_v38  ;;  %8104 = vmatpush.bf16.msra.mxu1 %v12413_v12 }
 0xfd6   : > { %8071 = vmatmul.bf16.vlgmr.msra.gmra.mxu3 %v6902_v48  ;;  %8084 = vmatmul.bf16.vlgmr.msrb.gmra.mxu2 %v6903_v49  ;;  %v6809_v52 = vpop.f32.mrf.mxu3  ;;  %v6822_v5 = vpop.f32.mrf.mxu2 }
 0xfd7   : > { %8116 = vmatpush.bf16.msrb.mxu3 %v12422_v46  ;;  %8129 = vmatpush.bf16.msra.mxu2 %v12430_v18 }
 0xfd9   : > { %8092 = vmatpush.bf16.msra.mxu0 %v12404_v50  ;;  %8105 = vmatpush.bf16.msra.mxu1 %v12412_v51 }
 0xfdb   : > { %8117 = vmatpush.bf16.msrb.mxu3 %v12421_v55  ;;  %8130 = vmatpush.bf16.msra.mxu2 %v12429_v56 }
 0xfdd   : > { %8093 = vmatpush.bf16.msra.mxu0 %v12403_v16  ;;  %8106 = vmatpush.bf16.msra.mxu1 %v12411_v57 }
 0xfdf   : > { %8118 = vmatpush.bf16.msrb.mxu3 %v12420_v58  ;;  %8131 = vmatpush.bf16.msra.mxu2 %v12428_v59 }
 0xfe1   : > { %8094 = vmatpush.bf16.msra.mxu0 %v12402_v6  ;;  %8107 = vmatpush.bf16.msra.mxu1 %v12410_v2 }
 0xfe3   : > { %8119 = vmatpush.bf16.msrb.mxu3 %v12419_v45  ;;  %8132 = vmatpush.bf16.msra.mxu2 %v12427_v61 }
 0xfe5   : > { %8095 = vmatpush.bf16.msra.mxu0 %v12401_v35  ;;  %8108 = vmatpush.bf16.msra.mxu1 %v12409_v63  ;;  %v6833_v54 = vpop.f32.mrf.mxu0  ;;  %v6846_v32 = vpop.f32.mrf.mxu1 }
 0xfe6   : > { %v6834_v62 = vadd.f32 %v6833_v54, %v6008_v3  ;;  %v6847_v10 = vadd.f32 %v6846_v32, %v6009_v7 }
 0xfe7   : > { %8120 = vmatpush.bf16.msrb.mxu3 %v12418_v8  ;;  %8133 = vmatpush.bf16.msra.mxu2 %v12426_v9 }
 0xfe8   : > { %v6888_v15 = vmax.f32 %v6834_v62, 0.0  ;;  %v6889_v17 = vmax.f32 %v6847_v10, 0.0 }
 0xfe9   : > { %8096 = vmatpush.bf16.msra.mxu0 %v12400_v13  ;;  %8109 = vmatpush.bf16.msra.mxu1 %v12408_v60 }
 0xfea   : > { %v6904_v21 = vpack.c.bf16 %v6888_v15, %v6888_v15  ;;  %v6905_v1 = vpack.c.bf16 %v6889_v17, %v6889_v17 }
 0xfeb   : > { %8121 = vmatpush.bf16.msrb.mxu3 %v12417_v11  ;;  %8134 = vmatpush.bf16.msra.mxu2 %v12425_v14 }
 0xfec   : > { %8097 = vmatmul.bf16.vlgmr.msra.gmra.mxu0 %v6904_v21  ;;  %8110 = vmatmul.bf16.vlgmr.msra.gmra.mxu1 %v6905_v1 }
 0xfed   : > { %v6859_v24 = vpop.f32.mrf.mxu3  ;;  %v6872_v25 = vpop.f32.mrf.mxu2 }
 0xfee   : > { %v6860_v26 = vadd.f32 %v6859_v24, %v6010_v19  ;;  %v6873_v27 = vadd.f32 %v6872_v25, %v6011_v20  ;;  %v6835_v28 = vpop.f32.mrf.mxu0  ;;  %v6848_v29 = vpop.f32.mrf.mxu1  ;;  %v12669_v20 = vld [vmem:[#allocation22 + $0x1] ss:$0 sm:$0xff] }
 0xfef   : > { %8122 = vmatpush.bf16.msrb.mxu3 %v12416_v22  ;;  %8135 = vmatpush.bf16.msra.mxu2 %v12424_v23  ;;  %v12439_v28 = vld [vmem:[#allocation26 + $0x38] sm:$0xff]  ;;  %v12438_v29 = vld [vmem:[#allocation26 + $0x30] sm:$0xff] }
 0xff0   : > { %v6890_v30 = vmax.f32 %v6860_v26, 0.0  ;;  %v6891_v31 = vmax.f32 %v6873_v27, 0.0  ;;  %8251 = vmatpush.bf16.msrb.mxu0 %v12439_v28 }
 0xff2   : > { %v6906_v33 = vpack.c.bf16 %v6890_v30, %v6890_v30  ;;  %v6907_v4 = vpack.c.bf16 %v6891_v31, %v6891_v31  ;;  %v12437_v30 = vld [vmem:[#allocation26 + $0x28] sm:$0xff]  ;;  %v12436_v31 = vld [vmem:[#allocation26 + $0x20] sm:$0xff] }
 0xff4   : > { %8123 = vmatmul.bf16.vlgmr.msrb.gmra.mxu3 %v6906_v33  ;;  %8136 = vmatmul.bf16.vlgmr.msra.gmra.mxu2 %v6907_v4  ;;  %v12435_v33 = vld [vmem:[#allocation26 + $0x18] sm:$0xff]  ;;  %v12433_v4 = vld [vmem:[#allocation26 + $0x8] sm:$0xff] }
 0xff5   : > { %v6861_v36 = vpop.f32.mrf.mxu3  ;;  %v6874_v39 = vpop.f32.mrf.mxu2  ;;  %8252 = vmatpush.bf16.msrb.mxu0 %v12438_v29 }
 0xff6   : > { %v12432_v36 = vld [vmem:[#allocation26] sm:$0xff] }
 0xff9   : > { %8253 = vmatpush.bf16.msrb.mxu0 %v12437_v30 }
 0xffd   : > { %8254 = vmatpush.bf16.msrb.mxu0 %v12436_v31 }
0x1001   : > { %8255 = vmatpush.bf16.msrb.mxu0 %v12435_v33 }
0x1028   : > { %v7942_v40 = vpop.f32.mrf.mxu0  ;;  %v7955_v41 = vpop.f32.mrf.mxu1 }
0x1029   : > { %v7956_v52 = vadd.f32 %v7955_v41, %v7942_v40 }
0x1030   : > { %v7944_v42 = vpop.f32.mrf.mxu0  ;;  %v7957_v0 = vpop.f32.mrf.mxu1 }
0x1035   : > { %v7968_v34 = vpop.f32.mrf.mxu3  ;;  %v7981_v37 = vpop.f32.mrf.mxu2 }
0x1036   : > { %v7969_v5 = vadd.f32 %v7968_v34, %v7956_v52  ;;  %v8197_v52 = vld [vmem:[#allocation28] sm:$0x1] }
0x1038   : > { %v7982_v16 = vadd.f32 %v7981_v37, %v7969_v5 }
0x1039   : > { %v7994_v38 = vpop.f32.mrf.mxu0  ;;  %v8007_v12 = vpop.f32.mrf.mxu1 }
0x103a   : > { %v7995_v59 = vadd.f32 %v7994_v38, %v7982_v16 }
0x103c   : > { %v8008_v45 = vadd.f32 %v8007_v12, %v7995_v59 }
0x103d   : > { %v7970_v43 = vpop.f32.mrf.mxu3  ;;  %v7983_v44 = vpop.f32.mrf.mxu2 }
0x103e   : > { %v12670_v43 = vld [vmem:[#allocation23 + $0x1] ss:$0 sm:$0xff] }
0x1041   : > { %v7996_v46 = vpop.f32.mrf.mxu0  ;;  %v8009_v18 = vpop.f32.mrf.mxu1 }
0x1042   : > { %v12671_v18 = vld [vmem:[#allocation25 + $0x1] ss:$0 sm:$0xff] }
0x1045   : > { %v8020_v48 = vpop.f32.mrf.mxu3  ;;  %v8033_v49 = vpop.f32.mrf.mxu2 }
0x1046   : > { %v8021_v61 = vadd.f32 %v8020_v48, %v8008_v45 }
0x1048   : > { %v8034_v35 = vadd.f32 %v8033_v49, %v8021_v61 }
0x1049   : > { %v8046_v50 = vpop.f32.mrf.mxu0  ;;  %v8059_v51 = vpop.f32.mrf.mxu1 }
0x104a   : > { %v8047_v7 = vadd.f32 %v8046_v50, %v8034_v35 }
0x104c   : > { %v8060_v8 = vadd.f32 %v8059_v51, %v8047_v7 }
0x104d   : > { %v8022_v55 = vpop.f32.mrf.mxu3  ;;  %v8035_v56 = vpop.f32.mrf.mxu2 }
0x1051   : > { %v8048_v57 = vpop.f32.mrf.mxu0  ;;  %v8061_v58 = vpop.f32.mrf.mxu1 }
0x1059   : > { %v8072_v6 = vpop.f32.mrf.mxu3  ;;  %v8085_v2 = vpop.f32.mrf.mxu2 }
0x105a   : > { %v8073_v60 = vadd.f32 %v8072_v6, %v8060_v8 }
0x105c   : > { %v8086_v54 = vadd.f32 %v8085_v2, %v8073_v60 }
0x1061   : > { %v8074_v63 = vpop.f32.mrf.mxu3  ;;  %v8087_v3 = vpop.f32.mrf.mxu2 }
0x1069   : > { %v8098_v9 = vpop.f32.mrf.mxu0  ;;  %v8111_v13 = vpop.f32.mrf.mxu1 }
0x106a   : > { %v8099_v32 = vadd.f32 %v8098_v9, %v8086_v54 }
0x106c   : > { %v8112_v11 = vadd.f32 %v8111_v13, %v8099_v32 }
0x1071   : > { %v8100_v62 = vpop.f32.mrf.mxu0  ;;  %v8113_v10 = vpop.f32.mrf.mxu1 }
0x1077   : > { %v8124_v14 = vpop.f32.mrf.mxu3  ;;  %v8137_v15 = vpop.f32.mrf.mxu2 }
0x1078   : > { %v8125_v17 = vadd.f32 %v8124_v14, %v8112_v11 }
0x107a   : > { %v8138_v19 = vadd.f32 %v8137_v15, %v8125_v17 }
0x107c   : > { %v8141_v21 = vadd.f32 %v8138_v19, %v13906_v53  ;;  %v12434_v53 = vld [vmem:[#allocation26 + $0x10] sm:$0xff] }
0x107d   : > { %8256 = vmatpush.bf16.msrb.mxu0 %v12434_v53 }
0x107e   : > { %v8147_v1 = vadd.f32 %v12669_v20, %v8141_v21 }
0x107f   : > { %v8126_v22 = vpop.f32.mrf.mxu3  ;;  %v8139_v23 = vpop.f32.mrf.mxu2 }
0x1080   : > { %8152 = vadd.xlane.f32.xlu1 %v8147_v1 }
0x1081   : > { %8257 = vmatpush.bf16.msrb.mxu0 %v12433_v4 }
0x1085   : > { %8258 = vmatpush.bf16.msrb.mxu0 %v12432_v36 }
0x10f3   : > { %v8153_v24 = vpop.xlane.xlu1 %8152 }
0x10f4   : > { %v8154_v25 = vmul.f32 %v8153_v24, %v13784_v47 }
0x10f6   : > { %v8155_v26 = vsub.f32 %v8147_v1, %v8154_v25 }
0x10f8   : > { %v8156_v27 = vmul.f32 %v8155_v26, %v8155_v26 }
0x10fa   : > { %8157 = vadd.xlane.f32.xlu2 %v8156_v27 }
0x116d   : > { %v8158_v39 = vpop.xlane.xlu2 %8157 }
0x116e   : > { %v8159_v40 = vmul.f32 %v8158_v39, %v13784_v47 }
0x1170   : > { %v8160_v41 = vadd.f32 1e-05, %v8159_v40 }
0x1172   : > { %12712 = vrsqrt.f32 %v8160_v41  ;;  %vm8167_vm14 = vweird.f32 %v8160_v41 }
0x1178   : > { %v12713_v42 = vpop.eup %12712 }
0x1179   : > { %v8162_v0 = vmul.f32 %v12713_v42, %v8160_v41  ;;  %vm8168_vm13 = vweird.f32 %v12713_v42 }
0x117a   : > { %vm8169_vm15 = vmor %vm8167_vm14, %vm8168_vm13 }
0x117b   : > { %v8163_v34 = vmul.f32 %v12713_v42, %v8162_v0 }
0x117d   : > { %v8164_v37 = vmul.f32 0.5, %v8163_v34 }
0x117f   : > { %v8165_v38 = vsub.f32 1.5, %v8164_v37 }
0x1181   : > { %v8166_v12 = vmul.f32 %v12713_v42, %v8165_v38 }
0x1183   : > { %v8170_v44 = vsel %vm8169_vm15, %v12713_v42, %v8166_v12 }
0x1184   : > { %v8171_v46 = vmul.f32 %v8170_v44, %v8155_v26 }
0x1186   : > { %v8175_v48 = vmul.f32 %v12670_v43, %v8171_v46 }
0x1188   : > { %v8179_v47 = vadd.f32 %v12671_v18, %v8175_v48 }
0x118a   : > { %v8180_v49 = vpack.c.bf16 %v8179_v47, %v8179_v47 }
0x118c   : > { %v8199_v50 = vshrl.u32 %v8180_v49, 16 }
0x118e   : > { %v8201_v51 = vrot.slane %v8199_v50, 3 }
0x1190   : > { %8259 = vmatmul.bf16.vlgmr.msrb.gmra.mxu0 %v8201_v51 }
0x120d   : > { %v8260_v5 = vpop.f32.mrf.mxu0 }
0x120e   : > { %v8261_v55 = vadd.f32 %v8260_v5, %v8197_v52 }
0x1210   : > { %8264 = vst [vmem:[%s862_s24] sm:$0x1] %v8261_v55 }
0x1211   : > { %13251 = shalt.err (!%p13248_p10)
}
0x1212   : > { %12506 = dma.vmem_to_hbm [thread:$0]  (%p13625_p4), %s8277_s3, 16, %s8279_s7, %s8266_s0  }
0x1215   : > { %v8262_v56 = vpop.f32.mrf.mxu0 }
0x1216 PF: > { %s14059_s20 = sld [smem:[#allocation40_spill]]  ;;  %p14060_p13 = scmp.ge.s32.totalorder %s13322_s30, 2 }
0x1218   : > { %p12562_p11 = pnand %p14060_p13, %p13629_p6 }
0x121a   : > { %p12563_p0 = pneg %p12562_p11 }
0x121c   : > { %s8290_s2 = sand.u32 1, %s14059_s20  }
0x121d   : > { %s8291_s24 = scalar_lea.sflag [#allocation4], %s8290_s2 }
0x121e   : > { %13305 = dma.done.wait (%p12563_p0), %s8291_s24, 16  }
0x121f   : > { %13307 = vsyncadd (%p12563_p0), %s8291_s24, 4294967280  ;;  %s14061_s27 = sld [smem:[#allocation41_spill]]  ;;  %p39_p2 = scmp.ge.s32.totalorder %s13599_s23, 4  }
0x1220   : > { %s14062_s28 = smov %s13318_s29  ;;  %s14063_s29 = smov %s13610_s18 }
0x1221   : > { %s14064_s30 = smov %s13599_s23  ;;  %41 = sbr.rel (!%p39_p2) target bundleno = 24 (0x18), region = 216 }
0x1226   :  { %8296 = vsyncpa [#allocation3], 1 }
0x1227   :  { %8298 = vsyncpa [#allocation3 + $0x1], 1 }
0x1228   :  { %8299 = vsyncpa [#allocation6], 1 }
0x1229   :  { %8300 = vsyncpa [#allocation9], 1 }
0x122a   :  { %8301 = vsyncpa [#allocation12], 1 }
0x122b   :  { %8302 = vsyncpa [#allocation15], 1 }
0x122c   :  { %8303 = vsyncpa [#allocation18], 1 }
0x122d   :  { %8304 = vsyncpa [#allocation21], 1 }
0x122e   :  { %8305 = vsyncpa [#allocation24], 1 }
0x122f   :  { %8306 = vsyncpa [#allocation27], 1 }
0x1230   :  { %8307 = vsyncpa [#allocation4], 1 }
0x1231   :  { %8309 = vsyncpa [#allocation4 + $0x1], 1 }

</bundles_post_ra>
